<compile_context>
chip_gen: v6e
topology: v6e:2x2x1
jax: 0.10.0
libtpu: 0.0.40
codegen_flags: <defaults>
</compile_context>

<pallas_src>
import jax
import jax.numpy as jnp
from jax.experimental import pallas as pl
from jax.experimental.pallas import tpu as pltpu


# ----------------------------------------------------------------------------
# Fused encoder kernel builder.
#
# Kernel ref layout (all whole-array VMEM, no grid):
#   inputs : ids (T*B,1) i32, emb (Vp,E), h0 (2L,B,H),
#            then per layer: wih (6*C,Dc,H), whh (6,H,H), bi (6,1,H), bn (2,1,H)
#            (leading index = dir*3 + gate, chunk-minor for wih; gate order r,z,n)
#   outputs: out (T*B,H), hn (2L,B,H)
#   scratch: gi (6,T*B,H), and 2 ping-pong pairs of per-direction outputs (T*B,H)
# ----------------------------------------------------------------------------
def _make_encoder_kernel(n_layers, T, B, H, Vp):
    TB = T * B

    def kernel(*refs):
        ids_ref, emb_ref, h0_ref = refs[:3]
        pos = 3
        layer_refs = []
        for _ in range(n_layers):
            layer_refs.append(refs[pos:pos + 4])        # (wih, whh, bi, bn)
            pos += 4
        out_ref = refs[pos]
        hn_ref = refs[pos + 1]
        gi_sc = refs[pos + 2]
        ybufs = ((refs[pos + 3], refs[pos + 4]),        # ping-pong fwd/bwd bufs
                 (refs[pos + 5], refs[pos + 6]))

        # ---- Embedding lookup fused in-kernel: exact one-hot MXU matmul.
        ids = ids_ref[...]                                           # (TB, 1) i32
        col = jax.lax.broadcasted_iota(jnp.int32, (TB, Vp), 1)
        onehot = (col == ids).astype(jnp.float32)                    # (TB, Vp)
        x0 = jnp.dot(onehot, emb_ref[...],
                     preferred_element_type=jnp.float32)             # (TB, E)

        x_chunks = (x0,)
        for l in range(n_layers):
            wih_ref, whh_ref, bi_ref, bn_ref = layer_refs[l]
            C = len(x_chunks)

            # ---- Phase 1: hoisted input projection for ALL timesteps, both
            # directions.  bi already contains b_ih (+ b_hh for r,z gates).
            for d in range(2):
                for g in range(3):
                    k = d * 3 + g
                    acc = jnp.dot(x_chunks[0], wih_ref[k * C + 0],
                                  preferred_element_type=jnp.float32)
                    for c in range(1, C):
                        acc = acc + jnp.dot(x_chunks[c], wih_ref[k * C + c],
                                            preferred_element_type=jnp.float32)
                    gi_sc[k] = acc + bi_ref[k]                       # (TB, H)

            # ---- Phase 2: fused fwd+bwd recurrence, T serial steps.
            yf_ref, yb_ref = ybufs[l % 2]
            wf = [whh_ref[g] for g in range(3)]
            wb = [whh_ref[3 + g] for g in range(3)]
            bnf = jnp.broadcast_to(bn_ref[0], (B, H))    # hoisted out of loop
            bnb = jnp.broadcast_to(bn_ref[1], (B, H))

            def step(t, carry):
                hf, hb = carry
                rowf = pl.multiple_of(t * B, B)
                rowb = pl.multiple_of((T - 1 - t) * B, B)
                gif = [gi_sc[g, pl.ds(rowf, B), :] for g in range(3)]
                gib = [gi_sc[3 + g, pl.ds(rowb, B), :] for g in range(3)]
                # Forward chain (time t).
                ghf_r = jnp.dot(hf, wf[0], preferred_element_type=jnp.float32)
                ghf_z = jnp.dot(hf, wf[1], preferred_element_type=jnp.float32)
                ghf_n = jnp.dot(hf, wf[2], preferred_element_type=jnp.float32) + bnf
                rf = jax.nn.sigmoid(gif[0] + ghf_r)
                zf = jax.nn.sigmoid(gif[1] + ghf_z)
                nf = jnp.tanh(gif[2] + rf * ghf_n)
                hf_new = (1.0 - zf) * nf + zf * hf
                # Backward chain (time T-1-t) — independent of the forward
                # chain, so the scheduler interleaves the two latency chains.
                ghb_r = jnp.dot(hb, wb[0], preferred_element_type=jnp.float32)
                ghb_z = jnp.dot(hb, wb[1], preferred_element_type=jnp.float32)
                ghb_n = jnp.dot(hb, wb[2], preferred_element_type=jnp.float32) + bnb
                rb = jax.nn.sigmoid(gib[0] + ghb_r)
                zb = jax.nn.sigmoid(gib[1] + ghb_z)
                nb = jnp.tanh(gib[2] + rb * ghb_n)
                hb_new = (1.0 - zb) * nb + zb * hb
                yf_ref[pl.ds(rowf, B), :] = hf_new
                yb_ref[pl.ds(rowb, B), :] = hb_new
                return (hf_new, hb_new)

            hf_last, hb_last = jax.lax.fori_loop(
                0, T, step, (h0_ref[2 * l], h0_ref[2 * l + 1]), unroll=True)
            hn_ref[2 * l] = hf_last
            hn_ref[2 * l + 1] = hb_last

            # Next layer consumes fwd/bwd buffers as two K=H chunks (no concat).
            x_chunks = (yf_ref[...], yb_ref[...])

        # ---- Epilogue: outputs = fwd half + bwd half of the last layer.
        yf_ref, yb_ref = ybufs[(n_layers - 1) % 2]
        out_ref[...] = yf_ref[...] + yb_ref[...]

    return kernel


# ----------------------------------------------------------------------------
# Parameter init (deterministic, mirrors Encoder.init_weights):
#   - embedding: normal (nn.Embedding default), rows padded to a multiple of 8
#   - GRU weights: xavier_normal_ on the PyTorch-shaped (3H, D) matrices, then
#     re-laid-out per (direction, gate, chunk) as (Dc, H) right-multiply blocks
#   - biases: 0 (per spec); b_hh_{r,z} are pre-folded into the phase-1 bias,
#     b_hh_n is kept separate (it sits inside the r * (...) term)
# ----------------------------------------------------------------------------
def init_encoder_params(key, input_size, hidden_size, emb_size, n_layers):
    H = hidden_size
    Vp = ((input_size + 7) // 8) * 8
    key, k_emb = jax.random.split(key)
    emb = jax.random.normal(k_emb, (input_size, emb_size), jnp.float32)
    emb = jnp.pad(emb, ((0, Vp - input_size), (0, 0)))
    params = {"embedding": emb}

    def xavier_normal(k, fan_out, fan_in):
        std = (2.0 / (fan_in + fan_out)) ** 0.5
        return std * jax.random.normal(k, (fan_out, fan_in), jnp.float32)

    rnn = []
    for layer in range(n_layers):
        d_in = emb_size if layer == 0 else 2 * H
        C = 1 if layer == 0 else 2
        Dc = d_in // C
        wih_blocks, whh_blocks, bi_blocks, bn_blocks = [], [], [], []
        for _direction in range(2):
            key, k1, k2 = jax.random.split(key, 3)
            w_ih_pt = xavier_normal(k1, 3 * H, d_in)      # (3H, Din), gates [r,z,n]
            w_hh_pt = xavier_normal(k2, 3 * H, H)         # (3H, H)
            b_ih = jnp.zeros((3, H), jnp.float32)         # spec: constant 0
            b_hh = jnp.zeros((3, H), jnp.float32)
            for g in range(3):
                for c in range(C):
                    wih_blocks.append(w_ih_pt[g * H:(g + 1) * H,
                                              c * Dc:(c + 1) * Dc].T)   # (Dc, H)
                whh_blocks.append(w_hh_pt[g * H:(g + 1) * H, :].T)      # (H, H)
                fold = b_hh[g] if g < 2 else jnp.zeros((H,), jnp.float32)
                bi_blocks.append((b_ih[g] + fold)[None, :])             # (1, H)
            bn_blocks.append(b_hh[2][None, :])                          # (1, H)
        rnn.append({
            "wih": jnp.stack(wih_blocks),   # (6*C, Dc, H), idx = (d*3+g)*C + c
            "whh": jnp.stack(whh_blocks),   # (6, H, H),    idx = d*3+g
            "bi":  jnp.stack(bi_blocks),    # (6, 1, H)
            "bn":  jnp.stack(bn_blocks),    # (2, 1, H)
        })
    params["rnn"] = rnn
    return params


# ----------------------------------------------------------------------------
# Encoder forward: one fused pallas_call.
# ----------------------------------------------------------------------------
def encoder_forward(params, input_seqs, hidden=None):
    T, B = input_seqs.shape
    rnn = params["rnn"]
    n_layers = len(rnn)
    H = rnn[0]["whh"].shape[-1]
    emb = params["embedding"]
    Vp = emb.shape[0]

    if hidden is None:
        hidden = jnp.zeros((2 * n_layers, B, H), jnp.float32)

    ids = input_seqs.reshape(T * B, 1).astype(jnp.int32)

    args = [ids, emb, hidden]
    for p in rnn:
        args += [p["wih"], p["whh"], p["bi"], p["bn"]]

    kernel = _make_encoder_kernel(n_layers, T, B, H, Vp)
    out_flat, hidden_out = pl.pallas_call(
        kernel,
        out_shape=(jax.ShapeDtypeStruct((T * B, H), jnp.float32),
                   jax.ShapeDtypeStruct((2 * n_layers, B, H), jnp.float32)),
        scratch_shapes=[pltpu.VMEM((6, T * B, H), jnp.float32),   # gi (reused per layer)
                        pltpu.VMEM((T * B, H), jnp.float32),      # y fwd (ping)
                        pltpu.VMEM((T * B, H), jnp.float32),      # y bwd (ping)
                        pltpu.VMEM((T * B, H), jnp.float32),      # y fwd (pong)
                        pltpu.VMEM((T * B, H), jnp.float32)],     # y bwd (pong)
    )(*args)
    # TODO(synk): nn.GRU inter-layer dropout (p=0.1) is train-only; eval
    # semantics (no dropout) are implemented here.
    return out_flat.reshape(T, B, H), hidden_out


# ----------------------------------------------------------------------------
# Pure-JAX reference (lax.scan GRU) for correctness check.
# ----------------------------------------------------------------------------
def _gru_dir_ref(x, W, whh, bi, bn, h0, reverse):
    xs = x[::-1] if reverse else x

    def step(h, xt):
        gi = [xt @ W[g] + bi[g] for g in range(3)]
        gh = [h @ whh[g] for g in range(3)]
        r = jax.nn.sigmoid(gi[0] + gh[0])
        z = jax.nn.sigmoid(gi[1] + gh[1])
        n = jnp.tanh(gi[2] + r * (gh[2] + bn))
        h_new = (1.0 - z) * n + z * h
        return h_new, h_new

    hT, ys = jax.lax.scan(step, h0, xs)
    if reverse:
        ys = ys[::-1]
    return ys, hT


def encoder_forward_ref(params, input_seqs, hidden=None):
    T, B = input_seqs.shape
    rnn = params["rnn"]
    n_layers = len(rnn)
    H = rnn[0]["whh"].shape[-1]
    emb = params["embedding"][input_seqs]                 # (T, B, E)
    if hidden is None:
        hidden = jnp.zeros((2 * n_layers, B, H), jnp.float32)

    x = emb
    h_finals = []
    for l, p in enumerate(rnn):
        C = p["wih"].shape[0] // 6
        outs = []
        for d in range(2):
            W = [jnp.concatenate([p["wih"][(d * 3 + g) * C + c] for c in range(C)],
                                 axis=0) for g in range(3)]
            whh = [p["whh"][d * 3 + g] for g in range(3)]
            bi = [p["bi"][d * 3 + g] for g in range(3)]
            bn = p["bn"][d]
            o, hn = _gru_dir_ref(x, W, whh, bi, bn, hidden[2 * l + d],
                                 reverse=(d == 1))
            outs.append(o)
            h_finals.append(hn)
        x = jnp.concatenate(outs, axis=-1)
    outputs = x[:, :, :H] + x[:, :, H:]
    return outputs, jnp.stack(h_finals, axis=0)


if __name__ == "__main__":
    # Small, deterministic config.
    INPUT_SIZE = 50   # vocab
    EMB_SIZE = 16
    HIDDEN_SIZE = 32
    N_LAYERS = 2
    SEQ_LEN = 8
    BATCH = 8

    key = jax.random.PRNGKey(0)
    key, k_params, k_inp = jax.random.split(key, 3)
    params = init_encoder_params(k_params, INPUT_SIZE, HIDDEN_SIZE,
                                 EMB_SIZE, N_LAYERS)
    input_seqs = jax.random.randint(k_inp, (SEQ_LEN, BATCH), 0, INPUT_SIZE,
                                    dtype=jnp.int32)

    outputs, hidden = jax.jit(encoder_forward)(params, input_seqs)
    outputs = jax.block_until_ready(outputs)
    hidden = jax.block_until_ready(hidden)

    # Sanity check against pure-JAX reference.
    ref_out, ref_hid = jax.jit(encoder_forward_ref)(params, input_seqs)
    assert outputs.shape == (SEQ_LEN, BATCH, HIDDEN_SIZE)
    assert hidden.shape == (2 * N_LAYERS, BATCH, HIDDEN_SIZE)
    assert jnp.allclose(outputs, ref_out, rtol=1e-3, atol=1e-3)
    assert jnp.allclose(hidden, ref_hid, rtol=1e-3, atol=1e-3)

    print("KERNEL_OK")
</pallas_src>

<mosaic_0001>
module attributes {stable_mosaic.version = 11 : i64} {
  func.func @kernel(%arg0: memref<64x1xi32, #tpu.memory_space<vmem>>, %arg1: memref<56x16xf32, #tpu.memory_space<vmem>>, %arg2: memref<4x8x32xf32, #tpu.memory_space<vmem>>, %arg3: memref<6x16x32xf32, #tpu.memory_space<vmem>>, %arg4: memref<6x32x32xf32, #tpu.memory_space<vmem>>, %arg5: memref<6x1x32xf32, #tpu.memory_space<vmem>>, %arg6: memref<2x1x32xf32, #tpu.memory_space<vmem>>, %arg7: memref<12x32x32xf32, #tpu.memory_space<vmem>>, %arg8: memref<6x32x32xf32, #tpu.memory_space<vmem>>, %arg9: memref<6x1x32xf32, #tpu.memory_space<vmem>>, %arg10: memref<2x1x32xf32, #tpu.memory_space<vmem>>, %arg11: memref<64x32xf32, #tpu.memory_space<vmem>>, %arg12: memref<4x8x32xf32, #tpu.memory_space<vmem>>, %arg13: memref<6x64x32xf32, #tpu.memory_space<vmem>>, %arg14: memref<64x32xf32, #tpu.memory_space<vmem>>, %arg15: memref<64x32xf32, #tpu.memory_space<vmem>>, %arg16: memref<64x32xf32, #tpu.memory_space<vmem>>, %arg17: memref<64x32xf32, #tpu.memory_space<vmem>>) attributes {dimension_semantics = [], scalar_prefetch = 0 : i64, scratch_operands = 5 : i64, tpu.core_type = #tpu.core_type<tc>} {
    %c0 = arith.constant 0 : index
    %c0_0 = arith.constant 0 : index
    %0 = vector.load %arg0[%c0, %c0_0] : memref<64x1xi32, #tpu.memory_space<vmem>>, vector<64x1xi32>
    %1 = tpu.iota {dimensions = array<i32: 1>} : vector<64x56xi32>
    %2 = vector.broadcast %0 : vector<64x1xi32> to vector<64x56xi32>
    %3 = arith.cmpi eq, %1, %2 : vector<64x56xi32>
    %4 = arith.extui %3 : vector<64x56xi1> to vector<64x56xi32>
    %5 = arith.sitofp %4 : vector<64x56xi32> to vector<64x56xf32>
    %c0_1 = arith.constant 0 : index
    %c0_2 = arith.constant 0 : index
    %6 = vector.load %arg1[%c0_1, %c0_2] : memref<56x16xf32, #tpu.memory_space<vmem>>, vector<56x16xf32>
    %cst = arith.constant dense<0.000000e+00> : vector<64x16xf32>
    %7 = tpu.matmul %5, %6, %cst {dimension_numbers = #tpu.dot_dimension_numbers<[1], [0], [0], [1], [0, 0, 1, 1], [], []>} : vector<64x56xf32>, vector<56x16xf32>, vector<64x16xf32> -> vector<64x16xf32>
    %c0_3 = arith.constant 0 : index
    %c0_4 = arith.constant 0 : index
    %c0_5 = arith.constant 0 : index
    %8 = vector.load %arg3[%c0_3, %c0_4, %c0_5] : memref<6x16x32xf32, #tpu.memory_space<vmem>>, vector<1x16x32xf32>
    %9 = vector.shape_cast %8 : vector<1x16x32xf32> to vector<16x32xf32>
    %cst_6 = arith.constant dense<0.000000e+00> : vector<64x32xf32>
    %10 = tpu.matmul %7, %9, %cst_6 {dimension_numbers = #tpu.dot_dimension_numbers<[1], [0], [0], [1], [0, 0, 1, 1], [], []>} : vector<64x16xf32>, vector<16x32xf32>, vector<64x32xf32> -> vector<64x32xf32>
    %c0_7 = arith.constant 0 : index
    %c0_8 = arith.constant 0 : index
    %c0_9 = arith.constant 0 : index
    %11 = vector.load %arg5[%c0_7, %c0_8, %c0_9] : memref<6x1x32xf32, #tpu.memory_space<vmem>>, vector<1x1x32xf32>
    %12 = vector.shape_cast %11 : vector<1x1x32xf32> to vector<1x32xf32>
    %13 = vector.broadcast %12 : vector<1x32xf32> to vector<64x32xf32>
    %14 = arith.addf %10, %13 : vector<64x32xf32>
    %c0_10 = arith.constant 0 : index
    %c0_11 = arith.constant 0 : index
    %c0_12 = arith.constant 0 : index
    %15 = vector.load %arg13[%c0_10, %c0_11, %c0_12] : memref<6x64x32xf32, #tpu.memory_space<vmem>>, vector<1x64x32xf32>
    %16 = vector.shape_cast %15 : vector<1x64x32xf32> to vector<64x32xf32>
    %17 = vector.shape_cast %14 : vector<64x32xf32> to vector<1x64x32xf32>
    tpu.vector_store %arg13[%c0_10, %c0_11, %c0_12], %17 {strides = array<i32>} : memref<6x64x32xf32, #tpu.memory_space<vmem>>, vector<1x64x32xf32>,
    %c1 = arith.constant 1 : index
    %c0_13 = arith.constant 0 : index
    %c0_14 = arith.constant 0 : index
    %18 = vector.load %arg3[%c1, %c0_13, %c0_14] : memref<6x16x32xf32, #tpu.memory_space<vmem>>, vector<1x16x32xf32>
    %19 = vector.shape_cast %18 : vector<1x16x32xf32> to vector<16x32xf32>
    %cst_15 = arith.constant dense<0.000000e+00> : vector<64x32xf32>
    %20 = tpu.matmul %7, %19, %cst_15 {dimension_numbers = #tpu.dot_dimension_numbers<[1], [0], [0], [1], [0, 0, 1, 1], [], []>} : vector<64x16xf32>, vector<16x32xf32>, vector<64x32xf32> -> vector<64x32xf32>
    %c1_16 = arith.constant 1 : index
    %c0_17 = arith.constant 0 : index
    %c0_18 = arith.constant 0 : index
    %21 = vector.load %arg5[%c1_16, %c0_17, %c0_18] : memref<6x1x32xf32, #tpu.memory_space<vmem>>, vector<1x1x32xf32>
    %22 = vector.shape_cast %21 : vector<1x1x32xf32> to vector<1x32xf32>
    %23 = vector.broadcast %22 : vector<1x32xf32> to vector<64x32xf32>
    %24 = arith.addf %20, %23 : vector<64x32xf32>
    %c1_19 = arith.constant 1 : index
    %c0_20 = arith.constant 0 : index
    %c0_21 = arith.constant 0 : index
    %25 = vector.load %arg13[%c1_19, %c0_20, %c0_21] : memref<6x64x32xf32, #tpu.memory_space<vmem>>, vector<1x64x32xf32>
    %26 = vector.shape_cast %25 : vector<1x64x32xf32> to vector<64x32xf32>
    %27 = vector.shape_cast %24 : vector<64x32xf32> to vector<1x64x32xf32>
    tpu.vector_store %arg13[%c1_19, %c0_20, %c0_21], %27 {strides = array<i32>} : memref<6x64x32xf32, #tpu.memory_space<vmem>>, vector<1x64x32xf32>,
    %c2 = arith.constant 2 : index
    %c0_22 = arith.constant 0 : index
    %c0_23 = arith.constant 0 : index
    %28 = vector.load %arg3[%c2, %c0_22, %c0_23] : memref<6x16x32xf32, #tpu.memory_space<vmem>>, vector<1x16x32xf32>
    %29 = vector.shape_cast %28 : vector<1x16x32xf32> to vector<16x32xf32>
    %cst_24 = arith.constant dense<0.000000e+00> : vector<64x32xf32>
    %30 = tpu.matmul %7, %29, %cst_24 {dimension_numbers = #tpu.dot_dimension_numbers<[1], [0], [0], [1], [0, 0, 1, 1], [], []>} : vector<64x16xf32>, vector<16x32xf32>, vector<64x32xf32> -> vector<64x32xf32>
    %c2_25 = arith.constant 2 : index
    %c0_26 = arith.constant 0 : index
    %c0_27 = arith.constant 0 : index
    %31 = vector.load %arg5[%c2_25, %c0_26, %c0_27] : memref<6x1x32xf32, #tpu.memory_space<vmem>>, vector<1x1x32xf32>
    %32 = vector.shape_cast %31 : vector<1x1x32xf32> to vector<1x32xf32>
    %33 = vector.broadcast %32 : vector<1x32xf32> to vector<64x32xf32>
    %34 = arith.addf %30, %33 : vector<64x32xf32>
    %c2_28 = arith.constant 2 : index
    %c0_29 = arith.constant 0 : index
    %c0_30 = arith.constant 0 : index
    %35 = vector.load %arg13[%c2_28, %c0_29, %c0_30] : memref<6x64x32xf32, #tpu.memory_space<vmem>>, vector<1x64x32xf32>
    %36 = vector.shape_cast %35 : vector<1x64x32xf32> to vector<64x32xf32>
    %37 = vector.shape_cast %34 : vector<64x32xf32> to vector<1x64x32xf32>
    tpu.vector_store %arg13[%c2_28, %c0_29, %c0_30], %37 {strides = array<i32>} : memref<6x64x32xf32, #tpu.memory_space<vmem>>, vector<1x64x32xf32>,
    %c3 = arith.constant 3 : index
    %c0_31 = arith.constant 0 : index
    %c0_32 = arith.constant 0 : index
    %38 = vector.load %arg3[%c3, %c0_31, %c0_32] : memref<6x16x32xf32, #tpu.memory_space<vmem>>, vector<1x16x32xf32>
    %39 = vector.shape_cast %38 : vector<1x16x32xf32> to vector<16x32xf32>
    %cst_33 = arith.constant dense<0.000000e+00> : vector<64x32xf32>
    %40 = tpu.matmul %7, %39, %cst_33 {dimension_numbers = #tpu.dot_dimension_numbers<[1], [0], [0], [1], [0, 0, 1, 1], [], []>} : vector<64x16xf32>, vector<16x32xf32>, vector<64x32xf32> -> vector<64x32xf32>
    %c3_34 = arith.constant 3 : index
    %c0_35 = arith.constant 0 : index
    %c0_36 = arith.constant 0 : index
    %41 = vector.load %arg5[%c3_34, %c0_35, %c0_36] : memref<6x1x32xf32, #tpu.memory_space<vmem>>, vector<1x1x32xf32>
    %42 = vector.shape_cast %41 : vector<1x1x32xf32> to vector<1x32xf32>
    %43 = vector.broadcast %42 : vector<1x32xf32> to vector<64x32xf32>
    %44 = arith.addf %40, %43 : vector<64x32xf32>
    %c3_37 = arith.constant 3 : index
    %c0_38 = arith.constant 0 : index
    %c0_39 = arith.constant 0 : index
    %45 = vector.load %arg13[%c3_37, %c0_38, %c0_39] : memref<6x64x32xf32, #tpu.memory_space<vmem>>, vector<1x64x32xf32>
    %46 = vector.shape_cast %45 : vector<1x64x32xf32> to vector<64x32xf32>
    %47 = vector.shape_cast %44 : vector<64x32xf32> to vector<1x64x32xf32>
    tpu.vector_store %arg13[%c3_37, %c0_38, %c0_39], %47 {strides = array<i32>} : memref<6x64x32xf32, #tpu.memory_space<vmem>>, vector<1x64x32xf32>,
    %c4 = arith.constant 4 : index
    %c0_40 = arith.constant 0 : index
    %c0_41 = arith.constant 0 : index
    %48 = vector.load %arg3[%c4, %c0_40, %c0_41] : memref<6x16x32xf32, #tpu.memory_space<vmem>>, vector<1x16x32xf32>
    %49 = vector.shape_cast %48 : vector<1x16x32xf32> to vector<16x32xf32>
    %cst_42 = arith.constant dense<0.000000e+00> : vector<64x32xf32>
    %50 = tpu.matmul %7, %49, %cst_42 {dimension_numbers = #tpu.dot_dimension_numbers<[1], [0], [0], [1], [0, 0, 1, 1], [], []>} : vector<64x16xf32>, vector<16x32xf32>, vector<64x32xf32> -> vector<64x32xf32>
    %c4_43 = arith.constant 4 : index
    %c0_44 = arith.constant 0 : index
    %c0_45 = arith.constant 0 : index
    %51 = vector.load %arg5[%c4_43, %c0_44, %c0_45] : memref<6x1x32xf32, #tpu.memory_space<vmem>>, vector<1x1x32xf32>
    %52 = vector.shape_cast %51 : vector<1x1x32xf32> to vector<1x32xf32>
    %53 = vector.broadcast %52 : vector<1x32xf32> to vector<64x32xf32>
    %54 = arith.addf %50, %53 : vector<64x32xf32>
    %c4_46 = arith.constant 4 : index
    %c0_47 = arith.constant 0 : index
    %c0_48 = arith.constant 0 : index
    %55 = vector.load %arg13[%c4_46, %c0_47, %c0_48] : memref<6x64x32xf32, #tpu.memory_space<vmem>>, vector<1x64x32xf32>
    %56 = vector.shape_cast %55 : vector<1x64x32xf32> to vector<64x32xf32>
    %57 = vector.shape_cast %54 : vector<64x32xf32> to vector<1x64x32xf32>
    tpu.vector_store %arg13[%c4_46, %c0_47, %c0_48], %57 {strides = array<i32>} : memref<6x64x32xf32, #tpu.memory_space<vmem>>, vector<1x64x32xf32>,
    %c5 = arith.constant 5 : index
    %c0_49 = arith.constant 0 : index
    %c0_50 = arith.constant 0 : index
    %58 = vector.load %arg3[%c5, %c0_49, %c0_50] : memref<6x16x32xf32, #tpu.memory_space<vmem>>, vector<1x16x32xf32>
    %59 = vector.shape_cast %58 : vector<1x16x32xf32> to vector<16x32xf32>
    %cst_51 = arith.constant dense<0.000000e+00> : vector<64x32xf32>
    %60 = tpu.matmul %7, %59, %cst_51 {dimension_numbers = #tpu.dot_dimension_numbers<[1], [0], [0], [1], [0, 0, 1, 1], [], []>} : vector<64x16xf32>, vector<16x32xf32>, vector<64x32xf32> -> vector<64x32xf32>
    %c5_52 = arith.constant 5 : index
    %c0_53 = arith.constant 0 : index
    %c0_54 = arith.constant 0 : index
    %61 = vector.load %arg5[%c5_52, %c0_53, %c0_54] : memref<6x1x32xf32, #tpu.memory_space<vmem>>, vector<1x1x32xf32>
    %62 = vector.shape_cast %61 : vector<1x1x32xf32> to vector<1x32xf32>
    %63 = vector.broadcast %62 : vector<1x32xf32> to vector<64x32xf32>
    %64 = arith.addf %60, %63 : vector<64x32xf32>
    %c5_55 = arith.constant 5 : index
    %c0_56 = arith.constant 0 : index
    %c0_57 = arith.constant 0 : index
    %65 = vector.load %arg13[%c5_55, %c0_56, %c0_57] : memref<6x64x32xf32, #tpu.memory_space<vmem>>, vector<1x64x32xf32>
    %66 = vector.shape_cast %65 : vector<1x64x32xf32> to vector<64x32xf32>
    %67 = vector.shape_cast %64 : vector<64x32xf32> to vector<1x64x32xf32>
    tpu.vector_store %arg13[%c5_55, %c0_56, %c0_57], %67 {strides = array<i32>} : memref<6x64x32xf32, #tpu.memory_space<vmem>>, vector<1x64x32xf32>,
    %c0_58 = arith.constant 0 : index
    %c0_59 = arith.constant 0 : index
    %c0_60 = arith.constant 0 : index
    %68 = vector.load %arg4[%c0_58, %c0_59, %c0_60] : memref<6x32x32xf32, #tpu.memory_space<vmem>>, vector<1x32x32xf32>
    %69 = vector.shape_cast %68 : vector<1x32x32xf32> to vector<32x32xf32>
    %c1_61 = arith.constant 1 : index
    %c0_62 = arith.constant 0 : index
    %c0_63 = arith.constant 0 : index
    %70 = vector.load %arg4[%c1_61, %c0_62, %c0_63] : memref<6x32x32xf32, #tpu.memory_space<vmem>>, vector<1x32x32xf32>
    %71 = vector.shape_cast %70 : vector<1x32x32xf32> to vector<32x32xf32>
    %c2_64 = arith.constant 2 : index
    %c0_65 = arith.constant 0 : index
    %c0_66 = arith.constant 0 : index
    %72 = vector.load %arg4[%c2_64, %c0_65, %c0_66] : memref<6x32x32xf32, #tpu.memory_space<vmem>>, vector<1x32x32xf32>
    %73 = vector.shape_cast %72 : vector<1x32x32xf32> to vector<32x32xf32>
    %c3_67 = arith.constant 3 : index
    %c0_68 = arith.constant 0 : index
    %c0_69 = arith.constant 0 : index
    %74 = vector.load %arg4[%c3_67, %c0_68, %c0_69] : memref<6x32x32xf32, #tpu.memory_space<vmem>>, vector<1x32x32xf32>
    %75 = vector.shape_cast %74 : vector<1x32x32xf32> to vector<32x32xf32>
    %c4_70 = arith.constant 4 : index
    %c0_71 = arith.constant 0 : index
    %c0_72 = arith.constant 0 : index
    %76 = vector.load %arg4[%c4_70, %c0_71, %c0_72] : memref<6x32x32xf32, #tpu.memory_space<vmem>>, vector<1x32x32xf32>
    %77 = vector.shape_cast %76 : vector<1x32x32xf32> to vector<32x32xf32>
    %c5_73 = arith.constant 5 : index
    %c0_74 = arith.constant 0 : index
    %c0_75 = arith.constant 0 : index
    %78 = vector.load %arg4[%c5_73, %c0_74, %c0_75] : memref<6x32x32xf32, #tpu.memory_space<vmem>>, vector<1x32x32xf32>
    %79 = vector.shape_cast %78 : vector<1x32x32xf32> to vector<32x32xf32>
    %c0_76 = arith.constant 0 : index
    %c0_77 = arith.constant 0 : index
    %c0_78 = arith.constant 0 : index
    %80 = vector.load %arg6[%c0_76, %c0_77, %c0_78] : memref<2x1x32xf32, #tpu.memory_space<vmem>>, vector<1x1x32xf32>
    %81 = vector.shape_cast %80 : vector<1x1x32xf32> to vector<1x32xf32>
    %82 = vector.shape_cast %81 : vector<1x32xf32> to vector<1x32xf32>
    %83 = vector.broadcast %82 : vector<1x32xf32> to vector<8x32xf32>
    %c1_79 = arith.constant 1 : index
    %c0_80 = arith.constant 0 : index
    %c0_81 = arith.constant 0 : index
    %84 = vector.load %arg6[%c1_79, %c0_80, %c0_81] : memref<2x1x32xf32, #tpu.memory_space<vmem>>, vector<1x1x32xf32>
    %85 = vector.shape_cast %84 : vector<1x1x32xf32> to vector<1x32xf32>
    %86 = vector.shape_cast %85 : vector<1x32xf32> to vector<1x32xf32>
    %87 = vector.broadcast %86 : vector<1x32xf32> to vector<8x32xf32>
    %c0_82 = arith.constant 0 : index
    %c0_83 = arith.constant 0 : index
    %c0_84 = arith.constant 0 : index
    %88 = vector.load %arg2[%c0_82, %c0_83, %c0_84] : memref<4x8x32xf32, #tpu.memory_space<vmem>>, vector<1x8x32xf32>
    %89 = vector.shape_cast %88 : vector<1x8x32xf32> to vector<8x32xf32>
    %c1_85 = arith.constant 1 : index
    %c0_86 = arith.constant 0 : index
    %c0_87 = arith.constant 0 : index
    %90 = vector.load %arg2[%c1_85, %c0_86, %c0_87] : memref<4x8x32xf32, #tpu.memory_space<vmem>>, vector<1x8x32xf32>
    %91 = vector.shape_cast %90 : vector<1x8x32xf32> to vector<8x32xf32>
    %c0_i32 = arith.constant 0 : i32
    %c8_i32 = arith.constant 8 : i32
    %92 = arith.muli %c0_i32, %c8_i32 : i32
    %93 = tpu.assume_multiple %92, 8 : i32
    %c7_i32 = arith.constant 7 : i32
    %94 = arith.subi %c7_i32, %c0_i32 : i32
    %c8_i32_88 = arith.constant 8 : i32
    %95 = arith.muli %94, %c8_i32_88 : i32
    %96 = tpu.assume_multiple %95, 8 : i32
    %c0_89 = arith.constant 0 : index
    %97 = arith.index_cast %93 : i32 to index
    %c0_90 = arith.constant 0 : index
    %98 = vector.load %arg13[%c0_89, %97, %c0_90] : memref<6x64x32xf32, #tpu.memory_space<vmem>>, vector<1x8x32xf32>
    %99 = vector.shape_cast %98 : vector<1x8x32xf32> to vector<8x32xf32>
    %c1_91 = arith.constant 1 : index
    %100 = arith.index_cast %93 : i32 to index
    %c0_92 = arith.constant 0 : index
    %101 = vector.load %arg13[%c1_91, %100, %c0_92] : memref<6x64x32xf32, #tpu.memory_space<vmem>>, vector<1x8x32xf32>
    %102 = vector.shape_cast %101 : vector<1x8x32xf32> to vector<8x32xf32>
    %c2_93 = arith.constant 2 : index
    %103 = arith.index_cast %93 : i32 to index
    %c0_94 = arith.constant 0 : index
    %104 = vector.load %arg13[%c2_93, %103, %c0_94] : memref<6x64x32xf32, #tpu.memory_space<vmem>>, vector<1x8x32xf32>
    %105 = vector.shape_cast %104 : vector<1x8x32xf32> to vector<8x32xf32>
    %c3_95 = arith.constant 3 : index
    %106 = arith.index_cast %96 : i32 to index
    %c0_96 = arith.constant 0 : index
    %107 = vector.load %arg13[%c3_95, %106, %c0_96] : memref<6x64x32xf32, #tpu.memory_space<vmem>>, vector<1x8x32xf32>
    %108 = vector.shape_cast %107 : vector<1x8x32xf32> to vector<8x32xf32>
    %c4_97 = arith.constant 4 : index
    %109 = arith.index_cast %96 : i32 to index
    %c0_98 = arith.constant 0 : index
    %110 = vector.load %arg13[%c4_97, %109, %c0_98] : memref<6x64x32xf32, #tpu.memory_space<vmem>>, vector<1x8x32xf32>
    %111 = vector.shape_cast %110 : vector<1x8x32xf32> to vector<8x32xf32>
    %c5_99 = arith.constant 5 : index
    %112 = arith.index_cast %96 : i32 to index
    %c0_100 = arith.constant 0 : index
    %113 = vector.load %arg13[%c5_99, %112, %c0_100] : memref<6x64x32xf32, #tpu.memory_space<vmem>>, vector<1x8x32xf32>
    %114 = vector.shape_cast %113 : vector<1x8x32xf32> to vector<8x32xf32>
    %cst_101 = arith.constant dense<0.000000e+00> : vector<8x32xf32>
    %115 = tpu.matmul %89, %69, %cst_101 {dimension_numbers = #tpu.dot_dimension_numbers<[1], [0], [0], [1], [0, 0, 1, 1], [], []>} : vector<8x32xf32>, vector<32x32xf32>, vector<8x32xf32> -> vector<8x32xf32>
    %cst_102 = arith.constant dense<0.000000e+00> : vector<8x32xf32>
    %116 = tpu.matmul %89, %71, %cst_102 {dimension_numbers = #tpu.dot_dimension_numbers<[1], [0], [0], [1], [0, 0, 1, 1], [], []>} : vector<8x32xf32>, vector<32x32xf32>, vector<8x32xf32> -> vector<8x32xf32>
    %cst_103 = arith.constant dense<0.000000e+00> : vector<8x32xf32>
    %117 = tpu.matmul %89, %73, %cst_103 {dimension_numbers = #tpu.dot_dimension_numbers<[1], [0], [0], [1], [0, 0, 1, 1], [], []>} : vector<8x32xf32>, vector<32x32xf32>, vector<8x32xf32> -> vector<8x32xf32>
    %118 = arith.addf %117, %83 : vector<8x32xf32>
    %119 = arith.addf %99, %115 : vector<8x32xf32>
    %120 = arith.negf %119 : vector<8x32xf32>
    %121 = math.exp %120 : vector<8x32xf32>
    %cst_104 = arith.constant 1.000000e+00 : f32
    %122 = vector.broadcast %cst_104 : f32 to vector<8x32xf32>
    %123 = arith.addf %122, %121 : vector<8x32xf32>
    %124 = arith.divf %122, %123 : vector<8x32xf32>
    %125 = arith.addf %102, %116 : vector<8x32xf32>
    %126 = arith.negf %125 : vector<8x32xf32>
    %127 = math.exp %126 : vector<8x32xf32>
    %cst_105 = arith.constant 1.000000e+00 : f32
    %128 = vector.broadcast %cst_105 : f32 to vector<8x32xf32>
    %129 = arith.addf %128, %127 : vector<8x32xf32>
    %130 = arith.divf %128, %129 : vector<8x32xf32>
    %131 = arith.mulf %124, %118 : vector<8x32xf32>
    %132 = arith.addf %105, %131 : vector<8x32xf32>
    %133 = math.tanh %132 : vector<8x32xf32>
    %cst_106 = arith.constant 1.000000e+00 : f32
    %134 = vector.broadcast %cst_106 : f32 to vector<8x32xf32>
    %135 = arith.subf %134, %130 : vector<8x32xf32>
    %136 = arith.mulf %135, %133 : vector<8x32xf32>
    %137 = arith.mulf %130, %89 : vector<8x32xf32>
    %138 = arith.addf %136, %137 : vector<8x32xf32>
    %cst_107 = arith.constant dense<0.000000e+00> : vector<8x32xf32>
    %139 = tpu.matmul %91, %75, %cst_107 {dimension_numbers = #tpu.dot_dimension_numbers<[1], [0], [0], [1], [0, 0, 1, 1], [], []>} : vector<8x32xf32>, vector<32x32xf32>, vector<8x32xf32> -> vector<8x32xf32>
    %cst_108 = arith.constant dense<0.000000e+00> : vector<8x32xf32>
    %140 = tpu.matmul %91, %77, %cst_108 {dimension_numbers = #tpu.dot_dimension_numbers<[1], [0], [0], [1], [0, 0, 1, 1], [], []>} : vector<8x32xf32>, vector<32x32xf32>, vector<8x32xf32> -> vector<8x32xf32>
    %cst_109 = arith.constant dense<0.000000e+00> : vector<8x32xf32>
    %141 = tpu.matmul %91, %79, %cst_109 {dimension_numbers = #tpu.dot_dimension_numbers<[1], [0], [0], [1], [0, 0, 1, 1], [], []>} : vector<8x32xf32>, vector<32x32xf32>, vector<8x32xf32> -> vector<8x32xf32>
    %142 = arith.addf %141, %87 : vector<8x32xf32>
    %143 = arith.addf %108, %139 : vector<8x32xf32>
    %144 = arith.negf %143 : vector<8x32xf32>
    %145 = math.exp %144 : vector<8x32xf32>
    %cst_110 = arith.constant 1.000000e+00 : f32
    %146 = vector.broadcast %cst_110 : f32 to vector<8x32xf32>
    %147 = arith.addf %146, %145 : vector<8x32xf32>
    %148 = arith.divf %146, %147 : vector<8x32xf32>
    %149 = arith.addf %111, %140 : vector<8x32xf32>
    %150 = arith.negf %149 : vector<8x32xf32>
    %151 = math.exp %150 : vector<8x32xf32>
    %cst_111 = arith.constant 1.000000e+00 : f32
    %152 = vector.broadcast %cst_111 : f32 to vector<8x32xf32>
    %153 = arith.addf %152, %151 : vector<8x32xf32>
    %154 = arith.divf %152, %153 : vector<8x32xf32>
    %155 = arith.mulf %148, %142 : vector<8x32xf32>
    %156 = arith.addf %114, %155 : vector<8x32xf32>
    %157 = math.tanh %156 : vector<8x32xf32>
    %cst_112 = arith.constant 1.000000e+00 : f32
    %158 = vector.broadcast %cst_112 : f32 to vector<8x32xf32>
    %159 = arith.subf %158, %154 : vector<8x32xf32>
    %160 = arith.mulf %159, %157 : vector<8x32xf32>
    %161 = arith.mulf %154, %91 : vector<8x32xf32>
    %162 = arith.addf %160, %161 : vector<8x32xf32>
    %163 = arith.index_cast %93 : i32 to index
    %c0_113 = arith.constant 0 : index
    %164 = vector.load %arg14[%163, %c0_113] : memref<64x32xf32, #tpu.memory_space<vmem>>, vector<8x32xf32>
    tpu.vector_store %arg14[%163, %c0_113], %138 {strides = array<i32>} : memref<64x32xf32, #tpu.memory_space<vmem>>, vector<8x32xf32>,
    %165 = arith.index_cast %96 : i32 to index
    %c0_114 = arith.constant 0 : index
    %166 = vector.load %arg15[%165, %c0_114] : memref<64x32xf32, #tpu.memory_space<vmem>>, vector<8x32xf32>
    tpu.vector_store %arg15[%165, %c0_114], %162 {strides = array<i32>} : memref<64x32xf32, #tpu.memory_space<vmem>>, vector<8x32xf32>,
    %c1_i32 = arith.constant 1 : i32
    %c8_i32_115 = arith.constant 8 : i32
    %167 = arith.muli %c1_i32, %c8_i32_115 : i32
    %168 = tpu.assume_multiple %167, 8 : i32
    %c7_i32_116 = arith.constant 7 : i32
    %169 = arith.subi %c7_i32_116, %c1_i32 : i32
    %c8_i32_117 = arith.constant 8 : i32
    %170 = arith.muli %169, %c8_i32_117 : i32
    %171 = tpu.assume_multiple %170, 8 : i32
    %c0_118 = arith.constant 0 : index
    %172 = arith.index_cast %168 : i32 to index
    %c0_119 = arith.constant 0 : index
    %173 = vector.load %arg13[%c0_118, %172, %c0_119] : memref<6x64x32xf32, #tpu.memory_space<vmem>>, vector<1x8x32xf32>
    %174 = vector.shape_cast %173 : vector<1x8x32xf32> to vector<8x32xf32>
    %c1_120 = arith.constant 1 : index
    %175 = arith.index_cast %168 : i32 to index
    %c0_121 = arith.constant 0 : index
    %176 = vector.load %arg13[%c1_120, %175, %c0_121] : memref<6x64x32xf32, #tpu.memory_space<vmem>>, vector<1x8x32xf32>
    %177 = vector.shape_cast %176 : vector<1x8x32xf32> to vector<8x32xf32>
    %c2_122 = arith.constant 2 : index
    %178 = arith.index_cast %168 : i32 to index
    %c0_123 = arith.constant 0 : index
    %179 = vector.load %arg13[%c2_122, %178, %c0_123] : memref<6x64x32xf32, #tpu.memory_space<vmem>>, vector<1x8x32xf32>
    %180 = vector.shape_cast %179 : vector<1x8x32xf32> to vector<8x32xf32>
    %c3_124 = arith.constant 3 : index
    %181 = arith.index_cast %171 : i32 to index
    %c0_125 = arith.constant 0 : index
    %182 = vector.load %arg13[%c3_124, %181, %c0_125] : memref<6x64x32xf32, #tpu.memory_space<vmem>>, vector<1x8x32xf32>
    %183 = vector.shape_cast %182 : vector<1x8x32xf32> to vector<8x32xf32>
    %c4_126 = arith.constant 4 : index
    %184 = arith.index_cast %171 : i32 to index
    %c0_127 = arith.constant 0 : index
    %185 = vector.load %arg13[%c4_126, %184, %c0_127] : memref<6x64x32xf32, #tpu.memory_space<vmem>>, vector<1x8x32xf32>
    %186 = vector.shape_cast %185 : vector<1x8x32xf32> to vector<8x32xf32>
    %c5_128 = arith.constant 5 : index
    %187 = arith.index_cast %171 : i32 to index
    %c0_129 = arith.constant 0 : index
    %188 = vector.load %arg13[%c5_128, %187, %c0_129] : memref<6x64x32xf32, #tpu.memory_space<vmem>>, vector<1x8x32xf32>
    %189 = vector.shape_cast %188 : vector<1x8x32xf32> to vector<8x32xf32>
    %cst_130 = arith.constant dense<0.000000e+00> : vector<8x32xf32>
    %190 = tpu.matmul %138, %69, %cst_130 {dimension_numbers = #tpu.dot_dimension_numbers<[1], [0], [0], [1], [0, 0, 1, 1], [], []>} : vector<8x32xf32>, vector<32x32xf32>, vector<8x32xf32> -> vector<8x32xf32>
    %cst_131 = arith.constant dense<0.000000e+00> : vector<8x32xf32>
    %191 = tpu.matmul %138, %71, %cst_131 {dimension_numbers = #tpu.dot_dimension_numbers<[1], [0], [0], [1], [0, 0, 1, 1], [], []>} : vector<8x32xf32>, vector<32x32xf32>, vector<8x32xf32> -> vector<8x32xf32>
    %cst_132 = arith.constant dense<0.000000e+00> : vector<8x32xf32>
    %192 = tpu.matmul %138, %73, %cst_132 {dimension_numbers = #tpu.dot_dimension_numbers<[1], [0], [0], [1], [0, 0, 1, 1], [], []>} : vector<8x32xf32>, vector<32x32xf32>, vector<8x32xf32> -> vector<8x32xf32>
    %193 = arith.addf %192, %83 : vector<8x32xf32>
    %194 = arith.addf %174, %190 : vector<8x32xf32>
    %195 = arith.negf %194 : vector<8x32xf32>
    %196 = math.exp %195 : vector<8x32xf32>
    %cst_133 = arith.constant 1.000000e+00 : f32
    %197 = vector.broadcast %cst_133 : f32 to vector<8x32xf32>
    %198 = arith.addf %197, %196 : vector<8x32xf32>
    %199 = arith.divf %197, %198 : vector<8x32xf32>
    %200 = arith.addf %177, %191 : vector<8x32xf32>
    %201 = arith.negf %200 : vector<8x32xf32>
    %202 = math.exp %201 : vector<8x32xf32>
    %cst_134 = arith.constant 1.000000e+00 : f32
    %203 = vector.broadcast %cst_134 : f32 to vector<8x32xf32>
    %204 = arith.addf %203, %202 : vector<8x32xf32>
    %205 = arith.divf %203, %204 : vector<8x32xf32>
    %206 = arith.mulf %199, %193 : vector<8x32xf32>
    %207 = arith.addf %180, %206 : vector<8x32xf32>
    %208 = math.tanh %207 : vector<8x32xf32>
    %cst_135 = arith.constant 1.000000e+00 : f32
    %209 = vector.broadcast %cst_135 : f32 to vector<8x32xf32>
    %210 = arith.subf %209, %205 : vector<8x32xf32>
    %211 = arith.mulf %210, %208 : vector<8x32xf32>
    %212 = arith.mulf %205, %138 : vector<8x32xf32>
    %213 = arith.addf %211, %212 : vector<8x32xf32>
    %cst_136 = arith.constant dense<0.000000e+00> : vector<8x32xf32>
    %214 = tpu.matmul %162, %75, %cst_136 {dimension_numbers = #tpu.dot_dimension_numbers<[1], [0], [0], [1], [0, 0, 1, 1], [], []>} : vector<8x32xf32>, vector<32x32xf32>, vector<8x32xf32> -> vector<8x32xf32>
    %cst_137 = arith.constant dense<0.000000e+00> : vector<8x32xf32>
    %215 = tpu.matmul %162, %77, %cst_137 {dimension_numbers = #tpu.dot_dimension_numbers<[1], [0], [0], [1], [0, 0, 1, 1], [], []>} : vector<8x32xf32>, vector<32x32xf32>, vector<8x32xf32> -> vector<8x32xf32>
    %cst_138 = arith.constant dense<0.000000e+00> : vector<8x32xf32>
    %216 = tpu.matmul %162, %79, %cst_138 {dimension_numbers = #tpu.dot_dimension_numbers<[1], [0], [0], [1], [0, 0, 1, 1], [], []>} : vector<8x32xf32>, vector<32x32xf32>, vector<8x32xf32> -> vector<8x32xf32>
    %217 = arith.addf %216, %87 : vector<8x32xf32>
    %218 = arith.addf %183, %214 : vector<8x32xf32>
    %219 = arith.negf %218 : vector<8x32xf32>
    %220 = math.exp %219 : vector<8x32xf32>
    %cst_139 = arith.constant 1.000000e+00 : f32
    %221 = vector.broadcast %cst_139 : f32 to vector<8x32xf32>
    %222 = arith.addf %221, %220 : vector<8x32xf32>
    %223 = arith.divf %221, %222 : vector<8x32xf32>
    %224 = arith.addf %186, %215 : vector<8x32xf32>
    %225 = arith.negf %224 : vector<8x32xf32>
    %226 = math.exp %225 : vector<8x32xf32>
    %cst_140 = arith.constant 1.000000e+00 : f32
    %227 = vector.broadcast %cst_140 : f32 to vector<8x32xf32>
    %228 = arith.addf %227, %226 : vector<8x32xf32>
    %229 = arith.divf %227, %228 : vector<8x32xf32>
    %230 = arith.mulf %223, %217 : vector<8x32xf32>
    %231 = arith.addf %189, %230 : vector<8x32xf32>
    %232 = math.tanh %231 : vector<8x32xf32>
    %cst_141 = arith.constant 1.000000e+00 : f32
    %233 = vector.broadcast %cst_141 : f32 to vector<8x32xf32>
    %234 = arith.subf %233, %229 : vector<8x32xf32>
    %235 = arith.mulf %234, %232 : vector<8x32xf32>
    %236 = arith.mulf %229, %162 : vector<8x32xf32>
    %237 = arith.addf %235, %236 : vector<8x32xf32>
    %238 = arith.index_cast %168 : i32 to index
    %c0_142 = arith.constant 0 : index
    %239 = vector.load %arg14[%238, %c0_142] : memref<64x32xf32, #tpu.memory_space<vmem>>, vector<8x32xf32>
    tpu.vector_store %arg14[%238, %c0_142], %213 {strides = array<i32>} : memref<64x32xf32, #tpu.memory_space<vmem>>, vector<8x32xf32>,
    %240 = arith.index_cast %171 : i32 to index
    %c0_143 = arith.constant 0 : index
    %241 = vector.load %arg15[%240, %c0_143] : memref<64x32xf32, #tpu.memory_space<vmem>>, vector<8x32xf32>
    tpu.vector_store %arg15[%240, %c0_143], %237 {strides = array<i32>} : memref<64x32xf32, #tpu.memory_space<vmem>>, vector<8x32xf32>,
    %c2_i32 = arith.constant 2 : i32
    %c8_i32_144 = arith.constant 8 : i32
    %242 = arith.muli %c2_i32, %c8_i32_144 : i32
    %243 = tpu.assume_multiple %242, 8 : i32
    %c7_i32_145 = arith.constant 7 : i32
    %244 = arith.subi %c7_i32_145, %c2_i32 : i32
    %c8_i32_146 = arith.constant 8 : i32
    %245 = arith.muli %244, %c8_i32_146 : i32
    %246 = tpu.assume_multiple %245, 8 : i32
    %c0_147 = arith.constant 0 : index
    %247 = arith.index_cast %243 : i32 to index
    %c0_148 = arith.constant 0 : index
    %248 = vector.load %arg13[%c0_147, %247, %c0_148] : memref<6x64x32xf32, #tpu.memory_space<vmem>>, vector<1x8x32xf32>
    %249 = vector.shape_cast %248 : vector<1x8x32xf32> to vector<8x32xf32>
    %c1_149 = arith.constant 1 : index
    %250 = arith.index_cast %243 : i32 to index
    %c0_150 = arith.constant 0 : index
    %251 = vector.load %arg13[%c1_149, %250, %c0_150] : memref<6x64x32xf32, #tpu.memory_space<vmem>>, vector<1x8x32xf32>
    %252 = vector.shape_cast %251 : vector<1x8x32xf32> to vector<8x32xf32>
    %c2_151 = arith.constant 2 : index
    %253 = arith.index_cast %243 : i32 to index
    %c0_152 = arith.constant 0 : index
    %254 = vector.load %arg13[%c2_151, %253, %c0_152] : memref<6x64x32xf32, #tpu.memory_space<vmem>>, vector<1x8x32xf32>
    %255 = vector.shape_cast %254 : vector<1x8x32xf32> to vector<8x32xf32>
    %c3_153 = arith.constant 3 : index
    %256 = arith.index_cast %246 : i32 to index
    %c0_154 = arith.constant 0 : index
    %257 = vector.load %arg13[%c3_153, %256, %c0_154] : memref<6x64x32xf32, #tpu.memory_space<vmem>>, vector<1x8x32xf32>
    %258 = vector.shape_cast %257 : vector<1x8x32xf32> to vector<8x32xf32>
    %c4_155 = arith.constant 4 : index
    %259 = arith.index_cast %246 : i32 to index
    %c0_156 = arith.constant 0 : index
    %260 = vector.load %arg13[%c4_155, %259, %c0_156] : memref<6x64x32xf32, #tpu.memory_space<vmem>>, vector<1x8x32xf32>
    %261 = vector.shape_cast %260 : vector<1x8x32xf32> to vector<8x32xf32>
    %c5_157 = arith.constant 5 : index
    %262 = arith.index_cast %246 : i32 to index
    %c0_158 = arith.constant 0 : index
    %263 = vector.load %arg13[%c5_157, %262, %c0_158] : memref<6x64x32xf32, #tpu.memory_space<vmem>>, vector<1x8x32xf32>
    %264 = vector.shape_cast %263 : vector<1x8x32xf32> to vector<8x32xf32>
    %cst_159 = arith.constant dense<0.000000e+00> : vector<8x32xf32>
    %265 = tpu.matmul %213, %69, %cst_159 {dimension_numbers = #tpu.dot_dimension_numbers<[1], [0], [0], [1], [0, 0, 1, 1], [], []>} : vector<8x32xf32>, vector<32x32xf32>, vector<8x32xf32> -> vector<8x32xf32>
    %cst_160 = arith.constant dense<0.000000e+00> : vector<8x32xf32>
    %266 = tpu.matmul %213, %71, %cst_160 {dimension_numbers = #tpu.dot_dimension_numbers<[1], [0], [0], [1], [0, 0, 1, 1], [], []>} : vector<8x32xf32>, vector<32x32xf32>, vector<8x32xf32> -> vector<8x32xf32>
    %cst_161 = arith.constant dense<0.000000e+00> : vector<8x32xf32>
    %267 = tpu.matmul %213, %73, %cst_161 {dimension_numbers = #tpu.dot_dimension_numbers<[1], [0], [0], [1], [0, 0, 1, 1], [], []>} : vector<8x32xf32>, vector<32x32xf32>, vector<8x32xf32> -> vector<8x32xf32>
    %268 = arith.addf %267, %83 : vector<8x32xf32>
    %269 = arith.addf %249, %265 : vector<8x32xf32>
    %270 = arith.negf %269 : vector<8x32xf32>
    %271 = math.exp %270 : vector<8x32xf32>
    %cst_162 = arith.constant 1.000000e+00 : f32
    %272 = vector.broadcast %cst_162 : f32 to vector<8x32xf32>
    %273 = arith.addf %272, %271 : vector<8x32xf32>
    %274 = arith.divf %272, %273 : vector<8x32xf32>
    %275 = arith.addf %252, %266 : vector<8x32xf32>
    %276 = arith.negf %275 : vector<8x32xf32>
    %277 = math.exp %276 : vector<8x32xf32>
    %cst_163 = arith.constant 1.000000e+00 : f32
    %278 = vector.broadcast %cst_163 : f32 to vector<8x32xf32>
    %279 = arith.addf %278, %277 : vector<8x32xf32>
    %280 = arith.divf %278, %279 : vector<8x32xf32>
    %281 = arith.mulf %274, %268 : vector<8x32xf32>
    %282 = arith.addf %255, %281 : vector<8x32xf32>
    %283 = math.tanh %282 : vector<8x32xf32>
    %cst_164 = arith.constant 1.000000e+00 : f32
    %284 = vector.broadcast %cst_164 : f32 to vector<8x32xf32>
    %285 = arith.subf %284, %280 : vector<8x32xf32>
    %286 = arith.mulf %285, %283 : vector<8x32xf32>
    %287 = arith.mulf %280, %213 : vector<8x32xf32>
    %288 = arith.addf %286, %287 : vector<8x32xf32>
    %cst_165 = arith.constant dense<0.000000e+00> : vector<8x32xf32>
    %289 = tpu.matmul %237, %75, %cst_165 {dimension_numbers = #tpu.dot_dimension_numbers<[1], [0], [0], [1], [0, 0, 1, 1], [], []>} : vector<8x32xf32>, vector<32x32xf32>, vector<8x32xf32> -> vector<8x32xf32>
    %cst_166 = arith.constant dense<0.000000e+00> : vector<8x32xf32>
    %290 = tpu.matmul %237, %77, %cst_166 {dimension_numbers = #tpu.dot_dimension_numbers<[1], [0], [0], [1], [0, 0, 1, 1], [], []>} : vector<8x32xf32>, vector<32x32xf32>, vector<8x32xf32> -> vector<8x32xf32>
    %cst_167 = arith.constant dense<0.000000e+00> : vector<8x32xf32>
    %291 = tpu.matmul %237, %79, %cst_167 {dimension_numbers = #tpu.dot_dimension_numbers<[1], [0], [0], [1], [0, 0, 1, 1], [], []>} : vector<8x32xf32>, vector<32x32xf32>, vector<8x32xf32> -> vector<8x32xf32>
    %292 = arith.addf %291, %87 : vector<8x32xf32>
    %293 = arith.addf %258, %289 : vector<8x32xf32>
    %294 = arith.negf %293 : vector<8x32xf32>
    %295 = math.exp %294 : vector<8x32xf32>
    %cst_168 = arith.constant 1.000000e+00 : f32
    %296 = vector.broadcast %cst_168 : f32 to vector<8x32xf32>
    %297 = arith.addf %296, %295 : vector<8x32xf32>
    %298 = arith.divf %296, %297 : vector<8x32xf32>
    %299 = arith.addf %261, %290 : vector<8x32xf32>
    %300 = arith.negf %299 : vector<8x32xf32>
    %301 = math.exp %300 : vector<8x32xf32>
    %cst_169 = arith.constant 1.000000e+00 : f32
    %302 = vector.broadcast %cst_169 : f32 to vector<8x32xf32>
    %303 = arith.addf %302, %301 : vector<8x32xf32>
    %304 = arith.divf %302, %303 : vector<8x32xf32>
    %305 = arith.mulf %298, %292 : vector<8x32xf32>
    %306 = arith.addf %264, %305 : vector<8x32xf32>
    %307 = math.tanh %306 : vector<8x32xf32>
    %cst_170 = arith.constant 1.000000e+00 : f32
    %308 = vector.broadcast %cst_170 : f32 to vector<8x32xf32>
    %309 = arith.subf %308, %304 : vector<8x32xf32>
    %310 = arith.mulf %309, %307 : vector<8x32xf32>
    %311 = arith.mulf %304, %237 : vector<8x32xf32>
    %312 = arith.addf %310, %311 : vector<8x32xf32>
    %313 = arith.index_cast %243 : i32 to index
    %c0_171 = arith.constant 0 : index
    %314 = vector.load %arg14[%313, %c0_171] : memref<64x32xf32, #tpu.memory_space<vmem>>, vector<8x32xf32>
    tpu.vector_store %arg14[%313, %c0_171], %288 {strides = array<i32>} : memref<64x32xf32, #tpu.memory_space<vmem>>, vector<8x32xf32>,
    %315 = arith.index_cast %246 : i32 to index
    %c0_172 = arith.constant 0 : index
    %316 = vector.load %arg15[%315, %c0_172] : memref<64x32xf32, #tpu.memory_space<vmem>>, vector<8x32xf32>
    tpu.vector_store %arg15[%315, %c0_172], %312 {strides = array<i32>} : memref<64x32xf32, #tpu.memory_space<vmem>>, vector<8x32xf32>,
    %c3_i32 = arith.constant 3 : i32
    %c8_i32_173 = arith.constant 8 : i32
    %317 = arith.muli %c3_i32, %c8_i32_173 : i32
    %318 = tpu.assume_multiple %317, 8 : i32
    %c7_i32_174 = arith.constant 7 : i32
    %319 = arith.subi %c7_i32_174, %c3_i32 : i32
    %c8_i32_175 = arith.constant 8 : i32
    %320 = arith.muli %319, %c8_i32_175 : i32
    %321 = tpu.assume_multiple %320, 8 : i32
    %c0_176 = arith.constant 0 : index
    %322 = arith.index_cast %318 : i32 to index
    %c0_177 = arith.constant 0 : index
    %323 = vector.load %arg13[%c0_176, %322, %c0_177] : memref<6x64x32xf32, #tpu.memory_space<vmem>>, vector<1x8x32xf32>
    %324 = vector.shape_cast %323 : vector<1x8x32xf32> to vector<8x32xf32>
    %c1_178 = arith.constant 1 : index
    %325 = arith.index_cast %318 : i32 to index
    %c0_179 = arith.constant 0 : index
    %326 = vector.load %arg13[%c1_178, %325, %c0_179] : memref<6x64x32xf32, #tpu.memory_space<vmem>>, vector<1x8x32xf32>
    %327 = vector.shape_cast %326 : vector<1x8x32xf32> to vector<8x32xf32>
    %c2_180 = arith.constant 2 : index
    %328 = arith.index_cast %318 : i32 to index
    %c0_181 = arith.constant 0 : index
    %329 = vector.load %arg13[%c2_180, %328, %c0_181] : memref<6x64x32xf32, #tpu.memory_space<vmem>>, vector<1x8x32xf32>
    %330 = vector.shape_cast %329 : vector<1x8x32xf32> to vector<8x32xf32>
    %c3_182 = arith.constant 3 : index
    %331 = arith.index_cast %321 : i32 to index
    %c0_183 = arith.constant 0 : index
    %332 = vector.load %arg13[%c3_182, %331, %c0_183] : memref<6x64x32xf32, #tpu.memory_space<vmem>>, vector<1x8x32xf32>
    %333 = vector.shape_cast %332 : vector<1x8x32xf32> to vector<8x32xf32>
    %c4_184 = arith.constant 4 : index
    %334 = arith.index_cast %321 : i32 to index
    %c0_185 = arith.constant 0 : index
    %335 = vector.load %arg13[%c4_184, %334, %c0_185] : memref<6x64x32xf32, #tpu.memory_space<vmem>>, vector<1x8x32xf32>
    %336 = vector.shape_cast %335 : vector<1x8x32xf32> to vector<8x32xf32>
    %c5_186 = arith.constant 5 : index
    %337 = arith.index_cast %321 : i32 to index
    %c0_187 = arith.constant 0 : index
    %338 = vector.load %arg13[%c5_186, %337, %c0_187] : memref<6x64x32xf32, #tpu.memory_space<vmem>>, vector<1x8x32xf32>
    %339 = vector.shape_cast %338 : vector<1x8x32xf32> to vector<8x32xf32>
    %cst_188 = arith.constant dense<0.000000e+00> : vector<8x32xf32>
    %340 = tpu.matmul %288, %69, %cst_188 {dimension_numbers = #tpu.dot_dimension_numbers<[1], [0], [0], [1], [0, 0, 1, 1], [], []>} : vector<8x32xf32>, vector<32x32xf32>, vector<8x32xf32> -> vector<8x32xf32>
    %cst_189 = arith.constant dense<0.000000e+00> : vector<8x32xf32>
    %341 = tpu.matmul %288, %71, %cst_189 {dimension_numbers = #tpu.dot_dimension_numbers<[1], [0], [0], [1], [0, 0, 1, 1], [], []>} : vector<8x32xf32>, vector<32x32xf32>, vector<8x32xf32> -> vector<8x32xf32>
    %cst_190 = arith.constant dense<0.000000e+00> : vector<8x32xf32>
    %342 = tpu.matmul %288, %73, %cst_190 {dimension_numbers = #tpu.dot_dimension_numbers<[1], [0], [0], [1], [0, 0, 1, 1], [], []>} : vector<8x32xf32>, vector<32x32xf32>, vector<8x32xf32> -> vector<8x32xf32>
    %343 = arith.addf %342, %83 : vector<8x32xf32>
    %344 = arith.addf %324, %340 : vector<8x32xf32>
    %345 = arith.negf %344 : vector<8x32xf32>
    %346 = math.exp %345 : vector<8x32xf32>
    %cst_191 = arith.constant 1.000000e+00 : f32
    %347 = vector.broadcast %cst_191 : f32 to vector<8x32xf32>
    %348 = arith.addf %347, %346 : vector<8x32xf32>
    %349 = arith.divf %347, %348 : vector<8x32xf32>
    %350 = arith.addf %327, %341 : vector<8x32xf32>
    %351 = arith.negf %350 : vector<8x32xf32>
    %352 = math.exp %351 : vector<8x32xf32>
    %cst_192 = arith.constant 1.000000e+00 : f32
    %353 = vector.broadcast %cst_192 : f32 to vector<8x32xf32>
    %354 = arith.addf %353, %352 : vector<8x32xf32>
    %355 = arith.divf %353, %354 : vector<8x32xf32>
    %356 = arith.mulf %349, %343 : vector<8x32xf32>
    %357 = arith.addf %330, %356 : vector<8x32xf32>
    %358 = math.tanh %357 : vector<8x32xf32>
    %cst_193 = arith.constant 1.000000e+00 : f32
    %359 = vector.broadcast %cst_193 : f32 to vector<8x32xf32>
    %360 = arith.subf %359, %355 : vector<8x32xf32>
    %361 = arith.mulf %360, %358 : vector<8x32xf32>
    %362 = arith.mulf %355, %288 : vector<8x32xf32>
    %363 = arith.addf %361, %362 : vector<8x32xf32>
    %cst_194 = arith.constant dense<0.000000e+00> : vector<8x32xf32>
    %364 = tpu.matmul %312, %75, %cst_194 {dimension_numbers = #tpu.dot_dimension_numbers<[1], [0], [0], [1], [0, 0, 1, 1], [], []>} : vector<8x32xf32>, vector<32x32xf32>, vector<8x32xf32> -> vector<8x32xf32>
    %cst_195 = arith.constant dense<0.000000e+00> : vector<8x32xf32>
    %365 = tpu.matmul %312, %77, %cst_195 {dimension_numbers = #tpu.dot_dimension_numbers<[1], [0], [0], [1], [0, 0, 1, 1], [], []>} : vector<8x32xf32>, vector<32x32xf32>, vector<8x32xf32> -> vector<8x32xf32>
    %cst_196 = arith.constant dense<0.000000e+00> : vector<8x32xf32>
    %366 = tpu.matmul %312, %79, %cst_196 {dimension_numbers = #tpu.dot_dimension_numbers<[1], [0], [0], [1], [0, 0, 1, 1], [], []>} : vector<8x32xf32>, vector<32x32xf32>, vector<8x32xf32> -> vector<8x32xf32>
    %367 = arith.addf %366, %87 : vector<8x32xf32>
    %368 = arith.addf %333, %364 : vector<8x32xf32>
    %369 = arith.negf %368 : vector<8x32xf32>
    %370 = math.exp %369 : vector<8x32xf32>
    %cst_197 = arith.constant 1.000000e+00 : f32
    %371 = vector.broadcast %cst_197 : f32 to vector<8x32xf32>
    %372 = arith.addf %371, %370 : vector<8x32xf32>
    %373 = arith.divf %371, %372 : vector<8x32xf32>
    %374 = arith.addf %336, %365 : vector<8x32xf32>
    %375 = arith.negf %374 : vector<8x32xf32>
    %376 = math.exp %375 : vector<8x32xf32>
    %cst_198 = arith.constant 1.000000e+00 : f32
    %377 = vector.broadcast %cst_198 : f32 to vector<8x32xf32>
    %378 = arith.addf %377, %376 : vector<8x32xf32>
    %379 = arith.divf %377, %378 : vector<8x32xf32>
    %380 = arith.mulf %373, %367 : vector<8x32xf32>
    %381 = arith.addf %339, %380 : vector<8x32xf32>
    %382 = math.tanh %381 : vector<8x32xf32>
    %cst_199 = arith.constant 1.000000e+00 : f32
    %383 = vector.broadcast %cst_199 : f32 to vector<8x32xf32>
    %384 = arith.subf %383, %379 : vector<8x32xf32>
    %385 = arith.mulf %384, %382 : vector<8x32xf32>
    %386 = arith.mulf %379, %312 : vector<8x32xf32>
    %387 = arith.addf %385, %386 : vector<8x32xf32>
    %388 = arith.index_cast %318 : i32 to index
    %c0_200 = arith.constant 0 : index
    %389 = vector.load %arg14[%388, %c0_200] : memref<64x32xf32, #tpu.memory_space<vmem>>, vector<8x32xf32>
    tpu.vector_store %arg14[%388, %c0_200], %363 {strides = array<i32>} : memref<64x32xf32, #tpu.memory_space<vmem>>, vector<8x32xf32>,
    %390 = arith.index_cast %321 : i32 to index
    %c0_201 = arith.constant 0 : index
    %391 = vector.load %arg15[%390, %c0_201] : memref<64x32xf32, #tpu.memory_space<vmem>>, vector<8x32xf32>
    tpu.vector_store %arg15[%390, %c0_201], %387 {strides = array<i32>} : memref<64x32xf32, #tpu.memory_space<vmem>>, vector<8x32xf32>,
    %c4_i32 = arith.constant 4 : i32
    %c8_i32_202 = arith.constant 8 : i32
    %392 = arith.muli %c4_i32, %c8_i32_202 : i32
    %393 = tpu.assume_multiple %392, 8 : i32
    %c7_i32_203 = arith.constant 7 : i32
    %394 = arith.subi %c7_i32_203, %c4_i32 : i32
    %c8_i32_204 = arith.constant 8 : i32
    %395 = arith.muli %394, %c8_i32_204 : i32
    %396 = tpu.assume_multiple %395, 8 : i32
    %c0_205 = arith.constant 0 : index
    %397 = arith.index_cast %393 : i32 to index
    %c0_206 = arith.constant 0 : index
    %398 = vector.load %arg13[%c0_205, %397, %c0_206] : memref<6x64x32xf32, #tpu.memory_space<vmem>>, vector<1x8x32xf32>
    %399 = vector.shape_cast %398 : vector<1x8x32xf32> to vector<8x32xf32>
    %c1_207 = arith.constant 1 : index
    %400 = arith.index_cast %393 : i32 to index
    %c0_208 = arith.constant 0 : index
    %401 = vector.load %arg13[%c1_207, %400, %c0_208] : memref<6x64x32xf32, #tpu.memory_space<vmem>>, vector<1x8x32xf32>
    %402 = vector.shape_cast %401 : vector<1x8x32xf32> to vector<8x32xf32>
    %c2_209 = arith.constant 2 : index
    %403 = arith.index_cast %393 : i32 to index
    %c0_210 = arith.constant 0 : index
    %404 = vector.load %arg13[%c2_209, %403, %c0_210] : memref<6x64x32xf32, #tpu.memory_space<vmem>>, vector<1x8x32xf32>
    %405 = vector.shape_cast %404 : vector<1x8x32xf32> to vector<8x32xf32>
    %c3_211 = arith.constant 3 : index
    %406 = arith.index_cast %396 : i32 to index
    %c0_212 = arith.constant 0 : index
    %407 = vector.load %arg13[%c3_211, %406, %c0_212] : memref<6x64x32xf32, #tpu.memory_space<vmem>>, vector<1x8x32xf32>
    %408 = vector.shape_cast %407 : vector<1x8x32xf32> to vector<8x32xf32>
    %c4_213 = arith.constant 4 : index
    %409 = arith.index_cast %396 : i32 to index
    %c0_214 = arith.constant 0 : index
    %410 = vector.load %arg13[%c4_213, %409, %c0_214] : memref<6x64x32xf32, #tpu.memory_space<vmem>>, vector<1x8x32xf32>
    %411 = vector.shape_cast %410 : vector<1x8x32xf32> to vector<8x32xf32>
    %c5_215 = arith.constant 5 : index
    %412 = arith.index_cast %396 : i32 to index
    %c0_216 = arith.constant 0 : index
    %413 = vector.load %arg13[%c5_215, %412, %c0_216] : memref<6x64x32xf32, #tpu.memory_space<vmem>>, vector<1x8x32xf32>
    %414 = vector.shape_cast %413 : vector<1x8x32xf32> to vector<8x32xf32>
    %cst_217 = arith.constant dense<0.000000e+00> : vector<8x32xf32>
    %415 = tpu.matmul %363, %69, %cst_217 {dimension_numbers = #tpu.dot_dimension_numbers<[1], [0], [0], [1], [0, 0, 1, 1], [], []>} : vector<8x32xf32>, vector<32x32xf32>, vector<8x32xf32> -> vector<8x32xf32>
    %cst_218 = arith.constant dense<0.000000e+00> : vector<8x32xf32>
    %416 = tpu.matmul %363, %71, %cst_218 {dimension_numbers = #tpu.dot_dimension_numbers<[1], [0], [0], [1], [0, 0, 1, 1], [], []>} : vector<8x32xf32>, vector<32x32xf32>, vector<8x32xf32> -> vector<8x32xf32>
    %cst_219 = arith.constant dense<0.000000e+00> : vector<8x32xf32>
    %417 = tpu.matmul %363, %73, %cst_219 {dimension_numbers = #tpu.dot_dimension_numbers<[1], [0], [0], [1], [0, 0, 1, 1], [], []>} : vector<8x32xf32>, vector<32x32xf32>, vector<8x32xf32> -> vector<8x32xf32>
    %418 = arith.addf %417, %83 : vector<8x32xf32>
    %419 = arith.addf %399, %415 : vector<8x32xf32>
    %420 = arith.negf %419 : vector<8x32xf32>
    %421 = math.exp %420 : vector<8x32xf32>
    %cst_220 = arith.constant 1.000000e+00 : f32
    %422 = vector.broadcast %cst_220 : f32 to vector<8x32xf32>
    %423 = arith.addf %422, %421 : vector<8x32xf32>
    %424 = arith.divf %422, %423 : vector<8x32xf32>
    %425 = arith.addf %402, %416 : vector<8x32xf32>
    %426 = arith.negf %425 : vector<8x32xf32>
    %427 = math.exp %426 : vector<8x32xf32>
    %cst_221 = arith.constant 1.000000e+00 : f32
    %428 = vector.broadcast %cst_221 : f32 to vector<8x32xf32>
    %429 = arith.addf %428, %427 : vector<8x32xf32>
    %430 = arith.divf %428, %429 : vector<8x32xf32>
    %431 = arith.mulf %424, %418 : vector<8x32xf32>
    %432 = arith.addf %405, %431 : vector<8x32xf32>
    %433 = math.tanh %432 : vector<8x32xf32>
    %cst_222 = arith.constant 1.000000e+00 : f32
    %434 = vector.broadcast %cst_222 : f32 to vector<8x32xf32>
    %435 = arith.subf %434, %430 : vector<8x32xf32>
    %436 = arith.mulf %435, %433 : vector<8x32xf32>
    %437 = arith.mulf %430, %363 : vector<8x32xf32>
    %438 = arith.addf %436, %437 : vector<8x32xf32>
    %cst_223 = arith.constant dense<0.000000e+00> : vector<8x32xf32>
    %439 = tpu.matmul %387, %75, %cst_223 {dimension_numbers = #tpu.dot_dimension_numbers<[1], [0], [0], [1], [0, 0, 1, 1], [], []>} : vector<8x32xf32>, vector<32x32xf32>, vector<8x32xf32> -> vector<8x32xf32>
    %cst_224 = arith.constant dense<0.000000e+00> : vector<8x32xf32>
    %440 = tpu.matmul %387, %77, %cst_224 {dimension_numbers = #tpu.dot_dimension_numbers<[1], [0], [0], [1], [0, 0, 1, 1], [], []>} : vector<8x32xf32>, vector<32x32xf32>, vector<8x32xf32> -> vector<8x32xf32>
    %cst_225 = arith.constant dense<0.000000e+00> : vector<8x32xf32>
    %441 = tpu.matmul %387, %79, %cst_225 {dimension_numbers = #tpu.dot_dimension_numbers<[1], [0], [0], [1], [0, 0, 1, 1], [], []>} : vector<8x32xf32>, vector<32x32xf32>, vector<8x32xf32> -> vector<8x32xf32>
    %442 = arith.addf %441, %87 : vector<8x32xf32>
    %443 = arith.addf %408, %439 : vector<8x32xf32>
    %444 = arith.negf %443 : vector<8x32xf32>
    %445 = math.exp %444 : vector<8x32xf32>
    %cst_226 = arith.constant 1.000000e+00 : f32
    %446 = vector.broadcast %cst_226 : f32 to vector<8x32xf32>
    %447 = arith.addf %446, %445 : vector<8x32xf32>
    %448 = arith.divf %446, %447 : vector<8x32xf32>
    %449 = arith.addf %411, %440 : vector<8x32xf32>
    %450 = arith.negf %449 : vector<8x32xf32>
    %451 = math.exp %450 : vector<8x32xf32>
    %cst_227 = arith.constant 1.000000e+00 : f32
    %452 = vector.broadcast %cst_227 : f32 to vector<8x32xf32>
    %453 = arith.addf %452, %451 : vector<8x32xf32>
    %454 = arith.divf %452, %453 : vector<8x32xf32>
    %455 = arith.mulf %448, %442 : vector<8x32xf32>
    %456 = arith.addf %414, %455 : vector<8x32xf32>
    %457 = math.tanh %456 : vector<8x32xf32>
    %cst_228 = arith.constant 1.000000e+00 : f32
    %458 = vector.broadcast %cst_228 : f32 to vector<8x32xf32>
    %459 = arith.subf %458, %454 : vector<8x32xf32>
    %460 = arith.mulf %459, %457 : vector<8x32xf32>
    %461 = arith.mulf %454, %387 : vector<8x32xf32>
    %462 = arith.addf %460, %461 : vector<8x32xf32>
    %463 = arith.index_cast %393 : i32 to index
    %c0_229 = arith.constant 0 : index
    %464 = vector.load %arg14[%463, %c0_229] : memref<64x32xf32, #tpu.memory_space<vmem>>, vector<8x32xf32>
    tpu.vector_store %arg14[%463, %c0_229], %438 {strides = array<i32>} : memref<64x32xf32, #tpu.memory_space<vmem>>, vector<8x32xf32>,
    %465 = arith.index_cast %396 : i32 to index
    %c0_230 = arith.constant 0 : index
    %466 = vector.load %arg15[%465, %c0_230] : memref<64x32xf32, #tpu.memory_space<vmem>>, vector<8x32xf32>
    tpu.vector_store %arg15[%465, %c0_230], %462 {strides = array<i32>} : memref<64x32xf32, #tpu.memory_space<vmem>>, vector<8x32xf32>,
    %c5_i32 = arith.constant 5 : i32
    %c8_i32_231 = arith.constant 8 : i32
    %467 = arith.muli %c5_i32, %c8_i32_231 : i32
    %468 = tpu.assume_multiple %467, 8 : i32
    %c7_i32_232 = arith.constant 7 : i32
    %469 = arith.subi %c7_i32_232, %c5_i32 : i32
    %c8_i32_233 = arith.constant 8 : i32
    %470 = arith.muli %469, %c8_i32_233 : i32
    %471 = tpu.assume_multiple %470, 8 : i32
    %c0_234 = arith.constant 0 : index
    %472 = arith.index_cast %468 : i32 to index
    %c0_235 = arith.constant 0 : index
    %473 = vector.load %arg13[%c0_234, %472, %c0_235] : memref<6x64x32xf32, #tpu.memory_space<vmem>>, vector<1x8x32xf32>
    %474 = vector.shape_cast %473 : vector<1x8x32xf32> to vector<8x32xf32>
    %c1_236 = arith.constant 1 : index
    %475 = arith.index_cast %468 : i32 to index
    %c0_237 = arith.constant 0 : index
    %476 = vector.load %arg13[%c1_236, %475, %c0_237] : memref<6x64x32xf32, #tpu.memory_space<vmem>>, vector<1x8x32xf32>
    %477 = vector.shape_cast %476 : vector<1x8x32xf32> to vector<8x32xf32>
    %c2_238 = arith.constant 2 : index
    %478 = arith.index_cast %468 : i32 to index
    %c0_239 = arith.constant 0 : index
    %479 = vector.load %arg13[%c2_238, %478, %c0_239] : memref<6x64x32xf32, #tpu.memory_space<vmem>>, vector<1x8x32xf32>
    %480 = vector.shape_cast %479 : vector<1x8x32xf32> to vector<8x32xf32>
    %c3_240 = arith.constant 3 : index
    %481 = arith.index_cast %471 : i32 to index
    %c0_241 = arith.constant 0 : index
    %482 = vector.load %arg13[%c3_240, %481, %c0_241] : memref<6x64x32xf32, #tpu.memory_space<vmem>>, vector<1x8x32xf32>
    %483 = vector.shape_cast %482 : vector<1x8x32xf32> to vector<8x32xf32>
    %c4_242 = arith.constant 4 : index
    %484 = arith.index_cast %471 : i32 to index
    %c0_243 = arith.constant 0 : index
    %485 = vector.load %arg13[%c4_242, %484, %c0_243] : memref<6x64x32xf32, #tpu.memory_space<vmem>>, vector<1x8x32xf32>
    %486 = vector.shape_cast %485 : vector<1x8x32xf32> to vector<8x32xf32>
    %c5_244 = arith.constant 5 : index
    %487 = arith.index_cast %471 : i32 to index
    %c0_245 = arith.constant 0 : index
    %488 = vector.load %arg13[%c5_244, %487, %c0_245] : memref<6x64x32xf32, #tpu.memory_space<vmem>>, vector<1x8x32xf32>
    %489 = vector.shape_cast %488 : vector<1x8x32xf32> to vector<8x32xf32>
    %cst_246 = arith.constant dense<0.000000e+00> : vector<8x32xf32>
    %490 = tpu.matmul %438, %69, %cst_246 {dimension_numbers = #tpu.dot_dimension_numbers<[1], [0], [0], [1], [0, 0, 1, 1], [], []>} : vector<8x32xf32>, vector<32x32xf32>, vector<8x32xf32> -> vector<8x32xf32>
    %cst_247 = arith.constant dense<0.000000e+00> : vector<8x32xf32>
    %491 = tpu.matmul %438, %71, %cst_247 {dimension_numbers = #tpu.dot_dimension_numbers<[1], [0], [0], [1], [0, 0, 1, 1], [], []>} : vector<8x32xf32>, vector<32x32xf32>, vector<8x32xf32> -> vector<8x32xf32>
    %cst_248 = arith.constant dense<0.000000e+00> : vector<8x32xf32>
    %492 = tpu.matmul %438, %73, %cst_248 {dimension_numbers = #tpu.dot_dimension_numbers<[1], [0], [0], [1], [0, 0, 1, 1], [], []>} : vector<8x32xf32>, vector<32x32xf32>, vector<8x32xf32> -> vector<8x32xf32>
    %493 = arith.addf %492, %83 : vector<8x32xf32>
    %494 = arith.addf %474, %490 : vector<8x32xf32>
    %495 = arith.negf %494 : vector<8x32xf32>
    %496 = math.exp %495 : vector<8x32xf32>
    %cst_249 = arith.constant 1.000000e+00 : f32
    %497 = vector.broadcast %cst_249 : f32 to vector<8x32xf32>
    %498 = arith.addf %497, %496 : vector<8x32xf32>
    %499 = arith.divf %497, %498 : vector<8x32xf32>
    %500 = arith.addf %477, %491 : vector<8x32xf32>
    %501 = arith.negf %500 : vector<8x32xf32>
    %502 = math.exp %501 : vector<8x32xf32>
    %cst_250 = arith.constant 1.000000e+00 : f32
    %503 = vector.broadcast %cst_250 : f32 to vector<8x32xf32>
    %504 = arith.addf %503, %502 : vector<8x32xf32>
    %505 = arith.divf %503, %504 : vector<8x32xf32>
    %506 = arith.mulf %499, %493 : vector<8x32xf32>
    %507 = arith.addf %480, %506 : vector<8x32xf32>
    %508 = math.tanh %507 : vector<8x32xf32>
    %cst_251 = arith.constant 1.000000e+00 : f32
    %509 = vector.broadcast %cst_251 : f32 to vector<8x32xf32>
    %510 = arith.subf %509, %505 : vector<8x32xf32>
    %511 = arith.mulf %510, %508 : vector<8x32xf32>
    %512 = arith.mulf %505, %438 : vector<8x32xf32>
    %513 = arith.addf %511, %512 : vector<8x32xf32>
    %cst_252 = arith.constant dense<0.000000e+00> : vector<8x32xf32>
    %514 = tpu.matmul %462, %75, %cst_252 {dimension_numbers = #tpu.dot_dimension_numbers<[1], [0], [0], [1], [0, 0, 1, 1], [], []>} : vector<8x32xf32>, vector<32x32xf32>, vector<8x32xf32> -> vector<8x32xf32>
    %cst_253 = arith.constant dense<0.000000e+00> : vector<8x32xf32>
    %515 = tpu.matmul %462, %77, %cst_253 {dimension_numbers = #tpu.dot_dimension_numbers<[1], [0], [0], [1], [0, 0, 1, 1], [], []>} : vector<8x32xf32>, vector<32x32xf32>, vector<8x32xf32> -> vector<8x32xf32>
    %cst_254 = arith.constant dense<0.000000e+00> : vector<8x32xf32>
    %516 = tpu.matmul %462, %79, %cst_254 {dimension_numbers = #tpu.dot_dimension_numbers<[1], [0], [0], [1], [0, 0, 1, 1], [], []>} : vector<8x32xf32>, vector<32x32xf32>, vector<8x32xf32> -> vector<8x32xf32>
    %517 = arith.addf %516, %87 : vector<8x32xf32>
    %518 = arith.addf %483, %514 : vector<8x32xf32>
    %519 = arith.negf %518 : vector<8x32xf32>
    %520 = math.exp %519 : vector<8x32xf32>
    %cst_255 = arith.constant 1.000000e+00 : f32
    %521 = vector.broadcast %cst_255 : f32 to vector<8x32xf32>
    %522 = arith.addf %521, %520 : vector<8x32xf32>
    %523 = arith.divf %521, %522 : vector<8x32xf32>
    %524 = arith.addf %486, %515 : vector<8x32xf32>
    %525 = arith.negf %524 : vector<8x32xf32>
    %526 = math.exp %525 : vector<8x32xf32>
    %cst_256 = arith.constant 1.000000e+00 : f32
    %527 = vector.broadcast %cst_256 : f32 to vector<8x32xf32>
    %528 = arith.addf %527, %526 : vector<8x32xf32>
    %529 = arith.divf %527, %528 : vector<8x32xf32>
    %530 = arith.mulf %523, %517 : vector<8x32xf32>
    %531 = arith.addf %489, %530 : vector<8x32xf32>
    %532 = math.tanh %531 : vector<8x32xf32>
    %cst_257 = arith.constant 1.000000e+00 : f32
    %533 = vector.broadcast %cst_257 : f32 to vector<8x32xf32>
    %534 = arith.subf %533, %529 : vector<8x32xf32>
    %535 = arith.mulf %534, %532 : vector<8x32xf32>
    %536 = arith.mulf %529, %462 : vector<8x32xf32>
    %537 = arith.addf %535, %536 : vector<8x32xf32>
    %538 = arith.index_cast %468 : i32 to index
    %c0_258 = arith.constant 0 : index
    %539 = vector.load %arg14[%538, %c0_258] : memref<64x32xf32, #tpu.memory_space<vmem>>, vector<8x32xf32>
    tpu.vector_store %arg14[%538, %c0_258], %513 {strides = array<i32>} : memref<64x32xf32, #tpu.memory_space<vmem>>, vector<8x32xf32>,
    %540 = arith.index_cast %471 : i32 to index
    %c0_259 = arith.constant 0 : index
    %541 = vector.load %arg15[%540, %c0_259] : memref<64x32xf32, #tpu.memory_space<vmem>>, vector<8x32xf32>
    tpu.vector_store %arg15[%540, %c0_259], %537 {strides = array<i32>} : memref<64x32xf32, #tpu.memory_space<vmem>>, vector<8x32xf32>,
    %c6_i32 = arith.constant 6 : i32
    %c8_i32_260 = arith.constant 8 : i32
    %542 = arith.muli %c6_i32, %c8_i32_260 : i32
    %543 = tpu.assume_multiple %542, 8 : i32
    %c7_i32_261 = arith.constant 7 : i32
    %544 = arith.subi %c7_i32_261, %c6_i32 : i32
    %c8_i32_262 = arith.constant 8 : i32
    %545 = arith.muli %544, %c8_i32_262 : i32
    %546 = tpu.assume_multiple %545, 8 : i32
    %c0_263 = arith.constant 0 : index
    %547 = arith.index_cast %543 : i32 to index
    %c0_264 = arith.constant 0 : index
    %548 = vector.load %arg13[%c0_263, %547, %c0_264] : memref<6x64x32xf32, #tpu.memory_space<vmem>>, vector<1x8x32xf32>
    %549 = vector.shape_cast %548 : vector<1x8x32xf32> to vector<8x32xf32>
    %c1_265 = arith.constant 1 : index
    %550 = arith.index_cast %543 : i32 to index
    %c0_266 = arith.constant 0 : index
    %551 = vector.load %arg13[%c1_265, %550, %c0_266] : memref<6x64x32xf32, #tpu.memory_space<vmem>>, vector<1x8x32xf32>
    %552 = vector.shape_cast %551 : vector<1x8x32xf32> to vector<8x32xf32>
    %c2_267 = arith.constant 2 : index
    %553 = arith.index_cast %543 : i32 to index
    %c0_268 = arith.constant 0 : index
    %554 = vector.load %arg13[%c2_267, %553, %c0_268] : memref<6x64x32xf32, #tpu.memory_space<vmem>>, vector<1x8x32xf32>
    %555 = vector.shape_cast %554 : vector<1x8x32xf32> to vector<8x32xf32>
    %c3_269 = arith.constant 3 : index
    %556 = arith.index_cast %546 : i32 to index
    %c0_270 = arith.constant 0 : index
    %557 = vector.load %arg13[%c3_269, %556, %c0_270] : memref<6x64x32xf32, #tpu.memory_space<vmem>>, vector<1x8x32xf32>
    %558 = vector.shape_cast %557 : vector<1x8x32xf32> to vector<8x32xf32>
    %c4_271 = arith.constant 4 : index
    %559 = arith.index_cast %546 : i32 to index
    %c0_272 = arith.constant 0 : index
    %560 = vector.load %arg13[%c4_271, %559, %c0_272] : memref<6x64x32xf32, #tpu.memory_space<vmem>>, vector<1x8x32xf32>
    %561 = vector.shape_cast %560 : vector<1x8x32xf32> to vector<8x32xf32>
    %c5_273 = arith.constant 5 : index
    %562 = arith.index_cast %546 : i32 to index
    %c0_274 = arith.constant 0 : index
    %563 = vector.load %arg13[%c5_273, %562, %c0_274] : memref<6x64x32xf32, #tpu.memory_space<vmem>>, vector<1x8x32xf32>
    %564 = vector.shape_cast %563 : vector<1x8x32xf32> to vector<8x32xf32>
    %cst_275 = arith.constant dense<0.000000e+00> : vector<8x32xf32>
    %565 = tpu.matmul %513, %69, %cst_275 {dimension_numbers = #tpu.dot_dimension_numbers<[1], [0], [0], [1], [0, 0, 1, 1], [], []>} : vector<8x32xf32>, vector<32x32xf32>, vector<8x32xf32> -> vector<8x32xf32>
    %cst_276 = arith.constant dense<0.000000e+00> : vector<8x32xf32>
    %566 = tpu.matmul %513, %71, %cst_276 {dimension_numbers = #tpu.dot_dimension_numbers<[1], [0], [0], [1], [0, 0, 1, 1], [], []>} : vector<8x32xf32>, vector<32x32xf32>, vector<8x32xf32> -> vector<8x32xf32>
    %cst_277 = arith.constant dense<0.000000e+00> : vector<8x32xf32>
    %567 = tpu.matmul %513, %73, %cst_277 {dimension_numbers = #tpu.dot_dimension_numbers<[1], [0], [0], [1], [0, 0, 1, 1], [], []>} : vector<8x32xf32>, vector<32x32xf32>, vector<8x32xf32> -> vector<8x32xf32>
    %568 = arith.addf %567, %83 : vector<8x32xf32>
    %569 = arith.addf %549, %565 : vector<8x32xf32>
    %570 = arith.negf %569 : vector<8x32xf32>
    %571 = math.exp %570 : vector<8x32xf32>
    %cst_278 = arith.constant 1.000000e+00 : f32
    %572 = vector.broadcast %cst_278 : f32 to vector<8x32xf32>
    %573 = arith.addf %572, %571 : vector<8x32xf32>
    %574 = arith.divf %572, %573 : vector<8x32xf32>
    %575 = arith.addf %552, %566 : vector<8x32xf32>
    %576 = arith.negf %575 : vector<8x32xf32>
    %577 = math.exp %576 : vector<8x32xf32>
    %cst_279 = arith.constant 1.000000e+00 : f32
    %578 = vector.broadcast %cst_279 : f32 to vector<8x32xf32>
    %579 = arith.addf %578, %577 : vector<8x32xf32>
    %580 = arith.divf %578, %579 : vector<8x32xf32>
    %581 = arith.mulf %574, %568 : vector<8x32xf32>
    %582 = arith.addf %555, %581 : vector<8x32xf32>
    %583 = math.tanh %582 : vector<8x32xf32>
    %cst_280 = arith.constant 1.000000e+00 : f32
    %584 = vector.broadcast %cst_280 : f32 to vector<8x32xf32>
    %585 = arith.subf %584, %580 : vector<8x32xf32>
    %586 = arith.mulf %585, %583 : vector<8x32xf32>
    %587 = arith.mulf %580, %513 : vector<8x32xf32>
    %588 = arith.addf %586, %587 : vector<8x32xf32>
    %cst_281 = arith.constant dense<0.000000e+00> : vector<8x32xf32>
    %589 = tpu.matmul %537, %75, %cst_281 {dimension_numbers = #tpu.dot_dimension_numbers<[1], [0], [0], [1], [0, 0, 1, 1], [], []>} : vector<8x32xf32>, vector<32x32xf32>, vector<8x32xf32> -> vector<8x32xf32>
    %cst_282 = arith.constant dense<0.000000e+00> : vector<8x32xf32>
    %590 = tpu.matmul %537, %77, %cst_282 {dimension_numbers = #tpu.dot_dimension_numbers<[1], [0], [0], [1], [0, 0, 1, 1], [], []>} : vector<8x32xf32>, vector<32x32xf32>, vector<8x32xf32> -> vector<8x32xf32>
    %cst_283 = arith.constant dense<0.000000e+00> : vector<8x32xf32>
    %591 = tpu.matmul %537, %79, %cst_283 {dimension_numbers = #tpu.dot_dimension_numbers<[1], [0], [0], [1], [0, 0, 1, 1], [], []>} : vector<8x32xf32>, vector<32x32xf32>, vector<8x32xf32> -> vector<8x32xf32>
    %592 = arith.addf %591, %87 : vector<8x32xf32>
    %593 = arith.addf %558, %589 : vector<8x32xf32>
    %594 = arith.negf %593 : vector<8x32xf32>
    %595 = math.exp %594 : vector<8x32xf32>
    %cst_284 = arith.constant 1.000000e+00 : f32
    %596 = vector.broadcast %cst_284 : f32 to vector<8x32xf32>
    %597 = arith.addf %596, %595 : vector<8x32xf32>
    %598 = arith.divf %596, %597 : vector<8x32xf32>
    %599 = arith.addf %561, %590 : vector<8x32xf32>
    %600 = arith.negf %599 : vector<8x32xf32>
    %601 = math.exp %600 : vector<8x32xf32>
    %cst_285 = arith.constant 1.000000e+00 : f32
    %602 = vector.broadcast %cst_285 : f32 to vector<8x32xf32>
    %603 = arith.addf %602, %601 : vector<8x32xf32>
    %604 = arith.divf %602, %603 : vector<8x32xf32>
    %605 = arith.mulf %598, %592 : vector<8x32xf32>
    %606 = arith.addf %564, %605 : vector<8x32xf32>
    %607 = math.tanh %606 : vector<8x32xf32>
    %cst_286 = arith.constant 1.000000e+00 : f32
    %608 = vector.broadcast %cst_286 : f32 to vector<8x32xf32>
    %609 = arith.subf %608, %604 : vector<8x32xf32>
    %610 = arith.mulf %609, %607 : vector<8x32xf32>
    %611 = arith.mulf %604, %537 : vector<8x32xf32>
    %612 = arith.addf %610, %611 : vector<8x32xf32>
    %613 = arith.index_cast %543 : i32 to index
    %c0_287 = arith.constant 0 : index
    %614 = vector.load %arg14[%613, %c0_287] : memref<64x32xf32, #tpu.memory_space<vmem>>, vector<8x32xf32>
    tpu.vector_store %arg14[%613, %c0_287], %588 {strides = array<i32>} : memref<64x32xf32, #tpu.memory_space<vmem>>, vector<8x32xf32>,
    %615 = arith.index_cast %546 : i32 to index
    %c0_288 = arith.constant 0 : index
    %616 = vector.load %arg15[%615, %c0_288] : memref<64x32xf32, #tpu.memory_space<vmem>>, vector<8x32xf32>
    tpu.vector_store %arg15[%615, %c0_288], %612 {strides = array<i32>} : memref<64x32xf32, #tpu.memory_space<vmem>>, vector<8x32xf32>,
    %c7_i32_289 = arith.constant 7 : i32
    %c8_i32_290 = arith.constant 8 : i32
    %617 = arith.muli %c7_i32_289, %c8_i32_290 : i32
    %618 = tpu.assume_multiple %617, 8 : i32
    %c7_i32_291 = arith.constant 7 : i32
    %619 = arith.subi %c7_i32_291, %c7_i32_289 : i32
    %c8_i32_292 = arith.constant 8 : i32
    %620 = arith.muli %619, %c8_i32_292 : i32
    %621 = tpu.assume_multiple %620, 8 : i32
    %c0_293 = arith.constant 0 : index
    %622 = arith.index_cast %618 : i32 to index
    %c0_294 = arith.constant 0 : index
    %623 = vector.load %arg13[%c0_293, %622, %c0_294] : memref<6x64x32xf32, #tpu.memory_space<vmem>>, vector<1x8x32xf32>
    %624 = vector.shape_cast %623 : vector<1x8x32xf32> to vector<8x32xf32>
    %c1_295 = arith.constant 1 : index
    %625 = arith.index_cast %618 : i32 to index
    %c0_296 = arith.constant 0 : index
    %626 = vector.load %arg13[%c1_295, %625, %c0_296] : memref<6x64x32xf32, #tpu.memory_space<vmem>>, vector<1x8x32xf32>
    %627 = vector.shape_cast %626 : vector<1x8x32xf32> to vector<8x32xf32>
    %c2_297 = arith.constant 2 : index
    %628 = arith.index_cast %618 : i32 to index
    %c0_298 = arith.constant 0 : index
    %629 = vector.load %arg13[%c2_297, %628, %c0_298] : memref<6x64x32xf32, #tpu.memory_space<vmem>>, vector<1x8x32xf32>
    %630 = vector.shape_cast %629 : vector<1x8x32xf32> to vector<8x32xf32>
    %c3_299 = arith.constant 3 : index
    %631 = arith.index_cast %621 : i32 to index
    %c0_300 = arith.constant 0 : index
    %632 = vector.load %arg13[%c3_299, %631, %c0_300] : memref<6x64x32xf32, #tpu.memory_space<vmem>>, vector<1x8x32xf32>
    %633 = vector.shape_cast %632 : vector<1x8x32xf32> to vector<8x32xf32>
    %c4_301 = arith.constant 4 : index
    %634 = arith.index_cast %621 : i32 to index
    %c0_302 = arith.constant 0 : index
    %635 = vector.load %arg13[%c4_301, %634, %c0_302] : memref<6x64x32xf32, #tpu.memory_space<vmem>>, vector<1x8x32xf32>
    %636 = vector.shape_cast %635 : vector<1x8x32xf32> to vector<8x32xf32>
    %c5_303 = arith.constant 5 : index
    %637 = arith.index_cast %621 : i32 to index
    %c0_304 = arith.constant 0 : index
    %638 = vector.load %arg13[%c5_303, %637, %c0_304] : memref<6x64x32xf32, #tpu.memory_space<vmem>>, vector<1x8x32xf32>
    %639 = vector.shape_cast %638 : vector<1x8x32xf32> to vector<8x32xf32>
    %cst_305 = arith.constant dense<0.000000e+00> : vector<8x32xf32>
    %640 = tpu.matmul %588, %69, %cst_305 {dimension_numbers = #tpu.dot_dimension_numbers<[1], [0], [0], [1], [0, 0, 1, 1], [], []>} : vector<8x32xf32>, vector<32x32xf32>, vector<8x32xf32> -> vector<8x32xf32>
    %cst_306 = arith.constant dense<0.000000e+00> : vector<8x32xf32>
    %641 = tpu.matmul %588, %71, %cst_306 {dimension_numbers = #tpu.dot_dimension_numbers<[1], [0], [0], [1], [0, 0, 1, 1], [], []>} : vector<8x32xf32>, vector<32x32xf32>, vector<8x32xf32> -> vector<8x32xf32>
    %cst_307 = arith.constant dense<0.000000e+00> : vector<8x32xf32>
    %642 = tpu.matmul %588, %73, %cst_307 {dimension_numbers = #tpu.dot_dimension_numbers<[1], [0], [0], [1], [0, 0, 1, 1], [], []>} : vector<8x32xf32>, vector<32x32xf32>, vector<8x32xf32> -> vector<8x32xf32>
    %643 = arith.addf %642, %83 : vector<8x32xf32>
    %644 = arith.addf %624, %640 : vector<8x32xf32>
    %645 = arith.negf %644 : vector<8x32xf32>
    %646 = math.exp %645 : vector<8x32xf32>
    %cst_308 = arith.constant 1.000000e+00 : f32
    %647 = vector.broadcast %cst_308 : f32 to vector<8x32xf32>
    %648 = arith.addf %647, %646 : vector<8x32xf32>
    %649 = arith.divf %647, %648 : vector<8x32xf32>
    %650 = arith.addf %627, %641 : vector<8x32xf32>
    %651 = arith.negf %650 : vector<8x32xf32>
    %652 = math.exp %651 : vector<8x32xf32>
    %cst_309 = arith.constant 1.000000e+00 : f32
    %653 = vector.broadcast %cst_309 : f32 to vector<8x32xf32>
    %654 = arith.addf %653, %652 : vector<8x32xf32>
    %655 = arith.divf %653, %654 : vector<8x32xf32>
    %656 = arith.mulf %649, %643 : vector<8x32xf32>
    %657 = arith.addf %630, %656 : vector<8x32xf32>
    %658 = math.tanh %657 : vector<8x32xf32>
    %cst_310 = arith.constant 1.000000e+00 : f32
    %659 = vector.broadcast %cst_310 : f32 to vector<8x32xf32>
    %660 = arith.subf %659, %655 : vector<8x32xf32>
    %661 = arith.mulf %660, %658 : vector<8x32xf32>
    %662 = arith.mulf %655, %588 : vector<8x32xf32>
    %663 = arith.addf %661, %662 : vector<8x32xf32>
    %cst_311 = arith.constant dense<0.000000e+00> : vector<8x32xf32>
    %664 = tpu.matmul %612, %75, %cst_311 {dimension_numbers = #tpu.dot_dimension_numbers<[1], [0], [0], [1], [0, 0, 1, 1], [], []>} : vector<8x32xf32>, vector<32x32xf32>, vector<8x32xf32> -> vector<8x32xf32>
    %cst_312 = arith.constant dense<0.000000e+00> : vector<8x32xf32>
    %665 = tpu.matmul %612, %77, %cst_312 {dimension_numbers = #tpu.dot_dimension_numbers<[1], [0], [0], [1], [0, 0, 1, 1], [], []>} : vector<8x32xf32>, vector<32x32xf32>, vector<8x32xf32> -> vector<8x32xf32>
    %cst_313 = arith.constant dense<0.000000e+00> : vector<8x32xf32>
    %666 = tpu.matmul %612, %79, %cst_313 {dimension_numbers = #tpu.dot_dimension_numbers<[1], [0], [0], [1], [0, 0, 1, 1], [], []>} : vector<8x32xf32>, vector<32x32xf32>, vector<8x32xf32> -> vector<8x32xf32>
    %667 = arith.addf %666, %87 : vector<8x32xf32>
    %668 = arith.addf %633, %664 : vector<8x32xf32>
    %669 = arith.negf %668 : vector<8x32xf32>
    %670 = math.exp %669 : vector<8x32xf32>
    %cst_314 = arith.constant 1.000000e+00 : f32
    %671 = vector.broadcast %cst_314 : f32 to vector<8x32xf32>
    %672 = arith.addf %671, %670 : vector<8x32xf32>
    %673 = arith.divf %671, %672 : vector<8x32xf32>
    %674 = arith.addf %636, %665 : vector<8x32xf32>
    %675 = arith.negf %674 : vector<8x32xf32>
    %676 = math.exp %675 : vector<8x32xf32>
    %cst_315 = arith.constant 1.000000e+00 : f32
    %677 = vector.broadcast %cst_315 : f32 to vector<8x32xf32>
    %678 = arith.addf %677, %676 : vector<8x32xf32>
    %679 = arith.divf %677, %678 : vector<8x32xf32>
    %680 = arith.mulf %673, %667 : vector<8x32xf32>
    %681 = arith.addf %639, %680 : vector<8x32xf32>
    %682 = math.tanh %681 : vector<8x32xf32>
    %cst_316 = arith.constant 1.000000e+00 : f32
    %683 = vector.broadcast %cst_316 : f32 to vector<8x32xf32>
    %684 = arith.subf %683, %679 : vector<8x32xf32>
    %685 = arith.mulf %684, %682 : vector<8x32xf32>
    %686 = arith.mulf %679, %612 : vector<8x32xf32>
    %687 = arith.addf %685, %686 : vector<8x32xf32>
    %688 = arith.index_cast %618 : i32 to index
    %c0_317 = arith.constant 0 : index
    %689 = vector.load %arg14[%688, %c0_317] : memref<64x32xf32, #tpu.memory_space<vmem>>, vector<8x32xf32>
    tpu.vector_store %arg14[%688, %c0_317], %663 {strides = array<i32>} : memref<64x32xf32, #tpu.memory_space<vmem>>, vector<8x32xf32>,
    %690 = arith.index_cast %621 : i32 to index
    %c0_318 = arith.constant 0 : index
    %691 = vector.load %arg15[%690, %c0_318] : memref<64x32xf32, #tpu.memory_space<vmem>>, vector<8x32xf32>
    tpu.vector_store %arg15[%690, %c0_318], %687 {strides = array<i32>} : memref<64x32xf32, #tpu.memory_space<vmem>>, vector<8x32xf32>,
    %c8_i32_319 = arith.constant 8 : i32
    %c0_320 = arith.constant 0 : index
    %c0_321 = arith.constant 0 : index
    %c0_322 = arith.constant 0 : index
    %692 = vector.load %arg12[%c0_320, %c0_321, %c0_322] : memref<4x8x32xf32, #tpu.memory_space<vmem>>, vector<1x8x32xf32>
    %693 = vector.shape_cast %692 : vector<1x8x32xf32> to vector<8x32xf32>
    %694 = vector.shape_cast %663 : vector<8x32xf32> to vector<1x8x32xf32>
    tpu.vector_store %arg12[%c0_320, %c0_321, %c0_322], %694 {strides = array<i32>} : memref<4x8x32xf32, #tpu.memory_space<vmem>>, vector<1x8x32xf32>,
    %c1_323 = arith.constant 1 : index
    %c0_324 = arith.constant 0 : index
    %c0_325 = arith.constant 0 : index
    %695 = vector.load %arg12[%c1_323, %c0_324, %c0_325] : memref<4x8x32xf32, #tpu.memory_space<vmem>>, vector<1x8x32xf32>
    %696 = vector.shape_cast %695 : vector<1x8x32xf32> to vector<8x32xf32>
    %697 = vector.shape_cast %687 : vector<8x32xf32> to vector<1x8x32xf32>
    tpu.vector_store %arg12[%c1_323, %c0_324, %c0_325], %697 {strides = array<i32>} : memref<4x8x32xf32, #tpu.memory_space<vmem>>, vector<1x8x32xf32>,
    %c0_326 = arith.constant 0 : index
    %c0_327 = arith.constant 0 : index
    %698 = vector.load %arg14[%c0_326, %c0_327] : memref<64x32xf32, #tpu.memory_space<vmem>>, vector<64x32xf32>
    %c0_328 = arith.constant 0 : index
    %c0_329 = arith.constant 0 : index
    %699 = vector.load %arg15[%c0_328, %c0_329] : memref<64x32xf32, #tpu.memory_space<vmem>>, vector<64x32xf32>
    %c0_330 = arith.constant 0 : index
    %c0_331 = arith.constant 0 : index
    %c0_332 = arith.constant 0 : index
    %700 = vector.load %arg7[%c0_330, %c0_331, %c0_332] : memref<12x32x32xf32, #tpu.memory_space<vmem>>, vector<1x32x32xf32>
    %701 = vector.shape_cast %700 : vector<1x32x32xf32> to vector<32x32xf32>
    %cst_333 = arith.constant dense<0.000000e+00> : vector<64x32xf32>
    %702 = tpu.matmul %698, %701, %cst_333 {dimension_numbers = #tpu.dot_dimension_numbers<[1], [0], [0], [1], [0, 0, 1, 1], [], []>} : vector<64x32xf32>, vector<32x32xf32>, vector<64x32xf32> -> vector<64x32xf32>
    %c1_334 = arith.constant 1 : index
    %c0_335 = arith.constant 0 : index
    %c0_336 = arith.constant 0 : index
    %703 = vector.load %arg7[%c1_334, %c0_335, %c0_336] : memref<12x32x32xf32, #tpu.memory_space<vmem>>, vector<1x32x32xf32>
    %704 = vector.shape_cast %703 : vector<1x32x32xf32> to vector<32x32xf32>
    %cst_337 = arith.constant dense<0.000000e+00> : vector<64x32xf32>
    %705 = tpu.matmul %699, %704, %cst_337 {dimension_numbers = #tpu.dot_dimension_numbers<[1], [0], [0], [1], [0, 0, 1, 1], [], []>} : vector<64x32xf32>, vector<32x32xf32>, vector<64x32xf32> -> vector<64x32xf32>
    %706 = arith.addf %702, %705 : vector<64x32xf32>
    %c0_338 = arith.constant 0 : index
    %c0_339 = arith.constant 0 : index
    %c0_340 = arith.constant 0 : index
    %707 = vector.load %arg9[%c0_338, %c0_339, %c0_340] : memref<6x1x32xf32, #tpu.memory_space<vmem>>, vector<1x1x32xf32>
    %708 = vector.shape_cast %707 : vector<1x1x32xf32> to vector<1x32xf32>
    %709 = vector.broadcast %708 : vector<1x32xf32> to vector<64x32xf32>
    %710 = arith.addf %706, %709 : vector<64x32xf32>
    %c0_341 = arith.constant 0 : index
    %c0_342 = arith.constant 0 : index
    %c0_343 = arith.constant 0 : index
    %711 = vector.load %arg13[%c0_341, %c0_342, %c0_343] : memref<6x64x32xf32, #tpu.memory_space<vmem>>, vector<1x64x32xf32>
    %712 = vector.shape_cast %711 : vector<1x64x32xf32> to vector<64x32xf32>
    %713 = vector.shape_cast %710 : vector<64x32xf32> to vector<1x64x32xf32>
    tpu.vector_store %arg13[%c0_341, %c0_342, %c0_343], %713 {strides = array<i32>} : memref<6x64x32xf32, #tpu.memory_space<vmem>>, vector<1x64x32xf32>,
    %c2_344 = arith.constant 2 : index
    %c0_345 = arith.constant 0 : index
    %c0_346 = arith.constant 0 : index
    %714 = vector.load %arg7[%c2_344, %c0_345, %c0_346] : memref<12x32x32xf32, #tpu.memory_space<vmem>>, vector<1x32x32xf32>
    %715 = vector.shape_cast %714 : vector<1x32x32xf32> to vector<32x32xf32>
    %cst_347 = arith.constant dense<0.000000e+00> : vector<64x32xf32>
    %716 = tpu.matmul %698, %715, %cst_347 {dimension_numbers = #tpu.dot_dimension_numbers<[1], [0], [0], [1], [0, 0, 1, 1], [], []>} : vector<64x32xf32>, vector<32x32xf32>, vector<64x32xf32> -> vector<64x32xf32>
    %c3_348 = arith.constant 3 : index
    %c0_349 = arith.constant 0 : index
    %c0_350 = arith.constant 0 : index
    %717 = vector.load %arg7[%c3_348, %c0_349, %c0_350] : memref<12x32x32xf32, #tpu.memory_space<vmem>>, vector<1x32x32xf32>
    %718 = vector.shape_cast %717 : vector<1x32x32xf32> to vector<32x32xf32>
    %cst_351 = arith.constant dense<0.000000e+00> : vector<64x32xf32>
    %719 = tpu.matmul %699, %718, %cst_351 {dimension_numbers = #tpu.dot_dimension_numbers<[1], [0], [0], [1], [0, 0, 1, 1], [], []>} : vector<64x32xf32>, vector<32x32xf32>, vector<64x32xf32> -> vector<64x32xf32>
    %720 = arith.addf %716, %719 : vector<64x32xf32>
    %c1_352 = arith.constant 1 : index
    %c0_353 = arith.constant 0 : index
    %c0_354 = arith.constant 0 : index
    %721 = vector.load %arg9[%c1_352, %c0_353, %c0_354] : memref<6x1x32xf32, #tpu.memory_space<vmem>>, vector<1x1x32xf32>
    %722 = vector.shape_cast %721 : vector<1x1x32xf32> to vector<1x32xf32>
    %723 = vector.broadcast %722 : vector<1x32xf32> to vector<64x32xf32>
    %724 = arith.addf %720, %723 : vector<64x32xf32>
    %c1_355 = arith.constant 1 : index
    %c0_356 = arith.constant 0 : index
    %c0_357 = arith.constant 0 : index
    %725 = vector.load %arg13[%c1_355, %c0_356, %c0_357] : memref<6x64x32xf32, #tpu.memory_space<vmem>>, vector<1x64x32xf32>
    %726 = vector.shape_cast %725 : vector<1x64x32xf32> to vector<64x32xf32>
    %727 = vector.shape_cast %724 : vector<64x32xf32> to vector<1x64x32xf32>
    tpu.vector_store %arg13[%c1_355, %c0_356, %c0_357], %727 {strides = array<i32>} : memref<6x64x32xf32, #tpu.memory_space<vmem>>, vector<1x64x32xf32>,
    %c4_358 = arith.constant 4 : index
    %c0_359 = arith.constant 0 : index
    %c0_360 = arith.constant 0 : index
    %728 = vector.load %arg7[%c4_358, %c0_359, %c0_360] : memref<12x32x32xf32, #tpu.memory_space<vmem>>, vector<1x32x32xf32>
    %729 = vector.shape_cast %728 : vector<1x32x32xf32> to vector<32x32xf32>
    %cst_361 = arith.constant dense<0.000000e+00> : vector<64x32xf32>
    %730 = tpu.matmul %698, %729, %cst_361 {dimension_numbers = #tpu.dot_dimension_numbers<[1], [0], [0], [1], [0, 0, 1, 1], [], []>} : vector<64x32xf32>, vector<32x32xf32>, vector<64x32xf32> -> vector<64x32xf32>
    %c5_362 = arith.constant 5 : index
    %c0_363 = arith.constant 0 : index
    %c0_364 = arith.constant 0 : index
    %731 = vector.load %arg7[%c5_362, %c0_363, %c0_364] : memref<12x32x32xf32, #tpu.memory_space<vmem>>, vector<1x32x32xf32>
    %732 = vector.shape_cast %731 : vector<1x32x32xf32> to vector<32x32xf32>
    %cst_365 = arith.constant dense<0.000000e+00> : vector<64x32xf32>
    %733 = tpu.matmul %699, %732, %cst_365 {dimension_numbers = #tpu.dot_dimension_numbers<[1], [0], [0], [1], [0, 0, 1, 1], [], []>} : vector<64x32xf32>, vector<32x32xf32>, vector<64x32xf32> -> vector<64x32xf32>
    %734 = arith.addf %730, %733 : vector<64x32xf32>
    %c2_366 = arith.constant 2 : index
    %c0_367 = arith.constant 0 : index
    %c0_368 = arith.constant 0 : index
    %735 = vector.load %arg9[%c2_366, %c0_367, %c0_368] : memref<6x1x32xf32, #tpu.memory_space<vmem>>, vector<1x1x32xf32>
    %736 = vector.shape_cast %735 : vector<1x1x32xf32> to vector<1x32xf32>
    %737 = vector.broadcast %736 : vector<1x32xf32> to vector<64x32xf32>
    %738 = arith.addf %734, %737 : vector<64x32xf32>
    %c2_369 = arith.constant 2 : index
    %c0_370 = arith.constant 0 : index
    %c0_371 = arith.constant 0 : index
    %739 = vector.load %arg13[%c2_369, %c0_370, %c0_371] : memref<6x64x32xf32, #tpu.memory_space<vmem>>, vector<1x64x32xf32>
    %740 = vector.shape_cast %739 : vector<1x64x32xf32> to vector<64x32xf32>
    %741 = vector.shape_cast %738 : vector<64x32xf32> to vector<1x64x32xf32>
    tpu.vector_store %arg13[%c2_369, %c0_370, %c0_371], %741 {strides = array<i32>} : memref<6x64x32xf32, #tpu.memory_space<vmem>>, vector<1x64x32xf32>,
    %c6 = arith.constant 6 : index
    %c0_372 = arith.constant 0 : index
    %c0_373 = arith.constant 0 : index
    %742 = vector.load %arg7[%c6, %c0_372, %c0_373] : memref<12x32x32xf32, #tpu.memory_space<vmem>>, vector<1x32x32xf32>
    %743 = vector.shape_cast %742 : vector<1x32x32xf32> to vector<32x32xf32>
    %cst_374 = arith.constant dense<0.000000e+00> : vector<64x32xf32>
    %744 = tpu.matmul %698, %743, %cst_374 {dimension_numbers = #tpu.dot_dimension_numbers<[1], [0], [0], [1], [0, 0, 1, 1], [], []>} : vector<64x32xf32>, vector<32x32xf32>, vector<64x32xf32> -> vector<64x32xf32>
    %c7 = arith.constant 7 : index
    %c0_375 = arith.constant 0 : index
    %c0_376 = arith.constant 0 : index
    %745 = vector.load %arg7[%c7, %c0_375, %c0_376] : memref<12x32x32xf32, #tpu.memory_space<vmem>>, vector<1x32x32xf32>
    %746 = vector.shape_cast %745 : vector<1x32x32xf32> to vector<32x32xf32>
    %cst_377 = arith.constant dense<0.000000e+00> : vector<64x32xf32>
    %747 = tpu.matmul %699, %746, %cst_377 {dimension_numbers = #tpu.dot_dimension_numbers<[1], [0], [0], [1], [0, 0, 1, 1], [], []>} : vector<64x32xf32>, vector<32x32xf32>, vector<64x32xf32> -> vector<64x32xf32>
    %748 = arith.addf %744, %747 : vector<64x32xf32>
    %c3_378 = arith.constant 3 : index
    %c0_379 = arith.constant 0 : index
    %c0_380 = arith.constant 0 : index
    %749 = vector.load %arg9[%c3_378, %c0_379, %c0_380] : memref<6x1x32xf32, #tpu.memory_space<vmem>>, vector<1x1x32xf32>
    %750 = vector.shape_cast %749 : vector<1x1x32xf32> to vector<1x32xf32>
    %751 = vector.broadcast %750 : vector<1x32xf32> to vector<64x32xf32>
    %752 = arith.addf %748, %751 : vector<64x32xf32>
    %c3_381 = arith.constant 3 : index
    %c0_382 = arith.constant 0 : index
    %c0_383 = arith.constant 0 : index
    %753 = vector.load %arg13[%c3_381, %c0_382, %c0_383] : memref<6x64x32xf32, #tpu.memory_space<vmem>>, vector<1x64x32xf32>
    %754 = vector.shape_cast %753 : vector<1x64x32xf32> to vector<64x32xf32>
    %755 = vector.shape_cast %752 : vector<64x32xf32> to vector<1x64x32xf32>
    tpu.vector_store %arg13[%c3_381, %c0_382, %c0_383], %755 {strides = array<i32>} : memref<6x64x32xf32, #tpu.memory_space<vmem>>, vector<1x64x32xf32>,
    %c8 = arith.constant 8 : index
    %c0_384 = arith.constant 0 : index
    %c0_385 = arith.constant 0 : index
    %756 = vector.load %arg7[%c8, %c0_384, %c0_385] : memref<12x32x32xf32, #tpu.memory_space<vmem>>, vector<1x32x32xf32>
    %757 = vector.shape_cast %756 : vector<1x32x32xf32> to vector<32x32xf32>
    %cst_386 = arith.constant dense<0.000000e+00> : vector<64x32xf32>
    %758 = tpu.matmul %698, %757, %cst_386 {dimension_numbers = #tpu.dot_dimension_numbers<[1], [0], [0], [1], [0, 0, 1, 1], [], []>} : vector<64x32xf32>, vector<32x32xf32>, vector<64x32xf32> -> vector<64x32xf32>
    %c9 = arith.constant 9 : index
    %c0_387 = arith.constant 0 : index
    %c0_388 = arith.constant 0 : index
    %759 = vector.load %arg7[%c9, %c0_387, %c0_388] : memref<12x32x32xf32, #tpu.memory_space<vmem>>, vector<1x32x32xf32>
    %760 = vector.shape_cast %759 : vector<1x32x32xf32> to vector<32x32xf32>
    %cst_389 = arith.constant dense<0.000000e+00> : vector<64x32xf32>
    %761 = tpu.matmul %699, %760, %cst_389 {dimension_numbers = #tpu.dot_dimension_numbers<[1], [0], [0], [1], [0, 0, 1, 1], [], []>} : vector<64x32xf32>, vector<32x32xf32>, vector<64x32xf32> -> vector<64x32xf32>
    %762 = arith.addf %758, %761 : vector<64x32xf32>
    %c4_390 = arith.constant 4 : index
    %c0_391 = arith.constant 0 : index
    %c0_392 = arith.constant 0 : index
    %763 = vector.load %arg9[%c4_390, %c0_391, %c0_392] : memref<6x1x32xf32, #tpu.memory_space<vmem>>, vector<1x1x32xf32>
    %764 = vector.shape_cast %763 : vector<1x1x32xf32> to vector<1x32xf32>
    %765 = vector.broadcast %764 : vector<1x32xf32> to vector<64x32xf32>
    %766 = arith.addf %762, %765 : vector<64x32xf32>
    %c4_393 = arith.constant 4 : index
    %c0_394 = arith.constant 0 : index
    %c0_395 = arith.constant 0 : index
    %767 = vector.load %arg13[%c4_393, %c0_394, %c0_395] : memref<6x64x32xf32, #tpu.memory_space<vmem>>, vector<1x64x32xf32>
    %768 = vector.shape_cast %767 : vector<1x64x32xf32> to vector<64x32xf32>
    %769 = vector.shape_cast %766 : vector<64x32xf32> to vector<1x64x32xf32>
    tpu.vector_store %arg13[%c4_393, %c0_394, %c0_395], %769 {strides = array<i32>} : memref<6x64x32xf32, #tpu.memory_space<vmem>>, vector<1x64x32xf32>,
    %c10 = arith.constant 10 : index
    %c0_396 = arith.constant 0 : index
    %c0_397 = arith.constant 0 : index
    %770 = vector.load %arg7[%c10, %c0_396, %c0_397] : memref<12x32x32xf32, #tpu.memory_space<vmem>>, vector<1x32x32xf32>
    %771 = vector.shape_cast %770 : vector<1x32x32xf32> to vector<32x32xf32>
    %cst_398 = arith.constant dense<0.000000e+00> : vector<64x32xf32>
    %772 = tpu.matmul %698, %771, %cst_398 {dimension_numbers = #tpu.dot_dimension_numbers<[1], [0], [0], [1], [0, 0, 1, 1], [], []>} : vector<64x32xf32>, vector<32x32xf32>, vector<64x32xf32> -> vector<64x32xf32>
    %c11 = arith.constant 11 : index
    %c0_399 = arith.constant 0 : index
    %c0_400 = arith.constant 0 : index
    %773 = vector.load %arg7[%c11, %c0_399, %c0_400] : memref<12x32x32xf32, #tpu.memory_space<vmem>>, vector<1x32x32xf32>
    %774 = vector.shape_cast %773 : vector<1x32x32xf32> to vector<32x32xf32>
    %cst_401 = arith.constant dense<0.000000e+00> : vector<64x32xf32>
    %775 = tpu.matmul %699, %774, %cst_401 {dimension_numbers = #tpu.dot_dimension_numbers<[1], [0], [0], [1], [0, 0, 1, 1], [], []>} : vector<64x32xf32>, vector<32x32xf32>, vector<64x32xf32> -> vector<64x32xf32>
    %776 = arith.addf %772, %775 : vector<64x32xf32>
    %c5_402 = arith.constant 5 : index
    %c0_403 = arith.constant 0 : index
    %c0_404 = arith.constant 0 : index
    %777 = vector.load %arg9[%c5_402, %c0_403, %c0_404] : memref<6x1x32xf32, #tpu.memory_space<vmem>>, vector<1x1x32xf32>
    %778 = vector.shape_cast %777 : vector<1x1x32xf32> to vector<1x32xf32>
    %779 = vector.broadcast %778 : vector<1x32xf32> to vector<64x32xf32>
    %780 = arith.addf %776, %779 : vector<64x32xf32>
    %c5_405 = arith.constant 5 : index
    %c0_406 = arith.constant 0 : index
    %c0_407 = arith.constant 0 : index
    %781 = vector.load %arg13[%c5_405, %c0_406, %c0_407] : memref<6x64x32xf32, #tpu.memory_space<vmem>>, vector<1x64x32xf32>
    %782 = vector.shape_cast %781 : vector<1x64x32xf32> to vector<64x32xf32>
    %783 = vector.shape_cast %780 : vector<64x32xf32> to vector<1x64x32xf32>
    tpu.vector_store %arg13[%c5_405, %c0_406, %c0_407], %783 {strides = array<i32>} : memref<6x64x32xf32, #tpu.memory_space<vmem>>, vector<1x64x32xf32>,
    %c0_408 = arith.constant 0 : index
    %c0_409 = arith.constant 0 : index
    %c0_410 = arith.constant 0 : index
    %784 = vector.load %arg8[%c0_408, %c0_409, %c0_410] : memref<6x32x32xf32, #tpu.memory_space<vmem>>, vector<1x32x32xf32>
    %785 = vector.shape_cast %784 : vector<1x32x32xf32> to vector<32x32xf32>
    %c1_411 = arith.constant 1 : index
    %c0_412 = arith.constant 0 : index
    %c0_413 = arith.constant 0 : index
    %786 = vector.load %arg8[%c1_411, %c0_412, %c0_413] : memref<6x32x32xf32, #tpu.memory_space<vmem>>, vector<1x32x32xf32>
    %787 = vector.shape_cast %786 : vector<1x32x32xf32> to vector<32x32xf32>
    %c2_414 = arith.constant 2 : index
    %c0_415 = arith.constant 0 : index
    %c0_416 = arith.constant 0 : index
    %788 = vector.load %arg8[%c2_414, %c0_415, %c0_416] : memref<6x32x32xf32, #tpu.memory_space<vmem>>, vector<1x32x32xf32>
    %789 = vector.shape_cast %788 : vector<1x32x32xf32> to vector<32x32xf32>
    %c3_417 = arith.constant 3 : index
    %c0_418 = arith.constant 0 : index
    %c0_419 = arith.constant 0 : index
    %790 = vector.load %arg8[%c3_417, %c0_418, %c0_419] : memref<6x32x32xf32, #tpu.memory_space<vmem>>, vector<1x32x32xf32>
    %791 = vector.shape_cast %790 : vector<1x32x32xf32> to vector<32x32xf32>
    %c4_420 = arith.constant 4 : index
    %c0_421 = arith.constant 0 : index
    %c0_422 = arith.constant 0 : index
    %792 = vector.load %arg8[%c4_420, %c0_421, %c0_422] : memref<6x32x32xf32, #tpu.memory_space<vmem>>, vector<1x32x32xf32>
    %793 = vector.shape_cast %792 : vector<1x32x32xf32> to vector<32x32xf32>
    %c5_423 = arith.constant 5 : index
    %c0_424 = arith.constant 0 : index
    %c0_425 = arith.constant 0 : index
    %794 = vector.load %arg8[%c5_423, %c0_424, %c0_425] : memref<6x32x32xf32, #tpu.memory_space<vmem>>, vector<1x32x32xf32>
    %795 = vector.shape_cast %794 : vector<1x32x32xf32> to vector<32x32xf32>
    %c0_426 = arith.constant 0 : index
    %c0_427 = arith.constant 0 : index
    %c0_428 = arith.constant 0 : index
    %796 = vector.load %arg10[%c0_426, %c0_427, %c0_428] : memref<2x1x32xf32, #tpu.memory_space<vmem>>, vector<1x1x32xf32>
    %797 = vector.shape_cast %796 : vector<1x1x32xf32> to vector<1x32xf32>
    %798 = vector.shape_cast %797 : vector<1x32xf32> to vector<1x32xf32>
    %799 = vector.broadcast %798 : vector<1x32xf32> to vector<8x32xf32>
    %c1_429 = arith.constant 1 : index
    %c0_430 = arith.constant 0 : index
    %c0_431 = arith.constant 0 : index
    %800 = vector.load %arg10[%c1_429, %c0_430, %c0_431] : memref<2x1x32xf32, #tpu.memory_space<vmem>>, vector<1x1x32xf32>
    %801 = vector.shape_cast %800 : vector<1x1x32xf32> to vector<1x32xf32>
    %802 = vector.shape_cast %801 : vector<1x32xf32> to vector<1x32xf32>
    %803 = vector.broadcast %802 : vector<1x32xf32> to vector<8x32xf32>
    %c2_432 = arith.constant 2 : index
    %c0_433 = arith.constant 0 : index
    %c0_434 = arith.constant 0 : index
    %804 = vector.load %arg2[%c2_432, %c0_433, %c0_434] : memref<4x8x32xf32, #tpu.memory_space<vmem>>, vector<1x8x32xf32>
    %805 = vector.shape_cast %804 : vector<1x8x32xf32> to vector<8x32xf32>
    %c3_435 = arith.constant 3 : index
    %c0_436 = arith.constant 0 : index
    %c0_437 = arith.constant 0 : index
    %806 = vector.load %arg2[%c3_435, %c0_436, %c0_437] : memref<4x8x32xf32, #tpu.memory_space<vmem>>, vector<1x8x32xf32>
    %807 = vector.shape_cast %806 : vector<1x8x32xf32> to vector<8x32xf32>
    %c0_i32_438 = arith.constant 0 : i32
    %c8_i32_439 = arith.constant 8 : i32
    %808 = arith.muli %c0_i32_438, %c8_i32_439 : i32
    %809 = tpu.assume_multiple %808, 8 : i32
    %c7_i32_440 = arith.constant 7 : i32
    %810 = arith.subi %c7_i32_440, %c0_i32_438 : i32
    %c8_i32_441 = arith.constant 8 : i32
    %811 = arith.muli %810, %c8_i32_441 : i32
    %812 = tpu.assume_multiple %811, 8 : i32
    %c0_442 = arith.constant 0 : index
    %813 = arith.index_cast %809 : i32 to index
    %c0_443 = arith.constant 0 : index
    %814 = vector.load %arg13[%c0_442, %813, %c0_443] : memref<6x64x32xf32, #tpu.memory_space<vmem>>, vector<1x8x32xf32>
    %815 = vector.shape_cast %814 : vector<1x8x32xf32> to vector<8x32xf32>
    %c1_444 = arith.constant 1 : index
    %816 = arith.index_cast %809 : i32 to index
    %c0_445 = arith.constant 0 : index
    %817 = vector.load %arg13[%c1_444, %816, %c0_445] : memref<6x64x32xf32, #tpu.memory_space<vmem>>, vector<1x8x32xf32>
    %818 = vector.shape_cast %817 : vector<1x8x32xf32> to vector<8x32xf32>
    %c2_446 = arith.constant 2 : index
    %819 = arith.index_cast %809 : i32 to index
    %c0_447 = arith.constant 0 : index
    %820 = vector.load %arg13[%c2_446, %819, %c0_447] : memref<6x64x32xf32, #tpu.memory_space<vmem>>, vector<1x8x32xf32>
    %821 = vector.shape_cast %820 : vector<1x8x32xf32> to vector<8x32xf32>
    %c3_448 = arith.constant 3 : index
    %822 = arith.index_cast %812 : i32 to index
    %c0_449 = arith.constant 0 : index
    %823 = vector.load %arg13[%c3_448, %822, %c0_449] : memref<6x64x32xf32, #tpu.memory_space<vmem>>, vector<1x8x32xf32>
    %824 = vector.shape_cast %823 : vector<1x8x32xf32> to vector<8x32xf32>
    %c4_450 = arith.constant 4 : index
    %825 = arith.index_cast %812 : i32 to index
    %c0_451 = arith.constant 0 : index
    %826 = vector.load %arg13[%c4_450, %825, %c0_451] : memref<6x64x32xf32, #tpu.memory_space<vmem>>, vector<1x8x32xf32>
    %827 = vector.shape_cast %826 : vector<1x8x32xf32> to vector<8x32xf32>
    %c5_452 = arith.constant 5 : index
    %828 = arith.index_cast %812 : i32 to index
    %c0_453 = arith.constant 0 : index
    %829 = vector.load %arg13[%c5_452, %828, %c0_453] : memref<6x64x32xf32, #tpu.memory_space<vmem>>, vector<1x8x32xf32>
    %830 = vector.shape_cast %829 : vector<1x8x32xf32> to vector<8x32xf32>
    %cst_454 = arith.constant dense<0.000000e+00> : vector<8x32xf32>
    %831 = tpu.matmul %805, %785, %cst_454 {dimension_numbers = #tpu.dot_dimension_numbers<[1], [0], [0], [1], [0, 0, 1, 1], [], []>} : vector<8x32xf32>, vector<32x32xf32>, vector<8x32xf32> -> vector<8x32xf32>
    %cst_455 = arith.constant dense<0.000000e+00> : vector<8x32xf32>
    %832 = tpu.matmul %805, %787, %cst_455 {dimension_numbers = #tpu.dot_dimension_numbers<[1], [0], [0], [1], [0, 0, 1, 1], [], []>} : vector<8x32xf32>, vector<32x32xf32>, vector<8x32xf32> -> vector<8x32xf32>
    %cst_456 = arith.constant dense<0.000000e+00> : vector<8x32xf32>
    %833 = tpu.matmul %805, %789, %cst_456 {dimension_numbers = #tpu.dot_dimension_numbers<[1], [0], [0], [1], [0, 0, 1, 1], [], []>} : vector<8x32xf32>, vector<32x32xf32>, vector<8x32xf32> -> vector<8x32xf32>
    %834 = arith.addf %833, %799 : vector<8x32xf32>
    %835 = arith.addf %815, %831 : vector<8x32xf32>
    %836 = arith.negf %835 : vector<8x32xf32>
    %837 = math.exp %836 : vector<8x32xf32>
    %cst_457 = arith.constant 1.000000e+00 : f32
    %838 = vector.broadcast %cst_457 : f32 to vector<8x32xf32>
    %839 = arith.addf %838, %837 : vector<8x32xf32>
    %840 = arith.divf %838, %839 : vector<8x32xf32>
    %841 = arith.addf %818, %832 : vector<8x32xf32>
    %842 = arith.negf %841 : vector<8x32xf32>
    %843 = math.exp %842 : vector<8x32xf32>
    %cst_458 = arith.constant 1.000000e+00 : f32
    %844 = vector.broadcast %cst_458 : f32 to vector<8x32xf32>
    %845 = arith.addf %844, %843 : vector<8x32xf32>
    %846 = arith.divf %844, %845 : vector<8x32xf32>
    %847 = arith.mulf %840, %834 : vector<8x32xf32>
    %848 = arith.addf %821, %847 : vector<8x32xf32>
    %849 = math.tanh %848 : vector<8x32xf32>
    %cst_459 = arith.constant 1.000000e+00 : f32
    %850 = vector.broadcast %cst_459 : f32 to vector<8x32xf32>
    %851 = arith.subf %850, %846 : vector<8x32xf32>
    %852 = arith.mulf %851, %849 : vector<8x32xf32>
    %853 = arith.mulf %846, %805 : vector<8x32xf32>
    %854 = arith.addf %852, %853 : vector<8x32xf32>
    %cst_460 = arith.constant dense<0.000000e+00> : vector<8x32xf32>
    %855 = tpu.matmul %807, %791, %cst_460 {dimension_numbers = #tpu.dot_dimension_numbers<[1], [0], [0], [1], [0, 0, 1, 1], [], []>} : vector<8x32xf32>, vector<32x32xf32>, vector<8x32xf32> -> vector<8x32xf32>
    %cst_461 = arith.constant dense<0.000000e+00> : vector<8x32xf32>
    %856 = tpu.matmul %807, %793, %cst_461 {dimension_numbers = #tpu.dot_dimension_numbers<[1], [0], [0], [1], [0, 0, 1, 1], [], []>} : vector<8x32xf32>, vector<32x32xf32>, vector<8x32xf32> -> vector<8x32xf32>
    %cst_462 = arith.constant dense<0.000000e+00> : vector<8x32xf32>
    %857 = tpu.matmul %807, %795, %cst_462 {dimension_numbers = #tpu.dot_dimension_numbers<[1], [0], [0], [1], [0, 0, 1, 1], [], []>} : vector<8x32xf32>, vector<32x32xf32>, vector<8x32xf32> -> vector<8x32xf32>
    %858 = arith.addf %857, %803 : vector<8x32xf32>
    %859 = arith.addf %824, %855 : vector<8x32xf32>
    %860 = arith.negf %859 : vector<8x32xf32>
    %861 = math.exp %860 : vector<8x32xf32>
    %cst_463 = arith.constant 1.000000e+00 : f32
    %862 = vector.broadcast %cst_463 : f32 to vector<8x32xf32>
    %863 = arith.addf %862, %861 : vector<8x32xf32>
    %864 = arith.divf %862, %863 : vector<8x32xf32>
    %865 = arith.addf %827, %856 : vector<8x32xf32>
    %866 = arith.negf %865 : vector<8x32xf32>
    %867 = math.exp %866 : vector<8x32xf32>
    %cst_464 = arith.constant 1.000000e+00 : f32
    %868 = vector.broadcast %cst_464 : f32 to vector<8x32xf32>
    %869 = arith.addf %868, %867 : vector<8x32xf32>
    %870 = arith.divf %868, %869 : vector<8x32xf32>
    %871 = arith.mulf %864, %858 : vector<8x32xf32>
    %872 = arith.addf %830, %871 : vector<8x32xf32>
    %873 = math.tanh %872 : vector<8x32xf32>
    %cst_465 = arith.constant 1.000000e+00 : f32
    %874 = vector.broadcast %cst_465 : f32 to vector<8x32xf32>
    %875 = arith.subf %874, %870 : vector<8x32xf32>
    %876 = arith.mulf %875, %873 : vector<8x32xf32>
    %877 = arith.mulf %870, %807 : vector<8x32xf32>
    %878 = arith.addf %876, %877 : vector<8x32xf32>
    %879 = arith.index_cast %809 : i32 to index
    %c0_466 = arith.constant 0 : index
    %880 = vector.load %arg16[%879, %c0_466] : memref<64x32xf32, #tpu.memory_space<vmem>>, vector<8x32xf32>
    tpu.vector_store %arg16[%879, %c0_466], %854 {strides = array<i32>} : memref<64x32xf32, #tpu.memory_space<vmem>>, vector<8x32xf32>,
    %881 = arith.index_cast %812 : i32 to index
    %c0_467 = arith.constant 0 : index
    %882 = vector.load %arg17[%881, %c0_467] : memref<64x32xf32, #tpu.memory_space<vmem>>, vector<8x32xf32>
    tpu.vector_store %arg17[%881, %c0_467], %878 {strides = array<i32>} : memref<64x32xf32, #tpu.memory_space<vmem>>, vector<8x32xf32>,
    %c1_i32_468 = arith.constant 1 : i32
    %c8_i32_469 = arith.constant 8 : i32
    %883 = arith.muli %c1_i32_468, %c8_i32_469 : i32
    %884 = tpu.assume_multiple %883, 8 : i32
    %c7_i32_470 = arith.constant 7 : i32
    %885 = arith.subi %c7_i32_470, %c1_i32_468 : i32
    %c8_i32_471 = arith.constant 8 : i32
    %886 = arith.muli %885, %c8_i32_471 : i32
    %887 = tpu.assume_multiple %886, 8 : i32
    %c0_472 = arith.constant 0 : index
    %888 = arith.index_cast %884 : i32 to index
    %c0_473 = arith.constant 0 : index
    %889 = vector.load %arg13[%c0_472, %888, %c0_473] : memref<6x64x32xf32, #tpu.memory_space<vmem>>, vector<1x8x32xf32>
    %890 = vector.shape_cast %889 : vector<1x8x32xf32> to vector<8x32xf32>
    %c1_474 = arith.constant 1 : index
    %891 = arith.index_cast %884 : i32 to index
    %c0_475 = arith.constant 0 : index
    %892 = vector.load %arg13[%c1_474, %891, %c0_475] : memref<6x64x32xf32, #tpu.memory_space<vmem>>, vector<1x8x32xf32>
    %893 = vector.shape_cast %892 : vector<1x8x32xf32> to vector<8x32xf32>
    %c2_476 = arith.constant 2 : index
    %894 = arith.index_cast %884 : i32 to index
    %c0_477 = arith.constant 0 : index
    %895 = vector.load %arg13[%c2_476, %894, %c0_477] : memref<6x64x32xf32, #tpu.memory_space<vmem>>, vector<1x8x32xf32>
    %896 = vector.shape_cast %895 : vector<1x8x32xf32> to vector<8x32xf32>
    %c3_478 = arith.constant 3 : index
    %897 = arith.index_cast %887 : i32 to index
    %c0_479 = arith.constant 0 : index
    %898 = vector.load %arg13[%c3_478, %897, %c0_479] : memref<6x64x32xf32, #tpu.memory_space<vmem>>, vector<1x8x32xf32>
    %899 = vector.shape_cast %898 : vector<1x8x32xf32> to vector<8x32xf32>
    %c4_480 = arith.constant 4 : index
    %900 = arith.index_cast %887 : i32 to index
    %c0_481 = arith.constant 0 : index
    %901 = vector.load %arg13[%c4_480, %900, %c0_481] : memref<6x64x32xf32, #tpu.memory_space<vmem>>, vector<1x8x32xf32>
    %902 = vector.shape_cast %901 : vector<1x8x32xf32> to vector<8x32xf32>
    %c5_482 = arith.constant 5 : index
    %903 = arith.index_cast %887 : i32 to index
    %c0_483 = arith.constant 0 : index
    %904 = vector.load %arg13[%c5_482, %903, %c0_483] : memref<6x64x32xf32, #tpu.memory_space<vmem>>, vector<1x8x32xf32>
    %905 = vector.shape_cast %904 : vector<1x8x32xf32> to vector<8x32xf32>
    %cst_484 = arith.constant dense<0.000000e+00> : vector<8x32xf32>
    %906 = tpu.matmul %854, %785, %cst_484 {dimension_numbers = #tpu.dot_dimension_numbers<[1], [0], [0], [1], [0, 0, 1, 1], [], []>} : vector<8x32xf32>, vector<32x32xf32>, vector<8x32xf32> -> vector<8x32xf32>
    %cst_485 = arith.constant dense<0.000000e+00> : vector<8x32xf32>
    %907 = tpu.matmul %854, %787, %cst_485 {dimension_numbers = #tpu.dot_dimension_numbers<[1], [0], [0], [1], [0, 0, 1, 1], [], []>} : vector<8x32xf32>, vector<32x32xf32>, vector<8x32xf32> -> vector<8x32xf32>
    %cst_486 = arith.constant dense<0.000000e+00> : vector<8x32xf32>
    %908 = tpu.matmul %854, %789, %cst_486 {dimension_numbers = #tpu.dot_dimension_numbers<[1], [0], [0], [1], [0, 0, 1, 1], [], []>} : vector<8x32xf32>, vector<32x32xf32>, vector<8x32xf32> -> vector<8x32xf32>
    %909 = arith.addf %908, %799 : vector<8x32xf32>
    %910 = arith.addf %890, %906 : vector<8x32xf32>
    %911 = arith.negf %910 : vector<8x32xf32>
    %912 = math.exp %911 : vector<8x32xf32>
    %cst_487 = arith.constant 1.000000e+00 : f32
    %913 = vector.broadcast %cst_487 : f32 to vector<8x32xf32>
    %914 = arith.addf %913, %912 : vector<8x32xf32>
    %915 = arith.divf %913, %914 : vector<8x32xf32>
    %916 = arith.addf %893, %907 : vector<8x32xf32>
    %917 = arith.negf %916 : vector<8x32xf32>
    %918 = math.exp %917 : vector<8x32xf32>
    %cst_488 = arith.constant 1.000000e+00 : f32
    %919 = vector.broadcast %cst_488 : f32 to vector<8x32xf32>
    %920 = arith.addf %919, %918 : vector<8x32xf32>
    %921 = arith.divf %919, %920 : vector<8x32xf32>
    %922 = arith.mulf %915, %909 : vector<8x32xf32>
    %923 = arith.addf %896, %922 : vector<8x32xf32>
    %924 = math.tanh %923 : vector<8x32xf32>
    %cst_489 = arith.constant 1.000000e+00 : f32
    %925 = vector.broadcast %cst_489 : f32 to vector<8x32xf32>
    %926 = arith.subf %925, %921 : vector<8x32xf32>
    %927 = arith.mulf %926, %924 : vector<8x32xf32>
    %928 = arith.mulf %921, %854 : vector<8x32xf32>
    %929 = arith.addf %927, %928 : vector<8x32xf32>
    %cst_490 = arith.constant dense<0.000000e+00> : vector<8x32xf32>
    %930 = tpu.matmul %878, %791, %cst_490 {dimension_numbers = #tpu.dot_dimension_numbers<[1], [0], [0], [1], [0, 0, 1, 1], [], []>} : vector<8x32xf32>, vector<32x32xf32>, vector<8x32xf32> -> vector<8x32xf32>
    %cst_491 = arith.constant dense<0.000000e+00> : vector<8x32xf32>
    %931 = tpu.matmul %878, %793, %cst_491 {dimension_numbers = #tpu.dot_dimension_numbers<[1], [0], [0], [1], [0, 0, 1, 1], [], []>} : vector<8x32xf32>, vector<32x32xf32>, vector<8x32xf32> -> vector<8x32xf32>
    %cst_492 = arith.constant dense<0.000000e+00> : vector<8x32xf32>
    %932 = tpu.matmul %878, %795, %cst_492 {dimension_numbers = #tpu.dot_dimension_numbers<[1], [0], [0], [1], [0, 0, 1, 1], [], []>} : vector<8x32xf32>, vector<32x32xf32>, vector<8x32xf32> -> vector<8x32xf32>
    %933 = arith.addf %932, %803 : vector<8x32xf32>
    %934 = arith.addf %899, %930 : vector<8x32xf32>
    %935 = arith.negf %934 : vector<8x32xf32>
    %936 = math.exp %935 : vector<8x32xf32>
    %cst_493 = arith.constant 1.000000e+00 : f32
    %937 = vector.broadcast %cst_493 : f32 to vector<8x32xf32>
    %938 = arith.addf %937, %936 : vector<8x32xf32>
    %939 = arith.divf %937, %938 : vector<8x32xf32>
    %940 = arith.addf %902, %931 : vector<8x32xf32>
    %941 = arith.negf %940 : vector<8x32xf32>
    %942 = math.exp %941 : vector<8x32xf32>
    %cst_494 = arith.constant 1.000000e+00 : f32
    %943 = vector.broadcast %cst_494 : f32 to vector<8x32xf32>
    %944 = arith.addf %943, %942 : vector<8x32xf32>
    %945 = arith.divf %943, %944 : vector<8x32xf32>
    %946 = arith.mulf %939, %933 : vector<8x32xf32>
    %947 = arith.addf %905, %946 : vector<8x32xf32>
    %948 = math.tanh %947 : vector<8x32xf32>
    %cst_495 = arith.constant 1.000000e+00 : f32
    %949 = vector.broadcast %cst_495 : f32 to vector<8x32xf32>
    %950 = arith.subf %949, %945 : vector<8x32xf32>
    %951 = arith.mulf %950, %948 : vector<8x32xf32>
    %952 = arith.mulf %945, %878 : vector<8x32xf32>
    %953 = arith.addf %951, %952 : vector<8x32xf32>
    %954 = arith.index_cast %884 : i32 to index
    %c0_496 = arith.constant 0 : index
    %955 = vector.load %arg16[%954, %c0_496] : memref<64x32xf32, #tpu.memory_space<vmem>>, vector<8x32xf32>
    tpu.vector_store %arg16[%954, %c0_496], %929 {strides = array<i32>} : memref<64x32xf32, #tpu.memory_space<vmem>>, vector<8x32xf32>,
    %956 = arith.index_cast %887 : i32 to index
    %c0_497 = arith.constant 0 : index
    %957 = vector.load %arg17[%956, %c0_497] : memref<64x32xf32, #tpu.memory_space<vmem>>, vector<8x32xf32>
    tpu.vector_store %arg17[%956, %c0_497], %953 {strides = array<i32>} : memref<64x32xf32, #tpu.memory_space<vmem>>, vector<8x32xf32>,
    %c2_i32_498 = arith.constant 2 : i32
    %c8_i32_499 = arith.constant 8 : i32
    %958 = arith.muli %c2_i32_498, %c8_i32_499 : i32
    %959 = tpu.assume_multiple %958, 8 : i32
    %c7_i32_500 = arith.constant 7 : i32
    %960 = arith.subi %c7_i32_500, %c2_i32_498 : i32
    %c8_i32_501 = arith.constant 8 : i32
    %961 = arith.muli %960, %c8_i32_501 : i32
    %962 = tpu.assume_multiple %961, 8 : i32
    %c0_502 = arith.constant 0 : index
    %963 = arith.index_cast %959 : i32 to index
    %c0_503 = arith.constant 0 : index
    %964 = vector.load %arg13[%c0_502, %963, %c0_503] : memref<6x64x32xf32, #tpu.memory_space<vmem>>, vector<1x8x32xf32>
    %965 = vector.shape_cast %964 : vector<1x8x32xf32> to vector<8x32xf32>
    %c1_504 = arith.constant 1 : index
    %966 = arith.index_cast %959 : i32 to index
    %c0_505 = arith.constant 0 : index
    %967 = vector.load %arg13[%c1_504, %966, %c0_505] : memref<6x64x32xf32, #tpu.memory_space<vmem>>, vector<1x8x32xf32>
    %968 = vector.shape_cast %967 : vector<1x8x32xf32> to vector<8x32xf32>
    %c2_506 = arith.constant 2 : index
    %969 = arith.index_cast %959 : i32 to index
    %c0_507 = arith.constant 0 : index
    %970 = vector.load %arg13[%c2_506, %969, %c0_507] : memref<6x64x32xf32, #tpu.memory_space<vmem>>, vector<1x8x32xf32>
    %971 = vector.shape_cast %970 : vector<1x8x32xf32> to vector<8x32xf32>
    %c3_508 = arith.constant 3 : index
    %972 = arith.index_cast %962 : i32 to index
    %c0_509 = arith.constant 0 : index
    %973 = vector.load %arg13[%c3_508, %972, %c0_509] : memref<6x64x32xf32, #tpu.memory_space<vmem>>, vector<1x8x32xf32>
    %974 = vector.shape_cast %973 : vector<1x8x32xf32> to vector<8x32xf32>
    %c4_510 = arith.constant 4 : index
    %975 = arith.index_cast %962 : i32 to index
    %c0_511 = arith.constant 0 : index
    %976 = vector.load %arg13[%c4_510, %975, %c0_511] : memref<6x64x32xf32, #tpu.memory_space<vmem>>, vector<1x8x32xf32>
    %977 = vector.shape_cast %976 : vector<1x8x32xf32> to vector<8x32xf32>
    %c5_512 = arith.constant 5 : index
    %978 = arith.index_cast %962 : i32 to index
    %c0_513 = arith.constant 0 : index
    %979 = vector.load %arg13[%c5_512, %978, %c0_513] : memref<6x64x32xf32, #tpu.memory_space<vmem>>, vector<1x8x32xf32>
    %980 = vector.shape_cast %979 : vector<1x8x32xf32> to vector<8x32xf32>
    %cst_514 = arith.constant dense<0.000000e+00> : vector<8x32xf32>
    %981 = tpu.matmul %929, %785, %cst_514 {dimension_numbers = #tpu.dot_dimension_numbers<[1], [0], [0], [1], [0, 0, 1, 1], [], []>} : vector<8x32xf32>, vector<32x32xf32>, vector<8x32xf32> -> vector<8x32xf32>
    %cst_515 = arith.constant dense<0.000000e+00> : vector<8x32xf32>
    %982 = tpu.matmul %929, %787, %cst_515 {dimension_numbers = #tpu.dot_dimension_numbers<[1], [0], [0], [1], [0, 0, 1, 1], [], []>} : vector<8x32xf32>, vector<32x32xf32>, vector<8x32xf32> -> vector<8x32xf32>
    %cst_516 = arith.constant dense<0.000000e+00> : vector<8x32xf32>
    %983 = tpu.matmul %929, %789, %cst_516 {dimension_numbers = #tpu.dot_dimension_numbers<[1], [0], [0], [1], [0, 0, 1, 1], [], []>} : vector<8x32xf32>, vector<32x32xf32>, vector<8x32xf32> -> vector<8x32xf32>
    %984 = arith.addf %983, %799 : vector<8x32xf32>
    %985 = arith.addf %965, %981 : vector<8x32xf32>
    %986 = arith.negf %985 : vector<8x32xf32>
    %987 = math.exp %986 : vector<8x32xf32>
    %cst_517 = arith.constant 1.000000e+00 : f32
    %988 = vector.broadcast %cst_517 : f32 to vector<8x32xf32>
    %989 = arith.addf %988, %987 : vector<8x32xf32>
    %990 = arith.divf %988, %989 : vector<8x32xf32>
    %991 = arith.addf %968, %982 : vector<8x32xf32>
    %992 = arith.negf %991 : vector<8x32xf32>
    %993 = math.exp %992 : vector<8x32xf32>
    %cst_518 = arith.constant 1.000000e+00 : f32
    %994 = vector.broadcast %cst_518 : f32 to vector<8x32xf32>
    %995 = arith.addf %994, %993 : vector<8x32xf32>
    %996 = arith.divf %994, %995 : vector<8x32xf32>
    %997 = arith.mulf %990, %984 : vector<8x32xf32>
    %998 = arith.addf %971, %997 : vector<8x32xf32>
    %999 = math.tanh %998 : vector<8x32xf32>
    %cst_519 = arith.constant 1.000000e+00 : f32
    %1000 = vector.broadcast %cst_519 : f32 to vector<8x32xf32>
    %1001 = arith.subf %1000, %996 : vector<8x32xf32>
    %1002 = arith.mulf %1001, %999 : vector<8x32xf32>
    %1003 = arith.mulf %996, %929 : vector<8x32xf32>
    %1004 = arith.addf %1002, %1003 : vector<8x32xf32>
    %cst_520 = arith.constant dense<0.000000e+00> : vector<8x32xf32>
    %1005 = tpu.matmul %953, %791, %cst_520 {dimension_numbers = #tpu.dot_dimension_numbers<[1], [0], [0], [1], [0, 0, 1, 1], [], []>} : vector<8x32xf32>, vector<32x32xf32>, vector<8x32xf32> -> vector<8x32xf32>
    %cst_521 = arith.constant dense<0.000000e+00> : vector<8x32xf32>
    %1006 = tpu.matmul %953, %793, %cst_521 {dimension_numbers = #tpu.dot_dimension_numbers<[1], [0], [0], [1], [0, 0, 1, 1], [], []>} : vector<8x32xf32>, vector<32x32xf32>, vector<8x32xf32> -> vector<8x32xf32>
    %cst_522 = arith.constant dense<0.000000e+00> : vector<8x32xf32>
    %1007 = tpu.matmul %953, %795, %cst_522 {dimension_numbers = #tpu.dot_dimension_numbers<[1], [0], [0], [1], [0, 0, 1, 1], [], []>} : vector<8x32xf32>, vector<32x32xf32>, vector<8x32xf32> -> vector<8x32xf32>
    %1008 = arith.addf %1007, %803 : vector<8x32xf32>
    %1009 = arith.addf %974, %1005 : vector<8x32xf32>
    %1010 = arith.negf %1009 : vector<8x32xf32>
    %1011 = math.exp %1010 : vector<8x32xf32>
    %cst_523 = arith.constant 1.000000e+00 : f32
    %1012 = vector.broadcast %cst_523 : f32 to vector<8x32xf32>
    %1013 = arith.addf %1012, %1011 : vector<8x32xf32>
    %1014 = arith.divf %1012, %1013 : vector<8x32xf32>
    %1015 = arith.addf %977, %1006 : vector<8x32xf32>
    %1016 = arith.negf %1015 : vector<8x32xf32>
    %1017 = math.exp %1016 : vector<8x32xf32>
    %cst_524 = arith.constant 1.000000e+00 : f32
    %1018 = vector.broadcast %cst_524 : f32 to vector<8x32xf32>
    %1019 = arith.addf %1018, %1017 : vector<8x32xf32>
    %1020 = arith.divf %1018, %1019 : vector<8x32xf32>
    %1021 = arith.mulf %1014, %1008 : vector<8x32xf32>
    %1022 = arith.addf %980, %1021 : vector<8x32xf32>
    %1023 = math.tanh %1022 : vector<8x32xf32>
    %cst_525 = arith.constant 1.000000e+00 : f32
    %1024 = vector.broadcast %cst_525 : f32 to vector<8x32xf32>
    %1025 = arith.subf %1024, %1020 : vector<8x32xf32>
    %1026 = arith.mulf %1025, %1023 : vector<8x32xf32>
    %1027 = arith.mulf %1020, %953 : vector<8x32xf32>
    %1028 = arith.addf %1026, %1027 : vector<8x32xf32>
    %1029 = arith.index_cast %959 : i32 to index
    %c0_526 = arith.constant 0 : index
    %1030 = vector.load %arg16[%1029, %c0_526] : memref<64x32xf32, #tpu.memory_space<vmem>>, vector<8x32xf32>
    tpu.vector_store %arg16[%1029, %c0_526], %1004 {strides = array<i32>} : memref<64x32xf32, #tpu.memory_space<vmem>>, vector<8x32xf32>,
    %1031 = arith.index_cast %962 : i32 to index
    %c0_527 = arith.constant 0 : index
    %1032 = vector.load %arg17[%1031, %c0_527] : memref<64x32xf32, #tpu.memory_space<vmem>>, vector<8x32xf32>
    tpu.vector_store %arg17[%1031, %c0_527], %1028 {strides = array<i32>} : memref<64x32xf32, #tpu.memory_space<vmem>>, vector<8x32xf32>,
    %c3_i32_528 = arith.constant 3 : i32
    %c8_i32_529 = arith.constant 8 : i32
    %1033 = arith.muli %c3_i32_528, %c8_i32_529 : i32
    %1034 = tpu.assume_multiple %1033, 8 : i32
    %c7_i32_530 = arith.constant 7 : i32
    %1035 = arith.subi %c7_i32_530, %c3_i32_528 : i32
    %c8_i32_531 = arith.constant 8 : i32
    %1036 = arith.muli %1035, %c8_i32_531 : i32
    %1037 = tpu.assume_multiple %1036, 8 : i32
    %c0_532 = arith.constant 0 : index
    %1038 = arith.index_cast %1034 : i32 to index
    %c0_533 = arith.constant 0 : index
    %1039 = vector.load %arg13[%c0_532, %1038, %c0_533] : memref<6x64x32xf32, #tpu.memory_space<vmem>>, vector<1x8x32xf32>
    %1040 = vector.shape_cast %1039 : vector<1x8x32xf32> to vector<8x32xf32>
    %c1_534 = arith.constant 1 : index
    %1041 = arith.index_cast %1034 : i32 to index
    %c0_535 = arith.constant 0 : index
    %1042 = vector.load %arg13[%c1_534, %1041, %c0_535] : memref<6x64x32xf32, #tpu.memory_space<vmem>>, vector<1x8x32xf32>
    %1043 = vector.shape_cast %1042 : vector<1x8x32xf32> to vector<8x32xf32>
    %c2_536 = arith.constant 2 : index
    %1044 = arith.index_cast %1034 : i32 to index
    %c0_537 = arith.constant 0 : index
    %1045 = vector.load %arg13[%c2_536, %1044, %c0_537] : memref<6x64x32xf32, #tpu.memory_space<vmem>>, vector<1x8x32xf32>
    %1046 = vector.shape_cast %1045 : vector<1x8x32xf32> to vector<8x32xf32>
    %c3_538 = arith.constant 3 : index
    %1047 = arith.index_cast %1037 : i32 to index
    %c0_539 = arith.constant 0 : index
    %1048 = vector.load %arg13[%c3_538, %1047, %c0_539] : memref<6x64x32xf32, #tpu.memory_space<vmem>>, vector<1x8x32xf32>
    %1049 = vector.shape_cast %1048 : vector<1x8x32xf32> to vector<8x32xf32>
    %c4_540 = arith.constant 4 : index
    %1050 = arith.index_cast %1037 : i32 to index
    %c0_541 = arith.constant 0 : index
    %1051 = vector.load %arg13[%c4_540, %1050, %c0_541] : memref<6x64x32xf32, #tpu.memory_space<vmem>>, vector<1x8x32xf32>
    %1052 = vector.shape_cast %1051 : vector<1x8x32xf32> to vector<8x32xf32>
    %c5_542 = arith.constant 5 : index
    %1053 = arith.index_cast %1037 : i32 to index
    %c0_543 = arith.constant 0 : index
    %1054 = vector.load %arg13[%c5_542, %1053, %c0_543] : memref<6x64x32xf32, #tpu.memory_space<vmem>>, vector<1x8x32xf32>
    %1055 = vector.shape_cast %1054 : vector<1x8x32xf32> to vector<8x32xf32>
    %cst_544 = arith.constant dense<0.000000e+00> : vector<8x32xf32>
    %1056 = tpu.matmul %1004, %785, %cst_544 {dimension_numbers = #tpu.dot_dimension_numbers<[1], [0], [0], [1], [0, 0, 1, 1], [], []>} : vector<8x32xf32>, vector<32x32xf32>, vector<8x32xf32> -> vector<8x32xf32>
    %cst_545 = arith.constant dense<0.000000e+00> : vector<8x32xf32>
    %1057 = tpu.matmul %1004, %787, %cst_545 {dimension_numbers = #tpu.dot_dimension_numbers<[1], [0], [0], [1], [0, 0, 1, 1], [], []>} : vector<8x32xf32>, vector<32x32xf32>, vector<8x32xf32> -> vector<8x32xf32>
    %cst_546 = arith.constant dense<0.000000e+00> : vector<8x32xf32>
    %1058 = tpu.matmul %1004, %789, %cst_546 {dimension_numbers = #tpu.dot_dimension_numbers<[1], [0], [0], [1], [0, 0, 1, 1], [], []>} : vector<8x32xf32>, vector<32x32xf32>, vector<8x32xf32> -> vector<8x32xf32>
    %1059 = arith.addf %1058, %799 : vector<8x32xf32>
    %1060 = arith.addf %1040, %1056 : vector<8x32xf32>
    %1061 = arith.negf %1060 : vector<8x32xf32>
    %1062 = math.exp %1061 : vector<8x32xf32>
    %cst_547 = arith.constant 1.000000e+00 : f32
    %1063 = vector.broadcast %cst_547 : f32 to vector<8x32xf32>
    %1064 = arith.addf %1063, %1062 : vector<8x32xf32>
    %1065 = arith.divf %1063, %1064 : vector<8x32xf32>
    %1066 = arith.addf %1043, %1057 : vector<8x32xf32>
    %1067 = arith.negf %1066 : vector<8x32xf32>
    %1068 = math.exp %1067 : vector<8x32xf32>
    %cst_548 = arith.constant 1.000000e+00 : f32
    %1069 = vector.broadcast %cst_548 : f32 to vector<8x32xf32>
    %1070 = arith.addf %1069, %1068 : vector<8x32xf32>
    %1071 = arith.divf %1069, %1070 : vector<8x32xf32>
    %1072 = arith.mulf %1065, %1059 : vector<8x32xf32>
    %1073 = arith.addf %1046, %1072 : vector<8x32xf32>
    %1074 = math.tanh %1073 : vector<8x32xf32>
    %cst_549 = arith.constant 1.000000e+00 : f32
    %1075 = vector.broadcast %cst_549 : f32 to vector<8x32xf32>
    %1076 = arith.subf %1075, %1071 : vector<8x32xf32>
    %1077 = arith.mulf %1076, %1074 : vector<8x32xf32>
    %1078 = arith.mulf %1071, %1004 : vector<8x32xf32>
    %1079 = arith.addf %1077, %1078 : vector<8x32xf32>
    %cst_550 = arith.constant dense<0.000000e+00> : vector<8x32xf32>
    %1080 = tpu.matmul %1028, %791, %cst_550 {dimension_numbers = #tpu.dot_dimension_numbers<[1], [0], [0], [1], [0, 0, 1, 1], [], []>} : vector<8x32xf32>, vector<32x32xf32>, vector<8x32xf32> -> vector<8x32xf32>
    %cst_551 = arith.constant dense<0.000000e+00> : vector<8x32xf32>
    %1081 = tpu.matmul %1028, %793, %cst_551 {dimension_numbers = #tpu.dot_dimension_numbers<[1], [0], [0], [1], [0, 0, 1, 1], [], []>} : vector<8x32xf32>, vector<32x32xf32>, vector<8x32xf32> -> vector<8x32xf32>
    %cst_552 = arith.constant dense<0.000000e+00> : vector<8x32xf32>
    %1082 = tpu.matmul %1028, %795, %cst_552 {dimension_numbers = #tpu.dot_dimension_numbers<[1], [0], [0], [1], [0, 0, 1, 1], [], []>} : vector<8x32xf32>, vector<32x32xf32>, vector<8x32xf32> -> vector<8x32xf32>
    %1083 = arith.addf %1082, %803 : vector<8x32xf32>
    %1084 = arith.addf %1049, %1080 : vector<8x32xf32>
    %1085 = arith.negf %1084 : vector<8x32xf32>
    %1086 = math.exp %1085 : vector<8x32xf32>
    %cst_553 = arith.constant 1.000000e+00 : f32
    %1087 = vector.broadcast %cst_553 : f32 to vector<8x32xf32>
    %1088 = arith.addf %1087, %1086 : vector<8x32xf32>
    %1089 = arith.divf %1087, %1088 : vector<8x32xf32>
    %1090 = arith.addf %1052, %1081 : vector<8x32xf32>
    %1091 = arith.negf %1090 : vector<8x32xf32>
    %1092 = math.exp %1091 : vector<8x32xf32>
    %cst_554 = arith.constant 1.000000e+00 : f32
    %1093 = vector.broadcast %cst_554 : f32 to vector<8x32xf32>
    %1094 = arith.addf %1093, %1092 : vector<8x32xf32>
    %1095 = arith.divf %1093, %1094 : vector<8x32xf32>
    %1096 = arith.mulf %1089, %1083 : vector<8x32xf32>
    %1097 = arith.addf %1055, %1096 : vector<8x32xf32>
    %1098 = math.tanh %1097 : vector<8x32xf32>
    %cst_555 = arith.constant 1.000000e+00 : f32
    %1099 = vector.broadcast %cst_555 : f32 to vector<8x32xf32>
    %1100 = arith.subf %1099, %1095 : vector<8x32xf32>
    %1101 = arith.mulf %1100, %1098 : vector<8x32xf32>
    %1102 = arith.mulf %1095, %1028 : vector<8x32xf32>
    %1103 = arith.addf %1101, %1102 : vector<8x32xf32>
    %1104 = arith.index_cast %1034 : i32 to index
    %c0_556 = arith.constant 0 : index
    %1105 = vector.load %arg16[%1104, %c0_556] : memref<64x32xf32, #tpu.memory_space<vmem>>, vector<8x32xf32>
    tpu.vector_store %arg16[%1104, %c0_556], %1079 {strides = array<i32>} : memref<64x32xf32, #tpu.memory_space<vmem>>, vector<8x32xf32>,
    %1106 = arith.index_cast %1037 : i32 to index
    %c0_557 = arith.constant 0 : index
    %1107 = vector.load %arg17[%1106, %c0_557] : memref<64x32xf32, #tpu.memory_space<vmem>>, vector<8x32xf32>
    tpu.vector_store %arg17[%1106, %c0_557], %1103 {strides = array<i32>} : memref<64x32xf32, #tpu.memory_space<vmem>>, vector<8x32xf32>,
    %c4_i32_558 = arith.constant 4 : i32
    %c8_i32_559 = arith.constant 8 : i32
    %1108 = arith.muli %c4_i32_558, %c8_i32_559 : i32
    %1109 = tpu.assume_multiple %1108, 8 : i32
    %c7_i32_560 = arith.constant 7 : i32
    %1110 = arith.subi %c7_i32_560, %c4_i32_558 : i32
    %c8_i32_561 = arith.constant 8 : i32
    %1111 = arith.muli %1110, %c8_i32_561 : i32
    %1112 = tpu.assume_multiple %1111, 8 : i32
    %c0_562 = arith.constant 0 : index
    %1113 = arith.index_cast %1109 : i32 to index
    %c0_563 = arith.constant 0 : index
    %1114 = vector.load %arg13[%c0_562, %1113, %c0_563] : memref<6x64x32xf32, #tpu.memory_space<vmem>>, vector<1x8x32xf32>
    %1115 = vector.shape_cast %1114 : vector<1x8x32xf32> to vector<8x32xf32>
    %c1_564 = arith.constant 1 : index
    %1116 = arith.index_cast %1109 : i32 to index
    %c0_565 = arith.constant 0 : index
    %1117 = vector.load %arg13[%c1_564, %1116, %c0_565] : memref<6x64x32xf32, #tpu.memory_space<vmem>>, vector<1x8x32xf32>
    %1118 = vector.shape_cast %1117 : vector<1x8x32xf32> to vector<8x32xf32>
    %c2_566 = arith.constant 2 : index
    %1119 = arith.index_cast %1109 : i32 to index
    %c0_567 = arith.constant 0 : index
    %1120 = vector.load %arg13[%c2_566, %1119, %c0_567] : memref<6x64x32xf32, #tpu.memory_space<vmem>>, vector<1x8x32xf32>
    %1121 = vector.shape_cast %1120 : vector<1x8x32xf32> to vector<8x32xf32>
    %c3_568 = arith.constant 3 : index
    %1122 = arith.index_cast %1112 : i32 to index
    %c0_569 = arith.constant 0 : index
    %1123 = vector.load %arg13[%c3_568, %1122, %c0_569] : memref<6x64x32xf32, #tpu.memory_space<vmem>>, vector<1x8x32xf32>
    %1124 = vector.shape_cast %1123 : vector<1x8x32xf32> to vector<8x32xf32>
    %c4_570 = arith.constant 4 : index
    %1125 = arith.index_cast %1112 : i32 to index
    %c0_571 = arith.constant 0 : index
    %1126 = vector.load %arg13[%c4_570, %1125, %c0_571] : memref<6x64x32xf32, #tpu.memory_space<vmem>>, vector<1x8x32xf32>
    %1127 = vector.shape_cast %1126 : vector<1x8x32xf32> to vector<8x32xf32>
    %c5_572 = arith.constant 5 : index
    %1128 = arith.index_cast %1112 : i32 to index
    %c0_573 = arith.constant 0 : index
    %1129 = vector.load %arg13[%c5_572, %1128, %c0_573] : memref<6x64x32xf32, #tpu.memory_space<vmem>>, vector<1x8x32xf32>
    %1130 = vector.shape_cast %1129 : vector<1x8x32xf32> to vector<8x32xf32>
    %cst_574 = arith.constant dense<0.000000e+00> : vector<8x32xf32>
    %1131 = tpu.matmul %1079, %785, %cst_574 {dimension_numbers = #tpu.dot_dimension_numbers<[1], [0], [0], [1], [0, 0, 1, 1], [], []>} : vector<8x32xf32>, vector<32x32xf32>, vector<8x32xf32> -> vector<8x32xf32>
    %cst_575 = arith.constant dense<0.000000e+00> : vector<8x32xf32>
    %1132 = tpu.matmul %1079, %787, %cst_575 {dimension_numbers = #tpu.dot_dimension_numbers<[1], [0], [0], [1], [0, 0, 1, 1], [], []>} : vector<8x32xf32>, vector<32x32xf32>, vector<8x32xf32> -> vector<8x32xf32>
    %cst_576 = arith.constant dense<0.000000e+00> : vector<8x32xf32>
    %1133 = tpu.matmul %1079, %789, %cst_576 {dimension_numbers = #tpu.dot_dimension_numbers<[1], [0], [0], [1], [0, 0, 1, 1], [], []>} : vector<8x32xf32>, vector<32x32xf32>, vector<8x32xf32> -> vector<8x32xf32>
    %1134 = arith.addf %1133, %799 : vector<8x32xf32>
    %1135 = arith.addf %1115, %1131 : vector<8x32xf32>
    %1136 = arith.negf %1135 : vector<8x32xf32>
    %1137 = math.exp %1136 : vector<8x32xf32>
    %cst_577 = arith.constant 1.000000e+00 : f32
    %1138 = vector.broadcast %cst_577 : f32 to vector<8x32xf32>
    %1139 = arith.addf %1138, %1137 : vector<8x32xf32>
    %1140 = arith.divf %1138, %1139 : vector<8x32xf32>
    %1141 = arith.addf %1118, %1132 : vector<8x32xf32>
    %1142 = arith.negf %1141 : vector<8x32xf32>
    %1143 = math.exp %1142 : vector<8x32xf32>
    %cst_578 = arith.constant 1.000000e+00 : f32
    %1144 = vector.broadcast %cst_578 : f32 to vector<8x32xf32>
    %1145 = arith.addf %1144, %1143 : vector<8x32xf32>
    %1146 = arith.divf %1144, %1145 : vector<8x32xf32>
    %1147 = arith.mulf %1140, %1134 : vector<8x32xf32>
    %1148 = arith.addf %1121, %1147 : vector<8x32xf32>
    %1149 = math.tanh %1148 : vector<8x32xf32>
    %cst_579 = arith.constant 1.000000e+00 : f32
    %1150 = vector.broadcast %cst_579 : f32 to vector<8x32xf32>
    %1151 = arith.subf %1150, %1146 : vector<8x32xf32>
    %1152 = arith.mulf %1151, %1149 : vector<8x32xf32>
    %1153 = arith.mulf %1146, %1079 : vector<8x32xf32>
    %1154 = arith.addf %1152, %1153 : vector<8x32xf32>
    %cst_580 = arith.constant dense<0.000000e+00> : vector<8x32xf32>
    %1155 = tpu.matmul %1103, %791, %cst_580 {dimension_numbers = #tpu.dot_dimension_numbers<[1], [0], [0], [1], [0, 0, 1, 1], [], []>} : vector<8x32xf32>, vector<32x32xf32>, vector<8x32xf32> -> vector<8x32xf32>
    %cst_581 = arith.constant dense<0.000000e+00> : vector<8x32xf32>
    %1156 = tpu.matmul %1103, %793, %cst_581 {dimension_numbers = #tpu.dot_dimension_numbers<[1], [0], [0], [1], [0, 0, 1, 1], [], []>} : vector<8x32xf32>, vector<32x32xf32>, vector<8x32xf32> -> vector<8x32xf32>
    %cst_582 = arith.constant dense<0.000000e+00> : vector<8x32xf32>
    %1157 = tpu.matmul %1103, %795, %cst_582 {dimension_numbers = #tpu.dot_dimension_numbers<[1], [0], [0], [1], [0, 0, 1, 1], [], []>} : vector<8x32xf32>, vector<32x32xf32>, vector<8x32xf32> -> vector<8x32xf32>
    %1158 = arith.addf %1157, %803 : vector<8x32xf32>
    %1159 = arith.addf %1124, %1155 : vector<8x32xf32>
    %1160 = arith.negf %1159 : vector<8x32xf32>
    %1161 = math.exp %1160 : vector<8x32xf32>
    %cst_583 = arith.constant 1.000000e+00 : f32
    %1162 = vector.broadcast %cst_583 : f32 to vector<8x32xf32>
    %1163 = arith.addf %1162, %1161 : vector<8x32xf32>
    %1164 = arith.divf %1162, %1163 : vector<8x32xf32>
    %1165 = arith.addf %1127, %1156 : vector<8x32xf32>
    %1166 = arith.negf %1165 : vector<8x32xf32>
    %1167 = math.exp %1166 : vector<8x32xf32>
    %cst_584 = arith.constant 1.000000e+00 : f32
    %1168 = vector.broadcast %cst_584 : f32 to vector<8x32xf32>
    %1169 = arith.addf %1168, %1167 : vector<8x32xf32>
    %1170 = arith.divf %1168, %1169 : vector<8x32xf32>
    %1171 = arith.mulf %1164, %1158 : vector<8x32xf32>
    %1172 = arith.addf %1130, %1171 : vector<8x32xf32>
    %1173 = math.tanh %1172 : vector<8x32xf32>
    %cst_585 = arith.constant 1.000000e+00 : f32
    %1174 = vector.broadcast %cst_585 : f32 to vector<8x32xf32>
    %1175 = arith.subf %1174, %1170 : vector<8x32xf32>
    %1176 = arith.mulf %1175, %1173 : vector<8x32xf32>
    %1177 = arith.mulf %1170, %1103 : vector<8x32xf32>
    %1178 = arith.addf %1176, %1177 : vector<8x32xf32>
    %1179 = arith.index_cast %1109 : i32 to index
    %c0_586 = arith.constant 0 : index
    %1180 = vector.load %arg16[%1179, %c0_586] : memref<64x32xf32, #tpu.memory_space<vmem>>, vector<8x32xf32>
    tpu.vector_store %arg16[%1179, %c0_586], %1154 {strides = array<i32>} : memref<64x32xf32, #tpu.memory_space<vmem>>, vector<8x32xf32>,
    %1181 = arith.index_cast %1112 : i32 to index
    %c0_587 = arith.constant 0 : index
    %1182 = vector.load %arg17[%1181, %c0_587] : memref<64x32xf32, #tpu.memory_space<vmem>>, vector<8x32xf32>
    tpu.vector_store %arg17[%1181, %c0_587], %1178 {strides = array<i32>} : memref<64x32xf32, #tpu.memory_space<vmem>>, vector<8x32xf32>,
    %c5_i32_588 = arith.constant 5 : i32
    %c8_i32_589 = arith.constant 8 : i32
    %1183 = arith.muli %c5_i32_588, %c8_i32_589 : i32
    %1184 = tpu.assume_multiple %1183, 8 : i32
    %c7_i32_590 = arith.constant 7 : i32
    %1185 = arith.subi %c7_i32_590, %c5_i32_588 : i32
    %c8_i32_591 = arith.constant 8 : i32
    %1186 = arith.muli %1185, %c8_i32_591 : i32
    %1187 = tpu.assume_multiple %1186, 8 : i32
    %c0_592 = arith.constant 0 : index
    %1188 = arith.index_cast %1184 : i32 to index
    %c0_593 = arith.constant 0 : index
    %1189 = vector.load %arg13[%c0_592, %1188, %c0_593] : memref<6x64x32xf32, #tpu.memory_space<vmem>>, vector<1x8x32xf32>
    %1190 = vector.shape_cast %1189 : vector<1x8x32xf32> to vector<8x32xf32>
    %c1_594 = arith.constant 1 : index
    %1191 = arith.index_cast %1184 : i32 to index
    %c0_595 = arith.constant 0 : index
    %1192 = vector.load %arg13[%c1_594, %1191, %c0_595] : memref<6x64x32xf32, #tpu.memory_space<vmem>>, vector<1x8x32xf32>
    %1193 = vector.shape_cast %1192 : vector<1x8x32xf32> to vector<8x32xf32>
    %c2_596 = arith.constant 2 : index
    %1194 = arith.index_cast %1184 : i32 to index
    %c0_597 = arith.constant 0 : index
    %1195 = vector.load %arg13[%c2_596, %1194, %c0_597] : memref<6x64x32xf32, #tpu.memory_space<vmem>>, vector<1x8x32xf32>
    %1196 = vector.shape_cast %1195 : vector<1x8x32xf32> to vector<8x32xf32>
    %c3_598 = arith.constant 3 : index
    %1197 = arith.index_cast %1187 : i32 to index
    %c0_599 = arith.constant 0 : index
    %1198 = vector.load %arg13[%c3_598, %1197, %c0_599] : memref<6x64x32xf32, #tpu.memory_space<vmem>>, vector<1x8x32xf32>
    %1199 = vector.shape_cast %1198 : vector<1x8x32xf32> to vector<8x32xf32>
    %c4_600 = arith.constant 4 : index
    %1200 = arith.index_cast %1187 : i32 to index
    %c0_601 = arith.constant 0 : index
    %1201 = vector.load %arg13[%c4_600, %1200, %c0_601] : memref<6x64x32xf32, #tpu.memory_space<vmem>>, vector<1x8x32xf32>
    %1202 = vector.shape_cast %1201 : vector<1x8x32xf32> to vector<8x32xf32>
    %c5_602 = arith.constant 5 : index
    %1203 = arith.index_cast %1187 : i32 to index
    %c0_603 = arith.constant 0 : index
    %1204 = vector.load %arg13[%c5_602, %1203, %c0_603] : memref<6x64x32xf32, #tpu.memory_space<vmem>>, vector<1x8x32xf32>
    %1205 = vector.shape_cast %1204 : vector<1x8x32xf32> to vector<8x32xf32>
    %cst_604 = arith.constant dense<0.000000e+00> : vector<8x32xf32>
    %1206 = tpu.matmul %1154, %785, %cst_604 {dimension_numbers = #tpu.dot_dimension_numbers<[1], [0], [0], [1], [0, 0, 1, 1], [], []>} : vector<8x32xf32>, vector<32x32xf32>, vector<8x32xf32> -> vector<8x32xf32>
    %cst_605 = arith.constant dense<0.000000e+00> : vector<8x32xf32>
    %1207 = tpu.matmul %1154, %787, %cst_605 {dimension_numbers = #tpu.dot_dimension_numbers<[1], [0], [0], [1], [0, 0, 1, 1], [], []>} : vector<8x32xf32>, vector<32x32xf32>, vector<8x32xf32> -> vector<8x32xf32>
    %cst_606 = arith.constant dense<0.000000e+00> : vector<8x32xf32>
    %1208 = tpu.matmul %1154, %789, %cst_606 {dimension_numbers = #tpu.dot_dimension_numbers<[1], [0], [0], [1], [0, 0, 1, 1], [], []>} : vector<8x32xf32>, vector<32x32xf32>, vector<8x32xf32> -> vector<8x32xf32>
    %1209 = arith.addf %1208, %799 : vector<8x32xf32>
    %1210 = arith.addf %1190, %1206 : vector<8x32xf32>
    %1211 = arith.negf %1210 : vector<8x32xf32>
    %1212 = math.exp %1211 : vector<8x32xf32>
    %cst_607 = arith.constant 1.000000e+00 : f32
    %1213 = vector.broadcast %cst_607 : f32 to vector<8x32xf32>
    %1214 = arith.addf %1213, %1212 : vector<8x32xf32>
    %1215 = arith.divf %1213, %1214 : vector<8x32xf32>
    %1216 = arith.addf %1193, %1207 : vector<8x32xf32>
    %1217 = arith.negf %1216 : vector<8x32xf32>
    %1218 = math.exp %1217 : vector<8x32xf32>
    %cst_608 = arith.constant 1.000000e+00 : f32
    %1219 = vector.broadcast %cst_608 : f32 to vector<8x32xf32>
    %1220 = arith.addf %1219, %1218 : vector<8x32xf32>
    %1221 = arith.divf %1219, %1220 : vector<8x32xf32>
    %1222 = arith.mulf %1215, %1209 : vector<8x32xf32>
    %1223 = arith.addf %1196, %1222 : vector<8x32xf32>
    %1224 = math.tanh %1223 : vector<8x32xf32>
    %cst_609 = arith.constant 1.000000e+00 : f32
    %1225 = vector.broadcast %cst_609 : f32 to vector<8x32xf32>
    %1226 = arith.subf %1225, %1221 : vector<8x32xf32>
    %1227 = arith.mulf %1226, %1224 : vector<8x32xf32>
    %1228 = arith.mulf %1221, %1154 : vector<8x32xf32>
    %1229 = arith.addf %1227, %1228 : vector<8x32xf32>
    %cst_610 = arith.constant dense<0.000000e+00> : vector<8x32xf32>
    %1230 = tpu.matmul %1178, %791, %cst_610 {dimension_numbers = #tpu.dot_dimension_numbers<[1], [0], [0], [1], [0, 0, 1, 1], [], []>} : vector<8x32xf32>, vector<32x32xf32>, vector<8x32xf32> -> vector<8x32xf32>
    %cst_611 = arith.constant dense<0.000000e+00> : vector<8x32xf32>
    %1231 = tpu.matmul %1178, %793, %cst_611 {dimension_numbers = #tpu.dot_dimension_numbers<[1], [0], [0], [1], [0, 0, 1, 1], [], []>} : vector<8x32xf32>, vector<32x32xf32>, vector<8x32xf32> -> vector<8x32xf32>
    %cst_612 = arith.constant dense<0.000000e+00> : vector<8x32xf32>
    %1232 = tpu.matmul %1178, %795, %cst_612 {dimension_numbers = #tpu.dot_dimension_numbers<[1], [0], [0], [1], [0, 0, 1, 1], [], []>} : vector<8x32xf32>, vector<32x32xf32>, vector<8x32xf32> -> vector<8x32xf32>
    %1233 = arith.addf %1232, %803 : vector<8x32xf32>
    %1234 = arith.addf %1199, %1230 : vector<8x32xf32>
    %1235 = arith.negf %1234 : vector<8x32xf32>
    %1236 = math.exp %1235 : vector<8x32xf32>
    %cst_613 = arith.constant 1.000000e+00 : f32
    %1237 = vector.broadcast %cst_613 : f32 to vector<8x32xf32>
    %1238 = arith.addf %1237, %1236 : vector<8x32xf32>
    %1239 = arith.divf %1237, %1238 : vector<8x32xf32>
    %1240 = arith.addf %1202, %1231 : vector<8x32xf32>
    %1241 = arith.negf %1240 : vector<8x32xf32>
    %1242 = math.exp %1241 : vector<8x32xf32>
    %cst_614 = arith.constant 1.000000e+00 : f32
    %1243 = vector.broadcast %cst_614 : f32 to vector<8x32xf32>
    %1244 = arith.addf %1243, %1242 : vector<8x32xf32>
    %1245 = arith.divf %1243, %1244 : vector<8x32xf32>
    %1246 = arith.mulf %1239, %1233 : vector<8x32xf32>
    %1247 = arith.addf %1205, %1246 : vector<8x32xf32>
    %1248 = math.tanh %1247 : vector<8x32xf32>
    %cst_615 = arith.constant 1.000000e+00 : f32
    %1249 = vector.broadcast %cst_615 : f32 to vector<8x32xf32>
    %1250 = arith.subf %1249, %1245 : vector<8x32xf32>
    %1251 = arith.mulf %1250, %1248 : vector<8x32xf32>
    %1252 = arith.mulf %1245, %1178 : vector<8x32xf32>
    %1253 = arith.addf %1251, %1252 : vector<8x32xf32>
    %1254 = arith.index_cast %1184 : i32 to index
    %c0_616 = arith.constant 0 : index
    %1255 = vector.load %arg16[%1254, %c0_616] : memref<64x32xf32, #tpu.memory_space<vmem>>, vector<8x32xf32>
    tpu.vector_store %arg16[%1254, %c0_616], %1229 {strides = array<i32>} : memref<64x32xf32, #tpu.memory_space<vmem>>, vector<8x32xf32>,
    %1256 = arith.index_cast %1187 : i32 to index
    %c0_617 = arith.constant 0 : index
    %1257 = vector.load %arg17[%1256, %c0_617] : memref<64x32xf32, #tpu.memory_space<vmem>>, vector<8x32xf32>
    tpu.vector_store %arg17[%1256, %c0_617], %1253 {strides = array<i32>} : memref<64x32xf32, #tpu.memory_space<vmem>>, vector<8x32xf32>,
    %c6_i32_618 = arith.constant 6 : i32
    %c8_i32_619 = arith.constant 8 : i32
    %1258 = arith.muli %c6_i32_618, %c8_i32_619 : i32
    %1259 = tpu.assume_multiple %1258, 8 : i32
    %c7_i32_620 = arith.constant 7 : i32
    %1260 = arith.subi %c7_i32_620, %c6_i32_618 : i32
    %c8_i32_621 = arith.constant 8 : i32
    %1261 = arith.muli %1260, %c8_i32_621 : i32
    %1262 = tpu.assume_multiple %1261, 8 : i32
    %c0_622 = arith.constant 0 : index
    %1263 = arith.index_cast %1259 : i32 to index
    %c0_623 = arith.constant 0 : index
    %1264 = vector.load %arg13[%c0_622, %1263, %c0_623] : memref<6x64x32xf32, #tpu.memory_space<vmem>>, vector<1x8x32xf32>
    %1265 = vector.shape_cast %1264 : vector<1x8x32xf32> to vector<8x32xf32>
    %c1_624 = arith.constant 1 : index
    %1266 = arith.index_cast %1259 : i32 to index
    %c0_625 = arith.constant 0 : index
    %1267 = vector.load %arg13[%c1_624, %1266, %c0_625] : memref<6x64x32xf32, #tpu.memory_space<vmem>>, vector<1x8x32xf32>
    %1268 = vector.shape_cast %1267 : vector<1x8x32xf32> to vector<8x32xf32>
    %c2_626 = arith.constant 2 : index
    %1269 = arith.index_cast %1259 : i32 to index
    %c0_627 = arith.constant 0 : index
    %1270 = vector.load %arg13[%c2_626, %1269, %c0_627] : memref<6x64x32xf32, #tpu.memory_space<vmem>>, vector<1x8x32xf32>
    %1271 = vector.shape_cast %1270 : vector<1x8x32xf32> to vector<8x32xf32>
    %c3_628 = arith.constant 3 : index
    %1272 = arith.index_cast %1262 : i32 to index
    %c0_629 = arith.constant 0 : index
    %1273 = vector.load %arg13[%c3_628, %1272, %c0_629] : memref<6x64x32xf32, #tpu.memory_space<vmem>>, vector<1x8x32xf32>
    %1274 = vector.shape_cast %1273 : vector<1x8x32xf32> to vector<8x32xf32>
    %c4_630 = arith.constant 4 : index
    %1275 = arith.index_cast %1262 : i32 to index
    %c0_631 = arith.constant 0 : index
    %1276 = vector.load %arg13[%c4_630, %1275, %c0_631] : memref<6x64x32xf32, #tpu.memory_space<vmem>>, vector<1x8x32xf32>
    %1277 = vector.shape_cast %1276 : vector<1x8x32xf32> to vector<8x32xf32>
    %c5_632 = arith.constant 5 : index
    %1278 = arith.index_cast %1262 : i32 to index
    %c0_633 = arith.constant 0 : index
    %1279 = vector.load %arg13[%c5_632, %1278, %c0_633] : memref<6x64x32xf32, #tpu.memory_space<vmem>>, vector<1x8x32xf32>
    %1280 = vector.shape_cast %1279 : vector<1x8x32xf32> to vector<8x32xf32>
    %cst_634 = arith.constant dense<0.000000e+00> : vector<8x32xf32>
    %1281 = tpu.matmul %1229, %785, %cst_634 {dimension_numbers = #tpu.dot_dimension_numbers<[1], [0], [0], [1], [0, 0, 1, 1], [], []>} : vector<8x32xf32>, vector<32x32xf32>, vector<8x32xf32> -> vector<8x32xf32>
    %cst_635 = arith.constant dense<0.000000e+00> : vector<8x32xf32>
    %1282 = tpu.matmul %1229, %787, %cst_635 {dimension_numbers = #tpu.dot_dimension_numbers<[1], [0], [0], [1], [0, 0, 1, 1], [], []>} : vector<8x32xf32>, vector<32x32xf32>, vector<8x32xf32> -> vector<8x32xf32>
    %cst_636 = arith.constant dense<0.000000e+00> : vector<8x32xf32>
    %1283 = tpu.matmul %1229, %789, %cst_636 {dimension_numbers = #tpu.dot_dimension_numbers<[1], [0], [0], [1], [0, 0, 1, 1], [], []>} : vector<8x32xf32>, vector<32x32xf32>, vector<8x32xf32> -> vector<8x32xf32>
    %1284 = arith.addf %1283, %799 : vector<8x32xf32>
    %1285 = arith.addf %1265, %1281 : vector<8x32xf32>
    %1286 = arith.negf %1285 : vector<8x32xf32>
    %1287 = math.exp %1286 : vector<8x32xf32>
    %cst_637 = arith.constant 1.000000e+00 : f32
    %1288 = vector.broadcast %cst_637 : f32 to vector<8x32xf32>
    %1289 = arith.addf %1288, %1287 : vector<8x32xf32>
    %1290 = arith.divf %1288, %1289 : vector<8x32xf32>
    %1291 = arith.addf %1268, %1282 : vector<8x32xf32>
    %1292 = arith.negf %1291 : vector<8x32xf32>
    %1293 = math.exp %1292 : vector<8x32xf32>
    %cst_638 = arith.constant 1.000000e+00 : f32
    %1294 = vector.broadcast %cst_638 : f32 to vector<8x32xf32>
    %1295 = arith.addf %1294, %1293 : vector<8x32xf32>
    %1296 = arith.divf %1294, %1295 : vector<8x32xf32>
    %1297 = arith.mulf %1290, %1284 : vector<8x32xf32>
    %1298 = arith.addf %1271, %1297 : vector<8x32xf32>
    %1299 = math.tanh %1298 : vector<8x32xf32>
    %cst_639 = arith.constant 1.000000e+00 : f32
    %1300 = vector.broadcast %cst_639 : f32 to vector<8x32xf32>
    %1301 = arith.subf %1300, %1296 : vector<8x32xf32>
    %1302 = arith.mulf %1301, %1299 : vector<8x32xf32>
    %1303 = arith.mulf %1296, %1229 : vector<8x32xf32>
    %1304 = arith.addf %1302, %1303 : vector<8x32xf32>
    %cst_640 = arith.constant dense<0.000000e+00> : vector<8x32xf32>
    %1305 = tpu.matmul %1253, %791, %cst_640 {dimension_numbers = #tpu.dot_dimension_numbers<[1], [0], [0], [1], [0, 0, 1, 1], [], []>} : vector<8x32xf32>, vector<32x32xf32>, vector<8x32xf32> -> vector<8x32xf32>
    %cst_641 = arith.constant dense<0.000000e+00> : vector<8x32xf32>
    %1306 = tpu.matmul %1253, %793, %cst_641 {dimension_numbers = #tpu.dot_dimension_numbers<[1], [0], [0], [1], [0, 0, 1, 1], [], []>} : vector<8x32xf32>, vector<32x32xf32>, vector<8x32xf32> -> vector<8x32xf32>
    %cst_642 = arith.constant dense<0.000000e+00> : vector<8x32xf32>
    %1307 = tpu.matmul %1253, %795, %cst_642 {dimension_numbers = #tpu.dot_dimension_numbers<[1], [0], [0], [1], [0, 0, 1, 1], [], []>} : vector<8x32xf32>, vector<32x32xf32>, vector<8x32xf32> -> vector<8x32xf32>
    %1308 = arith.addf %1307, %803 : vector<8x32xf32>
    %1309 = arith.addf %1274, %1305 : vector<8x32xf32>
    %1310 = arith.negf %1309 : vector<8x32xf32>
    %1311 = math.exp %1310 : vector<8x32xf32>
    %cst_643 = arith.constant 1.000000e+00 : f32
    %1312 = vector.broadcast %cst_643 : f32 to vector<8x32xf32>
    %1313 = arith.addf %1312, %1311 : vector<8x32xf32>
    %1314 = arith.divf %1312, %1313 : vector<8x32xf32>
    %1315 = arith.addf %1277, %1306 : vector<8x32xf32>
    %1316 = arith.negf %1315 : vector<8x32xf32>
    %1317 = math.exp %1316 : vector<8x32xf32>
    %cst_644 = arith.constant 1.000000e+00 : f32
    %1318 = vector.broadcast %cst_644 : f32 to vector<8x32xf32>
    %1319 = arith.addf %1318, %1317 : vector<8x32xf32>
    %1320 = arith.divf %1318, %1319 : vector<8x32xf32>
    %1321 = arith.mulf %1314, %1308 : vector<8x32xf32>
    %1322 = arith.addf %1280, %1321 : vector<8x32xf32>
    %1323 = math.tanh %1322 : vector<8x32xf32>
    %cst_645 = arith.constant 1.000000e+00 : f32
    %1324 = vector.broadcast %cst_645 : f32 to vector<8x32xf32>
    %1325 = arith.subf %1324, %1320 : vector<8x32xf32>
    %1326 = arith.mulf %1325, %1323 : vector<8x32xf32>
    %1327 = arith.mulf %1320, %1253 : vector<8x32xf32>
    %1328 = arith.addf %1326, %1327 : vector<8x32xf32>
    %1329 = arith.index_cast %1259 : i32 to index
    %c0_646 = arith.constant 0 : index
    %1330 = vector.load %arg16[%1329, %c0_646] : memref<64x32xf32, #tpu.memory_space<vmem>>, vector<8x32xf32>
    tpu.vector_store %arg16[%1329, %c0_646], %1304 {strides = array<i32>} : memref<64x32xf32, #tpu.memory_space<vmem>>, vector<8x32xf32>,
    %1331 = arith.index_cast %1262 : i32 to index
    %c0_647 = arith.constant 0 : index
    %1332 = vector.load %arg17[%1331, %c0_647] : memref<64x32xf32, #tpu.memory_space<vmem>>, vector<8x32xf32>
    tpu.vector_store %arg17[%1331, %c0_647], %1328 {strides = array<i32>} : memref<64x32xf32, #tpu.memory_space<vmem>>, vector<8x32xf32>,
    %c7_i32_648 = arith.constant 7 : i32
    %c8_i32_649 = arith.constant 8 : i32
    %1333 = arith.muli %c7_i32_648, %c8_i32_649 : i32
    %1334 = tpu.assume_multiple %1333, 8 : i32
    %c7_i32_650 = arith.constant 7 : i32
    %1335 = arith.subi %c7_i32_650, %c7_i32_648 : i32
    %c8_i32_651 = arith.constant 8 : i32
    %1336 = arith.muli %1335, %c8_i32_651 : i32
    %1337 = tpu.assume_multiple %1336, 8 : i32
    %c0_652 = arith.constant 0 : index
    %1338 = arith.index_cast %1334 : i32 to index
    %c0_653 = arith.constant 0 : index
    %1339 = vector.load %arg13[%c0_652, %1338, %c0_653] : memref<6x64x32xf32, #tpu.memory_space<vmem>>, vector<1x8x32xf32>
    %1340 = vector.shape_cast %1339 : vector<1x8x32xf32> to vector<8x32xf32>
    %c1_654 = arith.constant 1 : index
    %1341 = arith.index_cast %1334 : i32 to index
    %c0_655 = arith.constant 0 : index
    %1342 = vector.load %arg13[%c1_654, %1341, %c0_655] : memref<6x64x32xf32, #tpu.memory_space<vmem>>, vector<1x8x32xf32>
    %1343 = vector.shape_cast %1342 : vector<1x8x32xf32> to vector<8x32xf32>
    %c2_656 = arith.constant 2 : index
    %1344 = arith.index_cast %1334 : i32 to index
    %c0_657 = arith.constant 0 : index
    %1345 = vector.load %arg13[%c2_656, %1344, %c0_657] : memref<6x64x32xf32, #tpu.memory_space<vmem>>, vector<1x8x32xf32>
    %1346 = vector.shape_cast %1345 : vector<1x8x32xf32> to vector<8x32xf32>
    %c3_658 = arith.constant 3 : index
    %1347 = arith.index_cast %1337 : i32 to index
    %c0_659 = arith.constant 0 : index
    %1348 = vector.load %arg13[%c3_658, %1347, %c0_659] : memref<6x64x32xf32, #tpu.memory_space<vmem>>, vector<1x8x32xf32>
    %1349 = vector.shape_cast %1348 : vector<1x8x32xf32> to vector<8x32xf32>
    %c4_660 = arith.constant 4 : index
    %1350 = arith.index_cast %1337 : i32 to index
    %c0_661 = arith.constant 0 : index
    %1351 = vector.load %arg13[%c4_660, %1350, %c0_661] : memref<6x64x32xf32, #tpu.memory_space<vmem>>, vector<1x8x32xf32>
    %1352 = vector.shape_cast %1351 : vector<1x8x32xf32> to vector<8x32xf32>
    %c5_662 = arith.constant 5 : index
    %1353 = arith.index_cast %1337 : i32 to index
    %c0_663 = arith.constant 0 : index
    %1354 = vector.load %arg13[%c5_662, %1353, %c0_663] : memref<6x64x32xf32, #tpu.memory_space<vmem>>, vector<1x8x32xf32>
    %1355 = vector.shape_cast %1354 : vector<1x8x32xf32> to vector<8x32xf32>
    %cst_664 = arith.constant dense<0.000000e+00> : vector<8x32xf32>
    %1356 = tpu.matmul %1304, %785, %cst_664 {dimension_numbers = #tpu.dot_dimension_numbers<[1], [0], [0], [1], [0, 0, 1, 1], [], []>} : vector<8x32xf32>, vector<32x32xf32>, vector<8x32xf32> -> vector<8x32xf32>
    %cst_665 = arith.constant dense<0.000000e+00> : vector<8x32xf32>
    %1357 = tpu.matmul %1304, %787, %cst_665 {dimension_numbers = #tpu.dot_dimension_numbers<[1], [0], [0], [1], [0, 0, 1, 1], [], []>} : vector<8x32xf32>, vector<32x32xf32>, vector<8x32xf32> -> vector<8x32xf32>
    %cst_666 = arith.constant dense<0.000000e+00> : vector<8x32xf32>
    %1358 = tpu.matmul %1304, %789, %cst_666 {dimension_numbers = #tpu.dot_dimension_numbers<[1], [0], [0], [1], [0, 0, 1, 1], [], []>} : vector<8x32xf32>, vector<32x32xf32>, vector<8x32xf32> -> vector<8x32xf32>
    %1359 = arith.addf %1358, %799 : vector<8x32xf32>
    %1360 = arith.addf %1340, %1356 : vector<8x32xf32>
    %1361 = arith.negf %1360 : vector<8x32xf32>
    %1362 = math.exp %1361 : vector<8x32xf32>
    %cst_667 = arith.constant 1.000000e+00 : f32
    %1363 = vector.broadcast %cst_667 : f32 to vector<8x32xf32>
    %1364 = arith.addf %1363, %1362 : vector<8x32xf32>
    %1365 = arith.divf %1363, %1364 : vector<8x32xf32>
    %1366 = arith.addf %1343, %1357 : vector<8x32xf32>
    %1367 = arith.negf %1366 : vector<8x32xf32>
    %1368 = math.exp %1367 : vector<8x32xf32>
    %cst_668 = arith.constant 1.000000e+00 : f32
    %1369 = vector.broadcast %cst_668 : f32 to vector<8x32xf32>
    %1370 = arith.addf %1369, %1368 : vector<8x32xf32>
    %1371 = arith.divf %1369, %1370 : vector<8x32xf32>
    %1372 = arith.mulf %1365, %1359 : vector<8x32xf32>
    %1373 = arith.addf %1346, %1372 : vector<8x32xf32>
    %1374 = math.tanh %1373 : vector<8x32xf32>
    %cst_669 = arith.constant 1.000000e+00 : f32
    %1375 = vector.broadcast %cst_669 : f32 to vector<8x32xf32>
    %1376 = arith.subf %1375, %1371 : vector<8x32xf32>
    %1377 = arith.mulf %1376, %1374 : vector<8x32xf32>
    %1378 = arith.mulf %1371, %1304 : vector<8x32xf32>
    %1379 = arith.addf %1377, %1378 : vector<8x32xf32>
    %cst_670 = arith.constant dense<0.000000e+00> : vector<8x32xf32>
    %1380 = tpu.matmul %1328, %791, %cst_670 {dimension_numbers = #tpu.dot_dimension_numbers<[1], [0], [0], [1], [0, 0, 1, 1], [], []>} : vector<8x32xf32>, vector<32x32xf32>, vector<8x32xf32> -> vector<8x32xf32>
    %cst_671 = arith.constant dense<0.000000e+00> : vector<8x32xf32>
    %1381 = tpu.matmul %1328, %793, %cst_671 {dimension_numbers = #tpu.dot_dimension_numbers<[1], [0], [0], [1], [0, 0, 1, 1], [], []>} : vector<8x32xf32>, vector<32x32xf32>, vector<8x32xf32> -> vector<8x32xf32>
    %cst_672 = arith.constant dense<0.000000e+00> : vector<8x32xf32>
    %1382 = tpu.matmul %1328, %795, %cst_672 {dimension_numbers = #tpu.dot_dimension_numbers<[1], [0], [0], [1], [0, 0, 1, 1], [], []>} : vector<8x32xf32>, vector<32x32xf32>, vector<8x32xf32> -> vector<8x32xf32>
    %1383 = arith.addf %1382, %803 : vector<8x32xf32>
    %1384 = arith.addf %1349, %1380 : vector<8x32xf32>
    %1385 = arith.negf %1384 : vector<8x32xf32>
    %1386 = math.exp %1385 : vector<8x32xf32>
    %cst_673 = arith.constant 1.000000e+00 : f32
    %1387 = vector.broadcast %cst_673 : f32 to vector<8x32xf32>
    %1388 = arith.addf %1387, %1386 : vector<8x32xf32>
    %1389 = arith.divf %1387, %1388 : vector<8x32xf32>
    %1390 = arith.addf %1352, %1381 : vector<8x32xf32>
    %1391 = arith.negf %1390 : vector<8x32xf32>
    %1392 = math.exp %1391 : vector<8x32xf32>
    %cst_674 = arith.constant 1.000000e+00 : f32
    %1393 = vector.broadcast %cst_674 : f32 to vector<8x32xf32>
    %1394 = arith.addf %1393, %1392 : vector<8x32xf32>
    %1395 = arith.divf %1393, %1394 : vector<8x32xf32>
    %1396 = arith.mulf %1389, %1383 : vector<8x32xf32>
    %1397 = arith.addf %1355, %1396 : vector<8x32xf32>
    %1398 = math.tanh %1397 : vector<8x32xf32>
    %cst_675 = arith.constant 1.000000e+00 : f32
    %1399 = vector.broadcast %cst_675 : f32 to vector<8x32xf32>
    %1400 = arith.subf %1399, %1395 : vector<8x32xf32>
    %1401 = arith.mulf %1400, %1398 : vector<8x32xf32>
    %1402 = arith.mulf %1395, %1328 : vector<8x32xf32>
    %1403 = arith.addf %1401, %1402 : vector<8x32xf32>
    %1404 = arith.index_cast %1334 : i32 to index
    %c0_676 = arith.constant 0 : index
    %1405 = vector.load %arg16[%1404, %c0_676] : memref<64x32xf32, #tpu.memory_space<vmem>>, vector<8x32xf32>
    tpu.vector_store %arg16[%1404, %c0_676], %1379 {strides = array<i32>} : memref<64x32xf32, #tpu.memory_space<vmem>>, vector<8x32xf32>,
    %1406 = arith.index_cast %1337 : i32 to index
    %c0_677 = arith.constant 0 : index
    %1407 = vector.load %arg17[%1406, %c0_677] : memref<64x32xf32, #tpu.memory_space<vmem>>, vector<8x32xf32>
    tpu.vector_store %arg17[%1406, %c0_677], %1403 {strides = array<i32>} : memref<64x32xf32, #tpu.memory_space<vmem>>, vector<8x32xf32>,
    %c8_i32_678 = arith.constant 8 : i32
    %c2_679 = arith.constant 2 : index
    %c0_680 = arith.constant 0 : index
    %c0_681 = arith.constant 0 : index
    %1408 = vector.load %arg12[%c2_679, %c0_680, %c0_681] : memref<4x8x32xf32, #tpu.memory_space<vmem>>, vector<1x8x32xf32>
    %1409 = vector.shape_cast %1408 : vector<1x8x32xf32> to vector<8x32xf32>
    %1410 = vector.shape_cast %1379 : vector<8x32xf32> to vector<1x8x32xf32>
    tpu.vector_store %arg12[%c2_679, %c0_680, %c0_681], %1410 {strides = array<i32>} : memref<4x8x32xf32, #tpu.memory_space<vmem>>, vector<1x8x32xf32>,
    %c3_682 = arith.constant 3 : index
    %c0_683 = arith.constant 0 : index
    %c0_684 = arith.constant 0 : index
    %1411 = vector.load %arg12[%c3_682, %c0_683, %c0_684] : memref<4x8x32xf32, #tpu.memory_space<vmem>>, vector<1x8x32xf32>
    %1412 = vector.shape_cast %1411 : vector<1x8x32xf32> to vector<8x32xf32>
    %1413 = vector.shape_cast %1403 : vector<8x32xf32> to vector<1x8x32xf32>
    tpu.vector_store %arg12[%c3_682, %c0_683, %c0_684], %1413 {strides = array<i32>} : memref<4x8x32xf32, #tpu.memory_space<vmem>>, vector<1x8x32xf32>,
    %c0_685 = arith.constant 0 : index
    %c0_686 = arith.constant 0 : index
    %1414 = vector.load %arg16[%c0_685, %c0_686] : memref<64x32xf32, #tpu.memory_space<vmem>>, vector<64x32xf32>
    %c0_687 = arith.constant 0 : index
    %c0_688 = arith.constant 0 : index
    %1415 = vector.load %arg17[%c0_687, %c0_688] : memref<64x32xf32, #tpu.memory_space<vmem>>, vector<64x32xf32>
    %1416 = arith.addf %1414, %1415 : vector<64x32xf32>
    %c0_689 = arith.constant 0 : index
    %c0_690 = arith.constant 0 : index
    %1417 = vector.load %arg11[%c0_689, %c0_690] : memref<64x32xf32, #tpu.memory_space<vmem>>, vector<64x32xf32>
    tpu.vector_store %arg11[%c0_689, %c0_690], %1416 {strides = array<i32>} : memref<64x32xf32, #tpu.memory_space<vmem>>, vector<64x32xf32>,
    return
  }
}

</mosaic_0001>

<bundles_post_ra>
// kernel: encoder_forward.1
= control target key start
LH: loop header
LB: loop body
LE: loop exit
PB: predicated region body
PF: predicated region fallthrough
CT: control target
= control target key end

     0   :  { %18 = vsyncpa [#allocation8], 0  ;;  %s15898_s0 = inlined_call_operand.vmem [shape: s32[64,1], index: 0, kind: input, shape index: {}]   ;;  %s15899_s1 = inlined_call_operand.vmem [shape: f32[56,16], index: 1, kind: input, shape index: {}]   ;;  %s15900_s2 = inlined_call_operand.vmem [shape: f32[4,8,32], index: 2, kind: input, shape index: {}]   ;;  %s15901_s3 = inlined_call_operand.vmem [shape: f32[6,16,32], index: 3, kind: input, shape index: {}]   ;;  %s15902_s4 = inlined_call_operand.hbm [shape: f32[6,32,32], index: 4, kind: input, shape index: {}]   ;;  %s15903_s5 = inlined_call_operand.vmem [shape: f32[6,1,32], index: 5, kind: input, shape index: {}]   ;;  %s15904_s6 = inlined_call_operand.vmem [shape: f32[2,1,32], index: 6, kind: input, shape index: {}]   ;;  %s15905_s7 = inlined_call_operand.hbm [shape: f32[12,32,32], index: 7, kind: input, shape index: {}]   ;;  %s15906_s8 = inlined_call_operand.hbm [shape: f32[6,32,32], index: 8, kind: input, shape index: {}]   ;;  %s15907_s9 = inlined_call_operand.vmem [shape: f32[6,1,32], index: 9, kind: input, shape index: {}]   ;;  %s15908_s10 = inlined_call_operand.vmem [shape: f32[2,1,32], index: 10, kind: input, shape index: {}]   ;;  %s15909_s11 = inlined_call_operand.hbm [shape: f32[64,32], index: 11, kind: output, shape index: {0}]   ;;  %s15910_s12 = inlined_call_operand.hbm [shape: f32[4,8,32], index: 12, kind: output, shape index: {1}]  }
   0x1   :  { %19 = vsyncpa [#allocation11], 0 }
   0x2   :  { %20 = vsyncpa [#allocation9], 0 }
   0x3   :  { %21 = vsyncpa [#allocation15], 0  ;;  %s13510_s21 = smov [#allocation10]   ;;  %s13511_s23 = smov [#allocation7]  }
   0x4   :  { %s51_s22 = sshll.u32 %s13510_s21, 4  ;;  %s35_s24 = sshll.u32 %s13511_s23, 4  ;;  %s52_s22 = int_to_ptr.vmem [resolvable:$true] %s51_s22  ;;  %s36_s24 = int_to_ptr.vmem [resolvable:$true] %s35_s24 }
   0x5   :  { %s13410_s25 = scalar_lea.vmem %s52_s22, 6144  ;;  %p13415_p1 = scmp.lt.s32.totalorder %s52_s22, %s52_s22 }
   0x6   :  { %p13411_p0 = scmp.ne.s32.totalorder %s52_s22, %s13410_s25  ;;  %p13416_p2 = scmp.lt.s32.totalorder %s13410_s25, %s13410_s25 }
   0x8   :  { %p13417_p3 = por %p13416_p2, %p13415_p1 }
   0xa   :  { %p13418_p4 = pnand %p13417_p3, %p13411_p0 }
   0xc   :  { %13421 = shalt.err (!%p13418_p4)
}
   0xd   :  { %s13512_s26 = smov 128   ;;  %s13513_s27 = smov 8  }
   0xe   :  { %57 = dma.hbm_to_vmem [thread:$0]  %s15905_s7, 6144, %s52_s22, [#allocation11], %s13512_s26, %s13512_s26, %s13513_s27  }
   0xf   :  { %s13430_s30 = scalar_lea.vmem %s36_s24, 3072  ;;  %p13435_p6 = scmp.lt.s32.totalorder %s36_s24, %s36_s24 }
  0x10   :  { %p13431_p5 = scmp.ne.s32.totalorder %s36_s24, %s13430_s30  ;;  %p13436_p7 = scmp.lt.s32.totalorder %s13430_s30, %s13430_s30 }
  0x12   :  { %p13437_p8 = por %p13436_p7, %p13435_p6 }
  0x14   :  { %p13438_p9 = pnand %p13437_p8, %p13431_p5 }
  0x16   :  { %13441 = shalt.err (!%p13438_p9)
}
  0x17   :  { %41 = dma.hbm_to_vmem [thread:$0]  %s15902_s4, 3072, %s36_s24, [#allocation8], %s13512_s26, %s13512_s26, %s13513_s27  }
  0x18   :  { %s13514_s15 = smov [#allocation12]  }
  0x19   :  { %s63_s16 = sshll.u32 %s13514_s15, 4  ;;  %s64_s16 = int_to_ptr.vmem [resolvable:$true] %s63_s16 }
  0x1a   :  { %s13450_s17 = scalar_lea.vmem %s64_s16, 3072  ;;  %p13455_p11 = scmp.lt.s32.totalorder %s64_s16, %s64_s16 }
  0x1b   :  { %p13451_p10 = scmp.ne.s32.totalorder %s64_s16, %s13450_s17  ;;  %p13456_p12 = scmp.lt.s32.totalorder %s13450_s17, %s13450_s17 }
  0x1d   :  { %p13457_p13 = por %p13456_p12, %p13455_p11 }
  0x1f   :  { %p13458_p0 = pnand %p13457_p13, %p13451_p10 }
  0x21   :  { %13461 = shalt.err (!%p13458_p0)
}
  0x22   :  { %69 = dma.hbm_to_vmem [thread:$0]  %s15906_s8, 3072, %s64_s16, [#allocation11], %s13512_s26, %s13512_s26, %s13513_s27  }
  0x23   :  { %13502 = dma.done.wait [#allocation8], 3072  }
  0x24   :  { %13503 = vsyncadd [#allocation8], 4294964224 }
  0x25   :  { %13504 = dma.done.wait [#allocation11], 9216  }
  0x26   :  { %13505 = vsyncadd [#allocation11], 4294958080  ;;  %v13515_v0 = vmov 0   ;;  %v85_v1 = vld [vmem:[%s15898_s0 + $0x10] sm:$0xff]  ;;  %v83_v2 = vld [vmem:[%s15898_s0] sm:$0xff]  ;;  %v91_v17 = vlaneseq  ;;  %vm148_vm0 = vcmask 457728  }
  0x27   :  { %13005 = vset.pattern.permute.xlu1 %v13515_v0  ;;  %13004 = vset.pattern.permute.xlu0 %v13515_v0  ;;  %v86_v3 = vld [vmem:[%s15898_s0 + $0x18] sm:$0xff]  ;;  %v84_v4 = vld [vmem:[%s15898_s0 + $0x8] sm:$0xff]  ;;  %v147_v5 = vld [vmem:[%s15899_s1 + $0x30] sm:$0xff]  ;;  %v13516_v21 = vmov 0.0   ;;  %vm287_vm9 = vcmask 130048   ;;  %vm417_vm10 = vcmask 261120  }
  0x28   :  { %100 = vperm.xlu1 %13005, %v85_v1   ;;  %94 = vperm.xlu0 %13004, %v83_v2   ;;  %v146_v6 = vld [vmem:[%s15899_s1 + $0x28] sm:$0xff]  ;;  %v145_v7 = vld [vmem:[%s15899_s1 + $0x20] sm:$0xff]  ;;  %v144_v10 = vld [vmem:[%s15899_s1 + $0x18] sm:$0xff]  ;;  %v92_v18 = vand.u32 127, %v91_v17  ;;  %vm13517_vm11 = vmmov 0  }
  0x29   :  { %11576 = vmatprep.subr.mxu0 %v147_v5  ;;  %v88_v8 = vld [vmem:[%s15898_s0 + $0x28] sm:$0xff]  ;;  %v87_v9 = vld [vmem:[%s15898_s0 + $0x20] sm:$0xff]  ;;  %v90_v11 = vld [vmem:[%s15898_s0 + $0x38] sm:$0xff] }
  0x2a   :  { %11577 = vmatpush3.msra.mxu0 %v147_v5  ;;  %v89_v12 = vld [vmem:[%s15898_s0 + $0x30] sm:$0xff]  ;;  %v142_v14 = vld [vmem:[%s15899_s1 + $0x8] sm:$0xff]  ;;  %v141_v15 = vld [vmem:[%s15899_s1] sm:$0xff] }
  0x2b   :  { %11578 = vmatprep.subr.mxu0 %v146_v6  ;;  %v143_v13 = vld [vmem:[%s15899_s1 + $0x10] sm:$0xff]  ;;  %v279_v16 = vld [vmem:[%s15901_s3 + $0x8] sm:$0xff]  ;;  %v278_v37 = vld [vmem:[%s15901_s3] sm:$0xff] }
  0x2c   :  { %103 = vperm.xlu1 %13005, %v86_v3   ;;  %97 = vperm.xlu0 %13004, %v84_v4   ;;  %v10554_v36 = vld [vmem:[%s15901_s3 + $0x28] sm:$0xff]  ;;  %v10553_v38 = vld [vmem:[%s15901_s3 + $0x20] sm:$0xff]  ;;  %v10542_v39 = vld [vmem:[%s15901_s3 + $0x18] sm:$0xff] }
  0x2d   :  { %11579 = vmatpush3.msra.mxu0 %v146_v6  ;;  %11602 = vmatprep.subr.mxu1 %v279_v16  ;;  %v10578_v40 = vld [vmem:[%s15901_s3 + $0x48] sm:$0xff]  ;;  %v10541_v43 = vld [vmem:[%s15901_s3 + $0x10] sm:$0xff]  ;;  %v10577_v44 = vld [vmem:[%s15901_s3 + $0x40] sm:$0xff] }
  0x2e   :  { %11580 = vmatprep.subr.mxu0 %v145_v7  ;;  %11603 = vmatpush3.msra.mxu1 %v279_v16  ;;  %v10566_v47 = vld [vmem:[%s15901_s3 + $0x38] sm:$0xff]  ;;  %v10565_v52 = vld [vmem:[%s15901_s3 + $0x30] sm:$0xff]  ;;  %v13777_v56 = vld [vmem:[#allocation7 + $0x8] sm:$0xff] }
  0x2f   :  { %11581 = vmatpush3.msra.mxu0 %v145_v7  ;;  %11604 = vmatprep.subr.mxu1 %v278_v37  ;;  %v13751_v53 = vld [vmem:[#allocation7 + $0x18] sm:$0xff]  ;;  %v13765_v55 = vld [vmem:[#allocation7 + $0x10] sm:$0xff]  ;;  %v13785_v57 = vld [vmem:[#allocation7] sm:$0xff] }
  0x30   :  { %109 = vperm.xlu1 %13005, %v88_v8   ;;  %106 = vperm.xlu0 %13004, %v87_v9   ;;  %v10590_v54 = vld [vmem:[%s15901_s3 + $0x58] sm:$0xff]  ;;  %v13797_v58 = vld [vmem:[%s15900_s2] sm:$0xff]  ;;  %v13809_v60 = vld [vmem:[#allocation7 + $0x50] sm:$0xff] }
  0x31   :  { %11582 = vmatprep.subr.mxu0 %v144_v10  ;;  %11605 = vmatpush3.msra.mxu1 %v278_v37  ;;  %v13802_v59 = vld [vmem:[#allocation7 + $0x58] sm:$0xff]  ;;  %v10589_v61 = vld [vmem:[%s15901_s3 + $0x50] sm:$0xff]  ;;  %v13818_v62 = vld [vmem:[#allocation7 + $0x48] sm:$0xff] }
  0x32   :  { %11583 = vmatpush3.msra.mxu0 %v144_v10  ;;  %11618 = vmatprep.subr.mxu1 %v10542_v39  ;;  %v13824_v63 = vld [vmem:[#allocation7 + $0x40] sm:$0xff]  ;;  %v13833_v0 = vld [vmem:[#allocation7 + $0x98] sm:$0xff]  ;;  %v13842_v1 = vld [vmem:[#allocation7 + $0x90] sm:$0xff] }
  0x33   :  { %11584 = vmatprep.subr.mxu0 %v143_v13  ;;  %v13848_v2 = vld [vmem:[#allocation7 + $0x88] sm:$0xff]  ;;  %v13857_v3 = vld [vmem:[#allocation7 + $0x80] sm:$0xff]  ;;  %v13865_v5 = vld [vmem:[#allocation7 + $0x38] sm:$0xff] }
  0x34   :  { %115 = vperm.xlu1 %13005, %v90_v11   ;;  %112 = vperm.xlu0 %13004, %v89_v12   ;;  %v13863_v4 = vld [vmem:[%s15900_s2 + $0x8] sm:$0xff]  ;;  %v13871_v6 = vld [vmem:[#allocation7 + $0x30] sm:$0xff]  ;;  %v13886_v8 = vld [vmem:[#allocation7 + $0x20] sm:$0xff] }
  0x35   :  { %11585 = vmatpush3.msra.mxu0 %v143_v13  ;;  %v13879_v7 = vld [vmem:[#allocation7 + $0x28] sm:$0xff]  ;;  %v13911_v9 = vld [vmem:[#allocation7 + $0x78] sm:$0xff]  ;;  %v13916_v10 = vld [vmem:[#allocation7 + $0x70] sm:$0xff] }
  0x36   :  { %11586 = vmatprep.subr.mxu0 %v142_v14  ;;  %v13922_v11 = vld [vmem:[#allocation7 + $0x68] sm:$0xff]  ;;  %v13926_v12 = vld [vmem:[#allocation7 + $0x60] sm:$0xff]  ;;  %v13930_v13 = vld [vmem:[#allocation7 + $0xb8] sm:$0xff] }
  0x37   :  { %11587 = vmatpush3.msra.mxu0 %v142_v14  ;;  %v13936_v14 = vld [vmem:[#allocation7 + $0xb0] sm:$0xff]  ;;  %v13946_v16 = vld [vmem:[#allocation7 + $0xa0] sm:$0xff] }
  0x38   :  { %11588 = vmatprep.subr.mxu0 %v141_v15  ;;  %v10532_v17 = vld [vmem:[%s15903_s5] ss:$0 sm:$0xff] }
  0x39   :  { %11589 = vmatpush3.msra.mxu0 %v141_v15  ;;  %v13942_v15 = vld [vmem:[#allocation7 + $0xa8] sm:$0xff] }
  0x3a   :  { %11634 = vmatprep.subr.mxu0 %v10554_v36 }
  0xa3   :  { %v101_v19 = vpop.permute.xlu1 %100  ;;  %v95_v20 = vpop.permute.xlu0 %94 }
  0xa4   :  { %vm117_vm1 = vcmp.eq.s32.totalorder %v92_v18, %v95_v20  ;;  %vm119_vm2 = vcmp.eq.s32.totalorder %v92_v18, %v101_v19 }
  0xa5   :  { %v10516_v22 = vsel %vm117_vm1, 1.0, %v13516_v21  ;;  %v10518_v25 = vsel %vm119_vm2, 1.0, %v13516_v21 }
  0xa6   :  { %11590 = vmatprep.mubr.msk.f32.mxu0 %vm148_vm0, %v10516_v22 }
  0xa7   :  { %v104_v23 = vpop.permute.xlu1 %103  ;;  %v98_v24 = vpop.permute.xlu0 %97 }
  0xa8   :  { %vm118_vm3 = vcmp.eq.s32.totalorder %v92_v18, %v98_v24  ;;  %vm120_vm4 = vcmp.eq.s32.totalorder %v92_v18, %v104_v23 }
  0xa9   :  { %v10517_v26 = vsel %vm118_vm3, 1.0, %v13516_v21  ;;  %v10519_v29 = vsel %vm120_vm4, 1.0, %v13516_v21 }
  0xaa   :  { %11591 = vmatmul.mubr.msk.f32.vlgmr.msra.gmra.mxu0 %vm148_vm0, %v10517_v26 }
  0xab   :  { %v110_v27 = vpop.permute.xlu1 %109  ;;  %11593 = vmatprep.mubr.msk.f32.mxu0 %vm148_vm0, %v10518_v25  ;;  %v107_v28 = vpop.permute.xlu0 %106  ;;  %11635 = vmatpush3.msra.mxu0 %v10554_v36 }
  0xac   :  { %vm121_vm5 = vcmp.eq.s32.totalorder %v92_v18, %v107_v28  ;;  %vm122_vm6 = vcmp.eq.s32.totalorder %v92_v18, %v110_v27  ;;  %11636 = vmatprep.subr.mxu0 %v10553_v38 }
  0xad   :  { %v10520_v30 = vsel %vm121_vm5, 1.0, %v13516_v21  ;;  %v10521_v33 = vsel %vm122_vm6, 1.0, %v13516_v21  ;;  %11637 = vmatpush3.msra.mxu0 %v10553_v38 }
  0xae   :  { %11594 = vmatmul.mubr.msk.f32.gmra.mxu0 %vm148_vm0, %v10519_v29  ;;  %11666 = vmatprep.subr.mxu0 %v10578_v40 }
  0xaf   :  { %v116_v31 = vpop.permute.xlu1 %115  ;;  %11596 = vmatprep.mubr.msk.f32.mxu0 %vm148_vm0, %v10520_v30  ;;  %v113_v32 = vpop.permute.xlu0 %112 }
  0xb0   :  { %vm123_vm7 = vcmp.eq.s32.totalorder %v92_v18, %v113_v32  ;;  %vm124_vm8 = vcmp.eq.s32.totalorder %v92_v18, %v116_v31  ;;  %v10556_v18 = vld [vmem:[%s15903_s5 + $0x2] ss:$0 sm:$0xff] }
  0xb1   :  { %v10522_v34 = vsel %vm123_vm7, 1.0, %v13516_v21  ;;  %v10523_v35 = vsel %vm124_vm8, 1.0, %v13516_v21 }
  0xb2   :  { %11597 = vmatmul.mubr.msk.f32.gmra.mxu0 %vm148_vm0, %v10521_v33 }
  0xb3   :  { %11599 = vmatprep.mubr.msk.f32.mxu0 %vm148_vm0, %v10522_v34 }
  0xb6   :  { %11600 = vmatmul.mubr.msk.f32.gmra.mxu0 %vm148_vm0, %v10523_v35 }
 0x16a   :  { %v13682_v41 = vpop.f32.mrf.mxu0 }
 0x16c   :  { %v13684_v42 = vpop.f32.mrf.mxu0 }
 0x16d   :  { %11606 = vmatprep.mubr.msk.f32.mxu1 %vm287_vm9, %v13684_v42  ;;  %11638 = vmatprep.mubr.msk.f32.mxu0 %vm287_vm9, %v13684_v42 }
 0x16e   :  { %v13696_v45 = vpop.f32.mrf.mxu0  ;;  %11607 = vmatmul.mubr.msk.f32.vlgmr.msra.gmra.mxu1 %vm287_vm9, %v13682_v41  ;;  %11639 = vmatmul.mubr.msk.f32.vlgmr.msra.gmra.mxu0 %vm287_vm9, %v13682_v41 }
 0x16f   :  { %11619 = vmatpush3.msra.mxu1 %v10542_v39  ;;  %11667 = vmatpush3.msra.mxu0 %v10578_v40 }
 0x170   :  { %v13702_v46 = vpop.f32.mrf.mxu0  ;;  %11620 = vmatprep.subr.mxu1 %v10541_v43  ;;  %11668 = vmatprep.subr.mxu0 %v10577_v44 }
 0x171   :  { %11609 = vmatprep.mubr.msk.f32.mxu1 %vm287_vm9, %v13702_v46  ;;  %11641 = vmatprep.mubr.msk.f32.mxu0 %vm287_vm9, %v13702_v46 }
 0x172   :  { %v13711_v48 = vpop.f32.mrf.mxu0  ;;  %11610 = vmatmul.mubr.msk.f32.gmra.mxu1 %vm287_vm9, %v13696_v45  ;;  %11642 = vmatmul.mubr.msk.f32.gmra.mxu0 %vm287_vm9, %v13696_v45 }
 0x173   :  { %11621 = vmatpush3.msra.mxu1 %v10541_v43  ;;  %11669 = vmatpush3.msra.mxu0 %v10577_v44 }
 0x174   :  { %v13717_v49 = vpop.f32.mrf.mxu0  ;;  %11650 = vmatprep.subr.mxu1 %v10566_v47  ;;  %11698 = vmatprep.subr.mxu0 %v13516_v21 }
 0x175   :  { %11612 = vmatprep.mubr.msk.f32.mxu1 %vm287_vm9, %v13717_v49  ;;  %11644 = vmatprep.mubr.msk.f32.mxu0 %vm287_vm9, %v13717_v49 }
 0x176   :  { %v13724_v50 = vpop.f32.mrf.mxu0  ;;  %11613 = vmatmul.mubr.msk.f32.gmra.mxu1 %vm287_vm9, %v13711_v48  ;;  %11645 = vmatmul.mubr.msk.f32.gmra.mxu0 %vm287_vm9, %v13711_v48 }
 0x178   :  { %v13730_v51 = vpop.f32.mrf.mxu0 }
 0x179   :  { %11615 = vmatprep.mubr.msk.f32.mxu1 %vm287_vm9, %v13730_v51  ;;  %11647 = vmatprep.mubr.msk.f32.mxu0 %vm287_vm9, %v13730_v51 }
 0x17a   :  { %11616 = vmatmul.mubr.msk.f32.gmra.mxu1 %vm287_vm9, %v13724_v50  ;;  %11648 = vmatmul.mubr.msk.f32.gmra.mxu0 %vm287_vm9, %v13724_v50 }
 0x17b   :  { %11622 = vmatprep.mubr.msk.f32.mxu1 %vm287_vm9, %v13684_v42  ;;  %11670 = vmatprep.mubr.msk.f32.mxu0 %vm287_vm9, %v13684_v42 }
 0x17e   :  { %11623 = vmatmul.mubr.msk.f32.vlgmr.msra.gmra.mxu1 %vm287_vm9, %v13682_v41  ;;  %11671 = vmatmul.mubr.msk.f32.vlgmr.msra.gmra.mxu0 %vm287_vm9, %v13682_v41 }
 0x17f   :  { %11651 = vmatpush3.msra.mxu1 %v10566_v47  ;;  %11625 = vmatprep.mubr.msk.f32.mxu1 %vm287_vm9, %v13702_v46 }
 0x180   :  { %11673 = vmatprep.mubr.msk.f32.mxu0 %vm287_vm9, %v13702_v46  ;;  %11652 = vmatprep.subr.mxu1 %v10565_v52 }
 0x181   :  { %11653 = vmatpush3.msra.mxu1 %v10565_v52  ;;  %11699 = vmatpush3.msra.mxu0 %v13751_v53 }
 0x182   :  { %11626 = vmatmul.mubr.msk.f32.gmra.mxu1 %vm287_vm9, %v13696_v45  ;;  %11674 = vmatmul.mubr.msk.f32.gmra.mxu0 %vm287_vm9, %v13696_v45 }
 0x183   :  { %11628 = vmatprep.mubr.msk.f32.mxu1 %vm287_vm9, %v13717_v49  ;;  %11676 = vmatprep.mubr.msk.f32.mxu0 %vm287_vm9, %v13717_v49 }
 0x184   :  { %11700 = vmatprep.subr.mxu0 %v13516_v21  ;;  %11682 = vmatprep.subr.mxu1 %v10590_v54 }
 0x185   :  { %11701 = vmatpush3.msra.mxu0 %v13765_v55 }
 0x186   :  { %11629 = vmatmul.mubr.msk.f32.gmra.mxu1 %vm287_vm9, %v13711_v48  ;;  %11677 = vmatmul.mubr.msk.f32.gmra.mxu0 %vm287_vm9, %v13711_v48 }
 0x187   :  { %11631 = vmatprep.mubr.msk.f32.mxu1 %vm287_vm9, %v13730_v51  ;;  %11679 = vmatprep.mubr.msk.f32.mxu0 %vm287_vm9, %v13730_v51 }
 0x188   :  { %11702 = vmatprep.subr.mxu0 %v13516_v21 }
 0x189   :  { %11703 = vmatpush3.msra.mxu0 %v13777_v56 }
 0x18a   :  { %11632 = vmatmul.mubr.msk.f32.gmra.mxu1 %vm287_vm9, %v13724_v50  ;;  %11680 = vmatmul.mubr.msk.f32.gmra.mxu0 %vm287_vm9, %v13724_v50 }
 0x18b   :  { %11654 = vmatprep.mubr.msk.f32.mxu1 %vm287_vm9, %v13684_v42  ;;  %11704 = vmatprep.subr.mxu0 %v13516_v21 }
 0x18c   :  { %11705 = vmatpush3.msra.mxu0 %v13785_v57  ;;  %11706 = vmatprep.mubr.msk.f32.mxu0 %vm13517_vm11, %v13516_v21 }
 0x18d   :  { %11720 = vmatprep.subr.mxu0 %v13516_v21 }
 0x18e   :  { %11655 = vmatmul.mubr.msk.f32.vlgmr.msra.gmra.mxu1 %vm287_vm9, %v13682_v41  ;;  %11707 = vmatmul.mubr.msk.f32.vlgmr.msra.gmra.mxu0 %vm417_vm10, %v13797_v58 }
 0x18f   :  { %11683 = vmatpush3.msra.mxu1 %v10590_v54  ;;  %11721 = vmatpush3.msra.mxu0 %v13802_v59 }
 0x190   :  { %11657 = vmatprep.mubr.msk.f32.mxu1 %vm287_vm9, %v13702_v46  ;;  %11722 = vmatprep.subr.mxu0 %v13516_v21 }
 0x191   :  { %11723 = vmatpush3.msra.mxu0 %v13809_v60  ;;  %11684 = vmatprep.subr.mxu1 %v10589_v61 }
 0x192   :  { %11724 = vmatprep.subr.mxu0 %v13516_v21  ;;  %11658 = vmatmul.mubr.msk.f32.gmra.mxu1 %vm287_vm9, %v13696_v45 }
 0x193   :  { %11725 = vmatpush3.msra.mxu0 %v13818_v62  ;;  %11660 = vmatprep.mubr.msk.f32.mxu1 %vm287_vm9, %v13717_v49 }
 0x194   :  { %11726 = vmatprep.subr.mxu0 %v13516_v21  ;;  %11728 = vmatprep.mubr.msk.f32.mxu0 %vm13517_vm11, %v13516_v21 }
 0x195   :  { %11727 = vmatpush3.msra.mxu0 %v13824_v63  ;;  %11685 = vmatpush3.msra.mxu1 %v10589_v61 }
 0x196   :  { %11742 = vmatprep.subr.mxu0 %v13516_v21  ;;  %11661 = vmatmul.mubr.msk.f32.gmra.mxu1 %vm287_vm9, %v13711_v48 }
 0x197   :  { %11729 = vmatmul.mubr.msk.f32.vlgmr.msra.gmra.mxu0 %vm417_vm10, %v13797_v58  ;;  %11663 = vmatprep.mubr.msk.f32.mxu1 %vm287_vm9, %v13730_v51 }
 0x198   :  { %11743 = vmatpush3.msra.mxu0 %v13833_v0  ;;  %11750 = vmatprep.mubr.msk.f32.mxu0 %vm13517_vm11, %v13516_v21 }
 0x199   :  { %11744 = vmatprep.subr.mxu0 %v13516_v21  ;;  %11709 = vmatprep.subr.mxu1 %v13516_v21 }
 0x19a   :  { %11745 = vmatpush3.msra.mxu0 %v13842_v1  ;;  %11664 = vmatmul.mubr.msk.f32.gmra.mxu1 %vm287_vm9, %v13724_v50 }
 0x19b   :  { %11746 = vmatprep.subr.mxu0 %v13516_v21  ;;  %11686 = vmatprep.mubr.msk.f32.mxu1 %vm287_vm9, %v13684_v42 }
 0x19c   :  { %11747 = vmatpush3.msra.mxu0 %v13848_v2 }
 0x19d   :  { %11748 = vmatprep.subr.mxu0 %v13516_v21 }
 0x19e   :  { %11749 = vmatpush3.msra.mxu0 %v13857_v3  ;;  %11687 = vmatmul.mubr.msk.f32.vlgmr.msra.gmra.mxu1 %vm287_vm9, %v13682_v41 }
 0x19f   :  { %11751 = vmatmul.mubr.msk.f32.vlgmr.msra.gmra.mxu0 %vm417_vm10, %v13863_v4  ;;  %11710 = vmatpush3.msra.mxu1 %v13865_v5 }
 0x1a0   :  { %11689 = vmatprep.mubr.msk.f32.mxu1 %vm287_vm9, %v13702_v46  ;;  %11711 = vmatprep.subr.mxu1 %v13516_v21 }
 0x1a1   :  { %11712 = vmatpush3.msra.mxu1 %v13871_v6  ;;  %11764 = vmatprep.subr.mxu0 %v13516_v21 }
 0x1a2   :  { %11690 = vmatmul.mubr.msk.f32.gmra.mxu1 %vm287_vm9, %v13696_v45  ;;  %11713 = vmatprep.subr.mxu1 %v13516_v21 }
 0x1a3   :  { %11692 = vmatprep.mubr.msk.f32.mxu1 %vm287_vm9, %v13717_v49  ;;  %11714 = vmatpush3.msra.mxu1 %v13879_v7 }
 0x1a4   :  { %11715 = vmatprep.subr.mxu1 %v13516_v21  ;;  %11765 = vmatpush3.msra.mxu0 %v13751_v53 }
 0x1a5   :  { %11716 = vmatpush3.msra.mxu1 %v13886_v8  ;;  %11766 = vmatprep.subr.mxu0 %v13516_v21 }
 0x1a6   :  { %11693 = vmatmul.mubr.msk.f32.gmra.mxu1 %vm287_vm9, %v13711_v48  ;;  %11731 = vmatprep.subr.mxu1 %v13516_v21 }
 0x1a7   :  { %11695 = vmatprep.mubr.msk.f32.mxu1 %vm287_vm9, %v13730_v51  ;;  %11767 = vmatpush3.msra.mxu0 %v13765_v55  ;;  %v10580_v51 = vld [vmem:[%s15903_s5 + $0x4] ss:$0 sm:$0xff] }
 0x1a8   :  { %11768 = vmatprep.subr.mxu0 %v13516_v21  ;;  %11772 = vmatprep.mubr.msk.f32.mxu0 %vm13517_vm11, %v13516_v21 }
 0x1a9   :  { %11769 = vmatpush3.msra.mxu0 %v13777_v56 }
 0x1aa   :  { %11696 = vmatmul.mubr.msk.f32.gmra.mxu1 %vm287_vm9, %v13724_v50  ;;  %11770 = vmatprep.subr.mxu0 %v13516_v21  ;;  %v10544_v50 = vld [vmem:[%s15903_s5 + $0x1] ss:$0 sm:$0xff] }
 0x1ab   :  { %11717 = vmatprep.mubr.msk.f32.mxu1 %vm13517_vm11, %v13516_v21  ;;  %11771 = vmatpush3.msra.mxu0 %v13785_v57 }
 0x1ac   :  { %11786 = vmatprep.subr.mxu0 %v13516_v21 }
 0x1ae   :  { %11718 = vmatmul.mubr.msk.f32.vlgmr.msra.gmra.mxu1 %vm417_vm10, %v13797_v58 }
 0x1af   :  { %11732 = vmatpush3.msra.mxu1 %v13911_v9  ;;  %11739 = vmatprep.mubr.msk.f32.mxu1 %vm13517_vm11, %v13516_v21 }
 0x1b0   :  { %11733 = vmatprep.subr.mxu1 %v13516_v21 }
 0x1b1   :  { %11734 = vmatpush3.msra.mxu1 %v13916_v10 }
 0x1b2   :  { %11735 = vmatprep.subr.mxu1 %v13516_v21 }
 0x1b3   :  { %11736 = vmatpush3.msra.mxu1 %v13922_v11 }
 0x1b4   :  { %11737 = vmatprep.subr.mxu1 %v13516_v21 }
 0x1b5   :  { %11738 = vmatpush3.msra.mxu1 %v13926_v12 }
 0x1b6   :  { %11740 = vmatmul.mubr.msk.f32.vlgmr.msra.gmra.mxu1 %vm417_vm10, %v13863_v4  ;;  %11753 = vmatprep.subr.mxu1 %v13516_v21 }
 0x1b7   :  { %11754 = vmatpush3.msra.mxu1 %v13930_v13  ;;  %11761 = vmatprep.mubr.msk.f32.mxu1 %vm13517_vm11, %v13516_v21 }
 0x1b8   :  { %11755 = vmatprep.subr.mxu1 %v13516_v21 }
 0x1b9   :  { %11756 = vmatpush3.msra.mxu1 %v13936_v14 }
 0x1ba   :  { %11757 = vmatprep.subr.mxu1 %v13516_v21 }
 0x1bb   :  { %11758 = vmatpush3.msra.mxu1 %v13942_v15 }
 0x1bc   :  { %11759 = vmatprep.subr.mxu1 %v13516_v21 }
 0x1bd   :  { %11760 = vmatpush3.msra.mxu1 %v13946_v16 }
 0x1be   :  { %11762 = vmatmul.mubr.msk.f32.vlgmr.msra.gmra.mxu1 %vm417_vm10, %v13863_v4  ;;  %11775 = vmatprep.subr.mxu1 %v13516_v21 }
 0x1bf   :  { %11776 = vmatpush3.msra.mxu1 %v13865_v5  ;;  %11783 = vmatprep.mubr.msk.f32.mxu1 %vm13517_vm11, %v13516_v21 }
 0x1c0   :  { %11777 = vmatprep.subr.mxu1 %v13516_v21 }
 0x1c1   :  { %11778 = vmatpush3.msra.mxu1 %v13871_v6 }
 0x1c2   :  { %11779 = vmatprep.subr.mxu1 %v13516_v21 }
 0x1c3   :  { %11780 = vmatpush3.msra.mxu1 %v13879_v7 }
 0x1c4   :  { %11781 = vmatprep.subr.mxu1 %v13516_v21 }
 0x1c5   :  { %11782 = vmatpush3.msra.mxu1 %v13886_v8 }
 0x1c6   :  { %11797 = vmatprep.subr.mxu1 %v13516_v21 }
 0x22e   :  { %v11608_v19 = vpop.f32.mrf.mxu1  ;;  %v11640_v20 = vpop.f32.mrf.mxu0 }
 0x22f   :  { %v384_v22 = vadd.f32 %v11608_v19, %v10532_v17  ;;  %v634_v23 = vadd.f32 %v11640_v20, %v10556_v18 }
 0x230   :  { %v378_v24 = vpop.f32.mrf.mxu1  ;;  %v628_v25 = vpop.f32.mrf.mxu0 }
 0x231   :  { %419 = vst.msk [vmem:[#allocation2 + $0x8] sm:$0xff] %vm417_vm10, %v384_v22  ;;  %669 = vst.msk [vmem:[#allocation2 + $0x88] sm:$0xff] %vm417_vm10, %v634_v23  ;;  %v379_v26 = vadd.f32 %v10532_v17, %v378_v24  ;;  %v629_v27 = vadd.f32 %v10556_v18, %v628_v25 }
 0x232   :  { %v11611_v28 = vpop.f32.mrf.mxu1  ;;  %v11643_v29 = vpop.f32.mrf.mxu0 }
 0x233   :  { %418 = vst.msk [vmem:[#allocation2] sm:$0xff] %vm417_vm10, %v379_v26  ;;  %668 = vst.msk [vmem:[#allocation2 + $0x80] sm:$0xff] %vm417_vm10, %v629_v27  ;;  %v394_v30 = vadd.f32 %v11611_v28, %v10532_v17  ;;  %v644_v31 = vadd.f32 %v11643_v29, %v10556_v18 }
 0x234   :  { %v388_v32 = vpop.f32.mrf.mxu1  ;;  %v638_v33 = vpop.f32.mrf.mxu0 }
 0x235   :  { %421 = vst.msk [vmem:[#allocation2 + $0x18] sm:$0xff] %vm417_vm10, %v394_v30  ;;  %671 = vst.msk [vmem:[#allocation2 + $0x98] sm:$0xff] %vm417_vm10, %v644_v31  ;;  %v389_v34 = vadd.f32 %v10532_v17, %v388_v32  ;;  %v639_v35 = vadd.f32 %v10556_v18, %v638_v33 }
 0x236   :  { %v11614_v36 = vpop.f32.mrf.mxu1  ;;  %v11646_v37 = vpop.f32.mrf.mxu0 }
 0x237   :  { %420 = vst.msk [vmem:[#allocation2 + $0x10] sm:$0xff] %vm417_vm10, %v389_v34  ;;  %670 = vst.msk [vmem:[#allocation2 + $0x90] sm:$0xff] %vm417_vm10, %v639_v35  ;;  %v404_v38 = vadd.f32 %v11614_v36, %v10532_v17  ;;  %v654_v39 = vadd.f32 %v11646_v37, %v10556_v18 }
 0x238   :  { %v398_v40 = vpop.f32.mrf.mxu1  ;;  %v648_v41 = vpop.f32.mrf.mxu0 }
 0x239   :  { %423 = vst.msk [vmem:[#allocation2 + $0x28] sm:$0xff] %vm417_vm10, %v404_v38  ;;  %673 = vst.msk [vmem:[#allocation2 + $0xa8] sm:$0xff] %vm417_vm10, %v654_v39  ;;  %v399_v42 = vadd.f32 %v10532_v17, %v398_v40  ;;  %v649_v43 = vadd.f32 %v10556_v18, %v648_v41 }
 0x23a   :  { %v11617_v44 = vpop.f32.mrf.mxu1  ;;  %v11649_v45 = vpop.f32.mrf.mxu0 }
 0x23b   :  { %422 = vst.msk [vmem:[#allocation2 + $0x20] sm:$0xff] %vm417_vm10, %v399_v42  ;;  %672 = vst.msk [vmem:[#allocation2 + $0xa0] sm:$0xff] %vm417_vm10, %v649_v43  ;;  %v414_v46 = vadd.f32 %v11617_v44, %v10532_v17  ;;  %v664_v47 = vadd.f32 %v11649_v45, %v10556_v18 }
 0x23c   :  { %v408_v48 = vpop.f32.mrf.mxu1  ;;  %v658_v49 = vpop.f32.mrf.mxu0 }
 0x23d   :  { %425 = vst.msk [vmem:[#allocation2 + $0x38] sm:$0xff] %vm417_vm10, %v414_v46  ;;  %675 = vst.msk [vmem:[#allocation2 + $0xb8] sm:$0xff] %vm417_vm10, %v664_v47  ;;  %v409_v52 = vadd.f32 %v10532_v17, %v408_v48  ;;  %v659_v54 = vadd.f32 %v10556_v18, %v658_v49  ;;  %v10568_v47 = vld [vmem:[%s15903_s5 + $0x3] ss:$0 sm:$0xff] }
 0x23e   :  { %v11624_v61 = vpop.f32.mrf.mxu1  ;;  %v11672_v19 = vpop.f32.mrf.mxu0 }
 0x23f   :  { %424 = vst.msk [vmem:[#allocation2 + $0x30] sm:$0xff] %vm417_vm10, %v409_v52  ;;  %674 = vst.msk [vmem:[#allocation2 + $0xb0] sm:$0xff] %vm417_vm10, %v659_v54  ;;  %v509_v20 = vadd.f32 %v11624_v61, %v10544_v50  ;;  %v884_v22 = vadd.f32 %v11672_v19, %v10580_v51  ;;  %v1098_v19 = vld [vmem:[#allocation2] sm:$0xff] }
 0x240   :  { %v503_v23 = vpop.f32.mrf.mxu1  ;;  %v878_v24 = vpop.f32.mrf.mxu0 }
 0x241   :  { %544 = vst.msk [vmem:[#allocation2 + $0x48] sm:$0xff] %vm417_vm10, %v509_v20  ;;  %919 = vst.msk [vmem:[#allocation2 + $0x108] sm:$0xff] %vm417_vm10, %v884_v22  ;;  %v504_v25 = vadd.f32 %v10544_v50, %v503_v23  ;;  %v879_v26 = vadd.f32 %v10580_v51, %v878_v24 }
 0x242   :  { %v11627_v27 = vpop.f32.mrf.mxu1  ;;  %v11675_v28 = vpop.f32.mrf.mxu0 }
 0x243   :  { %543 = vst.msk [vmem:[#allocation2 + $0x40] sm:$0xff] %vm417_vm10, %v504_v25  ;;  %918 = vst.msk [vmem:[#allocation2 + $0x100] sm:$0xff] %vm417_vm10, %v879_v26  ;;  %v519_v17 = vadd.f32 %v11627_v27, %v10544_v50  ;;  %v894_v18 = vadd.f32 %v11675_v28, %v10580_v51 }
 0x244   :  { %v513_v29 = vpop.f32.mrf.mxu1  ;;  %v888_v30 = vpop.f32.mrf.mxu0 }
 0x245   :  { %546 = vst.msk [vmem:[#allocation2 + $0x58] sm:$0xff] %vm417_vm10, %v519_v17  ;;  %921 = vst.msk [vmem:[#allocation2 + $0x118] sm:$0xff] %vm417_vm10, %v894_v18  ;;  %v514_v31 = vadd.f32 %v10544_v50, %v513_v29  ;;  %v889_v32 = vadd.f32 %v10580_v51, %v888_v30 }
 0x246   :  { %v11630_v33 = vpop.f32.mrf.mxu1  ;;  %v11678_v34 = vpop.f32.mrf.mxu0 }
 0x247   :  { %545 = vst.msk [vmem:[#allocation2 + $0x50] sm:$0xff] %vm417_vm10, %v514_v31  ;;  %920 = vst.msk [vmem:[#allocation2 + $0x110] sm:$0xff] %vm417_vm10, %v889_v32  ;;  %v529_v35 = vadd.f32 %v11630_v33, %v10544_v50  ;;  %v904_v36 = vadd.f32 %v11678_v34, %v10580_v51 }
 0x248   :  { %v523_v37 = vpop.f32.mrf.mxu1  ;;  %v898_v38 = vpop.f32.mrf.mxu0 }
 0x249   :  { %548 = vst.msk [vmem:[#allocation2 + $0x68] sm:$0xff] %vm417_vm10, %v529_v35  ;;  %923 = vst.msk [vmem:[#allocation2 + $0x128] sm:$0xff] %vm417_vm10, %v904_v36  ;;  %v524_v39 = vadd.f32 %v10544_v50, %v523_v37  ;;  %v899_v40 = vadd.f32 %v10580_v51, %v898_v38  ;;  %v10592_v35 = vld [vmem:[%s15903_s5 + $0x5] ss:$0 sm:$0xff] }
 0x24a   :  { %v11633_v41 = vpop.f32.mrf.mxu1  ;;  %v11681_v42 = vpop.f32.mrf.mxu0 }
 0x24b   :  { %547 = vst.msk [vmem:[#allocation2 + $0x60] sm:$0xff] %vm417_vm10, %v524_v39  ;;  %922 = vst.msk [vmem:[#allocation2 + $0x120] sm:$0xff] %vm417_vm10, %v899_v40  ;;  %v539_v43 = vadd.f32 %v11633_v41, %v10544_v50  ;;  %v914_v44 = vadd.f32 %v11681_v42, %v10580_v51 }
 0x24c   :  { %v533_v45 = vpop.f32.mrf.mxu1  ;;  %v908_v46 = vpop.f32.mrf.mxu0 }
 0x24d   :  { %550 = vst.msk [vmem:[#allocation2 + $0x78] sm:$0xff] %vm417_vm10, %v539_v43  ;;  %925 = vst.msk [vmem:[#allocation2 + $0x138] sm:$0xff] %vm417_vm10, %v914_v44  ;;  %v534_v48 = vadd.f32 %v10544_v50, %v533_v45  ;;  %v909_v49 = vadd.f32 %v10580_v51, %v908_v46 }
 0x24e   :  { %v11656_v52 = vpop.f32.mrf.mxu1  ;;  %v1183_v54 = vpop.f32.mrf.mxu0 }
 0x24f   :  { %549 = vst.msk [vmem:[#allocation2 + $0x70] sm:$0xff] %vm417_vm10, %v534_v48  ;;  %924 = vst.msk [vmem:[#allocation2 + $0x130] sm:$0xff] %vm417_vm10, %v909_v49  ;;  %v759_v61 = vadd.f32 %v11656_v52, %v10568_v47  ;;  %v1327_v23 = vadd.f32 %v1183_v54, %v1098_v19 }
 0x250   :  { %v753_v20 = vpop.f32.mrf.mxu1  ;;  %v11708_v22 = vpop.f32.mrf.mxu0 }
 0x251   :  { %794 = vst.msk [vmem:[#allocation2 + $0xc8] sm:$0xff] %vm417_vm10, %v759_v61  ;;  %v754_v24 = vadd.f32 %v10568_v47, %v753_v20  ;;  %v10608_v51 = vmul.f32 -1.442695, %v1327_v23 }
 0x252   :  { %v11659_v25 = vpop.f32.mrf.mxu1 }
 0x253   :  { %793 = vst.msk [vmem:[#allocation2 + $0xc0] sm:$0xff] %vm417_vm10, %v754_v24  ;;  %v769_v26 = vadd.f32 %v11659_v25, %v10568_v47  ;;  %13006 = vpow2.f32 %v10608_v51  ;;  %v1101_v24 = vld [vmem:[#allocation2 + $0x40] sm:$0xff] }
 0x254   :  { %v763_v50 = vpop.f32.mrf.mxu1 }
 0x255   :  { %796 = vst.msk [vmem:[#allocation2 + $0xd8] sm:$0xff] %vm417_vm10, %v769_v26  ;;  %v764_v27 = vadd.f32 %v10568_v47, %v763_v50 }
 0x256   :  { %v11662_v28 = vpop.f32.mrf.mxu1 }
 0x257   :  { %795 = vst.msk [vmem:[#allocation2 + $0xd0] sm:$0xff] %vm417_vm10, %v764_v27  ;;  %v779_v17 = vadd.f32 %v11662_v28, %v10568_v47  ;;  %v1323_v18 = vpop.f32.mrf.mxu0  ;;  %v14033_v27 = vld [vmem:[%s15904_s6] ss:$0 sm:$0xff] }
 0x258   :  { %v773_v29 = vpop.f32.mrf.mxu1 }
 0x259   :  { %798 = vst.msk [vmem:[#allocation2 + $0xe8] sm:$0xff] %vm417_vm10, %v779_v17  ;;  %v774_v30 = vadd.f32 %v10568_v47, %v773_v29  ;;  %v11730_v31 = vpop.f32.mrf.mxu0 }
 0x25a   :  { %v11665_v32 = vpop.f32.mrf.mxu1  ;;  %v1324_v31 = vadd.f32 %v14033_v27, %v1323_v18 }
 0x25b   :  { %797 = vst.msk [vmem:[#allocation2 + $0xe0] sm:$0xff] %vm417_vm10, %v774_v30  ;;  %v789_v33 = vadd.f32 %v11665_v32, %v10568_v47 }
 0x25c   :  { %v783_v34 = vpop.f32.mrf.mxu1 }
 0x25d   :  { %800 = vst.msk [vmem:[#allocation2 + $0xf8] sm:$0xff] %vm417_vm10, %v789_v33  ;;  %v784_v36 = vadd.f32 %v10568_v47, %v783_v34  ;;  %v1110_v34 = vld [vmem:[#allocation2 + $0x138] sm:$0xff] }
 0x25e   :  { %v11688_v37 = vpop.f32.mrf.mxu1 }
 0x25f   :  { %799 = vst.msk [vmem:[#allocation2 + $0xf0] sm:$0xff] %vm417_vm10, %v784_v36  ;;  %v1487_v38 = vpop.f32.mrf.mxu0  ;;  %v1009_v39 = vadd.f32 %v11688_v37, %v10592_v35 }
 0x260   :  { %v1003_v40 = vpop.f32.mrf.mxu1  ;;  %v13007_v48 = vpop.eup %13006 }
 0x261   :  { %1044 = vst.msk [vmem:[#allocation2 + $0x148] sm:$0xff] %vm417_vm10, %v1009_v39  ;;  %v1004_v41 = vadd.f32 %v10592_v35, %v1003_v40  ;;  %v11752_v42 = vpop.f32.mrf.mxu0  ;;  %v1331_v54 = vadd.f32 1.0, %v13007_v48  ;;  %v1104_v40 = vld [vmem:[#allocation2 + $0x80] sm:$0xff] }
 0x262   :  { %v11691_v43 = vpop.f32.mrf.mxu1 }
 0x263   :  { %1043 = vst.msk [vmem:[#allocation2 + $0x140] sm:$0xff] %vm417_vm10, %v1004_v41  ;;  %v1019_v44 = vadd.f32 %v11691_v43, %v10592_v35  ;;  %13008 = vrcp.f32 %v1331_v54 }
 0x264   :  { %v1013_v45 = vpop.f32.mrf.mxu1  ;;  %v1107_v28 = vld [vmem:[#allocation2 + $0xf8] sm:$0xff] }
 0x265   :  { %1046 = vst.msk [vmem:[#allocation2 + $0x158] sm:$0xff] %vm417_vm10, %v1019_v44  ;;  %v1014_v46 = vadd.f32 %v10592_v35, %v1013_v45 }
 0x266   :  { %v11694_v47 = vpop.f32.mrf.mxu1 }
 0x267   :  { %1045 = vst.msk [vmem:[#allocation2 + $0x150] sm:$0xff] %vm417_vm10, %v1014_v46  ;;  %v1029_v49 = vadd.f32 %v11694_v47, %v10592_v35 }
 0x268   :  { %v1023_v52 = vpop.f32.mrf.mxu1 }
 0x269   :  { %1048 = vst.msk [vmem:[#allocation2 + $0x168] sm:$0xff] %vm417_vm10, %v1029_v49  ;;  %v1024_v61 = vadd.f32 %v10592_v35, %v1023_v52 }
 0x26a   :  { %v11697_v19 = vpop.f32.mrf.mxu1 }
 0x26b   :  { %1047 = vst.msk [vmem:[#allocation2 + $0x160] sm:$0xff] %vm417_vm10, %v1024_v61  ;;  %v1039_v20 = vadd.f32 %v11697_v19, %v10592_v35 }
 0x26c   :  { %v1033_v22 = vpop.f32.mrf.mxu1 }
 0x26d   :  { %1050 = vst.msk [vmem:[#allocation2 + $0x178] sm:$0xff] %vm417_vm10, %v1039_v20  ;;  %v1034_v23 = vadd.f32 %v10592_v35, %v1033_v22  ;;  %v1568_v35 = vadd.f32 %v1487_v38, %v1110_v34  ;;  %v14039_v38 = vld [vmem:[%s15904_s6 + $0x1] ss:$0 sm:$0xff] }
 0x26e   :  { %v1253_v25 = vpop.f32.mrf.mxu1 }
 0x26f   :  { %1049 = vst.msk [vmem:[#allocation2 + $0x170] sm:$0xff] %vm417_vm10, %v1034_v23  ;;  %v1334_v26 = vadd.f32 %v1253_v25, %v1101_v24  ;;  %v10614_v41 = vmul.f32 -1.442695, %v1568_v35 }
 0x270   :  { %v11719_v50 = vpop.f32.mrf.mxu1  ;;  %v13009_v33 = vpop.eup %13008 }
 0x271   :  { %v10609_v51 = vmul.f32 -1.442695, %v1334_v26  ;;  %v1341_v36 = vmul.f32 %v13009_v33, %v1324_v31  ;;  %v1589_v31 = vld [vmem:[#allocation2 + $0x48] sm:$0xff] }
 0x273   :  { %13010 = vpow2.f32 %v10609_v51  ;;  %v1342_v43 = vadd.f32 %v1341_v36, %v1104_v40 }
 0x274   :  { %v1113_v23 = vld [vmem:[#allocation2 + $0x178] sm:$0xff] }
 0x276   :  { %v1417_v17 = vpop.f32.mrf.mxu1 }
 0x277   :  { %v1561_v29 = vadd.f32 %v1417_v17, %v1107_v28 }
 0x278   :  { %v11741_v30 = vpop.f32.mrf.mxu1 }
 0x279   :  { %v10613_v32 = vmul.f32 -1.442695, %v1561_v29 }
 0x27b   :  { %13012 = vpow2.f32 %v10613_v32 }
 0x27e   :  { %v1557_v37 = vpop.f32.mrf.mxu1 }
 0x27f   :  { %v1558_v19 = vadd.f32 %v14039_v38, %v1557_v37 }
 0x280   :  { %v13011_v39 = vpop.eup %13010  ;;  %v11763_v42 = vpop.f32.mrf.mxu1 }
 0x281   :  { %v1338_v44 = vadd.f32 1.0, %v13011_v39  ;;  %v1595_v39 = vld [vmem:[#allocation2 + $0xf0] sm:$0xff] }
 0x283   :  { %13014 = vrcp.f32 %v1338_v44 }
 0x284   :  { %13016 = vpow2.f32 %v10614_v41 }
 0x285   :  { %13018 = vtanh.f32 %v1342_v43 }
 0x288   :  { %v13013_v45 = vpop.eup %13012 }
 0x289   :  { %v1565_v46 = vadd.f32 1.0, %v13013_v45 }
 0x28b   :  { %13020 = vrcp.f32 %v1565_v46 }
 0x290   :  { %v13015_v18 = vpop.eup %13014 }
 0x291   :  { %v13017_v48 = vpop.eup %13016  ;;  %v1344_v47 = vsub.f32 1.0, %v13015_v18  ;;  %v1346_v54 = vmul.f32 %v13015_v18, %v13797_v58  ;;  %v1598_v18 = vld [vmem:[#allocation2 + $0x130] sm:$0xff] }
 0x292   :  { %v13019_v49 = vpop.eup %13018  ;;  %v1572_v61 = vadd.f32 1.0, %v13017_v48 }
 0x293   :  { %v1345_v52 = vmul.f32 %v13019_v49, %v1344_v47 }
 0x294   :  { %13022 = vrcp.f32 %v1572_v61 }
 0x295   :  { %v14043_v20 = vadd.f32 %v1346_v54, %v1345_v52 }
 0x297   :  { %1582 = vst.msk [vmem:[#allocation3] sm:$0xff] %vm417_vm10, %v14043_v20  ;;  %11773 = vmatmul.mubr.msk.f32.vlgmr.msra.gmra.mxu0 %vm417_vm10, %v14043_v20  ;;  %11784 = vmatmul.mubr.msk.f32.vlgmr.msra.gmra.mxu1 %vm417_vm10, %v14043_v20 }
 0x298   :  { %v13021_v22 = vpop.eup %13020  ;;  %11787 = vmatpush3.msra.mxu0 %v13802_v59  ;;  %11794 = vmatprep.mubr.msk.f32.mxu0 %vm13517_vm11, %v13516_v21 }
 0x299   :  { %v1575_v58 = vmul.f32 %v13021_v22, %v1558_v19  ;;  %11788 = vmatprep.subr.mxu0 %v13516_v21  ;;  %11798 = vmatpush3.msra.mxu1 %v13911_v9 }
 0x29a   :  { %11789 = vmatpush3.msra.mxu0 %v13809_v60  ;;  %11799 = vmatprep.subr.mxu1 %v13516_v21 }
 0x29b   :  { %v1576_v24 = vadd.f32 %v1575_v58, %v1113_v23  ;;  %11790 = vmatprep.subr.mxu0 %v13516_v21  ;;  %11800 = vmatpush3.msra.mxu1 %v13916_v10  ;;  %v1592_v58 = vld [vmem:[#allocation2 + $0x88] sm:$0xff] }
 0x29c   :  { %11791 = vmatpush3.msra.mxu0 %v13818_v62  ;;  %11801 = vmatprep.subr.mxu1 %v13516_v21 }
 0x29d   :  { %13024 = vtanh.f32 %v1576_v24  ;;  %11792 = vmatprep.subr.mxu0 %v13516_v21  ;;  %11802 = vmatpush3.msra.mxu1 %v13922_v11 }
 0x29e   :  { %11793 = vmatpush3.msra.mxu0 %v13824_v63  ;;  %11803 = vmatprep.subr.mxu1 %v13516_v21 }
 0x29f   :  { %11795 = vmatmul.mubr.msk.f32.vlgmr.msra.gmra.mxu0 %vm417_vm10, %v14043_v20  ;;  %11808 = vmatprep.subr.mxu0 %v13516_v21 }
 0x2a0   :  { %11809 = vmatpush3.msra.mxu0 %v13833_v0  ;;  %11804 = vmatpush3.msra.mxu1 %v13926_v12 }
 0x2a1   :  { %11810 = vmatprep.subr.mxu0 %v13516_v21  ;;  %11805 = vmatprep.mubr.msk.f32.mxu1 %vm13517_vm11, %v13516_v21  ;;  %v13023_v25 = vpop.eup %13022 }
 0x2a2   :  { %11811 = vmatpush3.msra.mxu0 %v13842_v1  ;;  %11816 = vmatprep.mubr.msk.f32.mxu0 %vm13517_vm11, %v13516_v21  ;;  %v1578_v26 = vsub.f32 1.0, %v13023_v25  ;;  %v1580_v28 = vmul.f32 %v13023_v25, %v13863_v4 }
 0x2a3   :  { %11812 = vmatprep.subr.mxu0 %v13516_v21  ;;  %11819 = vmatprep.subr.mxu1 %v13516_v21 }
 0x2a4   :  { %11813 = vmatpush3.msra.mxu0 %v13848_v2 }
 0x2a5   :  { %11814 = vmatprep.subr.mxu0 %v13516_v21 }
 0x2a6   :  { %11815 = vmatpush3.msra.mxu0 %v13857_v3 }
 0x2a7   :  { %11830 = vmatprep.subr.mxu0 %v13516_v21 }
 0x2aa   :  { %v13025_v50 = vpop.eup %13024 }
 0x2ab   :  { %v1579_v51 = vmul.f32 %v13025_v50, %v1578_v26 }
 0x2ad   :  { %v14084_v17 = vadd.f32 %v1580_v28, %v1579_v51 }
 0x2af   :  { %1584 = vst.msk [vmem:[#allocation4 + $0x38] sm:$0xff] %vm417_vm10, %v14084_v17  ;;  %11806 = vmatmul.mubr.msk.f32.vlgmr.msra.gmra.mxu1 %vm417_vm10, %v14084_v17  ;;  %11817 = vmatmul.mubr.msk.f32.vlgmr.msra.gmra.mxu0 %vm417_vm10, %v14084_v17 }
 0x2b0   :  { %11820 = vmatpush3.msra.mxu1 %v13930_v13  ;;  %11827 = vmatprep.mubr.msk.f32.mxu1 %vm13517_vm11, %v13516_v21 }
 0x2b1   :  { %11821 = vmatprep.subr.mxu1 %v13516_v21  ;;  %11831 = vmatpush3.msra.mxu0 %v13751_v53  ;;  %v1586_v53 = vld [vmem:[#allocation2 + $0x8] sm:$0xff] }
 0x2b2   :  { %11822 = vmatpush3.msra.mxu1 %v13936_v14  ;;  %11832 = vmatprep.subr.mxu0 %v13516_v21 }
 0x2b3   :  { %11823 = vmatprep.subr.mxu1 %v13516_v21  ;;  %11833 = vmatpush3.msra.mxu0 %v13765_v55 }
 0x2b4   :  { %11824 = vmatpush3.msra.mxu1 %v13942_v15  ;;  %11834 = vmatprep.subr.mxu0 %v13516_v21 }
 0x2b5   :  { %11825 = vmatprep.subr.mxu1 %v13516_v21  ;;  %11835 = vmatpush3.msra.mxu0 %v13777_v56 }
 0x2b6   :  { %11826 = vmatpush3.msra.mxu1 %v13946_v16  ;;  %11836 = vmatprep.subr.mxu0 %v13516_v21 }
 0x2b7   :  { %11828 = vmatmul.mubr.msk.f32.vlgmr.msra.gmra.mxu1 %vm417_vm10, %v14084_v17  ;;  %11841 = vmatprep.subr.mxu1 %v13516_v21 }
 0x2b8   :  { %11842 = vmatpush3.msra.mxu1 %v13865_v5  ;;  %11837 = vmatpush3.msra.mxu0 %v13785_v57 }
 0x2b9   :  { %11843 = vmatprep.subr.mxu1 %v13516_v21  ;;  %11838 = vmatprep.mubr.msk.f32.mxu0 %vm13517_vm11, %v13516_v21 }
 0x2ba   :  { %11844 = vmatpush3.msra.mxu1 %v13871_v6  ;;  %11849 = vmatprep.mubr.msk.f32.mxu1 %vm13517_vm11, %v13516_v21 }
 0x2bb   :  { %11845 = vmatprep.subr.mxu1 %v13516_v21  ;;  %11852 = vmatprep.subr.mxu0 %v13516_v21 }
 0x2bc   :  { %11846 = vmatpush3.msra.mxu1 %v13879_v7 }
 0x2bd   :  { %11847 = vmatprep.subr.mxu1 %v13516_v21 }
 0x2be   :  { %11848 = vmatpush3.msra.mxu1 %v13886_v8 }
 0x2bf   :  { %11863 = vmatprep.subr.mxu1 %v13516_v21 }
 0x357   :  { %v1671_v55 = vpop.f32.mrf.mxu0  ;;  %v1741_v56 = vpop.f32.mrf.mxu1 }
 0x358   :  { %v1815_v57 = vadd.f32 %v1671_v55, %v1586_v53  ;;  %v1822_v32 = vadd.f32 %v1741_v56, %v1589_v31 }
 0x359   :  { %v11774_v4 = vpop.f32.mrf.mxu0  ;;  %v11785_v29 = vpop.f32.mrf.mxu1 }
 0x35a   :  { %v10618_v30 = vmul.f32 -1.442695, %v1815_v57  ;;  %v10619_v35 = vmul.f32 -1.442695, %v1822_v32 }
 0x35c   :  { %13026 = vpow2.f32 %v10618_v30  ;;  %v1601_v30 = vld [vmem:[#allocation2 + $0x170] sm:$0xff] }
 0x35d   :  { %13028 = vpow2.f32 %v10619_v35 }
 0x35f   :  { %v1811_v33 = vpop.f32.mrf.mxu0 }
 0x360   :  { %v1812_v52 = vadd.f32 %v14033_v27, %v1811_v33 }
 0x361   :  { %v11796_v34 = vpop.f32.mrf.mxu0 }
 0x362   :  { %v2078_v34 = vld [vmem:[#allocation2 + $0x50] sm:$0xff] }
 0x369   :  { %v13027_v36 = vpop.eup %13026 }
 0x36a   :  { %v1819_v37 = vadd.f32 1.0, %v13027_v36  ;;  %v13029_v46 = vpop.eup %13028 }
 0x36b   :  { %v1826_v47 = vadd.f32 1.0, %v13029_v46 }
 0x36c   :  { %13030 = vrcp.f32 %v1819_v37 }
 0x36f   :  { %v1905_v40 = vpop.f32.mrf.mxu1  ;;  %v1975_v41 = vpop.f32.mrf.mxu0 }
 0x370   :  { %v2049_v42 = vadd.f32 %v1905_v40, %v1595_v39  ;;  %v2056_v48 = vadd.f32 %v1975_v41, %v1598_v18 }
 0x371   :  { %v11807_v43 = vpop.f32.mrf.mxu1  ;;  %v11818_v44 = vpop.f32.mrf.mxu0 }
 0x372   :  { %v10623_v45 = vmul.f32 -1.442695, %v2049_v42  ;;  %v10624_v61 = vmul.f32 -1.442695, %v2056_v48  ;;  %v2087_v48 = vld [vmem:[#allocation2 + $0x128] sm:$0xff] }
 0x374   :  { %13032 = vpow2.f32 %v10623_v45 }
 0x375   :  { %13034 = vrcp.f32 %v1826_v47 }
 0x376   :  { %13036 = vpow2.f32 %v10624_v61 }
 0x377   :  { %v2045_v49 = vpop.f32.mrf.mxu1 }
 0x378   :  { %v2046_v4 = vadd.f32 %v14039_v38, %v2045_v49 }
 0x379   :  { %v13031_v54 = vpop.eup %13030  ;;  %v11829_v19 = vpop.f32.mrf.mxu1 }
 0x37a   :  { %v1829_v22 = vmul.f32 %v13031_v54, %v1812_v52 }
 0x37c   :  { %v1830_v23 = vadd.f32 %v1829_v22, %v1592_v58 }
 0x37e   :  { %13038 = vtanh.f32 %v1830_v23  ;;  %v2081_v23 = vld [vmem:[#allocation2 + $0x90] sm:$0xff] }
 0x381   :  { %v13033_v24 = vpop.eup %13032 }
 0x382   :  { %v2053_v25 = vadd.f32 1.0, %v13033_v24  ;;  %v13035_v26 = vpop.eup %13034 }
 0x383   :  { %v13037_v50 = vpop.eup %13036  ;;  %v1832_v51 = vsub.f32 1.0, %v13035_v26  ;;  %v1834_v55 = vmul.f32 %v13035_v26, %v14043_v20 }
 0x384   :  { %13040 = vrcp.f32 %v2053_v25  ;;  %v2060_v56 = vadd.f32 1.0, %v13037_v50 }
 0x386   :  { %13042 = vrcp.f32 %v2060_v56 }
 0x38b   :  { %v13039_v28 = vpop.eup %13038 }
 0x38c   :  { %v1833_v53 = vmul.f32 %v13039_v28, %v1832_v51 }
 0x38e   :  { %v14126_v57 = vadd.f32 %v1834_v55, %v1833_v53 }
 0x390   :  { %2071 = vst.msk [vmem:[#allocation3 + $0x8] sm:$0xff] %vm417_vm10, %v14126_v57  ;;  %11839 = vmatmul.mubr.msk.f32.vlgmr.msra.gmra.mxu0 %vm417_vm10, %v14126_v57  ;;  %11850 = vmatmul.mubr.msk.f32.vlgmr.msra.gmra.mxu1 %vm417_vm10, %v14126_v57 }
 0x391   :  { %v13041_v29 = vpop.eup %13040  ;;  %11853 = vmatpush3.msra.mxu0 %v13802_v59  ;;  %11860 = vmatprep.mubr.msk.f32.mxu0 %vm13517_vm11, %v13516_v21 }
 0x392   :  { %v2063_v20 = vmul.f32 %v13041_v29, %v2046_v4  ;;  %11854 = vmatprep.subr.mxu0 %v13516_v21  ;;  %11864 = vmatpush3.msra.mxu1 %v13911_v9 }
 0x393   :  { %11855 = vmatpush3.msra.mxu0 %v13809_v60  ;;  %11865 = vmatprep.subr.mxu1 %v13516_v21  ;;  %v13043_v59 = vpop.eup %13042 }
 0x394   :  { %v2064_v31 = vadd.f32 %v2063_v20, %v1601_v30  ;;  %11856 = vmatprep.subr.mxu0 %v13516_v21  ;;  %11866 = vmatpush3.msra.mxu1 %v13916_v10  ;;  %v2066_v60 = vsub.f32 1.0, %v13043_v59 }
 0x395   :  { %11857 = vmatpush3.msra.mxu0 %v13818_v62  ;;  %11867 = vmatprep.subr.mxu1 %v13516_v21 }
 0x396   :  { %13044 = vtanh.f32 %v2064_v31  ;;  %11858 = vmatprep.subr.mxu0 %v13516_v21  ;;  %11868 = vmatpush3.msra.mxu1 %v13922_v11  ;;  %v14227_v31 = vld [vmem:[#allocation7 + $0x58] sm:$0xff] }
 0x397   :  { %11859 = vmatpush3.msra.mxu0 %v13824_v63  ;;  %11869 = vmatprep.subr.mxu1 %v13516_v21 }
 0x398   :  { %11861 = vmatmul.mubr.msk.f32.vlgmr.msra.gmra.mxu0 %vm417_vm10, %v14126_v57  ;;  %11874 = vmatprep.subr.mxu0 %v13516_v21 }
 0x399   :  { %11875 = vmatpush3.msra.mxu0 %v13833_v0  ;;  %11870 = vmatpush3.msra.mxu1 %v13926_v12  ;;  %v2068_v0 = vmul.f32 %v13043_v59, %v14084_v17  ;;  %v2090_v59 = vld [vmem:[#allocation2 + $0x168] sm:$0xff] }
 0x39a   :  { %11876 = vmatprep.subr.mxu0 %v13516_v21  ;;  %11871 = vmatprep.mubr.msk.f32.mxu1 %vm13517_vm11, %v13516_v21 }
 0x39b   :  { %11877 = vmatpush3.msra.mxu0 %v13842_v1  ;;  %11882 = vmatprep.mubr.msk.f32.mxu0 %vm13517_vm11, %v13516_v21 }
 0x39c   :  { %11878 = vmatprep.subr.mxu0 %v13516_v21  ;;  %11885 = vmatprep.subr.mxu1 %v13516_v21 }
 0x39d   :  { %11879 = vmatpush3.msra.mxu0 %v13848_v2  ;;  %v14180_v2 = vld [vmem:[#allocation7 + $0x18] sm:$0xff] }
 0x39e   :  { %11880 = vmatprep.subr.mxu0 %v13516_v21 }
 0x39f   :  { %11881 = vmatpush3.msra.mxu0 %v13857_v3  ;;  %v14186_v3 = vld [vmem:[#allocation7 + $0x10] sm:$0xff] }
 0x3a0   :  { %11896 = vmatprep.subr.mxu0 %v13516_v21 }
 0x3a3   :  { %v13045_v62 = vpop.eup %13044 }
 0x3a4   :  { %v2067_v63 = vmul.f32 %v13045_v62, %v2066_v60  ;;  %v14234_v60 = vld [vmem:[#allocation7 + $0x50] sm:$0xff] }
 0x3a6   :  { %v14168_v1 = vadd.f32 %v2068_v0, %v2067_v63  ;;  %v14240_v63 = vld [vmem:[#allocation7 + $0x48] sm:$0xff] }
 0x3a7   :  { %v14267_v0 = vld [vmem:[#allocation7 + $0x88] sm:$0xff] }
 0x3a8   :  { %2073 = vst.msk [vmem:[#allocation4 + $0x30] sm:$0xff] %vm417_vm10, %v14168_v1  ;;  %11872 = vmatmul.mubr.msk.f32.vlgmr.msra.gmra.mxu1 %vm417_vm10, %v14168_v1  ;;  %11883 = vmatmul.mubr.msk.f32.vlgmr.msra.gmra.mxu0 %vm417_vm10, %v14168_v1 }
 0x3a9   :  { %11886 = vmatpush3.msra.mxu1 %v13930_v13  ;;  %11893 = vmatprep.mubr.msk.f32.mxu1 %vm13517_vm11, %v13516_v21  ;;  %v14192_v13 = vld [vmem:[#allocation7 + $0x8] sm:$0xff] }
 0x3aa   :  { %11887 = vmatprep.subr.mxu1 %v13516_v21  ;;  %11897 = vmatpush3.msra.mxu0 %v14180_v2 }
 0x3ab   :  { %11888 = vmatpush3.msra.mxu1 %v13936_v14  ;;  %11898 = vmatprep.subr.mxu0 %v13516_v21  ;;  %v14201_v14 = vld [vmem:[#allocation7] sm:$0xff] }
 0x3ac   :  { %11889 = vmatprep.subr.mxu1 %v13516_v21  ;;  %11899 = vmatpush3.msra.mxu0 %v14186_v3 }
 0x3ad   :  { %11890 = vmatpush3.msra.mxu1 %v13942_v15  ;;  %11900 = vmatprep.subr.mxu0 %v13516_v21 }
 0x3ae   :  { %11891 = vmatprep.subr.mxu1 %v13516_v21  ;;  %11901 = vmatpush3.msra.mxu0 %v14192_v13 }
 0x3af   :  { %11892 = vmatpush3.msra.mxu1 %v13946_v16  ;;  %11902 = vmatprep.subr.mxu0 %v13516_v21 }
 0x3b0   :  { %11894 = vmatmul.mubr.msk.f32.vlgmr.msra.gmra.mxu1 %vm417_vm10, %v14168_v1  ;;  %11907 = vmatprep.subr.mxu1 %v13516_v21 }
 0x3b1   :  { %11908 = vmatpush3.msra.mxu1 %v13865_v5  ;;  %11903 = vmatpush3.msra.mxu0 %v14201_v14  ;;  %v2075_v5 = vld [vmem:[#allocation2 + $0x10] sm:$0xff] }
 0x3b2   :  { %11909 = vmatprep.subr.mxu1 %v13516_v21  ;;  %11904 = vmatprep.mubr.msk.f32.mxu0 %vm13517_vm11, %v13516_v21 }
 0x3b3   :  { %11910 = vmatpush3.msra.mxu1 %v13871_v6  ;;  %11915 = vmatprep.mubr.msk.f32.mxu1 %vm13517_vm11, %v13516_v21 }
 0x3b4   :  { %11911 = vmatprep.subr.mxu1 %v13516_v21  ;;  %11918 = vmatprep.subr.mxu0 %v13516_v21 }
 0x3b5   :  { %11912 = vmatpush3.msra.mxu1 %v13879_v7 }
 0x3b6   :  { %11913 = vmatprep.subr.mxu1 %v13516_v21 }
 0x3b7   :  { %11914 = vmatpush3.msra.mxu1 %v13886_v8  ;;  %v2084_v8 = vld [vmem:[#allocation2 + $0xe8] sm:$0xff] }
 0x3b8   :  { %11929 = vmatprep.subr.mxu1 %v13516_v21 }
 0x450   :  { %v2160_v15 = vpop.f32.mrf.mxu0  ;;  %v2230_v16 = vpop.f32.mrf.mxu1 }
 0x451   :  { %v2304_v17 = vadd.f32 %v2160_v15, %v2075_v5  ;;  %v2311_v35 = vadd.f32 %v2230_v16, %v2078_v34  ;;  %v14271_v5 = vld [vmem:[#allocation7 + $0x80] sm:$0xff]  ;;  %v14297_v34 = vld [vmem:[#allocation7 + $0xa8] sm:$0xff] }
 0x452   :  { %v11840_v6 = vpop.f32.mrf.mxu0  ;;  %v11851_v32 = vpop.f32.mrf.mxu1 }
 0x453   :  { %v10628_v33 = vmul.f32 -1.442695, %v2304_v17  ;;  %v10629_v39 = vmul.f32 -1.442695, %v2311_v35  ;;  %v14303_v35 = vld [vmem:[#allocation7 + $0xa0] sm:$0xff] }
 0x455   :  { %13046 = vpow2.f32 %v10628_v33  ;;  %v14284_v33 = vld [vmem:[#allocation7 + $0xb8] sm:$0xff] }
 0x456   :  { %13048 = vpow2.f32 %v10629_v39  ;;  %v14324_v39 = vld [vmem:[#allocation7 + $0x28] sm:$0xff] }
 0x458   :  { %v2300_v36 = vpop.f32.mrf.mxu0 }
 0x459   :  { %v2301_v54 = vadd.f32 %v14033_v27, %v2300_v36  ;;  %v14310_v36 = vld [vmem:[#allocation7 + $0x38] sm:$0xff] }
 0x45a   :  { %v11862_v37 = vpop.f32.mrf.mxu0 }
 0x45b   :  { %v14317_v37 = vld [vmem:[#allocation7 + $0x30] sm:$0xff] }
 0x462   :  { %v13047_v7 = vpop.eup %13046 }
 0x463   :  { %v2308_v40 = vadd.f32 1.0, %v13047_v7  ;;  %v13049_v18 = vpop.eup %13048  ;;  %v14328_v7 = vld [vmem:[#allocation7 + $0x20] sm:$0xff] }
 0x464   :  { %v2315_v49 = vadd.f32 1.0, %v13049_v18 }
 0x465   :  { %13050 = vrcp.f32 %v2308_v40  ;;  %v2564_v40 = vld [vmem:[#allocation2 + $0x18] sm:$0xff] }
 0x468   :  { %v2394_v41 = vpop.f32.mrf.mxu1  ;;  %v2464_v42 = vpop.f32.mrf.mxu0 }
 0x469   :  { %v2538_v43 = vadd.f32 %v2394_v41, %v2084_v8  ;;  %v2545_v47 = vadd.f32 %v2464_v42, %v2087_v48 }
 0x46a   :  { %v11873_v44 = vpop.f32.mrf.mxu1  ;;  %v11884_v45 = vpop.f32.mrf.mxu0 }
 0x46b   :  { %v10633_v46 = vmul.f32 -1.442695, %v2538_v43  ;;  %v10634_v19 = vmul.f32 -1.442695, %v2545_v47 }
 0x46d   :  { %13052 = vpow2.f32 %v10633_v46  ;;  %v2567_v46 = vld [vmem:[#allocation2 + $0x58] sm:$0xff] }
 0x46e   :  { %13054 = vrcp.f32 %v2315_v49 }
 0x46f   :  { %13056 = vpow2.f32 %v10634_v19 }
 0x470   :  { %v2534_v52 = vpop.f32.mrf.mxu1 }
 0x471   :  { %v2535_v20 = vadd.f32 %v14039_v38, %v2534_v52 }
 0x472   :  { %v13051_v61 = vpop.eup %13050  ;;  %v11895_v22 = vpop.f32.mrf.mxu1 }
 0x473   :  { %v2318_v58 = vmul.f32 %v13051_v61, %v2301_v54  ;;  %v2573_v61 = vld [vmem:[#allocation2 + $0xe0] sm:$0xff] }
 0x475   :  { %v2319_v24 = vadd.f32 %v2318_v58, %v2081_v23 }
 0x477   :  { %13058 = vtanh.f32 %v2319_v24 }
 0x47a   :  { %v13053_v25 = vpop.eup %13052 }
 0x47b   :  { %v2542_v26 = vadd.f32 1.0, %v13053_v25  ;;  %v13055_v50 = vpop.eup %13054 }
 0x47c   :  { %v13057_v51 = vpop.eup %13056  ;;  %v2321_v28 = vsub.f32 1.0, %v13055_v50  ;;  %v2323_v56 = vmul.f32 %v13055_v50, %v14126_v57  ;;  %v2576_v50 = vld [vmem:[#allocation2 + $0x120] sm:$0xff] }
 0x47d   :  { %13060 = vrcp.f32 %v2542_v26  ;;  %v2549_v4 = vadd.f32 1.0, %v13057_v51 }
 0x47f   :  { %13062 = vrcp.f32 %v2549_v4 }
 0x484   :  { %v13059_v53 = vpop.eup %13058 }
 0x485   :  { %v2322_v55 = vmul.f32 %v13059_v53, %v2321_v28 }
 0x487   :  { %v14218_v29 = vadd.f32 %v2323_v56, %v2322_v55 }
 0x489   :  { %2560 = vst.msk [vmem:[#allocation3 + $0x10] sm:$0xff] %vm417_vm10, %v14218_v29  ;;  %11905 = vmatmul.mubr.msk.f32.vlgmr.msra.gmra.mxu0 %vm417_vm10, %v14218_v29  ;;  %11916 = vmatmul.mubr.msk.f32.vlgmr.msra.gmra.mxu1 %vm417_vm10, %v14218_v29 }
 0x48a   :  { %v13061_v30 = vpop.eup %13060  ;;  %11919 = vmatpush3.msra.mxu0 %v14227_v31  ;;  %11926 = vmatprep.mubr.msk.f32.mxu0 %vm13517_vm11, %v13516_v21 }
 0x48b   :  { %v2552_v57 = vmul.f32 %v13061_v30, %v2535_v20  ;;  %11920 = vmatprep.subr.mxu0 %v13516_v21  ;;  %11930 = vmatpush3.msra.mxu1 %v13911_v9  ;;  %v14246_v9 = vld [vmem:[#allocation7 + $0x40] sm:$0xff] }
 0x48c   :  { %11921 = vmatpush3.msra.mxu0 %v14234_v60  ;;  %11931 = vmatprep.subr.mxu1 %v13516_v21 }
 0x48d   :  { %v2553_v62 = vadd.f32 %v2552_v57, %v2090_v59  ;;  %11922 = vmatprep.subr.mxu0 %v13516_v21  ;;  %11932 = vmatpush3.msra.mxu1 %v13916_v10  ;;  %v14253_v10 = vld [vmem:[#allocation7 + $0x98] sm:$0xff] }
 0x48e   :  { %11923 = vmatpush3.msra.mxu0 %v14240_v63  ;;  %11933 = vmatprep.subr.mxu1 %v13516_v21  ;;  %v2570_v57 = vld [vmem:[#allocation2 + $0x98] sm:$0xff] }
 0x48f   :  { %13064 = vtanh.f32 %v2553_v62  ;;  %11924 = vmatprep.subr.mxu0 %v13516_v21  ;;  %11934 = vmatpush3.msra.mxu1 %v13922_v11  ;;  %v14260_v11 = vld [vmem:[#allocation7 + $0x90] sm:$0xff] }
 0x490   :  { %11925 = vmatpush3.msra.mxu0 %v14246_v9  ;;  %11935 = vmatprep.subr.mxu1 %v13516_v21 }
 0x491   :  { %11927 = vmatmul.mubr.msk.f32.vlgmr.msra.gmra.mxu0 %vm417_vm10, %v14218_v29  ;;  %11940 = vmatprep.subr.mxu0 %v13516_v21 }
 0x492   :  { %11941 = vmatpush3.msra.mxu0 %v14253_v10  ;;  %11936 = vmatpush3.msra.mxu1 %v13926_v12  ;;  %v13063_v12 = vpop.eup %13062 }
 0x493   :  { %11942 = vmatprep.subr.mxu0 %v13516_v21  ;;  %11937 = vmatprep.mubr.msk.f32.mxu1 %vm13517_vm11, %v13516_v21  ;;  %v2555_v15 = vsub.f32 1.0, %v13063_v12  ;;  %v2557_v6 = vmul.f32 %v13063_v12, %v14168_v1  ;;  %v14291_v1 = vld [vmem:[#allocation7 + $0xb0] sm:$0xff] }
 0x494   :  { %11943 = vmatpush3.msra.mxu0 %v14260_v11  ;;  %11948 = vmatprep.mubr.msk.f32.mxu0 %vm13517_vm11, %v13516_v21 }
 0x495   :  { %11944 = vmatprep.subr.mxu0 %v13516_v21  ;;  %11951 = vmatprep.subr.mxu1 %v13516_v21 }
 0x496   :  { %11945 = vmatpush3.msra.mxu0 %v14267_v0 }
 0x497   :  { %11946 = vmatprep.subr.mxu0 %v13516_v21 }
 0x498   :  { %11947 = vmatpush3.msra.mxu0 %v14271_v5 }
 0x499   :  { %11962 = vmatprep.subr.mxu0 %v13516_v21 }
 0x49c   :  { %v13065_v16 = vpop.eup %13064 }
 0x49d   :  { %v2556_v17 = vmul.f32 %v13065_v16, %v2555_v15 }
 0x49f   :  { %v14276_v32 = vadd.f32 %v2557_v6, %v2556_v17 }
 0x4a1   :  { %2562 = vst.msk [vmem:[#allocation4 + $0x28] sm:$0xff] %vm417_vm10, %v14276_v32  ;;  %11938 = vmatmul.mubr.msk.f32.vlgmr.msra.gmra.mxu1 %vm417_vm10, %v14276_v32  ;;  %11949 = vmatmul.mubr.msk.f32.vlgmr.msra.gmra.mxu0 %vm417_vm10, %v14276_v32 }
 0x4a2   :  { %11952 = vmatpush3.msra.mxu1 %v14284_v33  ;;  %11959 = vmatprep.mubr.msk.f32.mxu1 %vm13517_vm11, %v13516_v21 }
 0x4a3   :  { %11953 = vmatprep.subr.mxu1 %v13516_v21  ;;  %11963 = vmatpush3.msra.mxu0 %v14180_v2 }
 0x4a4   :  { %11954 = vmatpush3.msra.mxu1 %v14291_v1  ;;  %11964 = vmatprep.subr.mxu0 %v13516_v21 }
 0x4a5   :  { %11955 = vmatprep.subr.mxu1 %v13516_v21  ;;  %11965 = vmatpush3.msra.mxu0 %v14186_v3 }
 0x4a6   :  { %11956 = vmatpush3.msra.mxu1 %v14297_v34  ;;  %11966 = vmatprep.subr.mxu0 %v13516_v21 }
 0x4a7   :  { %11957 = vmatprep.subr.mxu1 %v13516_v21  ;;  %11967 = vmatpush3.msra.mxu0 %v14192_v13 }
 0x4a8   :  { %11958 = vmatpush3.msra.mxu1 %v14303_v35  ;;  %11968 = vmatprep.subr.mxu0 %v13516_v21 }
 0x4a9   :  { %11960 = vmatmul.mubr.msk.f32.vlgmr.msra.gmra.mxu1 %vm417_vm10, %v14276_v32  ;;  %11973 = vmatprep.subr.mxu1 %v13516_v21 }
 0x4aa   :  { %11974 = vmatpush3.msra.mxu1 %v14310_v36  ;;  %11969 = vmatpush3.msra.mxu0 %v14201_v14 }
 0x4ab   :  { %11975 = vmatprep.subr.mxu1 %v13516_v21  ;;  %11970 = vmatprep.mubr.msk.f32.mxu0 %vm13517_vm11, %v13516_v21 }
 0x4ac   :  { %11976 = vmatpush3.msra.mxu1 %v14317_v37  ;;  %11981 = vmatprep.mubr.msk.f32.mxu1 %vm13517_vm11, %v13516_v21 }
 0x4ad   :  { %11977 = vmatprep.subr.mxu1 %v13516_v21  ;;  %11984 = vmatprep.subr.mxu0 %v13516_v21 }
 0x4ae   :  { %11978 = vmatpush3.msra.mxu1 %v14324_v39 }
 0x4af   :  { %11979 = vmatprep.subr.mxu1 %v13516_v21 }
 0x4b0   :  { %11980 = vmatpush3.msra.mxu1 %v14328_v7 }
 0x4b1   :  { %11995 = vmatprep.subr.mxu1 %v13516_v21 }
 0x549   :  { %v2649_v8 = vpop.f32.mrf.mxu0  ;;  %v2719_v41 = vpop.f32.mrf.mxu1 }
 0x54a   :  { %v2793_v42 = vadd.f32 %v2649_v8, %v2564_v40  ;;  %v2800_v18 = vadd.f32 %v2719_v41, %v2567_v46 }
 0x54b   :  { %v11906_v43 = vpop.f32.mrf.mxu0  ;;  %v11917_v44 = vpop.f32.mrf.mxu1 }
 0x54c   :  { %v10638_v45 = vmul.f32 -1.442695, %v2793_v42  ;;  %v10639_v49 = vmul.f32 -1.442695, %v2800_v18  ;;  %v14347_v44 = vld [vmem:[#allocation7 + $0x78] sm:$0xff]  ;;  %v14353_v18 = vld [vmem:[#allocation7 + $0x70] sm:$0xff] }
 0x54e   :  { %13066 = vpow2.f32 %v10638_v45  ;;  %v2579_v45 = vld [vmem:[#allocation2 + $0x160] sm:$0xff] }
 0x54f   :  { %13068 = vpow2.f32 %v10639_v49 }
 0x551   :  { %v2789_v48 = vpop.f32.mrf.mxu0 }
 0x552   :  { %v2790_v55 = vadd.f32 %v14033_v27, %v2789_v48  ;;  %v14359_v48 = vld [vmem:[#allocation7 + $0x68] sm:$0xff] }
 0x553   :  { %v11928_v47 = vpop.f32.mrf.mxu0 }
 0x554   :  { %v14368_v47 = vld [vmem:[#allocation7 + $0x60] sm:$0xff] }
 0x55b   :  { %v13067_v52 = vpop.eup %13066 }
 0x55c   :  { %v2797_v54 = vadd.f32 1.0, %v13067_v52  ;;  %v13069_v26 = vpop.eup %13068 }
 0x55d   :  { %v2804_v28 = vadd.f32 1.0, %v13069_v26 }
 0x55e   :  { %13070 = vrcp.f32 %v2797_v54 }
 0x561   :  { %v2883_v19 = vpop.f32.mrf.mxu1  ;;  %v2953_v22 = vpop.f32.mrf.mxu0 }
 0x562   :  { %v3027_v58 = vadd.f32 %v2883_v19, %v2573_v61  ;;  %v3034_v51 = vadd.f32 %v2953_v22, %v2576_v50 }
 0x563   :  { %v11939_v23 = vpop.f32.mrf.mxu1  ;;  %v11950_v24 = vpop.f32.mrf.mxu0 }
 0x564   :  { %v10643_v25 = vmul.f32 -1.442695, %v3027_v58  ;;  %v10644_v4 = vmul.f32 -1.442695, %v3034_v51  ;;  %v3056_v51 = vld [vmem:[#allocation2 + $0x60] sm:$0xff] }
 0x566   :  { %13072 = vpow2.f32 %v10643_v25 }
 0x567   :  { %13074 = vrcp.f32 %v2804_v28 }
 0x568   :  { %13076 = vpow2.f32 %v10644_v4 }
 0x569   :  { %v3023_v53 = vpop.f32.mrf.mxu1 }
 0x56a   :  { %v3024_v42 = vadd.f32 %v14039_v38, %v3023_v53 }
 0x56b   :  { %v13071_v56 = vpop.eup %13070  ;;  %v11961_v20 = vpop.f32.mrf.mxu1 }
 0x56c   :  { %v2807_v30 = vmul.f32 %v13071_v56, %v2790_v55 }
 0x56e   :  { %v2808_v59 = vadd.f32 %v2807_v30, %v2570_v57  ;;  %v3062_v30 = vld [vmem:[#allocation2 + $0xd8] sm:$0xff] }
 0x570   :  { %13078 = vtanh.f32 %v2808_v59 }
 0x573   :  { %v13073_v62 = vpop.eup %13072 }
 0x574   :  { %v3031_v12 = vadd.f32 1.0, %v13073_v62  ;;  %v13075_v15 = vpop.eup %13074 }
 0x575   :  { %v13077_v16 = vpop.eup %13076  ;;  %v2810_v17 = vsub.f32 1.0, %v13075_v15  ;;  %v2812_v8 = vmul.f32 %v13075_v15, %v14218_v29 }
 0x576   :  { %13080 = vrcp.f32 %v3031_v12  ;;  %v3038_v27 = vadd.f32 1.0, %v13077_v16 }
 0x578   :  { %13082 = vrcp.f32 %v3038_v27 }
 0x57d   :  { %v13079_v6 = vpop.eup %13078 }
 0x57e   :  { %v2811_v40 = vmul.f32 %v13079_v6, %v2810_v17  ;;  %v3065_v6 = vld [vmem:[#allocation2 + $0x118] sm:$0xff] }
 0x580   :  { %v14334_v41 = vadd.f32 %v2812_v8, %v2811_v40 }
 0x582   :  { %3049 = vst.msk [vmem:[#allocation3 + $0x18] sm:$0xff] %vm417_vm10, %v14334_v41  ;;  %11971 = vmatmul.mubr.msk.f32.vlgmr.msra.gmra.mxu0 %vm417_vm10, %v14334_v41  ;;  %11982 = vmatmul.mubr.msk.f32.vlgmr.msra.gmra.mxu1 %vm417_vm10, %v14334_v41 }
 0x583   :  { %v13081_v43 = vpop.eup %13080  ;;  %11985 = vmatpush3.msra.mxu0 %v14227_v31  ;;  %11992 = vmatprep.mubr.msk.f32.mxu0 %vm13517_vm11, %v13516_v21 }
 0x584   :  { %v3041_v29 = vmul.f32 %v13081_v43, %v3024_v42  ;;  %11986 = vmatprep.subr.mxu0 %v13516_v21  ;;  %11996 = vmatpush3.msra.mxu1 %v14347_v44  ;;  %v14427_v42 = vld [vmem:[%s15904_s6] ss:$0 sm:$0xff] }
 0x585   :  { %11987 = vmatpush3.msra.mxu0 %v14234_v60  ;;  %11997 = vmatprep.subr.mxu1 %v13516_v21  ;;  %v13083_v49 = vpop.eup %13082 }
 0x586   :  { %v3042_v46 = vadd.f32 %v3041_v29, %v2579_v45  ;;  %11988 = vmatprep.subr.mxu0 %v13516_v21  ;;  %11998 = vmatpush3.msra.mxu1 %v14353_v18  ;;  %v3044_v52 = vsub.f32 1.0, %v13083_v49  ;;  %v3046_v19 = vmul.f32 %v13083_v49, %v14276_v32  ;;  %v3053_v32 = vld [vmem:[#allocation2 + $0x20] sm:$0xff] }
 0x587   :  { %11989 = vmatpush3.msra.mxu0 %v14240_v63  ;;  %11999 = vmatprep.subr.mxu1 %v13516_v21 }
 0x588   :  { %13084 = vtanh.f32 %v3042_v46  ;;  %11990 = vmatprep.subr.mxu0 %v13516_v21  ;;  %12000 = vmatpush3.msra.mxu1 %v14359_v48 }
 0x589   :  { %11991 = vmatpush3.msra.mxu0 %v14246_v9  ;;  %12001 = vmatprep.subr.mxu1 %v13516_v21 }
 0x58a   :  { %11993 = vmatmul.mubr.msk.f32.vlgmr.msra.gmra.mxu0 %vm417_vm10, %v14334_v41  ;;  %12006 = vmatprep.subr.mxu0 %v13516_v21 }
 0x58b   :  { %12007 = vmatpush3.msra.mxu0 %v14253_v10  ;;  %12002 = vmatpush3.msra.mxu1 %v14368_v47 }
 0x58c   :  { %12008 = vmatprep.subr.mxu0 %v13516_v21  ;;  %12003 = vmatprep.mubr.msk.f32.mxu1 %vm13517_vm11, %v13516_v21 }
 0x58d   :  { %12009 = vmatpush3.msra.mxu0 %v14260_v11  ;;  %12014 = vmatprep.mubr.msk.f32.mxu0 %vm13517_vm11, %v13516_v21 }
 0x58e   :  { %12010 = vmatprep.subr.mxu0 %v13516_v21  ;;  %12017 = vmatprep.subr.mxu1 %v13516_v21 }
 0x58f   :  { %12011 = vmatpush3.msra.mxu0 %v14267_v0 }
 0x590   :  { %12012 = vmatprep.subr.mxu0 %v13516_v21 }
 0x591   :  { %12013 = vmatpush3.msra.mxu0 %v14271_v5 }
 0x592   :  { %12028 = vmatprep.subr.mxu0 %v13516_v21 }
 0x595   :  { %v13085_v54 = vpop.eup %13084 }
 0x596   :  { %v3045_v61 = vmul.f32 %v13085_v54, %v3044_v52  ;;  %v3059_v52 = vld [vmem:[#allocation2 + $0xa0] sm:$0xff] }
 0x598   :  { %v14384_v22 = vadd.f32 %v3046_v19, %v3045_v61 }
 0x59a   :  { %3051 = vst.msk [vmem:[#allocation4 + $0x20] sm:$0xff] %vm417_vm10, %v14384_v22  ;;  %12004 = vmatmul.mubr.msk.f32.vlgmr.msra.gmra.mxu1 %vm417_vm10, %v14384_v22  ;;  %12015 = vmatmul.mubr.msk.f32.vlgmr.msra.gmra.mxu0 %vm417_vm10, %v14384_v22 }
 0x59b   :  { %12018 = vmatpush3.msra.mxu1 %v14284_v33  ;;  %12025 = vmatprep.mubr.msk.f32.mxu1 %vm13517_vm11, %v13516_v21 }
 0x59c   :  { %12019 = vmatprep.subr.mxu1 %v13516_v21  ;;  %12029 = vmatpush3.msra.mxu0 %v14180_v2 }
 0x59d   :  { %12020 = vmatpush3.msra.mxu1 %v14291_v1  ;;  %12030 = vmatprep.subr.mxu0 %v13516_v21 }
 0x59e   :  { %12021 = vmatprep.subr.mxu1 %v13516_v21  ;;  %12031 = vmatpush3.msra.mxu0 %v14186_v3 }
 0x59f   :  { %12022 = vmatpush3.msra.mxu1 %v14297_v34  ;;  %12032 = vmatprep.subr.mxu0 %v13516_v21 }
 0x5a0   :  { %12023 = vmatprep.subr.mxu1 %v13516_v21  ;;  %12033 = vmatpush3.msra.mxu0 %v14192_v13 }
 0x5a1   :  { %12024 = vmatpush3.msra.mxu1 %v14303_v35  ;;  %12034 = vmatprep.subr.mxu0 %v13516_v21 }
 0x5a2   :  { %12026 = vmatmul.mubr.msk.f32.vlgmr.msra.gmra.mxu1 %vm417_vm10, %v14384_v22  ;;  %12039 = vmatprep.subr.mxu1 %v13516_v21 }
 0x5a3   :  { %12040 = vmatpush3.msra.mxu1 %v14310_v36  ;;  %12035 = vmatpush3.msra.mxu0 %v14201_v14 }
 0x5a4   :  { %12041 = vmatprep.subr.mxu1 %v13516_v21  ;;  %12036 = vmatprep.mubr.msk.f32.mxu0 %vm13517_vm11, %v13516_v21 }
 0x5a5   :  { %12042 = vmatpush3.msra.mxu1 %v14317_v37  ;;  %12047 = vmatprep.mubr.msk.f32.mxu1 %vm13517_vm11, %v13516_v21 }
 0x5a6   :  { %12043 = vmatprep.subr.mxu1 %v13516_v21  ;;  %12050 = vmatprep.subr.mxu0 %v13516_v21 }
 0x5a7   :  { %12044 = vmatpush3.msra.mxu1 %v14324_v39 }
 0x5a8   :  { %12045 = vmatprep.subr.mxu1 %v13516_v21 }
 0x5a9   :  { %12046 = vmatpush3.msra.mxu1 %v14328_v7 }
 0x5aa   :  { %12061 = vmatprep.subr.mxu1 %v13516_v21 }
 0x642   :  { %v3138_v58 = vpop.f32.mrf.mxu0  ;;  %v3208_v23 = vpop.f32.mrf.mxu1 }
 0x643   :  { %v3282_v24 = vadd.f32 %v3138_v58, %v3053_v32  ;;  %v3289_v28 = vadd.f32 %v3208_v23, %v3056_v51 }
 0x644   :  { %v11972_v25 = vpop.f32.mrf.mxu0  ;;  %v11983_v26 = vpop.f32.mrf.mxu1 }
 0x645   :  { %v10648_v50 = vmul.f32 -1.442695, %v3282_v24  ;;  %v10649_v56 = vmul.f32 -1.442695, %v3289_v28 }
 0x647   :  { %13086 = vpow2.f32 %v10648_v50 }
 0x648   :  { %13088 = vpow2.f32 %v10649_v56 }
 0x64a   :  { %v3278_v53 = vpop.f32.mrf.mxu0 }
 0x64b   :  { %v3279_v43 = vadd.f32 %v14427_v42, %v3278_v53 }
 0x64c   :  { %v11994_v55 = vpop.f32.mrf.mxu0 }
 0x654   :  { %v13087_v4 = vpop.eup %13086 }
 0x655   :  { %v3286_v20 = vadd.f32 1.0, %v13087_v4  ;;  %v13089_v17 = vpop.eup %13088 }
 0x656   :  { %v3293_v8 = vadd.f32 1.0, %v13089_v17 }
 0x657   :  { %13090 = vrcp.f32 %v3286_v20 }
 0x65a   :  { %v3372_v57 = vpop.f32.mrf.mxu1  ;;  %v3442_v59 = vpop.f32.mrf.mxu0 }
 0x65b   :  { %v3516_v62 = vadd.f32 %v3372_v57, %v3062_v30  ;;  %v3523_v40 = vadd.f32 %v3442_v59, %v3065_v6 }
 0x65c   :  { %v12005_v12 = vpop.f32.mrf.mxu1  ;;  %v12016_v15 = vpop.f32.mrf.mxu0 }
 0x65d   :  { %v10653_v16 = vmul.f32 -1.442695, %v3516_v62  ;;  %v10654_v45 = vmul.f32 -1.442695, %v3523_v40  ;;  %v3545_v40 = vld [vmem:[#allocation2 + $0x68] sm:$0xff] }
 0x65f   :  { %13092 = vpow2.f32 %v10653_v16 }
 0x660   :  { %13094 = vrcp.f32 %v3293_v8 }
 0x661   :  { %13096 = vpow2.f32 %v10654_v45 }
 0x662   :  { %v3512_v27 = vpop.f32.mrf.mxu1 }
 0x663   :  { %v3513_v28 = vadd.f32 %v14039_v38, %v3512_v27  ;;  %v3068_v38 = vld [vmem:[#allocation2 + $0x158] sm:$0xff] }
 0x664   :  { %v13091_v29 = vpop.eup %13090  ;;  %v12027_v46 = vpop.f32.mrf.mxu1 }
 0x665   :  { %v3296_v49 = vmul.f32 %v13091_v29, %v3279_v43 }
 0x667   :  { %v3297_v54 = vadd.f32 %v3296_v49, %v3059_v52  ;;  %v3551_v49 = vld [vmem:[#allocation2 + $0xd0] sm:$0xff] }
 0x669   :  { %13098 = vtanh.f32 %v3297_v54 }
 0x66c   :  { %v13093_v61 = vpop.eup %13092 }
 0x66d   :  { %v3520_v19 = vadd.f32 1.0, %v13093_v61  ;;  %v13095_v32 = vpop.eup %13094 }
 0x66e   :  { %v13097_v58 = vpop.eup %13096  ;;  %v3299_v23 = vsub.f32 1.0, %v13095_v32  ;;  %v3301_v26 = vmul.f32 %v13095_v32, %v14334_v41 }
 0x66f   :  { %13100 = vrcp.f32 %v3520_v19  ;;  %v3527_v50 = vadd.f32 1.0, %v13097_v58 }
 0x671   :  { %13102 = vrcp.f32 %v3527_v50 }
 0x676   :  { %v13099_v24 = vpop.eup %13098 }
 0x677   :  { %v3300_v25 = vmul.f32 %v13099_v24, %v3299_v23  ;;  %v3554_v24 = vld [vmem:[#allocation2 + $0x110] sm:$0xff] }
 0x679   :  { %v14431_v51 = vadd.f32 %v3301_v26, %v3300_v25 }
 0x67b   :  { %3538 = vst.msk [vmem:[#allocation3 + $0x20] sm:$0xff] %vm417_vm10, %v14431_v51  ;;  %12037 = vmatmul.mubr.msk.f32.vlgmr.msra.gmra.mxu0 %vm417_vm10, %v14431_v51  ;;  %12048 = vmatmul.mubr.msk.f32.vlgmr.msra.gmra.mxu1 %vm417_vm10, %v14431_v51 }
 0x67c   :  { %v13101_v53 = vpop.eup %13100  ;;  %12051 = vmatpush3.msra.mxu0 %v14227_v31  ;;  %12058 = vmatprep.mubr.msk.f32.mxu0 %vm13517_vm11, %v13516_v21 }
 0x67d   :  { %v3530_v41 = vmul.f32 %v13101_v53, %v3513_v28  ;;  %12052 = vmatprep.subr.mxu0 %v13516_v21  ;;  %12062 = vmatpush3.msra.mxu1 %v14347_v44 }
 0x67e   :  { %12053 = vmatpush3.msra.mxu0 %v14234_v60  ;;  %12063 = vmatprep.subr.mxu1 %v13516_v21  ;;  %v13103_v56 = vpop.eup %13102 }
 0x67f   :  { %v3531_v55 = vadd.f32 %v3530_v41, %v3068_v38  ;;  %12054 = vmatprep.subr.mxu0 %v13516_v21  ;;  %12064 = vmatpush3.msra.mxu1 %v14353_v18  ;;  %v3533_v4 = vsub.f32 1.0, %v13103_v56  ;;  %v3535_v57 = vmul.f32 %v13103_v56, %v14384_v22  ;;  %v3542_v22 = vld [vmem:[#allocation2 + $0x28] sm:$0xff] }
 0x680   :  { %12055 = vmatpush3.msra.mxu0 %v14240_v63  ;;  %12065 = vmatprep.subr.mxu1 %v13516_v21  ;;  %v3548_v56 = vld [vmem:[#allocation2 + $0xa8] sm:$0xff] }
 0x681   :  { %13104 = vtanh.f32 %v3531_v55  ;;  %12056 = vmatprep.subr.mxu0 %v13516_v21  ;;  %12066 = vmatpush3.msra.mxu1 %v14359_v48 }
 0x682   :  { %12057 = vmatpush3.msra.mxu0 %v14246_v9  ;;  %12067 = vmatprep.subr.mxu1 %v13516_v21 }
 0x683   :  { %12059 = vmatmul.mubr.msk.f32.vlgmr.msra.gmra.mxu0 %vm417_vm10, %v14431_v51  ;;  %12072 = vmatprep.subr.mxu0 %v13516_v21 }
 0x684   :  { %12073 = vmatpush3.msra.mxu0 %v14253_v10  ;;  %12068 = vmatpush3.msra.mxu1 %v14368_v47 }
 0x685   :  { %12074 = vmatprep.subr.mxu0 %v13516_v21  ;;  %12069 = vmatprep.mubr.msk.f32.mxu1 %vm13517_vm11, %v13516_v21 }
 0x686   :  { %12075 = vmatpush3.msra.mxu0 %v14260_v11  ;;  %12080 = vmatprep.mubr.msk.f32.mxu0 %vm13517_vm11, %v13516_v21 }
 0x687   :  { %12076 = vmatprep.subr.mxu0 %v13516_v21  ;;  %12083 = vmatprep.subr.mxu1 %v13516_v21 }
 0x688   :  { %12077 = vmatpush3.msra.mxu0 %v14267_v0 }
 0x689   :  { %12078 = vmatprep.subr.mxu0 %v13516_v21 }
 0x68a   :  { %12079 = vmatpush3.msra.mxu0 %v14271_v5 }
 0x68b   :  { %12094 = vmatprep.subr.mxu0 %v13516_v21 }
 0x68e   :  { %v13105_v20 = vpop.eup %13104 }
 0x68f   :  { %v3534_v30 = vmul.f32 %v13105_v20, %v3533_v4 }
 0x691   :  { %v14473_v59 = vadd.f32 %v3535_v57, %v3534_v30 }
 0x693   :  { %3540 = vst.msk [vmem:[#allocation4 + $0x18] sm:$0xff] %vm417_vm10, %v14473_v59  ;;  %12070 = vmatmul.mubr.msk.f32.vlgmr.msra.gmra.mxu1 %vm417_vm10, %v14473_v59  ;;  %12081 = vmatmul.mubr.msk.f32.vlgmr.msra.gmra.mxu0 %vm417_vm10, %v14473_v59 }
 0x694   :  { %12084 = vmatpush3.msra.mxu1 %v14284_v33  ;;  %12091 = vmatprep.mubr.msk.f32.mxu1 %vm13517_vm11, %v13516_v21 }
 0x695   :  { %12085 = vmatprep.subr.mxu1 %v13516_v21  ;;  %12095 = vmatpush3.msra.mxu0 %v14180_v2 }
 0x696   :  { %12086 = vmatpush3.msra.mxu1 %v14291_v1  ;;  %12096 = vmatprep.subr.mxu0 %v13516_v21 }
 0x697   :  { %12087 = vmatprep.subr.mxu1 %v13516_v21  ;;  %12097 = vmatpush3.msra.mxu0 %v14186_v3 }
 0x698   :  { %12088 = vmatpush3.msra.mxu1 %v14297_v34  ;;  %12098 = vmatprep.subr.mxu0 %v13516_v21 }
 0x699   :  { %12089 = vmatprep.subr.mxu1 %v13516_v21  ;;  %12099 = vmatpush3.msra.mxu0 %v14192_v13 }
 0x69a   :  { %12090 = vmatpush3.msra.mxu1 %v14303_v35  ;;  %12100 = vmatprep.subr.mxu0 %v13516_v21 }
 0x69b   :  { %12092 = vmatmul.mubr.msk.f32.vlgmr.msra.gmra.mxu1 %vm417_vm10, %v14473_v59  ;;  %12105 = vmatprep.subr.mxu1 %v13516_v21 }
 0x69c   :  { %12106 = vmatpush3.msra.mxu1 %v14310_v36  ;;  %12101 = vmatpush3.msra.mxu0 %v14201_v14 }
 0x69d   :  { %12107 = vmatprep.subr.mxu1 %v13516_v21  ;;  %12102 = vmatprep.mubr.msk.f32.mxu0 %vm13517_vm11, %v13516_v21 }
 0x69e   :  { %12108 = vmatpush3.msra.mxu1 %v14317_v37  ;;  %12113 = vmatprep.mubr.msk.f32.mxu1 %vm13517_vm11, %v13516_v21 }
 0x69f   :  { %12109 = vmatprep.subr.mxu1 %v13516_v21  ;;  %12116 = vmatprep.subr.mxu0 %v13516_v21 }
 0x6a0   :  { %12110 = vmatpush3.msra.mxu1 %v14324_v39 }
 0x6a1   :  { %12111 = vmatprep.subr.mxu1 %v13516_v21 }
 0x6a2   :  { %12112 = vmatpush3.msra.mxu1 %v14328_v7 }
 0x6a3   :  { %12127 = vmatprep.subr.mxu1 %v13516_v21 }
 0x73b   :  { %v3627_v62 = vpop.f32.mrf.mxu0  ;;  %v3697_v12 = vpop.f32.mrf.mxu1 }
 0x73c   :  { %v3771_v15 = vadd.f32 %v3627_v62, %v3542_v22  ;;  %v3778_v8 = vadd.f32 %v3697_v12, %v3545_v40  ;;  %v14520_v40 = vld [vmem:[%s15904_s6 + $0x1] ss:$0 sm:$0xff] }
 0x73d   :  { %v12038_v16 = vpop.f32.mrf.mxu0  ;;  %v12049_v17 = vpop.f32.mrf.mxu1 }
 0x73e   :  { %v10658_v6 = vmul.f32 -1.442695, %v3771_v15  ;;  %v10659_v29 = vmul.f32 -1.442695, %v3778_v8 }
 0x740   :  { %13106 = vpow2.f32 %v10658_v6 }
 0x741   :  { %13108 = vpow2.f32 %v10659_v29 }
 0x743   :  { %v3767_v27 = vpop.f32.mrf.mxu0 }
 0x744   :  { %v3768_v28 = vadd.f32 %v14427_v42, %v3767_v27 }
 0x745   :  { %v12060_v43 = vpop.f32.mrf.mxu0 }
 0x746   :  { %v3557_v43 = vld [vmem:[#allocation2 + $0x150] sm:$0xff] }
 0x74d   :  { %v13107_v45 = vpop.eup %13106 }
 0x74e   :  { %v3775_v46 = vadd.f32 1.0, %v13107_v45  ;;  %v13109_v23 = vpop.eup %13108 }
 0x74f   :  { %v3782_v26 = vadd.f32 1.0, %v13109_v23 }
 0x750   :  { %13110 = vrcp.f32 %v3775_v46 }
 0x753   :  { %v3861_v52 = vpop.f32.mrf.mxu1  ;;  %v3931_v54 = vpop.f32.mrf.mxu0 }
 0x754   :  { %v4005_v61 = vadd.f32 %v3861_v52, %v3551_v49  ;;  %v4012_v25 = vadd.f32 %v3931_v54, %v3554_v24 }
 0x755   :  { %v12071_v19 = vpop.f32.mrf.mxu1  ;;  %v12082_v32 = vpop.f32.mrf.mxu0 }
 0x756   :  { %v10663_v58 = vmul.f32 -1.442695, %v4005_v61  ;;  %v10664_v41 = vmul.f32 -1.442695, %v4012_v25  ;;  %v4034_v19 = vld [vmem:[#allocation2 + $0x70] sm:$0xff] }
 0x758   :  { %13112 = vpow2.f32 %v10663_v58 }
 0x759   :  { %13114 = vrcp.f32 %v3782_v26 }
 0x75a   :  { %13116 = vpow2.f32 %v10664_v41 }
 0x75b   :  { %v4001_v50 = vpop.f32.mrf.mxu1 }
 0x75c   :  { %v4002_v8 = vadd.f32 %v14520_v40, %v4001_v50 }
 0x75d   :  { %v13111_v53 = vpop.eup %13110  ;;  %v12093_v38 = vpop.f32.mrf.mxu1 }
 0x75e   :  { %v3785_v55 = vmul.f32 %v13111_v53, %v3768_v28 }
 0x760   :  { %v3786_v4 = vadd.f32 %v3785_v55, %v3548_v56  ;;  %v4043_v56 = vld [vmem:[#allocation2 + $0x108] sm:$0xff] }
 0x762   :  { %13118 = vtanh.f32 %v3786_v4 }
 0x765   :  { %v13113_v20 = vpop.eup %13112 }
 0x766   :  { %v4009_v30 = vadd.f32 1.0, %v13113_v20  ;;  %v13115_v57 = vpop.eup %13114 }
 0x767   :  { %v13117_v22 = vpop.eup %13116  ;;  %v3788_v62 = vsub.f32 1.0, %v13115_v57  ;;  %v3790_v16 = vmul.f32 %v13115_v57, %v14431_v51 }
 0x768   :  { %13120 = vrcp.f32 %v4009_v30  ;;  %v4016_v17 = vadd.f32 1.0, %v13117_v22 }
 0x76a   :  { %13122 = vrcp.f32 %v4016_v17 }
 0x76f   :  { %v13119_v12 = vpop.eup %13118 }
 0x770   :  { %v3789_v15 = vmul.f32 %v13119_v12, %v3788_v62 }
 0x772   :  { %v14515_v6 = vadd.f32 %v3790_v16, %v3789_v15  ;;  %v4037_v16 = vld [vmem:[#allocation2 + $0xb0] sm:$0xff] }
 0x774   :  { %4027 = vst.msk [vmem:[#allocation3 + $0x28] sm:$0xff] %vm417_vm10, %v14515_v6  ;;  %12103 = vmatmul.mubr.msk.f32.vlgmr.msra.gmra.mxu0 %vm417_vm10, %v14515_v6  ;;  %12114 = vmatmul.mubr.msk.f32.vlgmr.msra.gmra.mxu1 %vm417_vm10, %v14515_v6 }
 0x775   :  { %v13121_v51 = vpop.eup %13120  ;;  %12117 = vmatpush3.msra.mxu0 %v14227_v31  ;;  %12124 = vmatprep.mubr.msk.f32.mxu0 %vm13517_vm11, %v13516_v21 }
 0x776   :  { %v4019_v27 = vmul.f32 %v13121_v51, %v4002_v8  ;;  %12118 = vmatprep.subr.mxu0 %v13516_v21  ;;  %12128 = vmatpush3.msra.mxu1 %v14347_v44 }
 0x777   :  { %12119 = vmatpush3.msra.mxu0 %v14234_v60  ;;  %12129 = vmatprep.subr.mxu1 %v13516_v21  ;;  %v13123_v45 = vpop.eup %13122 }
 0x778   :  { %v4020_v29 = vadd.f32 %v4019_v27, %v3557_v43  ;;  %12120 = vmatprep.subr.mxu0 %v13516_v21  ;;  %12130 = vmatpush3.msra.mxu1 %v14353_v18  ;;  %v4022_v46 = vsub.f32 1.0, %v13123_v45  ;;  %v4024_v54 = vmul.f32 %v13123_v45, %v14473_v59 }
 0x779   :  { %12121 = vmatpush3.msra.mxu0 %v14240_v63  ;;  %12131 = vmatprep.subr.mxu1 %v13516_v21 }
 0x77a   :  { %13124 = vtanh.f32 %v4020_v29  ;;  %12122 = vmatprep.subr.mxu0 %v13516_v21  ;;  %12132 = vmatpush3.msra.mxu1 %v14359_v48 }
 0x77b   :  { %12123 = vmatpush3.msra.mxu0 %v14246_v9  ;;  %12133 = vmatprep.subr.mxu1 %v13516_v21 }
 0x77c   :  { %12125 = vmatmul.mubr.msk.f32.vlgmr.msra.gmra.mxu0 %vm417_vm10, %v14515_v6  ;;  %12138 = vmatprep.subr.mxu0 %v13516_v21 }
 0x77d   :  { %12139 = vmatpush3.msra.mxu0 %v14253_v10  ;;  %12134 = vmatpush3.msra.mxu1 %v14368_v47 }
 0x77e   :  { %12140 = vmatprep.subr.mxu0 %v13516_v21  ;;  %12135 = vmatprep.mubr.msk.f32.mxu1 %vm13517_vm11, %v13516_v21 }
 0x77f   :  { %12141 = vmatpush3.msra.mxu0 %v14260_v11  ;;  %12146 = vmatprep.mubr.msk.f32.mxu0 %vm13517_vm11, %v13516_v21 }
 0x780   :  { %12142 = vmatprep.subr.mxu0 %v13516_v21  ;;  %12149 = vmatprep.subr.mxu1 %v13516_v21 }
 0x781   :  { %12143 = vmatpush3.msra.mxu0 %v14267_v0 }
 0x782   :  { %12144 = vmatprep.subr.mxu0 %v13516_v21 }
 0x783   :  { %12145 = vmatpush3.msra.mxu0 %v14271_v5 }
 0x784   :  { %12160 = vmatprep.subr.mxu0 %v13516_v21 }
 0x787   :  { %v13125_v49 = vpop.eup %13124 }
 0x788   :  { %v4023_v52 = vmul.f32 %v13125_v49, %v4022_v46 }
 0x78a   :  { %v14562_v61 = vadd.f32 %v4024_v54, %v4023_v52 }
 0x78c   :  { %4029 = vst.msk [vmem:[#allocation4 + $0x10] sm:$0xff] %vm417_vm10, %v14562_v61  ;;  %12136 = vmatmul.mubr.msk.f32.vlgmr.msra.gmra.mxu1 %vm417_vm10, %v14562_v61  ;;  %12147 = vmatmul.mubr.msk.f32.vlgmr.msra.gmra.mxu0 %vm417_vm10, %v14562_v61 }
 0x78d   :  { %12150 = vmatpush3.msra.mxu1 %v14284_v33  ;;  %12157 = vmatprep.mubr.msk.f32.mxu1 %vm13517_vm11, %v13516_v21 }
 0x78e   :  { %12151 = vmatprep.subr.mxu1 %v13516_v21  ;;  %12161 = vmatpush3.msra.mxu0 %v14180_v2  ;;  %v4031_v2 = vld [vmem:[#allocation2 + $0x30] sm:$0xff] }
 0x78f   :  { %12152 = vmatpush3.msra.mxu1 %v14291_v1  ;;  %12162 = vmatprep.subr.mxu0 %v13516_v21 }
 0x790   :  { %12153 = vmatprep.subr.mxu1 %v13516_v21  ;;  %12163 = vmatpush3.msra.mxu0 %v14186_v3 }
 0x791   :  { %12154 = vmatpush3.msra.mxu1 %v14297_v34  ;;  %12164 = vmatprep.subr.mxu0 %v13516_v21 }
 0x792   :  { %12155 = vmatprep.subr.mxu1 %v13516_v21  ;;  %12165 = vmatpush3.msra.mxu0 %v14192_v13 }
 0x793   :  { %12156 = vmatpush3.msra.mxu1 %v14303_v35  ;;  %12166 = vmatprep.subr.mxu0 %v13516_v21 }
 0x794   :  { %12158 = vmatmul.mubr.msk.f32.vlgmr.msra.gmra.mxu1 %vm417_vm10, %v14562_v61  ;;  %12171 = vmatprep.subr.mxu1 %v13516_v21 }
 0x795   :  { %12172 = vmatpush3.msra.mxu1 %v14310_v36  ;;  %12167 = vmatpush3.msra.mxu0 %v14201_v14 }
 0x796   :  { %12173 = vmatprep.subr.mxu1 %v13516_v21  ;;  %12168 = vmatprep.mubr.msk.f32.mxu0 %vm13517_vm11, %v13516_v21 }
 0x797   :  { %12174 = vmatpush3.msra.mxu1 %v14317_v37  ;;  %12179 = vmatprep.mubr.msk.f32.mxu1 %vm13517_vm11, %v13516_v21 }
 0x798   :  { %12175 = vmatprep.subr.mxu1 %v13516_v21  ;;  %12182 = vmatprep.subr.mxu0 %v13516_v21 }
 0x799   :  { %12176 = vmatpush3.msra.mxu1 %v14324_v39 }
 0x79a   :  { %12177 = vmatprep.subr.mxu1 %v13516_v21 }
 0x79b   :  { %12178 = vmatpush3.msra.mxu1 %v14328_v7  ;;  %v4040_v7 = vld [vmem:[#allocation2 + $0xc8] sm:$0xff] }
 0x79c   :  { %12193 = vmatprep.subr.mxu1 %v13516_v21 }
 0x834   :  { %v4116_v3 = vpop.f32.mrf.mxu0  ;;  %v4186_v13 = vpop.f32.mrf.mxu1 }
 0x835   :  { %v4260_v14 = vadd.f32 %v4116_v3, %v4031_v2  ;;  %v4267_v32 = vadd.f32 %v4186_v13, %v4034_v19  ;;  %v4046_v13 = vld [vmem:[#allocation2 + $0x148] sm:$0xff]  ;;  %v5317_v19 = vld [vmem:[#allocation10 + $0x40] sm:$0xff] }
 0x836   :  { %v12104_v36 = vpop.f32.mrf.mxu0  ;;  %v12115_v37 = vpop.f32.mrf.mxu1 }
 0x837   :  { %v10668_v59 = vmul.f32 -1.442695, %v4260_v14  ;;  %v10669_v24 = vmul.f32 -1.442695, %v4267_v32  ;;  %v5320_v36 = vld [vmem:[#allocation10 + $0x58] sm:$0xff]  ;;  %v5319_v37 = vld [vmem:[#allocation10 + $0x50] sm:$0xff] }
 0x838   :  { %v14692_v32 = vld [vmem:[#allocation10 + $0x98] sm:$0xff] }
 0x839   :  { %13126 = vpow2.f32 %v10668_v59  ;;  %v5318_v59 = vld [vmem:[#allocation10 + $0x48] sm:$0xff] }
 0x83a   :  { %13128 = vpow2.f32 %v10669_v24  ;;  %v5032_v24 = vld [vmem:[#allocation10 + $0x28] sm:$0xff] }
 0x83c   :  { %v4256_v58 = vpop.f32.mrf.mxu0 }
 0x83d   :  { %v4257_v57 = vadd.f32 %v14427_v42, %v4256_v58  ;;  %v5034_v58 = vld [vmem:[#allocation10 + $0x38] sm:$0xff] }
 0x83e   :  { %v12126_v23 = vpop.f32.mrf.mxu0 }
 0x83f   :  { %v5033_v23 = vld [vmem:[#allocation10 + $0x30] sm:$0xff] }
 0x846   :  { %v13127_v39 = vpop.eup %13126 }
 0x847   :  { %v4264_v25 = vadd.f32 1.0, %v13127_v39  ;;  %v13129_v55 = vpop.eup %13128  ;;  %v5031_v39 = vld [vmem:[#allocation10 + $0x20] sm:$0xff] }
 0x848   :  { %v4271_v20 = vadd.f32 1.0, %v13129_v55  ;;  %v4523_v55 = vld [vmem:[#allocation2 + $0x78] sm:$0xff] }
 0x849   :  { %13130 = vrcp.f32 %v4264_v25  ;;  %v14695_v25 = vld [vmem:[#allocation10 + $0x78] sm:$0xff] }
 0x84c   :  { %v4350_v26 = vpop.f32.mrf.mxu1  ;;  %v4420_v50 = vpop.f32.mrf.mxu0 }
 0x84d   :  { %v4494_v28 = vadd.f32 %v4350_v26, %v4040_v7  ;;  %v4501_v4 = vadd.f32 %v4420_v50, %v4043_v56  ;;  %v4520_v7 = vld [vmem:[#allocation2 + $0x38] sm:$0xff] }
 0x84e   :  { %v12137_v53 = vpop.f32.mrf.mxu1  ;;  %v12148_v41 = vpop.f32.mrf.mxu0 }
 0x84f   :  { %v10673_v38 = vmul.f32 -1.442695, %v4494_v28  ;;  %v10674_v62 = vmul.f32 -1.442695, %v4501_v4 }
 0x851   :  { %13132 = vpow2.f32 %v10673_v38 }
 0x852   :  { %13134 = vrcp.f32 %v4271_v20 }
 0x853   :  { %13136 = vpow2.f32 %v10674_v62  ;;  %v4529_v62 = vld [vmem:[#allocation2 + $0xc0] sm:$0xff] }
 0x854   :  { %v4490_v30 = vpop.f32.mrf.mxu1 }
 0x855   :  { %v4491_v2 = vadd.f32 %v14520_v40, %v4490_v30 }
 0x856   :  { %v13131_v22 = vpop.eup %13130  ;;  %v12159_v12 = vpop.f32.mrf.mxu1 }
 0x857   :  { %v4274_v15 = vmul.f32 %v13131_v22, %v4257_v57 }
 0x859   :  { %v4275_v17 = vadd.f32 %v4274_v15, %v4037_v16 }
 0x85b   :  { %13138 = vtanh.f32 %v4275_v17 }
 0x85e   :  { %v13133_v8 = vpop.eup %13132 }
 0x85f   :  { %v4498_v51 = vadd.f32 1.0, %v13133_v8  ;;  %v13135_v27 = vpop.eup %13134 }
 0x860   :  { %v13137_v43 = vpop.eup %13136  ;;  %v4277_v29 = vsub.f32 1.0, %v13135_v27  ;;  %v4279_v49 = vmul.f32 %v13135_v27, %v14515_v6 }
 0x861   :  { %13140 = vrcp.f32 %v4498_v51  ;;  %v4505_v52 = vadd.f32 1.0, %v13137_v43  ;;  %v4532_v43 = vld [vmem:[#allocation2 + $0x100] sm:$0xff] }
 0x863   :  { %13142 = vrcp.f32 %v4505_v52 }
 0x868   :  { %v13139_v45 = vpop.eup %13138 }
 0x869   :  { %v4278_v46 = vmul.f32 %v13139_v45, %v4277_v29 }
 0x86b   :  { %v14604_v54 = vadd.f32 %v4279_v49, %v4278_v46 }
 0x86d   :  { %4516 = vst.msk [vmem:[#allocation3 + $0x30] sm:$0xff] %vm417_vm10, %v14604_v54  ;;  %12169 = vmatmul.mubr.msk.f32.vlgmr.msra.gmra.mxu0 %vm417_vm10, %v14604_v54  ;;  %12180 = vmatmul.mubr.msk.f32.vlgmr.msra.gmra.mxu1 %vm417_vm10, %v14604_v54 }
 0x86e   :  { %v13141_v3 = vpop.eup %13140  ;;  %12183 = vmatpush3.msra.mxu0 %v14227_v31  ;;  %12190 = vmatprep.mubr.msk.f32.mxu0 %vm13517_vm11, %v13516_v21 }
 0x86f   :  { %v4508_v6 = vmul.f32 %v13141_v3, %v4491_v2  ;;  %12184 = vmatprep.subr.mxu0 %v13516_v21  ;;  %12194 = vmatpush3.msra.mxu1 %v14347_v44  ;;  %v14672_v44 = vld [vmem:[#allocation3 + $0x10] sm:$0xff] }
 0x870   :  { %12185 = vmatpush3.msra.mxu0 %v14234_v60  ;;  %12195 = vmatprep.subr.mxu1 %v13516_v21  ;;  %v13143_v31 = vpop.eup %13142 }
 0x871   :  { %v4509_v14 = vadd.f32 %v4508_v6, %v4046_v13  ;;  %12186 = vmatprep.subr.mxu0 %v13516_v21  ;;  %12196 = vmatpush3.msra.mxu1 %v14353_v18  ;;  %v4511_v60 = vsub.f32 1.0, %v13143_v31  ;;  %v14676_v18 = vld [vmem:[#allocation3 + $0x18] sm:$0xff] }
 0x872   :  { %12187 = vmatpush3.msra.mxu0 %v14240_v63  ;;  %12197 = vmatprep.subr.mxu1 %v13516_v21  ;;  %v4526_v13 = vld [vmem:[#allocation2 + $0xb8] sm:$0xff] }
 0x873   :  { %13144 = vtanh.f32 %v4509_v14  ;;  %12188 = vmatprep.subr.mxu0 %v13516_v21  ;;  %12198 = vmatpush3.msra.mxu1 %v14359_v48  ;;  %v14680_v48 = vld [vmem:[#allocation3 + $0x20] sm:$0xff] }
 0x874   :  { %12189 = vmatpush3.msra.mxu0 %v14246_v9  ;;  %12199 = vmatprep.subr.mxu1 %v13516_v21 }
 0x875   :  { %12191 = vmatmul.mubr.msk.f32.vlgmr.msra.gmra.mxu0 %vm417_vm10, %v14604_v54  ;;  %12204 = vmatprep.subr.mxu0 %v13516_v21 }
 0x876   :  { %12205 = vmatpush3.msra.mxu0 %v14253_v10  ;;  %12200 = vmatpush3.msra.mxu1 %v14368_v47  ;;  %v4513_v10 = vmul.f32 %v13143_v31, %v14562_v61  ;;  %v14684_v47 = vld [vmem:[#allocation3 + $0x28] sm:$0xff]  ;;  %v14688_v61 = vld [vmem:[#allocation3 + $0x30] sm:$0xff] }
 0x877   :  { %12206 = vmatprep.subr.mxu0 %v13516_v21  ;;  %12201 = vmatprep.mubr.msk.f32.mxu1 %vm13517_vm11, %v13516_v21 }
 0x878   :  { %12207 = vmatpush3.msra.mxu0 %v14260_v11  ;;  %12212 = vmatprep.mubr.msk.f32.mxu0 %vm13517_vm11, %v13516_v21 }
 0x879   :  { %12208 = vmatprep.subr.mxu0 %v13516_v21  ;;  %12215 = vmatprep.subr.mxu1 %v13516_v21 }
 0x87a   :  { %12209 = vmatpush3.msra.mxu0 %v14267_v0  ;;  %v5029_v0 = vld [vmem:[#allocation10 + $0x18] sm:$0xff] }
 0x87b   :  { %12210 = vmatprep.subr.mxu0 %v13516_v21 }
 0x87c   :  { %12211 = vmatpush3.msra.mxu0 %v14271_v5  ;;  %v5028_v5 = vld [vmem:[#allocation10 + $0x10] sm:$0xff] }
 0x87d   :  { %12226 = vmatprep.subr.mxu0 %v5034_v58 }
 0x880   :  { %v13145_v63 = vpop.eup %13144 }
 0x881   :  { %v4512_v9 = vmul.f32 %v13145_v63, %v4511_v60 }
 0x883   :  { %v14645_v11 = vadd.f32 %v4513_v10, %v4512_v9 }
 0x885   :  { %4518 = vst.msk [vmem:[#allocation4 + $0x8] sm:$0xff] %vm417_vm10, %v14645_v11  ;;  %12202 = vmatmul.mubr.msk.f32.vlgmr.msra.gmra.mxu1 %vm417_vm10, %v14645_v11  ;;  %12213 = vmatmul.mubr.msk.f32.vlgmr.msra.gmra.mxu0 %vm417_vm10, %v14645_v11 }
 0x886   :  { %12216 = vmatpush3.msra.mxu1 %v14284_v33  ;;  %12223 = vmatprep.mubr.msk.f32.mxu1 %vm13517_vm11, %v13516_v21  ;;  %v14664_v33 = vld [vmem:[#allocation3] sm:$0xff] }
 0x887   :  { %12217 = vmatprep.subr.mxu1 %v13516_v21  ;;  %12227 = vmatpush3.msra.mxu0 %v5034_v58 }
 0x888   :  { %12218 = vmatpush3.msra.mxu1 %v14291_v1  ;;  %v5027_v1 = vld [vmem:[#allocation10 + $0x8] sm:$0xff]  ;;  %12228 = vmatprep.subr.mxu0 %v5033_v23 }
 0x889   :  { %12219 = vmatprep.subr.mxu1 %v13516_v21  ;;  %12229 = vmatpush3.msra.mxu0 %v5033_v23 }
 0x88a   :  { %12220 = vmatpush3.msra.mxu1 %v14297_v34  ;;  %v5026_v34 = vld [vmem:[#allocation10] sm:$0xff]  ;;  %12230 = vmatprep.subr.mxu0 %v5032_v24 }
 0x88b   :  { %12221 = vmatprep.subr.mxu1 %v13516_v21  ;;  %12231 = vmatpush3.msra.mxu0 %v5032_v24 }
 0x88c   :  { %12222 = vmatpush3.msra.mxu1 %v14303_v35  ;;  %v14668_v35 = vld [vmem:[#allocation3 + $0x8] sm:$0xff]  ;;  %12232 = vmatprep.subr.mxu0 %v5031_v39 }
 0x88d   :  { %12224 = vmatmul.mubr.msk.f32.vlgmr.msra.gmra.mxu1 %vm417_vm10, %v14645_v11  ;;  %12246 = vmatprep.subr.mxu1 %v5029_v0 }
 0x88e   :  { %12247 = vmatpush3.msra.mxu1 %v5029_v0  ;;  %12254 = vmatprep.mubr.msk.f32.mxu1 %vm417_vm10, %v14664_v33 }
 0x88f   :  { %12248 = vmatprep.subr.mxu1 %v5028_v5  ;;  %12233 = vmatpush3.msra.mxu0 %v5031_v39  ;;  %v5561_v39 = vld [vmem:[#allocation10 + $0x80] sm:$0xff] }
 0x890   :  { %12249 = vmatpush3.msra.mxu1 %v5028_v5  ;;  %12266 = vmatprep.subr.mxu0 %v14695_v25 }
 0x891   :  { %12250 = vmatprep.subr.mxu1 %v5027_v1 }
 0x892   :  { %12251 = vmatpush3.msra.mxu1 %v5027_v1 }
 0x893   :  { %12252 = vmatprep.subr.mxu1 %v5026_v34 }
 0x894   :  { %12253 = vmatpush3.msra.mxu1 %v5026_v34 }
 0x895   :  { %12255 = vmatmul.mubr.msk.f32.vlgmr.msra.gmra.mxu1 %vm417_vm10, %v14668_v35  ;;  %12286 = vmatprep.subr.mxu1 %v5320_v36 }
 0x896   :  { %12257 = vmatprep.mubr.msk.f32.mxu1 %vm417_vm10, %v14672_v44  ;;  %12287 = vmatpush3.msra.mxu1 %v5320_v36 }
 0x897   :  { %12288 = vmatprep.subr.mxu1 %v5319_v37 }
 0x898   :  { %12289 = vmatpush3.msra.mxu1 %v5319_v37 }
 0x899   :  { %12258 = vmatmul.mubr.msk.f32.gmra.mxu1 %vm417_vm10, %v14676_v18  ;;  %12290 = vmatprep.subr.mxu1 %v5318_v59 }
 0x89a   :  { %12260 = vmatprep.mubr.msk.f32.mxu1 %vm417_vm10, %v14680_v48  ;;  %12291 = vmatpush3.msra.mxu1 %v5318_v59 }
 0x89b   :  { %12292 = vmatprep.subr.mxu1 %v5317_v19 }
 0x89c   :  { %12293 = vmatpush3.msra.mxu1 %v5317_v19  ;;  %v4535_v19 = vld [vmem:[#allocation2 + $0x140] sm:$0xff] }
 0x89d   :  { %12261 = vmatmul.mubr.msk.f32.gmra.mxu1 %vm417_vm10, %v14684_v47  ;;  %12326 = vmatprep.subr.mxu1 %v14692_v32 }
 0x89e   :  { %12263 = vmatprep.mubr.msk.f32.mxu1 %vm417_vm10, %v14688_v61 }
 0x92d   :  { %v4605_v26 = vpop.f32.mrf.mxu0  ;;  %v4675_v50 = vpop.f32.mrf.mxu1 }
 0x92e   :  { %v4749_v28 = vadd.f32 %v4605_v26, %v4520_v7  ;;  %v4756_v56 = vadd.f32 %v4675_v50, %v4523_v55  ;;  %v5808_v7 = vld [vmem:[#allocation10 + $0xd8] sm:$0xff]  ;;  %v5324_v55 = vld [vmem:[#allocation10 + $0x70] sm:$0xff] }
 0x92f   :  { %v12170_v53 = vpop.f32.mrf.mxu0  ;;  %v12181_v41 = vpop.f32.mrf.mxu1 }
 0x930   :  { %v10678_v38 = vmul.f32 -1.442695, %v4749_v28  ;;  %v10679_v30 = vmul.f32 -1.442695, %v4756_v56  ;;  %v5806_v56 = vld [vmem:[#allocation10 + $0xc8] sm:$0xff] }
 0x932   :  { %13146 = vpow2.f32 %v10678_v38  ;;  %v14737_v38 = vld [vmem:[#allocation4 + $0x8] sm:$0xff] }
 0x933   :  { %13148 = vpow2.f32 %v10679_v30  ;;  %v14750_v30 = vld [vmem:[#allocation4 + $0x18] sm:$0xff] }
 0x935   :  { %v4745_v4 = vpop.f32.mrf.mxu0 }
 0x936   :  { %v4746_v49 = vadd.f32 %v14427_v42, %v4745_v4  ;;  %v14743_v4 = vld [vmem:[#allocation4 + $0x10] sm:$0xff] }
 0x937   :  { %v12192_v20 = vpop.f32.mrf.mxu0 }
 0x938   :  { %v5323_v20 = vld [vmem:[#allocation10 + $0x68] sm:$0xff] }
 0x93f   :  { %v13147_v57 = vpop.eup %13146 }
 0x940   :  { %v4753_v22 = vadd.f32 1.0, %v13147_v57  ;;  %v13149_v27 = vpop.eup %13148  ;;  %v14756_v57 = vld [vmem:[#allocation4 + $0x20] sm:$0xff] }
 0x941   :  { %v4760_v45 = vadd.f32 1.0, %v13149_v27  ;;  %v5567_v27 = vld [vmem:[#allocation10 + $0xa8] sm:$0xff] }
 0x942   :  { %13150 = vrcp.f32 %v4753_v22  ;;  %v5322_v22 = vld [vmem:[#allocation10 + $0x60] sm:$0xff] }
 0x945   :  { %v4839_v12 = vpop.f32.mrf.mxu1  ;;  %v4909_v15 = vpop.f32.mrf.mxu0 }
 0x946   :  { %v4983_v16 = vadd.f32 %v4839_v12, %v4529_v62  ;;  %v4990_v29 = vadd.f32 %v4909_v15, %v4532_v43  ;;  %v14762_v62 = vld [vmem:[#allocation4 + $0x28] sm:$0xff]  ;;  %v14768_v12 = vld [vmem:[#allocation4 + $0x30] sm:$0xff]  ;;  %v5569_v15 = vld [vmem:[#allocation10 + $0xb8] sm:$0xff] }
 0x947   :  { %v12203_v17 = vpop.f32.mrf.mxu1  ;;  %v12214_v8 = vpop.f32.mrf.mxu0  ;;  %v6050_v43 = vld [vmem:[#allocation10 + $0x108] sm:$0xff] }
 0x948   :  { %v10683_v51 = vmul.f32 -1.442695, %v4983_v16  ;;  %v10684_v2 = vmul.f32 -1.442695, %v4990_v29  ;;  %v6052_v16 = vld [vmem:[#allocation10 + $0x118] sm:$0xff]  ;;  %v6051_v8 = vld [vmem:[#allocation10 + $0x110] sm:$0xff] }
 0x949   :  { %v14774_v17 = vld [vmem:[#allocation4 + $0x38] sm:$0xff]  ;;  %v5566_v29 = vld [vmem:[#allocation10 + $0xa0] sm:$0xff] }
 0x94a   :  { %13152 = vpow2.f32 %v10683_v51  ;;  %v5568_v51 = vld [vmem:[#allocation10 + $0xb0] sm:$0xff] }
 0x94b   :  { %13154 = vrcp.f32 %v4760_v45  ;;  %v6049_v45 = vld [vmem:[#allocation10 + $0x100] sm:$0xff] }
 0x94c   :  { %13156 = vpow2.f32 %v10684_v2  ;;  %v6295_v2 = vld [vmem:[#allocation10 + $0x150] sm:$0xff] }
 0x94d   :  { %v4979_v46 = vpop.f32.mrf.mxu1 }
 0x94e   :  { %v4980_v36 = vadd.f32 %v14520_v40, %v4979_v46  ;;  %v5562_v40 = vld [vmem:[#allocation10 + $0x88] sm:$0xff]  ;;  %v5813_v46 = vld [vmem:[#allocation10 + $0xf8] sm:$0xff] }
 0x94f   :  { %v13151_v52 = vpop.eup %13150  ;;  %v12225_v3 = vpop.f32.mrf.mxu1 }
 0x950   :  { %v4763_v6 = vmul.f32 %v13151_v52, %v4746_v49  ;;  %v6296_v49 = vld [vmem:[#allocation10 + $0x158] sm:$0xff]  ;;  %v5812_v52 = vld [vmem:[#allocation10 + $0xf0] sm:$0xff]  ;;  %v5811_v3 = vld [vmem:[#allocation10 + $0xe8] sm:$0xff] }
 0x952   :  { %v4764_v14 = vadd.f32 %v4763_v6, %v4526_v13  ;;  %v6294_v6 = vld [vmem:[#allocation10 + $0x148] sm:$0xff]  ;;  %v6293_v13 = vld [vmem:[#allocation10 + $0x140] sm:$0xff] }
 0x954   :  { %13158 = vtanh.f32 %v4764_v14  ;;  %v5810_v14 = vld [vmem:[#allocation10 + $0xe0] sm:$0xff] }
 0x957   :  { %v13153_v31 = vpop.eup %13152 }
 0x958   :  { %v4987_v60 = vadd.f32 1.0, %v13153_v31  ;;  %v13155_v63 = vpop.eup %13154  ;;  %v6057_v31 = vld [vmem:[#allocation10 + $0x138] sm:$0xff] }
 0x959   :  { %v13157_v9 = vpop.eup %13156  ;;  %v4766_v10 = vsub.f32 1.0, %v13155_v63  ;;  %v4768_v5 = vmul.f32 %v13155_v63, %v14604_v54  ;;  %v5563_v54 = vld [vmem:[#allocation10 + $0x90] sm:$0xff]  ;;  %v6301_v63 = vld [vmem:[#allocation10 + $0x178] sm:$0xff] }
 0x95a   :  { %13160 = vrcp.f32 %v4987_v60  ;;  %v4994_v34 = vadd.f32 1.0, %v13157_v9  ;;  %v6056_v60 = vld [vmem:[#allocation10 + $0x130] sm:$0xff]  ;;  %v14897_v9 = vld [vmem:[#allocation12 + $0x78] sm:$0xff] }
 0x95c   :  { %13162 = vrcp.f32 %v4994_v34  ;;  %v14926_v34 = vld [vmem:[%s15900_s2 + $0x18] sm:$0xff] }
 0x961   :  { %v13159_v0 = vpop.eup %13158 }
 0x962   :  { %v4767_v1 = vmul.f32 %v13159_v0, %v4766_v10  ;;  %v6300_v10 = vld [vmem:[#allocation10 + $0x170] sm:$0xff] }
 0x963   :  { %v14907_v0 = vld [vmem:[#allocation12 + $0x70] sm:$0xff] }
 0x964   :  { %v4769_v42 = vadd.f32 %v4768_v5, %v4767_v1  ;;  %v14912_v5 = vld [vmem:[#allocation12 + $0x68] sm:$0xff] }
 0x965   :  { %v6299_v1 = vld [vmem:[#allocation10 + $0x168] sm:$0xff] }
 0x966   :  { %5005 = vst.msk [vmem:[#allocation3 + $0x38] sm:$0xff] %vm417_vm10, %v4769_v42  ;;  %5007 = vst.msk [vmem:[#allocation14] sm:$0xff] %vm417_vm10, %v4769_v42  ;;  %v14918_v42 = vld [vmem:[#allocation12 + $0x60] sm:$0xff] }
 0x967   :  { %v13161_v37 = vpop.eup %13160 }
 0x968   :  { %v4997_v59 = vmul.f32 %v13161_v37, %v4980_v36  ;;  %v6298_v36 = vld [vmem:[#allocation10 + $0x160] sm:$0xff]  ;;  %v14934_v37 = vld [vmem:[#allocation12 + $0xb8] sm:$0xff] }
 0x969   :  { %v13163_v24 = vpop.eup %13162 }
 0x96a   :  { %v4998_v58 = vadd.f32 %v4997_v59, %v4535_v19  ;;  %v5000_v26 = vsub.f32 1.0, %v13163_v24  ;;  %v14939_v59 = vld [vmem:[#allocation12 + $0xb0] sm:$0xff]  ;;  %v14946_v19 = vld [vmem:[#allocation12 + $0xa8] sm:$0xff] }
 0x96c   :  { %13164 = vtanh.f32 %v4998_v58  ;;  %v14951_v58 = vld [vmem:[#allocation12 + $0x18] sm:$0xff] }
 0x96d   :  { %v14703_v23 = vld [vmem:[#allocation3 + $0x38] sm:$0xff] }
 0x96e   :  { %12264 = vmatmul.mubr.msk.f32.gmra.mxu1 %vm417_vm10, %v14703_v23 }
 0x96f   :  { %12294 = vmatprep.mubr.msk.f32.mxu1 %vm417_vm10, %v14664_v33 }
 0x972   :  { %12295 = vmatmul.mubr.msk.f32.vlgmr.msra.gmra.mxu1 %vm417_vm10, %v14668_v35 }
 0x973   :  { %12297 = vmatprep.mubr.msk.f32.mxu1 %vm417_vm10, %v14672_v44  ;;  %12327 = vmatpush3.msra.mxu1 %v14692_v32  ;;  %v5002_v32 = vmul.f32 %v13163_v24, %v14645_v11  ;;  %v5807_v11 = vld [vmem:[#allocation10 + $0xd0] sm:$0xff]  ;;  %v14977_v24 = vld [vmem:[#allocation12] sm:$0xff] }
 0x974   :  { %12328 = vmatprep.subr.mxu1 %v5563_v54 }
 0x975   :  { %12329 = vmatpush3.msra.mxu1 %v5563_v54  ;;  %v14961_v54 = vld [vmem:[#allocation12 + $0x10] sm:$0xff] }
 0x976   :  { %12298 = vmatmul.mubr.msk.f32.gmra.mxu1 %vm417_vm10, %v14676_v18  ;;  %12330 = vmatprep.subr.mxu1 %v5562_v40 }
 0x977   :  { %12300 = vmatprep.mubr.msk.f32.mxu1 %vm417_vm10, %v14680_v48  ;;  %12331 = vmatpush3.msra.mxu1 %v5562_v40  ;;  %v14968_v40 = vld [vmem:[#allocation12 + $0x8] sm:$0xff] }
 0x978   :  { %12332 = vmatprep.subr.mxu1 %v5561_v39 }
 0x979   :  { %v13165_v50 = vpop.eup %13164  ;;  %12333 = vmatpush3.msra.mxu1 %v5561_v39  ;;  %v15002_v39 = vld [vmem:[#allocation12 + $0x58] sm:$0xff] }
 0x97a   :  { %v5001_v28 = vmul.f32 %v13165_v50, %v5000_v26  ;;  %12301 = vmatmul.mubr.msk.f32.gmra.mxu1 %vm417_vm10, %v14684_v47  ;;  %12366 = vmatprep.subr.mxu1 %v5808_v7  ;;  %v15014_v26 = vld [vmem:[#allocation12 + $0x48] sm:$0xff]  ;;  %v15018_v50 = vld [vmem:[#allocation12 + $0x40] sm:$0xff] }
 0x97b   :  { %12303 = vmatprep.mubr.msk.f32.mxu1 %vm417_vm10, %v14688_v61 }
 0x97c   :  { %v5003_v53 = vadd.f32 %v5002_v32, %v5001_v28  ;;  %v15022_v32 = vld [vmem:[#allocation12 + $0x98] sm:$0xff]  ;;  %v15028_v28 = vld [vmem:[#allocation12 + $0x90] sm:$0xff] }
 0x97e   :  { %5006 = vst.msk [vmem:[#allocation4] sm:$0xff] %vm417_vm10, %v5003_v53  ;;  %5009 = vst.msk [vmem:[#allocation14 + $0x8] sm:$0xff] %vm417_vm10, %v5003_v53  ;;  %12304 = vmatmul.mubr.msk.f32.gmra.mxu1 %vm417_vm10, %v14703_v23  ;;  %v15034_v53 = vld [vmem:[#allocation12 + $0x88] sm:$0xff] }
 0x97f   :  { %12334 = vmatprep.mubr.msk.f32.mxu1 %vm417_vm10, %v14664_v33 }
 0x982   :  { %12335 = vmatmul.mubr.msk.f32.vlgmr.msra.gmra.mxu1 %vm417_vm10, %v14668_v35 }
 0x983   :  { %12337 = vmatprep.mubr.msk.f32.mxu1 %vm417_vm10, %v14672_v44  ;;  %12367 = vmatpush3.msra.mxu1 %v5808_v7  ;;  %v15008_v7 = vld [vmem:[#allocation12 + $0x50] sm:$0xff] }
 0x984   :  { %12368 = vmatprep.subr.mxu1 %v5807_v11 }
 0x985   :  { %v14733_v41 = vld [vmem:[#allocation4] sm:$0xff]  ;;  %12369 = vmatpush3.msra.mxu1 %v5807_v11 }
 0x986   :  { %12234 = vmatprep.mubr.msk.f32.mxu0 %vm417_vm10, %v14733_v41  ;;  %12338 = vmatmul.mubr.msk.f32.gmra.mxu1 %vm417_vm10, %v14676_v18  ;;  %v15038_v11 = vld [vmem:[#allocation12 + $0x80] sm:$0xff] }
 0x987   :  { %12235 = vmatmul.mubr.msk.f32.vlgmr.msra.gmra.mxu0 %vm417_vm10, %v14737_v38  ;;  %12340 = vmatprep.mubr.msk.f32.mxu1 %vm417_vm10, %v14680_v48 }
 0x988   :  { %12267 = vmatpush3.msra.mxu0 %v14695_v25  ;;  %12237 = vmatprep.mubr.msk.f32.mxu0 %vm417_vm10, %v14743_v4  ;;  %v5805_v25 = vld [vmem:[#allocation10 + $0xc0] sm:$0xff] }
 0x989   :  { %12268 = vmatprep.subr.mxu0 %v5324_v55  ;;  %12370 = vmatprep.subr.mxu1 %v5806_v56 }
 0x98a   :  { %12269 = vmatpush3.msra.mxu0 %v5324_v55  ;;  %12341 = vmatmul.mubr.msk.f32.gmra.mxu1 %vm417_vm10, %v14684_v47 }
 0x98b   :  { %12238 = vmatmul.mubr.msk.f32.gmra.mxu0 %vm417_vm10, %v14750_v30  ;;  %12343 = vmatprep.mubr.msk.f32.mxu1 %vm417_vm10, %v14688_v61 }
 0x98c   :  { %12240 = vmatprep.mubr.msk.f32.mxu0 %vm417_vm10, %v14756_v57  ;;  %12270 = vmatprep.subr.mxu0 %v5323_v20 }
 0x98d   :  { %12271 = vmatpush3.msra.mxu0 %v5323_v20  ;;  %12371 = vmatpush3.msra.mxu1 %v5806_v56 }
 0x98e   :  { %12344 = vmatmul.mubr.msk.f32.gmra.mxu1 %vm417_vm10, %v14703_v23  ;;  %12372 = vmatprep.subr.mxu1 %v5805_v25 }
 0x98f   :  { %12241 = vmatmul.mubr.msk.f32.gmra.mxu0 %vm417_vm10, %v14762_v62  ;;  %12374 = vmatprep.mubr.msk.f32.mxu1 %vm417_vm10, %v14664_v33 }
 0x990   :  { %12243 = vmatprep.mubr.msk.f32.mxu0 %vm417_vm10, %v14768_v12  ;;  %12272 = vmatprep.subr.mxu0 %v5322_v22 }
 0x991   :  { %12373 = vmatpush3.msra.mxu1 %v5805_v25  ;;  %12273 = vmatpush3.msra.mxu0 %v5322_v22 }
 0x992   :  { %12375 = vmatmul.mubr.msk.f32.vlgmr.msra.gmra.mxu1 %vm417_vm10, %v14668_v35  ;;  %12306 = vmatprep.subr.mxu0 %v5569_v15 }
 0x993   :  { %12244 = vmatmul.mubr.msk.f32.gmra.mxu0 %vm417_vm10, %v14774_v17  ;;  %12377 = vmatprep.mubr.msk.f32.mxu1 %vm417_vm10, %v14672_v44 }
 0x994   :  { %12274 = vmatprep.mubr.msk.f32.mxu0 %vm417_vm10, %v14733_v41  ;;  %12406 = vmatprep.subr.mxu1 %v6052_v16 }
 0x995   :  { %12407 = vmatpush3.msra.mxu1 %v6052_v16 }
 0x996   :  { %12378 = vmatmul.mubr.msk.f32.gmra.mxu1 %vm417_vm10, %v14676_v18  ;;  %12408 = vmatprep.subr.mxu1 %v6051_v8 }
 0x997   :  { %12275 = vmatmul.mubr.msk.f32.vlgmr.msra.gmra.mxu0 %vm417_vm10, %v14737_v38  ;;  %12380 = vmatprep.mubr.msk.f32.mxu1 %vm417_vm10, %v14680_v48 }
 0x998   :  { %12307 = vmatpush3.msra.mxu0 %v5569_v15  ;;  %12277 = vmatprep.mubr.msk.f32.mxu0 %vm417_vm10, %v14743_v4 }
 0x999   :  { %12308 = vmatprep.subr.mxu0 %v5568_v51  ;;  %12409 = vmatpush3.msra.mxu1 %v6051_v8 }
 0x99a   :  { %12309 = vmatpush3.msra.mxu0 %v5568_v51  ;;  %12381 = vmatmul.mubr.msk.f32.gmra.mxu1 %vm417_vm10, %v14684_v47 }
 0x99b   :  { %12278 = vmatmul.mubr.msk.f32.gmra.mxu0 %vm417_vm10, %v14750_v30  ;;  %12383 = vmatprep.mubr.msk.f32.mxu1 %vm417_vm10, %v14688_v61 }
 0x99c   :  { %12280 = vmatprep.mubr.msk.f32.mxu0 %vm417_vm10, %v14756_v57  ;;  %12310 = vmatprep.subr.mxu0 %v5567_v27 }
 0x99d   :  { %12311 = vmatpush3.msra.mxu0 %v5567_v27  ;;  %12410 = vmatprep.subr.mxu1 %v6050_v43 }
 0x99e   :  { %12384 = vmatmul.mubr.msk.f32.gmra.mxu1 %vm417_vm10, %v14703_v23  ;;  %12312 = vmatprep.subr.mxu0 %v5566_v29 }
 0x99f   :  { %12281 = vmatmul.mubr.msk.f32.gmra.mxu0 %vm417_vm10, %v14762_v62  ;;  %12411 = vmatpush3.msra.mxu1 %v6050_v43 }
 0x9a0   :  { %12283 = vmatprep.mubr.msk.f32.mxu0 %vm417_vm10, %v14768_v12  ;;  %12414 = vmatprep.mubr.msk.f32.mxu1 %vm417_vm10, %v14664_v33 }
 0x9a1   :  { %12412 = vmatprep.subr.mxu1 %v6049_v45  ;;  %12313 = vmatpush3.msra.mxu0 %v5566_v29 }
 0x9a2   :  { %12413 = vmatpush3.msra.mxu1 %v6049_v45  ;;  %12346 = vmatprep.subr.mxu0 %v5813_v46  ;;  %v10701_v45 = vld [vmem:[%s15907_s9] ss:$0 sm:$0xff] }
 0x9a3   :  { %12284 = vmatmul.mubr.msk.f32.gmra.mxu0 %vm417_vm10, %v14774_v17  ;;  %12415 = vmatmul.mubr.msk.f32.vlgmr.msra.gmra.mxu1 %vm417_vm10, %v14668_v35 }
 0x9a4   :  { %12314 = vmatprep.mubr.msk.f32.mxu0 %vm417_vm10, %v14733_v41  ;;  %12417 = vmatprep.mubr.msk.f32.mxu1 %vm417_vm10, %v14672_v44 }
 0x9a5   :  { %12446 = vmatprep.subr.mxu1 %v6296_v49 }
 0x9a6   :  { %12447 = vmatpush3.msra.mxu1 %v6296_v49 }
 0x9a7   :  { %12315 = vmatmul.mubr.msk.f32.vlgmr.msra.gmra.mxu0 %vm417_vm10, %v14737_v38  ;;  %12418 = vmatmul.mubr.msk.f32.gmra.mxu1 %vm417_vm10, %v14676_v18 }
 0x9a8   :  { %12347 = vmatpush3.msra.mxu0 %v5813_v46  ;;  %12317 = vmatprep.mubr.msk.f32.mxu0 %vm417_vm10, %v14743_v4 }
 0x9a9   :  { %12420 = vmatprep.mubr.msk.f32.mxu1 %vm417_vm10, %v14680_v48  ;;  %12348 = vmatprep.subr.mxu0 %v5812_v52 }
 0x9aa   :  { %12349 = vmatpush3.msra.mxu0 %v5812_v52  ;;  %12448 = vmatprep.subr.mxu1 %v6295_v2 }
 0x9ab   :  { %12318 = vmatmul.mubr.msk.f32.gmra.mxu0 %vm417_vm10, %v14750_v30  ;;  %12421 = vmatmul.mubr.msk.f32.gmra.mxu1 %vm417_vm10, %v14684_v47 }
 0x9ac   :  { %12320 = vmatprep.mubr.msk.f32.mxu0 %vm417_vm10, %v14756_v57  ;;  %12423 = vmatprep.mubr.msk.f32.mxu1 %vm417_vm10, %v14688_v61 }
 0x9ad   :  { %12350 = vmatprep.subr.mxu0 %v5811_v3  ;;  %12449 = vmatpush3.msra.mxu1 %v6295_v2 }
 0x9ae   :  { %12351 = vmatpush3.msra.mxu0 %v5811_v3  ;;  %12450 = vmatprep.subr.mxu1 %v6294_v6 }
 0x9af   :  { %12321 = vmatmul.mubr.msk.f32.gmra.mxu0 %vm417_vm10, %v14762_v62  ;;  %12424 = vmatmul.mubr.msk.f32.gmra.mxu1 %vm417_vm10, %v14703_v23 }
 0x9b0   :  { %12323 = vmatprep.mubr.msk.f32.mxu0 %vm417_vm10, %v14768_v12  ;;  %12451 = vmatpush3.msra.mxu1 %v6294_v6 }
 0x9b1   :  { %12454 = vmatprep.mubr.msk.f32.mxu1 %vm417_vm10, %v14664_v33  ;;  %12452 = vmatprep.subr.mxu1 %v6293_v13  ;;  %v14853_v33 = vld [vmem:[#allocation12 + $0x38] sm:$0xff] }
 0x9b2   :  { %12352 = vmatprep.subr.mxu0 %v5810_v14  ;;  %12453 = vmatpush3.msra.mxu1 %v6293_v13 }
 0x9b3   :  { %12324 = vmatmul.mubr.msk.f32.gmra.mxu0 %vm417_vm10, %v14774_v17  ;;  %12455 = vmatmul.mubr.msk.f32.vlgmr.msra.gmra.mxu1 %vm417_vm10, %v14668_v35  ;;  %v6055_v35 = vld [vmem:[#allocation10 + $0x128] sm:$0xff] }
 0x9b4   :  { %12353 = vmatpush3.msra.mxu0 %v5810_v14  ;;  %12354 = vmatprep.mubr.msk.f32.mxu0 %vm417_vm10, %v14733_v41 }
 0x9b5   :  { %12457 = vmatprep.mubr.msk.f32.mxu1 %vm417_vm10, %v14672_v44  ;;  %12386 = vmatprep.subr.mxu0 %v6057_v31  ;;  %v14864_v44 = vld [vmem:[#allocation12 + $0x30] sm:$0xff] }
 0x9b6   :  { %12477 = vmatprep.subr.mxu1 %v13516_v21 }
 0x9b7   :  { %12355 = vmatmul.mubr.msk.f32.vlgmr.msra.gmra.mxu0 %vm417_vm10, %v14737_v38  ;;  %12458 = vmatmul.mubr.msk.f32.gmra.mxu1 %vm417_vm10, %v14676_v18  ;;  %v14872_v18 = vld [vmem:[#allocation12 + $0x28] sm:$0xff] }
 0x9b8   :  { %12387 = vmatpush3.msra.mxu0 %v6057_v31  ;;  %12357 = vmatprep.mubr.msk.f32.mxu0 %vm417_vm10, %v14743_v4 }
 0x9b9   :  { %12460 = vmatprep.mubr.msk.f32.mxu1 %vm417_vm10, %v14680_v48  ;;  %12388 = vmatprep.subr.mxu0 %v6056_v60  ;;  %v6054_v48 = vld [vmem:[#allocation10 + $0x120] sm:$0xff] }
 0x9ba   :  { %12389 = vmatpush3.msra.mxu0 %v6056_v60  ;;  %12478 = vmatpush3.msra.mxu1 %v14853_v33 }
 0x9bb   :  { %12358 = vmatmul.mubr.msk.f32.gmra.mxu0 %vm417_vm10, %v14750_v30  ;;  %12461 = vmatmul.mubr.msk.f32.gmra.mxu1 %vm417_vm10, %v14684_v47  ;;  %v14881_v47 = vld [vmem:[#allocation12 + $0x20] sm:$0xff] }
 0x9bc   :  { %12360 = vmatprep.mubr.msk.f32.mxu0 %vm417_vm10, %v14756_v57  ;;  %12463 = vmatprep.mubr.msk.f32.mxu1 %vm417_vm10, %v14688_v61  ;;  %v14887_v61 = vld [vmem:[%s15900_s2 + $0x10] sm:$0xff] }
 0x9bd   :  { %12479 = vmatprep.subr.mxu1 %v13516_v21  ;;  %12390 = vmatprep.subr.mxu0 %v6055_v35 }
 0x9be   :  { %12480 = vmatpush3.msra.mxu1 %v14864_v44  ;;  %12391 = vmatpush3.msra.mxu0 %v6055_v35 }
 0x9bf   :  { %12361 = vmatmul.mubr.msk.f32.gmra.mxu0 %vm417_vm10, %v14762_v62  ;;  %12464 = vmatmul.mubr.msk.f32.gmra.mxu1 %vm417_vm10, %v14703_v23  ;;  %v14957_v23 = vld [vmem:[#allocation12 + $0xa0] sm:$0xff] }
 0x9c0   :  { %12481 = vmatprep.subr.mxu1 %v13516_v21  ;;  %12363 = vmatprep.mubr.msk.f32.mxu0 %vm417_vm10, %v14768_v12 }
 0x9c1   :  { %12482 = vmatpush3.msra.mxu1 %v14872_v18  ;;  %12392 = vmatprep.subr.mxu0 %v6054_v48 }
 0x9c2   :  { %12483 = vmatprep.subr.mxu1 %v13516_v21  ;;  %12485 = vmatprep.mubr.msk.f32.mxu1 %vm13517_vm11, %v13516_v21 }
 0x9c3   :  { %12484 = vmatpush3.msra.mxu1 %v14881_v47  ;;  %12364 = vmatmul.mubr.msk.f32.gmra.mxu0 %vm417_vm10, %v14774_v17 }
 0x9c4   :  { %12393 = vmatpush3.msra.mxu0 %v6054_v48  ;;  %12486 = vmatmul.mubr.msk.f32.vlgmr.msra.gmra.mxu1 %vm417_vm10, %v14887_v61 }
 0x9c5   :  { %12394 = vmatprep.mubr.msk.f32.mxu0 %vm417_vm10, %v14733_v41  ;;  %12426 = vmatprep.subr.mxu0 %v6301_v63 }
 0x9c6   :  { %12499 = vmatprep.subr.mxu1 %v13516_v21  ;;  %12507 = vmatprep.mubr.msk.f32.mxu1 %vm13517_vm11, %v13516_v21 }
 0x9c7   :  { %12395 = vmatmul.mubr.msk.f32.vlgmr.msra.gmra.mxu0 %vm417_vm10, %v14737_v38  ;;  %12500 = vmatpush3.msra.mxu1 %v14897_v9 }
 0x9c8   :  { %12427 = vmatpush3.msra.mxu0 %v6301_v63  ;;  %12397 = vmatprep.mubr.msk.f32.mxu0 %vm417_vm10, %v14743_v4 }
 0x9c9   :  { %12501 = vmatprep.subr.mxu1 %v13516_v21  ;;  %12428 = vmatprep.subr.mxu0 %v6300_v10 }
 0x9ca   :  { %12502 = vmatpush3.msra.mxu1 %v14907_v0  ;;  %12429 = vmatpush3.msra.mxu0 %v6300_v10 }
 0x9cb   :  { %12398 = vmatmul.mubr.msk.f32.gmra.mxu0 %vm417_vm10, %v14750_v30  ;;  %12503 = vmatprep.subr.mxu1 %v13516_v21 }
 0x9cc   :  { %12400 = vmatprep.mubr.msk.f32.mxu0 %vm417_vm10, %v14756_v57  ;;  %12504 = vmatpush3.msra.mxu1 %v14912_v5 }
 0x9cd   :  { %12505 = vmatprep.subr.mxu1 %v13516_v21  ;;  %12430 = vmatprep.subr.mxu0 %v6299_v1 }
 0x9ce   :  { %12506 = vmatpush3.msra.mxu1 %v14918_v42  ;;  %12431 = vmatpush3.msra.mxu0 %v6299_v1 }
 0x9cf   :  { %12401 = vmatmul.mubr.msk.f32.gmra.mxu0 %vm417_vm10, %v14762_v62  ;;  %12508 = vmatmul.mubr.msk.f32.vlgmr.msra.gmra.mxu1 %vm417_vm10, %v14926_v34 }
 0x9d0   :  { %12403 = vmatprep.mubr.msk.f32.mxu0 %vm417_vm10, %v14768_v12  ;;  %12432 = vmatprep.subr.mxu0 %v6298_v36 }
 0x9d1   :  { %12433 = vmatpush3.msra.mxu0 %v6298_v36  ;;  %12521 = vmatprep.subr.mxu1 %v13516_v21 }
 0x9d2   :  { %12466 = vmatprep.subr.mxu0 %v13516_v21  ;;  %12522 = vmatpush3.msra.mxu1 %v14934_v37 }
 0x9d3   :  { %12404 = vmatmul.mubr.msk.f32.gmra.mxu0 %vm417_vm10, %v14774_v17  ;;  %12523 = vmatprep.subr.mxu1 %v13516_v21 }
 0x9d4   :  { %12434 = vmatprep.mubr.msk.f32.mxu0 %vm417_vm10, %v14733_v41  ;;  %12524 = vmatpush3.msra.mxu1 %v14939_v59  ;;  %v12256_v41 = vpop.f32.mrf.mxu1 }
 0x9d5   :  { %12525 = vmatprep.subr.mxu1 %v13516_v21  ;;  %12529 = vmatprep.mubr.msk.f32.mxu1 %vm13517_vm11, %v13516_v21 }
 0x9d6   :  { %12526 = vmatpush3.msra.mxu1 %v14946_v19 }
 0x9d7   :  { %12435 = vmatmul.mubr.msk.f32.vlgmr.msra.gmra.mxu0 %vm417_vm10, %v14737_v38  ;;  %12527 = vmatprep.subr.mxu1 %v13516_v21  ;;  %v5254_v38 = vpop.f32.mrf.mxu1 }
 0x9d8   :  { %12467 = vmatpush3.msra.mxu0 %v14951_v58  ;;  %12437 = vmatprep.mubr.msk.f32.mxu0 %vm417_vm10, %v14743_v4 }
 0x9d9   :  { %12468 = vmatprep.subr.mxu0 %v13516_v21  ;;  %12528 = vmatpush3.msra.mxu1 %v14957_v23  ;;  %v12259_v55 = vpop.f32.mrf.mxu1 }
 0x9da   :  { %12469 = vmatpush3.msra.mxu0 %v14961_v54  ;;  %12530 = vmatmul.mubr.msk.f32.vlgmr.msra.gmra.mxu1 %vm417_vm10, %v14926_v34 }
 0x9db   :  { %12438 = vmatmul.mubr.msk.f32.gmra.mxu0 %vm417_vm10, %v14750_v30  ;;  %12470 = vmatprep.subr.mxu0 %v13516_v21  ;;  %v5264_v56 = vpop.f32.mrf.mxu1 }
 0x9dc   :  { %12440 = vmatprep.mubr.msk.f32.mxu0 %vm417_vm10, %v14756_v57  ;;  %12471 = vmatpush3.msra.mxu0 %v14968_v40 }
 0x9dd   :  { %12472 = vmatprep.subr.mxu0 %v13516_v21  ;;  %12543 = vmatprep.subr.mxu1 %v13516_v21  ;;  %v12262_v4 = vpop.f32.mrf.mxu1 }
 0x9de   :  { %12473 = vmatpush3.msra.mxu0 %v14977_v24  ;;  %12544 = vmatpush3.msra.mxu1 %v14853_v33 }
 0x9df   :  { %12441 = vmatmul.mubr.msk.f32.gmra.mxu0 %vm417_vm10, %v14762_v62  ;;  %12488 = vmatprep.subr.mxu0 %v13516_v21  ;;  %v5274_v20 = vpop.f32.mrf.mxu1 }
 0x9e0   :  { %12443 = vmatprep.mubr.msk.f32.mxu0 %vm417_vm10, %v14768_v12  ;;  %12545 = vmatprep.subr.mxu1 %v13516_v21 }
 0x9e1   :  { %12546 = vmatpush3.msra.mxu1 %v14864_v44  ;;  %12551 = vmatprep.mubr.msk.f32.mxu1 %vm13517_vm11, %v13516_v21 }
 0x9e2   :  { %12547 = vmatprep.subr.mxu1 %v13516_v21 }
 0x9e3   :  { %12444 = vmatmul.mubr.msk.f32.gmra.mxu0 %vm417_vm10, %v14774_v17  ;;  %12548 = vmatpush3.msra.mxu1 %v14872_v18 }
 0x9e4   :  { %12474 = vmatprep.mubr.msk.f32.mxu0 %vm13517_vm11, %v13516_v21  ;;  %12549 = vmatprep.subr.mxu1 %v13516_v21 }
 0x9e5   :  { %12550 = vmatpush3.msra.mxu1 %v14881_v47 }
 0x9e6   :  { %12565 = vmatprep.subr.mxu1 %v13516_v21 }
 0x9e7   :  { %12475 = vmatmul.mubr.msk.f32.vlgmr.msra.gmra.mxu0 %vm417_vm10, %v14887_v61 }
 0x9e8   :  { %12489 = vmatpush3.msra.mxu0 %v15002_v39  ;;  %12496 = vmatprep.mubr.msk.f32.mxu0 %vm13517_vm11, %v13516_v21 }
 0x9e9   :  { %12490 = vmatprep.subr.mxu0 %v13516_v21 }
 0x9ea   :  { %12491 = vmatpush3.msra.mxu0 %v15008_v7 }
 0x9eb   :  { %12492 = vmatprep.subr.mxu0 %v13516_v21 }
 0x9ec   :  { %12493 = vmatpush3.msra.mxu0 %v15014_v26 }
 0x9ed   :  { %12494 = vmatprep.subr.mxu0 %v13516_v21 }
 0x9ee   :  { %12495 = vmatpush3.msra.mxu0 %v15018_v50 }
 0x9ef   :  { %12510 = vmatprep.subr.mxu0 %v13516_v21  ;;  %12497 = vmatmul.mubr.msk.f32.vlgmr.msra.gmra.mxu0 %vm417_vm10, %v14887_v61 }
 0x9f0   :  { %12511 = vmatpush3.msra.mxu0 %v15022_v32  ;;  %12518 = vmatprep.mubr.msk.f32.mxu0 %vm13517_vm11, %v13516_v21 }
 0x9f1   :  { %12512 = vmatprep.subr.mxu0 %v13516_v21 }
 0x9f2   :  { %12513 = vmatpush3.msra.mxu0 %v15028_v28 }
 0x9f3   :  { %12514 = vmatprep.subr.mxu0 %v13516_v21 }
 0x9f4   :  { %12515 = vmatpush3.msra.mxu0 %v15034_v53 }
 0x9f5   :  { %12516 = vmatprep.subr.mxu0 %v13516_v21 }
 0x9f6   :  { %12517 = vmatpush3.msra.mxu0 %v15038_v11 }
 0x9f7   :  { %12519 = vmatmul.mubr.msk.f32.vlgmr.msra.gmra.mxu0 %vm417_vm10, %v14926_v34  ;;  %12532 = vmatprep.subr.mxu0 %v13516_v21 }
 0x9f8   :  { %12533 = vmatpush3.msra.mxu0 %v14951_v58  ;;  %12540 = vmatprep.mubr.msk.f32.mxu0 %vm13517_vm11, %v13516_v21 }
 0x9f9   :  { %12534 = vmatprep.subr.mxu0 %v13516_v21 }
 0x9fa   :  { %12535 = vmatpush3.msra.mxu0 %v14961_v54 }
 0x9fb   :  { %12536 = vmatprep.subr.mxu0 %v13516_v21 }
 0x9fc   :  { %12537 = vmatpush3.msra.mxu0 %v14968_v40 }
 0x9fd   :  { %12538 = vmatprep.subr.mxu0 %v13516_v21 }
 0x9fe   :  { %12539 = vmatpush3.msra.mxu0 %v14977_v24 }
 0x9ff   :  { %12554 = vmatprep.subr.mxu0 %v13516_v21 }
 0xa2e   :  { %v12265_v30 = vpop.f32.mrf.mxu1 }
 0xa30   :  { %v5284_v57 = vpop.f32.mrf.mxu1 }
 0xa32   :  { %v12296_v25 = vpop.f32.mrf.mxu1 }
 0xa34   :  { %v5497_v22 = vpop.f32.mrf.mxu1 }
 0xa36   :  { %v12299_v62 = vpop.f32.mrf.mxu1 }
 0xa38   :  { %v15056_v12 = vpop.f32.mrf.mxu1 }
 0xa3a   :  { %v15058_v15 = vpop.f32.mrf.mxu1 }
 0xa3c   :  { %v15060_v16 = vpop.f32.mrf.mxu1 }
 0xa3e   :  { %v15062_v17 = vpop.f32.mrf.mxu1 }
 0xa40   :  { %v15064_v8 = vpop.f32.mrf.mxu1 }
 0xa42   :  { %v15066_v51 = vpop.f32.mrf.mxu1 }
 0xa44   :  { %v15068_v27 = vpop.f32.mrf.mxu1 }
 0xa46   :  { %v15070_v43 = vpop.f32.mrf.mxu1 }
 0xa47   :  { %v12236_v29 = vpop.f32.mrf.mxu0 }
 0xa48   :  { %v5260_v46 = vadd.f32 %v12256_v41, %v12236_v29  ;;  %v15075_v49 = vpop.f32.mrf.mxu1 }
 0xa49   :  { %v5125_v52 = vpop.f32.mrf.mxu0 }
 0xa4a   :  { %v5301_v2 = vadd.f32 %v10701_v45, %v5260_v46  ;;  %v5255_v3 = vadd.f32 %v5254_v38, %v5125_v52  ;;  %v15077_v6 = vpop.f32.mrf.mxu1 }
 0xa4b   :  { %v12239_v13 = vpop.f32.mrf.mxu0 }
 0xa4c   :  { %5309 = vst.msk [vmem:[#allocation2 + $0x8] sm:$0xff] %vm417_vm10, %v5301_v2  ;;  %v5300_v14 = vadd.f32 %v10701_v45, %v5255_v3  ;;  %v5270_v31 = vadd.f32 %v12259_v55, %v12239_v13  ;;  %v15080_v60 = vpop.f32.mrf.mxu1 }
 0xa4d   :  { %v5135_v35 = vpop.f32.mrf.mxu0 }
 0xa4e   :  { %5308 = vst.msk [vmem:[#allocation2] sm:$0xff] %vm417_vm10, %v5300_v14  ;;  %v5303_v48 = vadd.f32 %v10701_v45, %v5270_v31  ;;  %v5265_v63 = vadd.f32 %v5264_v56, %v5135_v35  ;;  %v15083_v10 = vpop.f32.mrf.mxu1 }
 0xa4f   :  { %v12242_v1 = vpop.f32.mrf.mxu0 }
 0xa50   :  { %5311 = vst.msk [vmem:[#allocation2 + $0x18] sm:$0xff] %vm417_vm10, %v5303_v48  ;;  %v5302_v36 = vadd.f32 %v10701_v45, %v5265_v63  ;;  %v5280_v41 = vadd.f32 %v12262_v4, %v12242_v1  ;;  %v15086_v38 = vpop.f32.mrf.mxu1 }
 0xa51   :  { %v5145_v29 = vpop.f32.mrf.mxu0 }
 0xa52   :  { %5310 = vst.msk [vmem:[#allocation2 + $0x10] sm:$0xff] %vm417_vm10, %v5302_v36  ;;  %v5305_v55 = vadd.f32 %v10701_v45, %v5280_v41  ;;  %v5275_v46 = vadd.f32 %v5274_v20, %v5145_v29  ;;  %v15089_v52 = vpop.f32.mrf.mxu1  ;;  %v10719_v20 = vld [vmem:[%s15907_s9 + $0x1] ss:$0 sm:$0xff] }
 0xa53   :  { %v12245_v2 = vpop.f32.mrf.mxu0 }
 0xa54   :  { %5313 = vst.msk [vmem:[#allocation2 + $0x28] sm:$0xff] %vm417_vm10, %v5305_v55  ;;  %v5304_v56 = vadd.f32 %v10701_v45, %v5275_v46  ;;  %v5290_v3 = vadd.f32 %v12265_v30, %v12245_v2  ;;  %v15092_v13 = vpop.f32.mrf.mxu1 }
 0xa55   :  { %v5155_v14 = vpop.f32.mrf.mxu0 }
 0xa56   :  { %5312 = vst.msk [vmem:[#allocation2 + $0x20] sm:$0xff] %vm417_vm10, %v5304_v56  ;;  %v5307_v4 = vadd.f32 %v10701_v45, %v5290_v3  ;;  %v5285_v31 = vadd.f32 %v5284_v57, %v5155_v14  ;;  %v15095_v35 = vpop.f32.mrf.mxu1 }
 0xa57   :  { %v12276_v48 = vpop.f32.mrf.mxu0 }
 0xa58   :  { %5315 = vst.msk [vmem:[#allocation2 + $0x38] sm:$0xff] %vm417_vm10, %v5307_v4  ;;  %v5306_v63 = vadd.f32 %v10701_v45, %v5285_v31  ;;  %v5503_v1 = vadd.f32 %v12296_v25, %v12276_v48  ;;  %v15101_v36 = vpop.f32.mrf.mxu1 }
 0xa59   :  { %v5392_v30 = vpop.f32.mrf.mxu0 }
 0xa5a   :  { %5314 = vst.msk [vmem:[#allocation2 + $0x30] sm:$0xff] %vm417_vm10, %v5306_v63  ;;  %v5545_v41 = vadd.f32 %v10719_v20, %v5503_v1  ;;  %v5498_v29 = vadd.f32 %v5497_v22, %v5392_v30  ;;  %v15104_v55 = vpop.f32.mrf.mxu1 }
 0xa5b   :  { %v12279_v57 = vpop.f32.mrf.mxu0 }
 0xa5c   :  { %5553 = vst.msk [vmem:[#allocation2 + $0x48] sm:$0xff] %vm417_vm10, %v5545_v41  ;;  %v5544_v46 = vadd.f32 %v10719_v20, %v5498_v29  ;;  %v5513_v2 = vadd.f32 %v12299_v62, %v12279_v57  ;;  %v15107_v56 = vpop.f32.mrf.mxu1 }
 0xa5d   :  { %v5402_v3 = vpop.f32.mrf.mxu0 }
 0xa5e   :  { %5552 = vst.msk [vmem:[#allocation2 + $0x40] sm:$0xff] %vm417_vm10, %v5544_v46  ;;  %v5547_v25 = vadd.f32 %v10719_v20, %v5513_v2  ;;  %v5508_v45 = vadd.f32 %v15056_v12, %v5402_v3  ;;  %v15111_v14 = vpop.f32.mrf.mxu1 }
 0xa5f   :  { %v12282_v4 = vpop.f32.mrf.mxu0 }
 0xa60   :  { %5555 = vst.msk [vmem:[#allocation2 + $0x58] sm:$0xff] %vm417_vm10, %v5547_v25  ;;  %v5546_v22 = vadd.f32 %v10719_v20, %v5508_v45  ;;  %v5523_v31 = vadd.f32 %v15058_v15, %v12282_v4  ;;  %v15115_v48 = vpop.f32.mrf.mxu1 }
 0xa61   :  { %v5412_v63 = vpop.f32.mrf.mxu0 }
 0xa62   :  { %5554 = vst.msk [vmem:[#allocation2 + $0x50] sm:$0xff] %vm417_vm10, %v5546_v22  ;;  %v5549_v62 = vadd.f32 %v10719_v20, %v5523_v31  ;;  %v5518_v1 = vadd.f32 %v15060_v16, %v5412_v63  ;;  %v10737_v16 = vld [vmem:[%s15907_s9 + $0x2] ss:$0 sm:$0xff] }
 0xa63   :  { %v12285_v30 = vpop.f32.mrf.mxu0  ;;  %v15119_v41 = vpop.f32.mrf.mxu1 }
 0xa64   :  { %5557 = vst.msk [vmem:[#allocation2 + $0x68] sm:$0xff] %vm417_vm10, %v5549_v62  ;;  %v5548_v12 = vadd.f32 %v10719_v20, %v5518_v1  ;;  %v5533_v29 = vadd.f32 %v15062_v17, %v12285_v30 }
 0xa65   :  { %v5422_v57 = vpop.f32.mrf.mxu0  ;;  %v15123_v46 = vpop.f32.mrf.mxu1 }
 0xa66   :  { %5556 = vst.msk [vmem:[#allocation2 + $0x60] sm:$0xff] %vm417_vm10, %v5548_v12  ;;  %v5551_v15 = vadd.f32 %v10719_v20, %v5533_v29  ;;  %v5528_v2 = vadd.f32 %v15064_v8, %v5422_v57 }
 0xa67   :  { %v12316_v3 = vpop.f32.mrf.mxu0  ;;  %v15130_v25 = vpop.f32.mrf.mxu1 }
 0xa68   :  { %5559 = vst.msk [vmem:[#allocation2 + $0x78] sm:$0xff] %vm417_vm10, %v5551_v15  ;;  %v5550_v45 = vadd.f32 %v10719_v20, %v5528_v2  ;;  %v5747_v17 = vadd.f32 %v15066_v51, %v12316_v3 }
 0xa69   :  { %v5636_v4 = vpop.f32.mrf.mxu0  ;;  %v15134_v22 = vpop.f32.mrf.mxu1 }
 0xa6a   :  { %5558 = vst.msk [vmem:[#allocation2 + $0x70] sm:$0xff] %vm417_vm10, %v5550_v45  ;;  %v5789_v31 = vadd.f32 %v10737_v16, %v5747_v17  ;;  %v5742_v8 = vadd.f32 %v15068_v27, %v5636_v4 }
 0xa6b   :  { %v12319_v63 = vpop.f32.mrf.mxu0  ;;  %v15138_v62 = vpop.f32.mrf.mxu1 }
 0xa6c   :  { %5797 = vst.msk [vmem:[#allocation2 + $0x88] sm:$0xff] %vm417_vm10, %v5789_v31  ;;  %v5788_v1 = vadd.f32 %v10737_v16, %v5742_v8  ;;  %v5757_v30 = vadd.f32 %v15070_v43, %v12319_v63 }
 0xa6d   :  { %v5646_v12 = vpop.f32.mrf.mxu0  ;;  %v15142_v20 = vpop.f32.mrf.mxu1 }
 0xa6e   :  { %5796 = vst.msk [vmem:[#allocation2 + $0x80] sm:$0xff] %vm417_vm10, %v5788_v1  ;;  %v5791_v51 = vadd.f32 %v10737_v16, %v5757_v30  ;;  %v5752_v29 = vadd.f32 %v15075_v49, %v5646_v12 }
 0xa6f   :  { %v12322_v57 = vpop.f32.mrf.mxu0  ;;  %v15146_v15 = vpop.f32.mrf.mxu1 }
 0xa70   :  { %5799 = vst.msk [vmem:[#allocation2 + $0x98] sm:$0xff] %vm417_vm10, %v5791_v51  ;;  %v5790_v27 = vadd.f32 %v10737_v16, %v5752_v29  ;;  %v5767_v2 = vadd.f32 %v15077_v6, %v12322_v57 }
 0xa71   :  { %v5656_v3 = vpop.f32.mrf.mxu0  ;;  %v15150_v45 = vpop.f32.mrf.mxu1 }
 0xa72   :  { %5798 = vst.msk [vmem:[#allocation2 + $0x90] sm:$0xff] %vm417_vm10, %v5790_v27  ;;  %v5793_v43 = vadd.f32 %v10737_v16, %v5767_v2  ;;  %v5762_v17 = vadd.f32 %v15080_v60, %v5656_v3  ;;  %v10755_v60 = vld [vmem:[%s15907_s9 + $0x3] ss:$0 sm:$0xff] }
 0xa73   :  { %v12325_v4 = vpop.f32.mrf.mxu0  ;;  %v15154_v31 = vpop.f32.mrf.mxu1 }
 0xa74   :  { %5801 = vst.msk [vmem:[#allocation2 + $0xa8] sm:$0xff] %vm417_vm10, %v5793_v43  ;;  %v5792_v49 = vadd.f32 %v10737_v16, %v5762_v17  ;;  %v5777_v8 = vadd.f32 %v15083_v10, %v12325_v4 }
 0xa75   :  { %v5666_v63 = vpop.f32.mrf.mxu0  ;;  %v15158_v1 = vpop.f32.mrf.mxu1 }
 0xa76   :  { %5800 = vst.msk [vmem:[#allocation2 + $0xa0] sm:$0xff] %vm417_vm10, %v5792_v49  ;;  %v5795_v6 = vadd.f32 %v10737_v16, %v5777_v8  ;;  %v5772_v30 = vadd.f32 %v15086_v38, %v5666_v63 }
 0xa77   :  { %v12356_v12 = vpop.f32.mrf.mxu0  ;;  %v15165_v51 = vpop.f32.mrf.mxu1 }
 0xa78   :  { %5803 = vst.msk [vmem:[#allocation2 + $0xb8] sm:$0xff] %vm417_vm10, %v5795_v6  ;;  %v5794_v29 = vadd.f32 %v10737_v16, %v5772_v30  ;;  %v5991_v10 = vadd.f32 %v15089_v52, %v12356_v12 }
 0xa79   :  { %v5880_v57 = vpop.f32.mrf.mxu0  ;;  %v15169_v27 = vpop.f32.mrf.mxu1 }
 0xa7a   :  { %5802 = vst.msk [vmem:[#allocation2 + $0xb0] sm:$0xff] %vm417_vm10, %v5794_v29  ;;  %v6033_v2 = vadd.f32 %v10755_v60, %v5991_v10  ;;  %v5986_v38 = vadd.f32 %v15092_v13, %v5880_v57 }
 0xa7b   :  { %v12359_v3 = vpop.f32.mrf.mxu0  ;;  %v15173_v43 = vpop.f32.mrf.mxu1 }
 0xa7c   :  { %6041 = vst.msk [vmem:[#allocation2 + $0xc8] sm:$0xff] %vm417_vm10, %v6033_v2  ;;  %v6032_v17 = vadd.f32 %v10755_v60, %v5986_v38  ;;  %v6001_v4 = vadd.f32 %v15095_v35, %v12359_v3 }
 0xa7d   :  { %v5890_v49 = vpop.f32.mrf.mxu0  ;;  %v15177_v16 = vpop.f32.mrf.mxu1 }
 0xa7e   :  { %6040 = vst.msk [vmem:[#allocation2 + $0xc0] sm:$0xff] %vm417_vm10, %v6032_v17  ;;  %v6035_v52 = vadd.f32 %v10755_v60, %v6001_v4  ;;  %v5996_v8 = vadd.f32 %v15101_v36, %v5890_v49 }
 0xa7f   :  { %v12362_v63 = vpop.f32.mrf.mxu0  ;;  %v15181_v6 = vpop.f32.mrf.mxu1 }
 0xa80   :  { %6043 = vst.msk [vmem:[#allocation2 + $0xd8] sm:$0xff] %vm417_vm10, %v6035_v52  ;;  %v6034_v13 = vadd.f32 %v10755_v60, %v5996_v8  ;;  %v6011_v30 = vadd.f32 %v15104_v55, %v12362_v63 }
 0xa81   :  { %v5900_v12 = vpop.f32.mrf.mxu0  ;;  %v15185_v29 = vpop.f32.mrf.mxu1 }
 0xa82   :  { %6042 = vst.msk [vmem:[#allocation2 + $0xd0] sm:$0xff] %vm417_vm10, %v6034_v13  ;;  %v6037_v35 = vadd.f32 %v10755_v60, %v6011_v30  ;;  %v6006_v10 = vadd.f32 %v15107_v56, %v5900_v12  ;;  %v10773_v56 = vld [vmem:[%s15907_s9 + $0x4] ss:$0 sm:$0xff] }
 0xa83   :  { %v12365_v57 = vpop.f32.mrf.mxu0 }
 0xa84   :  { %6045 = vst.msk [vmem:[#allocation2 + $0xe8] sm:$0xff] %vm417_vm10, %v6037_v35  ;;  %v6036_v36 = vadd.f32 %v10755_v60, %v6006_v10  ;;  %v6021_v2 = vadd.f32 %v15111_v14, %v12365_v57  ;;  %v15191_v38 = vpop.f32.mrf.mxu1 }
 0xa85   :  { %v5910_v3 = vpop.f32.mrf.mxu0 }
 0xa86   :  { %6044 = vst.msk [vmem:[#allocation2 + $0xe0] sm:$0xff] %vm417_vm10, %v6036_v36  ;;  %v6039_v55 = vadd.f32 %v10755_v60, %v6021_v2  ;;  %v6016_v17 = vadd.f32 %v15115_v48, %v5910_v3  ;;  %v12487_v4 = vpop.f32.mrf.mxu1 }
 0xa87   :  { %v12396_v49 = vpop.f32.mrf.mxu0 }
 0xa88   :  { %6047 = vst.msk [vmem:[#allocation2 + $0xf8] sm:$0xff] %vm417_vm10, %v6039_v55  ;;  %v6038_v52 = vadd.f32 %v10755_v60, %v6016_v17  ;;  %v6235_v8 = vadd.f32 %v15119_v41, %v12396_v49 }
 0xa89   :  { %v6124_v14 = vpop.f32.mrf.mxu0 }
 0xa8a   :  { %6046 = vst.msk [vmem:[#allocation2 + $0xf0] sm:$0xff] %vm417_vm10, %v6038_v52  ;;  %v6277_v63 = vadd.f32 %v10773_v56, %v6235_v8  ;;  %v6230_v13 = vadd.f32 %v15123_v46, %v6124_v14  ;;  %v10791_v14 = vld [vmem:[%s15907_s9 + $0x5] ss:$0 sm:$0xff] }
 0xa8b   :  { %v12399_v30 = vpop.f32.mrf.mxu0 }
 0xa8c   :  { %6285 = vst.msk [vmem:[#allocation2 + $0x108] sm:$0xff] %vm417_vm10, %v6277_v63  ;;  %v6276_v48 = vadd.f32 %v10773_v56, %v6230_v13  ;;  %v6245_v12 = vadd.f32 %v15130_v25, %v12399_v30 }
 0xa8d   :  { %v6134_v35 = vpop.f32.mrf.mxu0 }
 0xa8e   :  { %6284 = vst.msk [vmem:[#allocation2 + $0x100] sm:$0xff] %vm417_vm10, %v6276_v48  ;;  %v6279_v10 = vadd.f32 %v10773_v56, %v6245_v12  ;;  %v6240_v60 = vadd.f32 %v15134_v22, %v6134_v35 }
 0xa8f   :  { %v12402_v57 = vpop.f32.mrf.mxu0  ;;  %v6893_v41 = vpop.f32.mrf.mxu1  ;;  %v6587_v63 = vld [vmem:[#allocation2 + $0xf8] sm:$0xff] }
 0xa90   :  { %6287 = vst.msk [vmem:[#allocation2 + $0x118] sm:$0xff] %vm417_vm10, %v6279_v10  ;;  %v6278_v36 = vadd.f32 %v10773_v56, %v6240_v60  ;;  %v6255_v2 = vadd.f32 %v15138_v62, %v12402_v57  ;;  %v7037_v35 = vadd.f32 %v6893_v41, %v6587_v63 }
 0xa91   :  { %v6144_v46 = vpop.f32.mrf.mxu0  ;;  %v12509_v3 = vpop.f32.mrf.mxu1 }
 0xa92   :  { %6286 = vst.msk [vmem:[#allocation2 + $0x110] sm:$0xff] %vm417_vm10, %v6278_v36  ;;  %v6281_v55 = vadd.f32 %v10773_v56, %v6255_v2  ;;  %v6250_v25 = vadd.f32 %v15142_v20, %v6144_v46  ;;  %v10805_v2 = vmul.f32 -1.442695, %v7037_v35 }
 0xa93   :  { %v12405_v17 = vpop.f32.mrf.mxu0 }
 0xa94   :  { %6289 = vst.msk [vmem:[#allocation2 + $0x128] sm:$0xff] %vm417_vm10, %v6281_v55  ;;  %v6280_v4 = vadd.f32 %v10773_v56, %v6250_v25  ;;  %v6265_v22 = vadd.f32 %v15146_v15, %v12405_v17  ;;  %13166 = vpow2.f32 %v10805_v2 }
 0xa95   :  { %v6154_v49 = vpop.f32.mrf.mxu0 }
 0xa96   :  { %6288 = vst.msk [vmem:[#allocation2 + $0x120] sm:$0xff] %vm417_vm10, %v6280_v4  ;;  %v6283_v52 = vadd.f32 %v10773_v56, %v6265_v22  ;;  %v6260_v8 = vadd.f32 %v15150_v45, %v6154_v49 }
 0xa97   :  { %v12436_v62 = vpop.f32.mrf.mxu0 }
 0xa98   :  { %6291 = vst.msk [vmem:[#allocation2 + $0x138] sm:$0xff] %vm417_vm10, %v6283_v52  ;;  %v6282_v20 = vadd.f32 %v10773_v56, %v6260_v8  ;;  %v6479_v13 = vadd.f32 %v15154_v31, %v12436_v62 }
 0xa99   :  { %v6368_v30 = vpop.f32.mrf.mxu0 }
 0xa9a   :  { %6290 = vst.msk [vmem:[#allocation2 + $0x130] sm:$0xff] %vm417_vm10, %v6282_v20  ;;  %v6521_v15 = vadd.f32 %v10791_v14, %v6479_v13  ;;  %v6474_v48 = vadd.f32 %v15158_v1, %v6368_v30  ;;  %v7033_v12 = vpop.f32.mrf.mxu1  ;;  %v6585_v20 = vld [vmem:[#allocation2 + $0x40] sm:$0xff] }
 0xa9b   :  { %v12439_v45 = vpop.f32.mrf.mxu0 }
 0xa9c   :  { %6529 = vst.msk [vmem:[#allocation2 + $0x148] sm:$0xff] %vm417_vm10, %v6521_v15  ;;  %v6520_v10 = vadd.f32 %v10791_v14, %v6474_v48  ;;  %v6489_v60 = vadd.f32 %v15165_v51, %v12439_v45  ;;  %v12531_v57 = vpop.f32.mrf.mxu1 }
 0xa9d   :  { %v6378_v36 = vpop.f32.mrf.mxu0 }
 0xa9e   :  { %6528 = vst.msk [vmem:[#allocation2 + $0x140] sm:$0xff] %vm417_vm10, %v6520_v10  ;;  %v6523_v56 = vadd.f32 %v10791_v14, %v6489_v60  ;;  %v6484_v31 = vadd.f32 %v15169_v27, %v6378_v36 }
 0xa9f   :  { %v12442_v46 = vpop.f32.mrf.mxu0 }
 0xaa0   :  { %6531 = vst.msk [vmem:[#allocation2 + $0x158] sm:$0xff] %vm417_vm10, %v6523_v56  ;;  %v6522_v1 = vadd.f32 %v10791_v14, %v6484_v31  ;;  %v6499_v41 = vadd.f32 %v15173_v43, %v12442_v46  ;;  %v6584_v43 = vld [vmem:[#allocation2] sm:$0xff] }
 0xaa1   :  { %v6388_v3 = vpop.f32.mrf.mxu0  ;;  %v13167_v30 = vpop.eup %13166  ;;  %v15245_v46 = vld [vmem:[%s15908_s10] ss:$0 sm:$0xff] }
 0xaa2   :  { %6530 = vst.msk [vmem:[#allocation2 + $0x150] sm:$0xff] %vm417_vm10, %v6522_v1  ;;  %v6525_v55 = vadd.f32 %v10791_v14, %v6499_v41  ;;  %v6494_v51 = vadd.f32 %v15177_v16, %v6388_v3  ;;  %v7041_v35 = vadd.f32 1.0, %v13167_v30 }
 0xaa3   :  { %v12445_v25 = vpop.f32.mrf.mxu0 }
 0xaa4   :  { %6533 = vst.msk [vmem:[#allocation2 + $0x168] sm:$0xff] %vm417_vm10, %v6525_v55  ;;  %v6524_v17 = vadd.f32 %v10791_v14, %v6494_v51  ;;  %v6509_v27 = vadd.f32 %v15181_v6, %v12445_v25  ;;  %v6810_v6 = vadd.f32 %v15191_v38, %v6585_v20  ;;  %v15239_v38 = vld [vmem:[%s15908_s10 + $0x1] ss:$0 sm:$0xff] }
 0xaa5   :  { %v6398_v4 = vpop.f32.mrf.mxu0  ;;  %v7034_v31 = vadd.f32 %v15239_v38, %v7033_v12 }
 0xaa6   :  { %6532 = vst.msk [vmem:[#allocation2 + $0x160] sm:$0xff] %vm417_vm10, %v6524_v17  ;;  %v6527_v22 = vadd.f32 %v10791_v14, %v6509_v27  ;;  %v6504_v49 = vadd.f32 %v15185_v29, %v6398_v4  ;;  %v10801_v48 = vmul.f32 -1.442695, %v6810_v6  ;;  %v6588_v29 = vld [vmem:[#allocation2 + $0x138] sm:$0xff]  ;;  %v6586_v4 = vld [vmem:[#allocation2 + $0x80] sm:$0xff] }
 0xaa7   :  { %v6659_v52 = vpop.f32.mrf.mxu0 }
 0xaa8   :  { %6535 = vst.msk [vmem:[#allocation2 + $0x178] sm:$0xff] %vm417_vm10, %v6527_v22  ;;  %v6526_v8 = vadd.f32 %v10791_v14, %v6504_v49  ;;  %v6803_v62 = vadd.f32 %v6659_v52, %v6584_v43 }
 0xaa9   :  { %v12476_v16 = vpop.f32.mrf.mxu0 }
 0xaaa   :  { %6534 = vst.msk [vmem:[#allocation2 + $0x170] sm:$0xff] %vm417_vm10, %v6526_v8  ;;  %v10800_v63 = vmul.f32 -1.442695, %v6803_v62 }
 0xaac   :  { %13168 = vpow2.f32 %v10800_v63 }
 0xaad   :  { %13170 = vpow2.f32 %v10801_v48 }
 0xaae   :  { %13172 = vrcp.f32 %v7041_v35  ;;  %v7065_v35 = vld [vmem:[#allocation2 + $0x130] sm:$0xff] }
 0xaaf   :  { %v6799_v13 = vpop.f32.mrf.mxu0  ;;  %v6589_v25 = vld [vmem:[#allocation2 + $0x178] sm:$0xff] }
 0xab0   :  { %v6800_v3 = vadd.f32 %v15245_v46, %v6799_v13 }
 0xab1   :  { %v12498_v15 = vpop.f32.mrf.mxu0 }
 0xab7   :  { %v6963_v45 = vpop.f32.mrf.mxu0 }
 0xab8   :  { %v7044_v10 = vadd.f32 %v6963_v45, %v6588_v29 }
 0xab9   :  { %v13169_v14 = vpop.eup %13168  ;;  %v12520_v60 = vpop.f32.mrf.mxu0 }
 0xaba   :  { %v6807_v57 = vadd.f32 1.0, %v13169_v14  ;;  %v10806_v36 = vmul.f32 -1.442695, %v7044_v10  ;;  %v13171_v56 = vpop.eup %13170 }
 0xabb   :  { %v13173_v2 = vpop.eup %13172  ;;  %v6814_v1 = vadd.f32 1.0, %v13171_v56 }
 0xabc   :  { %13174 = vrcp.f32 %v6807_v57  ;;  %v7051_v41 = vmul.f32 %v13173_v2, %v7034_v31 }
 0xabd   :  { %13176 = vpow2.f32 %v10806_v36 }
 0xabe   :  { %13178 = vrcp.f32 %v6814_v1  ;;  %v7052_v27 = vadd.f32 %v7051_v41, %v6589_v25 }
 0xac9   :  { %v13175_v55 = vpop.eup %13174 }
 0xaca   :  { %v13177_v51 = vpop.eup %13176  ;;  %v6817_v17 = vmul.f32 %v13175_v55, %v6800_v3  ;;  %v7063_v55 = vld [vmem:[#allocation2 + $0x88] sm:$0xff] }
 0xacb   :  { %v7048_v22 = vadd.f32 1.0, %v13177_v51  ;;  %v13179_v12 = vpop.eup %13178 }
 0xacc   :  { %v6818_v49 = vadd.f32 %v6817_v17, %v6586_v4  ;;  %v6820_v52 = vsub.f32 1.0, %v13179_v12  ;;  %v6822_v20 = vmul.f32 %v13179_v12, %v14887_v61 }
 0xacd   :  { %13180 = vrcp.f32 %v7048_v22 }
 0xace   :  { %13182 = vtanh.f32 %v6818_v49  ;;  %v7066_v49 = vld [vmem:[#allocation2 + $0x170] sm:$0xff] }
 0xacf   :  { %13184 = vtanh.f32 %v7052_v27 }
 0xada   :  { %v13181_v43 = vpop.eup %13180 }
 0xadb   :  { %v13183_v8 = vpop.eup %13182  ;;  %v7054_v62 = vsub.f32 1.0, %v13181_v43  ;;  %v7056_v13 = vmul.f32 %v13181_v43, %v14926_v34 }
 0xadc   :  { %v13185_v16 = vpop.eup %13184  ;;  %v6821_v63 = vmul.f32 %v13183_v8, %v6820_v52 }
 0xadd   :  { %v7055_v6 = vmul.f32 %v13185_v16, %v7054_v62 }
 0xade   :  { %v15250_v30 = vadd.f32 %v6822_v20, %v6821_v63 }
 0xadf   :  { %v15252_v15 = vadd.f32 %v7056_v13, %v7055_v6  ;;  %v15342_v6 = vld [vmem:[#allocation12 + $0x78] sm:$0xff] }
 0xae0   :  { %7058 = vst.msk [vmem:[#allocation5] sm:$0xff] %vm417_vm10, %v15250_v30  ;;  %12541 = vmatmul.mubr.msk.f32.vlgmr.msra.gmra.mxu0 %vm417_vm10, %v15250_v30  ;;  %12552 = vmatmul.mubr.msk.f32.vlgmr.msra.gmra.mxu1 %vm417_vm10, %v15250_v30 }
 0xae1   :  { %12555 = vmatpush3.msra.mxu0 %v15002_v39  ;;  %12566 = vmatpush3.msra.mxu1 %v14897_v9  ;;  %7060 = vst.msk [vmem:[#allocation6 + $0x38] sm:$0xff] %vm417_vm10, %v15252_v15 }
 0xae2   :  { %12556 = vmatprep.subr.mxu0 %v13516_v21  ;;  %12567 = vmatprep.subr.mxu1 %v13516_v21 }
 0xae3   :  { %12557 = vmatpush3.msra.mxu0 %v15008_v7  ;;  %12568 = vmatpush3.msra.mxu1 %v14907_v0 }
 0xae4   :  { %12558 = vmatprep.subr.mxu0 %v13516_v21  ;;  %12569 = vmatprep.subr.mxu1 %v13516_v21 }
 0xae5   :  { %12559 = vmatpush3.msra.mxu0 %v15014_v26  ;;  %12570 = vmatpush3.msra.mxu1 %v14912_v5 }
 0xae6   :  { %12560 = vmatprep.subr.mxu0 %v13516_v21  ;;  %12571 = vmatprep.subr.mxu1 %v13516_v21 }
 0xae7   :  { %12561 = vmatpush3.msra.mxu0 %v15018_v50  ;;  %12562 = vmatprep.mubr.msk.f32.mxu0 %vm13517_vm11, %v13516_v21 }
 0xae8   :  { %12572 = vmatpush3.msra.mxu1 %v14918_v42  ;;  %12573 = vmatprep.mubr.msk.f32.mxu1 %vm13517_vm11, %v13516_v21  ;;  %v7062_v42 = vld [vmem:[#allocation2 + $0x48] sm:$0xff] }
 0xae9   :  { %12563 = vmatmul.mubr.msk.f32.vlgmr.msra.gmra.mxu0 %vm417_vm10, %v15250_v30  ;;  %12574 = vmatmul.mubr.msk.f32.vlgmr.msra.gmra.mxu1 %vm417_vm10, %v15252_v15 }
 0xaea   :  { %12576 = vmatprep.subr.mxu0 %v13516_v21  ;;  %12587 = vmatprep.subr.mxu1 %v13516_v21 }
 0xaeb   :  { %12577 = vmatpush3.msra.mxu0 %v15022_v32  ;;  %12588 = vmatpush3.msra.mxu1 %v14934_v37  ;;  %v7064_v37 = vld [vmem:[#allocation2 + $0xf0] sm:$0xff] }
 0xaec   :  { %12578 = vmatprep.subr.mxu0 %v13516_v21  ;;  %12589 = vmatprep.subr.mxu1 %v13516_v21 }
 0xaed   :  { %12579 = vmatpush3.msra.mxu0 %v15028_v28  ;;  %12590 = vmatpush3.msra.mxu1 %v14939_v59 }
 0xaee   :  { %12580 = vmatprep.subr.mxu0 %v13516_v21  ;;  %12591 = vmatprep.subr.mxu1 %v13516_v21 }
 0xaef   :  { %12581 = vmatpush3.msra.mxu0 %v15034_v53  ;;  %12592 = vmatpush3.msra.mxu1 %v14946_v19 }
 0xaf0   :  { %12582 = vmatprep.subr.mxu0 %v13516_v21  ;;  %12593 = vmatprep.subr.mxu1 %v13516_v21 }
 0xaf1   :  { %12583 = vmatpush3.msra.mxu0 %v15038_v11  ;;  %12584 = vmatprep.mubr.msk.f32.mxu0 %vm13517_vm11, %v13516_v21 }
 0xaf2   :  { %12594 = vmatpush3.msra.mxu1 %v14957_v23  ;;  %12595 = vmatprep.mubr.msk.f32.mxu1 %vm13517_vm11, %v13516_v21 }
 0xaf3   :  { %12585 = vmatmul.mubr.msk.f32.vlgmr.msra.gmra.mxu0 %vm417_vm10, %v15252_v15  ;;  %12596 = vmatmul.mubr.msk.f32.vlgmr.msra.gmra.mxu1 %vm417_vm10, %v15252_v15 }
 0xaf4   :  { %12598 = vmatprep.subr.mxu0 %v13516_v21  ;;  %12609 = vmatprep.subr.mxu1 %v13516_v21 }
 0xaf5   :  { %12599 = vmatpush3.msra.mxu0 %v14951_v58  ;;  %12610 = vmatpush3.msra.mxu1 %v14853_v33  ;;  %v7061_v33 = vld [vmem:[#allocation2 + $0x8] sm:$0xff] }
 0xaf6   :  { %12600 = vmatprep.subr.mxu0 %v13516_v21  ;;  %12611 = vmatprep.subr.mxu1 %v13516_v21 }
 0xaf7   :  { %12601 = vmatpush3.msra.mxu0 %v14961_v54  ;;  %12612 = vmatpush3.msra.mxu1 %v14864_v44 }
 0xaf8   :  { %12602 = vmatprep.subr.mxu0 %v13516_v21  ;;  %12613 = vmatprep.subr.mxu1 %v13516_v21 }
 0xaf9   :  { %12603 = vmatpush3.msra.mxu0 %v14968_v40  ;;  %12614 = vmatpush3.msra.mxu1 %v14872_v18 }
 0xafa   :  { %12604 = vmatprep.subr.mxu0 %v13516_v21  ;;  %12615 = vmatprep.subr.mxu1 %v13516_v21 }
 0xafb   :  { %12605 = vmatpush3.msra.mxu0 %v14977_v24  ;;  %12616 = vmatpush3.msra.mxu1 %v14881_v47 }
 0xafc   :  { %12606 = vmatprep.mubr.msk.f32.mxu0 %vm13517_vm11, %v13516_v21  ;;  %12617 = vmatprep.mubr.msk.f32.mxu1 %vm13517_vm11, %v13516_v21 }
 0xafd   :  { %12620 = vmatprep.subr.mxu0 %v13516_v21  ;;  %12631 = vmatprep.subr.mxu1 %v13516_v21 }
 0xba0   :  { %v7136_v44 = vpop.f32.mrf.mxu0  ;;  %v7206_v18 = vpop.f32.mrf.mxu1 }
 0xba1   :  { %v7280_v61 = vadd.f32 %v7136_v44, %v7061_v33  ;;  %v7287_v47 = vadd.f32 %v7206_v18, %v7062_v42  ;;  %v15354_v44 = vld [vmem:[#allocation12 + $0x68] sm:$0xff]  ;;  %v15434_v42 = vld [vmem:[#allocation12] sm:$0xff] }
 0xba2   :  { %v12542_v9 = vpop.f32.mrf.mxu0  ;;  %v12553_v0 = vpop.f32.mrf.mxu1 }
 0xba3   :  { %v10810_v5 = vmul.f32 -1.442695, %v7280_v61  ;;  %v10811_v58 = vmul.f32 -1.442695, %v7287_v47  ;;  %v15365_v61 = vld [vmem:[#allocation12 + $0x60] sm:$0xff]  ;;  %v15421_v9 = vld [vmem:[#allocation12 + $0x30] sm:$0xff] }
 0xba4   :  { %v15426_v0 = vld [vmem:[#allocation12 + $0x8] sm:$0xff]  ;;  %v15437_v47 = vld [vmem:[#allocation12 + $0x20] sm:$0xff] }
 0xba5   :  { %13186 = vpow2.f32 %v10810_v5  ;;  %v15429_v5 = vld [vmem:[#allocation12 + $0x28] sm:$0xff] }
 0xba9   :  { %v7276_v34 = vpop.f32.mrf.mxu0  ;;  %v7370_v59 = vpop.f32.mrf.mxu1 }
 0xbaa   :  { %v7514_v19 = vadd.f32 %v7370_v59, %v7064_v37  ;;  %v7277_v1 = vadd.f32 %v15245_v46, %v7276_v34  ;;  %v7539_v34 = vld [vmem:[#allocation2 + $0x10] sm:$0xff] }
 0xbab   :  { %v12564_v23 = vpop.f32.mrf.mxu0  ;;  %v12575_v54 = vpop.f32.mrf.mxu1 }
 0xbac   :  { %v10815_v40 = vmul.f32 -1.442695, %v7514_v19 }
 0xbae   :  { %13188 = vpow2.f32 %v10815_v40  ;;  %v7540_v40 = vld [vmem:[#allocation2 + $0x50] sm:$0xff] }
 0xbaf   :  { %13190 = vpow2.f32 %v10811_v58 }
 0xbb2   :  { %v13187_v24 = vpop.eup %13186 }
 0xbb3   :  { %v7284_v48 = vadd.f32 1.0, %v13187_v24  ;;  %v7440_v29 = vpop.f32.mrf.mxu0  ;;  %v7510_v45 = vpop.f32.mrf.mxu1 }
 0xbb4   :  { %v7521_v10 = vadd.f32 %v7440_v29, %v7065_v35  ;;  %v7511_v27 = vadd.f32 %v15239_v38, %v7510_v45  ;;  %v7542_v35 = vld [vmem:[#allocation2 + $0xe8] sm:$0xff] }
 0xbb5   :  { %13192 = vrcp.f32 %v7284_v48  ;;  %v12586_v14 = vpop.f32.mrf.mxu0  ;;  %v12597_v60 = vpop.f32.mrf.mxu1 }
 0xbb6   :  { %v10816_v57 = vmul.f32 -1.442695, %v7521_v10 }
 0xbb8   :  { %13194 = vpow2.f32 %v10816_v57 }
 0xbbb   :  { %v13189_v36 = vpop.eup %13188 }
 0xbbc   :  { %v13191_v56 = vpop.eup %13190  ;;  %v7518_v31 = vadd.f32 1.0, %v13189_v36 }
 0xbbd   :  { %v7291_v2 = vadd.f32 1.0, %v13191_v56 }
 0xbbe   :  { %13196 = vrcp.f32 %v7518_v31  ;;  %v7543_v31 = vld [vmem:[#allocation2 + $0x128] sm:$0xff] }
 0xbbf   :  { %13198 = vrcp.f32 %v7291_v2 }
 0xbc2   :  { %v13193_v41 = vpop.eup %13192 }
 0xbc3   :  { %v7294_v3 = vmul.f32 %v13193_v41, %v7277_v1 }
 0xbc5   :  { %v13195_v51 = vpop.eup %13194  ;;  %v7295_v25 = vadd.f32 %v7294_v3, %v7063_v55 }
 0xbc6   :  { %v7525_v17 = vadd.f32 1.0, %v13195_v51 }
 0xbc7   :  { %13200 = vtanh.f32 %v7295_v25 }
 0xbc8   :  { %13202 = vrcp.f32 %v7525_v17 }
 0xbcb   :  { %v13197_v4 = vpop.eup %13196 }
 0xbcc   :  { %v7528_v22 = vmul.f32 %v13197_v4, %v7511_v27  ;;  %v13199_v43 = vpop.eup %13198 }
 0xbcd   :  { %v7297_v52 = vsub.f32 1.0, %v13199_v43  ;;  %v7299_v16 = vmul.f32 %v13199_v43, %v15250_v30  ;;  %v15348_v30 = vld [vmem:[#allocation12 + $0x70] sm:$0xff] }
 0xbce   :  { %v7529_v12 = vadd.f32 %v7528_v22, %v7066_v49  ;;  %v7541_v43 = vld [vmem:[#allocation2 + $0x90] sm:$0xff] }
 0xbd0   :  { %13204 = vtanh.f32 %v7529_v12 }
 0xbd4   :  { %v13201_v8 = vpop.eup %13200 }
 0xbd5   :  { %v7298_v62 = vmul.f32 %v13201_v8, %v7297_v52  ;;  %v13203_v20 = vpop.eup %13202 }
 0xbd6   :  { %v7531_v13 = vsub.f32 1.0, %v13203_v20  ;;  %v7533_v18 = vmul.f32 %v13203_v20, %v15252_v15  ;;  %v15418_v15 = vld [vmem:[#allocation12 + $0x10] sm:$0xff] }
 0xbd7   :  { %v15333_v63 = vadd.f32 %v7299_v16, %v7298_v62 }
 0xbd9   :  { %7536 = vst.msk [vmem:[#allocation5 + $0x8] sm:$0xff] %vm417_vm10, %v15333_v63  ;;  %12607 = vmatmul.mubr.msk.f32.vlgmr.msra.gmra.mxu0 %vm417_vm10, %v15333_v63  ;;  %12618 = vmatmul.mubr.msk.f32.vlgmr.msra.gmra.mxu1 %vm417_vm10, %v15333_v63 }
 0xbda   :  { %12621 = vmatpush3.msra.mxu0 %v15002_v39  ;;  %12632 = vmatpush3.msra.mxu1 %v15342_v6 }
 0xbdb   :  { %12622 = vmatprep.subr.mxu0 %v13516_v21  ;;  %12633 = vmatprep.subr.mxu1 %v13516_v21 }
 0xbdc   :  { %12623 = vmatpush3.msra.mxu0 %v15008_v7  ;;  %12634 = vmatpush3.msra.mxu1 %v15348_v30 }
 0xbdd   :  { %v13205_v33 = vpop.eup %13204  ;;  %12624 = vmatprep.subr.mxu0 %v13516_v21  ;;  %12635 = vmatprep.subr.mxu1 %v13516_v21 }
 0xbde   :  { %v7532_v39 = vmul.f32 %v13205_v33, %v7531_v13  ;;  %12625 = vmatpush3.msra.mxu0 %v15014_v26  ;;  %12636 = vmatpush3.msra.mxu1 %v15354_v44  ;;  %v15379_v26 = vld [vmem:[#allocation12 + $0xb8] sm:$0xff]  ;;  %v7544_v33 = vld [vmem:[#allocation2 + $0x168] sm:$0xff] }
 0xbdf   :  { %12626 = vmatprep.subr.mxu0 %v13516_v21  ;;  %12637 = vmatprep.subr.mxu1 %v13516_v21 }
 0xbe0   :  { %12627 = vmatpush3.msra.mxu0 %v15018_v50  ;;  %12628 = vmatprep.mubr.msk.f32.mxu0 %vm13517_vm11, %v13516_v21  ;;  %v15363_v7 = vadd.f32 %v7533_v18, %v7532_v39  ;;  %v15385_v50 = vld [vmem:[#allocation12 + $0xb0] sm:$0xff] }
 0xbe1   :  { %12638 = vmatpush3.msra.mxu1 %v15365_v61  ;;  %12639 = vmatprep.mubr.msk.f32.mxu1 %vm13517_vm11, %v13516_v21 }
 0xbe2   :  { %12629 = vmatmul.mubr.msk.f32.vlgmr.msra.gmra.mxu0 %vm417_vm10, %v15333_v63  ;;  %7538 = vst.msk [vmem:[#allocation6 + $0x30] sm:$0xff] %vm417_vm10, %v15363_v7  ;;  %12640 = vmatmul.mubr.msk.f32.vlgmr.msra.gmra.mxu1 %vm417_vm10, %v15363_v7 }
 0xbe3   :  { %12642 = vmatprep.subr.mxu0 %v13516_v21  ;;  %12653 = vmatprep.subr.mxu1 %v13516_v21 }
 0xbe4   :  { %12643 = vmatpush3.msra.mxu0 %v15022_v32  ;;  %12654 = vmatpush3.msra.mxu1 %v15379_v26  ;;  %v15391_v32 = vld [vmem:[#allocation12 + $0xa8] sm:$0xff] }
 0xbe5   :  { %12644 = vmatprep.subr.mxu0 %v13516_v21  ;;  %12655 = vmatprep.subr.mxu1 %v13516_v21 }
 0xbe6   :  { %12645 = vmatpush3.msra.mxu0 %v15028_v28  ;;  %12656 = vmatpush3.msra.mxu1 %v15385_v50  ;;  %v15399_v28 = vld [vmem:[#allocation12 + $0xa0] sm:$0xff] }
 0xbe7   :  { %12646 = vmatprep.subr.mxu0 %v13516_v21  ;;  %12657 = vmatprep.subr.mxu1 %v13516_v21 }
 0xbe8   :  { %12647 = vmatpush3.msra.mxu0 %v15034_v53  ;;  %12658 = vmatpush3.msra.mxu1 %v15391_v32  ;;  %v15410_v53 = vld [vmem:[#allocation12 + $0x18] sm:$0xff] }
 0xbe9   :  { %12648 = vmatprep.subr.mxu0 %v13516_v21  ;;  %12659 = vmatprep.subr.mxu1 %v13516_v21 }
 0xbea   :  { %12649 = vmatpush3.msra.mxu0 %v15038_v11  ;;  %12650 = vmatprep.mubr.msk.f32.mxu0 %vm13517_vm11, %v13516_v21  ;;  %v15413_v11 = vld [vmem:[#allocation12 + $0x38] sm:$0xff] }
 0xbeb   :  { %12660 = vmatpush3.msra.mxu1 %v15399_v28  ;;  %12661 = vmatprep.mubr.msk.f32.mxu1 %vm13517_vm11, %v13516_v21 }
 0xbec   :  { %12651 = vmatmul.mubr.msk.f32.vlgmr.msra.gmra.mxu0 %vm417_vm10, %v15363_v7  ;;  %12662 = vmatmul.mubr.msk.f32.vlgmr.msra.gmra.mxu1 %vm417_vm10, %v15363_v7 }
 0xbed   :  { %12664 = vmatprep.subr.mxu0 %v13516_v21  ;;  %12675 = vmatprep.subr.mxu1 %v13516_v21 }
 0xbee   :  { %12665 = vmatpush3.msra.mxu0 %v15410_v53  ;;  %12676 = vmatpush3.msra.mxu1 %v15413_v11 }
 0xbef   :  { %12666 = vmatprep.subr.mxu0 %v13516_v21  ;;  %12677 = vmatprep.subr.mxu1 %v13516_v21 }
 0xbf0   :  { %12667 = vmatpush3.msra.mxu0 %v15418_v15  ;;  %12678 = vmatpush3.msra.mxu1 %v15421_v9 }
 0xbf1   :  { %12668 = vmatprep.subr.mxu0 %v13516_v21  ;;  %12679 = vmatprep.subr.mxu1 %v13516_v21 }
 0xbf2   :  { %12669 = vmatpush3.msra.mxu0 %v15426_v0  ;;  %12680 = vmatpush3.msra.mxu1 %v15429_v5 }
 0xbf3   :  { %12670 = vmatprep.subr.mxu0 %v13516_v21  ;;  %12681 = vmatprep.subr.mxu1 %v13516_v21 }
 0xbf4   :  { %12671 = vmatpush3.msra.mxu0 %v15434_v42  ;;  %12682 = vmatpush3.msra.mxu1 %v15437_v47 }
 0xbf5   :  { %12672 = vmatprep.mubr.msk.f32.mxu0 %vm13517_vm11, %v13516_v21  ;;  %12683 = vmatprep.mubr.msk.f32.mxu1 %vm13517_vm11, %v13516_v21 }
 0xbf6   :  { %12686 = vmatprep.subr.mxu0 %v13516_v21  ;;  %12697 = vmatprep.subr.mxu1 %v13516_v21 }
 0xc99   :  { %v7614_v37 = vpop.f32.mrf.mxu0  ;;  %v7684_v59 = vpop.f32.mrf.mxu1 }
 0xc9a   :  { %v7758_v19 = vadd.f32 %v7614_v37, %v7539_v34  ;;  %v7765_v24 = vadd.f32 %v7684_v59, %v7540_v40  ;;  %v15463_v40 = vld [vmem:[#allocation12 + $0x50] sm:$0xff] }
 0xc9b   :  { %v12608_v58 = vpop.f32.mrf.mxu0  ;;  %v12619_v23 = vpop.f32.mrf.mxu1 }
 0xc9c   :  { %v10820_v54 = vmul.f32 -1.442695, %v7758_v19  ;;  %v10821_v10 = vmul.f32 -1.442695, %v7765_v24 }
 0xc9e   :  { %13206 = vpow2.f32 %v10820_v54  ;;  %v15457_v54 = vld [vmem:[#allocation12 + $0x58] sm:$0xff] }
 0xca2   :  { %v7754_v48 = vpop.f32.mrf.mxu0  ;;  %v7848_v29 = vpop.f32.mrf.mxu1 }
 0xca3   :  { %v7992_v45 = vadd.f32 %v7848_v29, %v7542_v35  ;;  %v7755_v22 = vadd.f32 %v15245_v46, %v7754_v48  ;;  %v15469_v35 = vld [vmem:[#allocation12 + $0x48] sm:$0xff] }
 0xca4   :  { %v12630_v14 = vpop.f32.mrf.mxu0  ;;  %v12641_v60 = vpop.f32.mrf.mxu1 }
 0xca5   :  { %v10825_v57 = vmul.f32 -1.442695, %v7992_v45  ;;  %v15476_v45 = vld [vmem:[#allocation12 + $0x40] sm:$0xff]  ;;  %v15500_v14 = vld [vmem:[#allocation12 + $0x90] sm:$0xff]  ;;  %v15506_v60 = vld [vmem:[#allocation12 + $0x88] sm:$0xff] }
 0xca7   :  { %13208 = vpow2.f32 %v10825_v57  ;;  %v15512_v57 = vld [vmem:[#allocation12 + $0x80] sm:$0xff] }
 0xca8   :  { %13210 = vpow2.f32 %v10821_v10 }
 0xcab   :  { %v13207_v36 = vpop.eup %13206 }
 0xcac   :  { %v7762_v56 = vadd.f32 1.0, %v13207_v36  ;;  %v7918_v2 = vpop.f32.mrf.mxu0  ;;  %v7988_v1 = vpop.f32.mrf.mxu1  ;;  %v8017_v36 = vld [vmem:[#allocation2 + $0x18] sm:$0xff] }
 0xcad   :  { %v7999_v41 = vadd.f32 %v7918_v2, %v7543_v31  ;;  %v7989_v16 = vadd.f32 %v15239_v38, %v7988_v1 }
 0xcae   :  { %13212 = vrcp.f32 %v7762_v56  ;;  %v12652_v3 = vpop.f32.mrf.mxu0  ;;  %v12663_v55 = vpop.f32.mrf.mxu1 }
 0xcaf   :  { %v10826_v51 = vmul.f32 -1.442695, %v7999_v41  ;;  %v8018_v55 = vld [vmem:[#allocation2 + $0x58] sm:$0xff] }
 0xcb1   :  { %13214 = vpow2.f32 %v10826_v51 }
 0xcb4   :  { %v13209_v25 = vpop.eup %13208 }
 0xcb5   :  { %v13211_v17 = vpop.eup %13210  ;;  %v7996_v27 = vadd.f32 1.0, %v13209_v25 }
 0xcb6   :  { %v7769_v4 = vadd.f32 1.0, %v13211_v17  ;;  %v8020_v17 = vld [vmem:[#allocation2 + $0xe0] sm:$0xff] }
 0xcb7   :  { %13216 = vrcp.f32 %v7996_v27 }
 0xcb8   :  { %13218 = vrcp.f32 %v7769_v4 }
 0xcbb   :  { %v13213_v49 = vpop.eup %13212 }
 0xcbc   :  { %v7772_v12 = vmul.f32 %v13213_v49, %v7755_v22 }
 0xcbe   :  { %v13215_v52 = vpop.eup %13214  ;;  %v7773_v8 = vadd.f32 %v7772_v12, %v7541_v43 }
 0xcbf   :  { %v8003_v62 = vadd.f32 1.0, %v13215_v52 }
 0xcc0   :  { %13220 = vtanh.f32 %v7773_v8 }
 0xcc1   :  { %13222 = vrcp.f32 %v8003_v62  ;;  %v8021_v62 = vld [vmem:[#allocation2 + $0x120] sm:$0xff] }
 0xcc4   :  { %v13217_v20 = vpop.eup %13216 }
 0xcc5   :  { %v8006_v13 = vmul.f32 %v13217_v20, %v7989_v16  ;;  %v13219_v18 = vpop.eup %13218 }
 0xcc6   :  { %v7775_v34 = vsub.f32 1.0, %v13219_v18  ;;  %v7777_v19 = vmul.f32 %v13219_v18, %v15333_v63 }
 0xcc7   :  { %v8007_v39 = vadd.f32 %v8006_v13, %v7544_v33 }
 0xcc9   :  { %13224 = vtanh.f32 %v8007_v39 }
 0xccd   :  { %v13221_v37 = vpop.eup %13220 }
 0xcce   :  { %v7776_v59 = vmul.f32 %v13221_v37, %v7775_v34  ;;  %v13223_v23 = vpop.eup %13222 }
 0xccf   :  { %v8009_v63 = vsub.f32 1.0, %v13223_v23  ;;  %v8011_v29 = vmul.f32 %v13223_v23, %v15363_v7  ;;  %v15494_v7 = vld [vmem:[#allocation12 + $0x98] sm:$0xff] }
 0xcd0   :  { %v15449_v58 = vadd.f32 %v7777_v19, %v7776_v59 }
 0xcd2   :  { %8014 = vst.msk [vmem:[#allocation5 + $0x10] sm:$0xff] %vm417_vm10, %v15449_v58  ;;  %12673 = vmatmul.mubr.msk.f32.vlgmr.msra.gmra.mxu0 %vm417_vm10, %v15449_v58  ;;  %12684 = vmatmul.mubr.msk.f32.vlgmr.msra.gmra.mxu1 %vm417_vm10, %v15449_v58 }
 0xcd3   :  { %12687 = vmatpush3.msra.mxu0 %v15457_v54  ;;  %12698 = vmatpush3.msra.mxu1 %v15342_v6 }
 0xcd4   :  { %12688 = vmatprep.subr.mxu0 %v13516_v21  ;;  %12699 = vmatprep.subr.mxu1 %v13516_v21 }
 0xcd5   :  { %12689 = vmatpush3.msra.mxu0 %v15463_v40  ;;  %12700 = vmatpush3.msra.mxu1 %v15348_v30 }
 0xcd6   :  { %v13225_v24 = vpop.eup %13224  ;;  %12690 = vmatprep.subr.mxu0 %v13516_v21  ;;  %12701 = vmatprep.subr.mxu1 %v13516_v21 }
 0xcd7   :  { %v8010_v48 = vmul.f32 %v13225_v24, %v8009_v63  ;;  %12691 = vmatpush3.msra.mxu0 %v15469_v35  ;;  %12702 = vmatpush3.msra.mxu1 %v15354_v44 }
 0xcd8   :  { %12692 = vmatprep.subr.mxu0 %v13516_v21  ;;  %12703 = vmatprep.subr.mxu1 %v13516_v21 }
 0xcd9   :  { %12693 = vmatpush3.msra.mxu0 %v15476_v45  ;;  %12694 = vmatprep.mubr.msk.f32.mxu0 %vm13517_vm11, %v13516_v21  ;;  %v15481_v10 = vadd.f32 %v8011_v29, %v8010_v48  ;;  %v8019_v48 = vld [vmem:[#allocation2 + $0x98] sm:$0xff] }
 0xcda   :  { %12704 = vmatpush3.msra.mxu1 %v15365_v61  ;;  %12705 = vmatprep.mubr.msk.f32.mxu1 %vm13517_vm11, %v13516_v21 }
 0xcdb   :  { %12695 = vmatmul.mubr.msk.f32.vlgmr.msra.gmra.mxu0 %vm417_vm10, %v15449_v58  ;;  %8016 = vst.msk [vmem:[#allocation6 + $0x28] sm:$0xff] %vm417_vm10, %v15481_v10  ;;  %12706 = vmatmul.mubr.msk.f32.vlgmr.msra.gmra.mxu1 %vm417_vm10, %v15481_v10 }
 0xcdc   :  { %12708 = vmatprep.subr.mxu0 %v13516_v21  ;;  %12719 = vmatprep.subr.mxu1 %v13516_v21 }
 0xcdd   :  { %12709 = vmatpush3.msra.mxu0 %v15494_v7  ;;  %12720 = vmatpush3.msra.mxu1 %v15379_v26 }
 0xcde   :  { %12710 = vmatprep.subr.mxu0 %v13516_v21  ;;  %12721 = vmatprep.subr.mxu1 %v13516_v21 }
 0xcdf   :  { %12711 = vmatpush3.msra.mxu0 %v15500_v14  ;;  %12722 = vmatpush3.msra.mxu1 %v15385_v50 }
 0xce0   :  { %12712 = vmatprep.subr.mxu0 %v13516_v21  ;;  %12723 = vmatprep.subr.mxu1 %v13516_v21 }
 0xce1   :  { %12713 = vmatpush3.msra.mxu0 %v15506_v60  ;;  %12724 = vmatpush3.msra.mxu1 %v15391_v32 }
 0xce2   :  { %12714 = vmatprep.subr.mxu0 %v13516_v21  ;;  %12725 = vmatprep.subr.mxu1 %v13516_v21 }
 0xce3   :  { %12715 = vmatpush3.msra.mxu0 %v15512_v57  ;;  %12716 = vmatprep.mubr.msk.f32.mxu0 %vm13517_vm11, %v13516_v21 }
 0xce4   :  { %12726 = vmatpush3.msra.mxu1 %v15399_v28  ;;  %12727 = vmatprep.mubr.msk.f32.mxu1 %vm13517_vm11, %v13516_v21 }
 0xce5   :  { %12717 = vmatmul.mubr.msk.f32.vlgmr.msra.gmra.mxu0 %vm417_vm10, %v15481_v10  ;;  %12728 = vmatmul.mubr.msk.f32.vlgmr.msra.gmra.mxu1 %vm417_vm10, %v15481_v10 }
 0xce6   :  { %12730 = vmatprep.subr.mxu0 %v13516_v21  ;;  %12741 = vmatprep.subr.mxu1 %v13516_v21 }
 0xce7   :  { %12731 = vmatpush3.msra.mxu0 %v15410_v53  ;;  %12742 = vmatpush3.msra.mxu1 %v15413_v11 }
 0xce8   :  { %12732 = vmatprep.subr.mxu0 %v13516_v21  ;;  %12743 = vmatprep.subr.mxu1 %v13516_v21 }
 0xce9   :  { %12733 = vmatpush3.msra.mxu0 %v15418_v15  ;;  %12744 = vmatpush3.msra.mxu1 %v15421_v9 }
 0xcea   :  { %12734 = vmatprep.subr.mxu0 %v13516_v21  ;;  %12745 = vmatprep.subr.mxu1 %v13516_v21 }
 0xceb   :  { %12735 = vmatpush3.msra.mxu0 %v15426_v0  ;;  %12746 = vmatpush3.msra.mxu1 %v15429_v5 }
 0xcec   :  { %12736 = vmatprep.subr.mxu0 %v13516_v21  ;;  %12747 = vmatprep.subr.mxu1 %v13516_v21 }
 0xced   :  { %12737 = vmatpush3.msra.mxu0 %v15434_v42  ;;  %12748 = vmatpush3.msra.mxu1 %v15437_v47 }
 0xcee   :  { %12738 = vmatprep.mubr.msk.f32.mxu0 %vm13517_vm11, %v13516_v21  ;;  %12749 = vmatprep.mubr.msk.f32.mxu1 %vm13517_vm11, %v13516_v21 }
 0xcef   :  { %12752 = vmatprep.subr.mxu0 %v13516_v21  ;;  %12763 = vmatprep.subr.mxu1 %v13516_v21 }
 0xd92   :  { %v8092_v56 = vpop.f32.mrf.mxu0  ;;  %v8162_v31 = vpop.f32.mrf.mxu1 }
 0xd93   :  { %v8236_v2 = vadd.f32 %v8092_v56, %v8017_v36  ;;  %v8243_v51 = vadd.f32 %v8162_v31, %v8018_v55 }
 0xd94   :  { %v12674_v1 = vpop.f32.mrf.mxu0  ;;  %v12685_v41 = vpop.f32.mrf.mxu1 }
 0xd95   :  { %v10830_v3 = vmul.f32 -1.442695, %v8236_v2  ;;  %v10831_v22 = vmul.f32 -1.442695, %v8243_v51  ;;  %v8022_v41 = vld [vmem:[#allocation2 + $0x160] sm:$0xff] }
 0xd97   :  { %13226 = vpow2.f32 %v10830_v3 }
 0xd9b   :  { %v8232_v25 = vpop.f32.mrf.mxu0  ;;  %v8326_v27 = vpop.f32.mrf.mxu1 }
 0xd9c   :  { %v8470_v4 = vadd.f32 %v8326_v27, %v8020_v17  ;;  %v8233_v23 = vadd.f32 %v15245_v46, %v8232_v25 }
 0xd9d   :  { %v12696_v49 = vpop.f32.mrf.mxu0  ;;  %v12707_v12 = vpop.f32.mrf.mxu1 }
 0xd9e   :  { %v10835_v43 = vmul.f32 -1.442695, %v8470_v4 }
 0xda0   :  { %13228 = vpow2.f32 %v10835_v43 }
 0xda1   :  { %13230 = vpow2.f32 %v10831_v22 }
 0xda4   :  { %v13227_v52 = vpop.eup %13226 }
 0xda5   :  { %v8240_v8 = vadd.f32 1.0, %v13227_v52  ;;  %v8396_v16 = vpop.f32.mrf.mxu0  ;;  %v8466_v20 = vpop.f32.mrf.mxu1 }
 0xda6   :  { %v8477_v13 = vadd.f32 %v8396_v16, %v8021_v62  ;;  %v8467_v31 = vadd.f32 %v15239_v38, %v8466_v20 }
 0xda7   :  { %13232 = vrcp.f32 %v8240_v8  ;;  %v12718_v33 = vpop.f32.mrf.mxu0  ;;  %v12729_v39 = vpop.f32.mrf.mxu1 }
 0xda8   :  { %v10836_v18 = vmul.f32 -1.442695, %v8477_v13  ;;  %v8496_v33 = vld [vmem:[#allocation2 + $0x60] sm:$0xff] }
 0xdaa   :  { %13234 = vpow2.f32 %v10836_v18 }
 0xdad   :  { %v13229_v34 = vpop.eup %13228 }
 0xdae   :  { %v13231_v37 = vpop.eup %13230  ;;  %v8474_v59 = vadd.f32 1.0, %v13229_v34  ;;  %v8498_v34 = vld [vmem:[#allocation2 + $0xd8] sm:$0xff] }
 0xdaf   :  { %v8247_v19 = vadd.f32 1.0, %v13231_v37 }
 0xdb0   :  { %13236 = vrcp.f32 %v8474_v59 }
 0xdb1   :  { %13238 = vrcp.f32 %v8247_v19 }
 0xdb4   :  { %v13233_v63 = vpop.eup %13232 }
 0xdb5   :  { %v8250_v24 = vmul.f32 %v13233_v63, %v8233_v23 }
 0xdb7   :  { %v13235_v29 = vpop.eup %13234  ;;  %v8251_v36 = vadd.f32 %v8250_v24, %v8019_v48 }
 0xdb8   :  { %v8481_v56 = vadd.f32 1.0, %v13235_v29 }
 0xdb9   :  { %13240 = vtanh.f32 %v8251_v36  ;;  %v8499_v36 = vld [vmem:[#allocation2 + $0x118] sm:$0xff] }
 0xdba   :  { %13242 = vrcp.f32 %v8481_v56 }
 0xdbd   :  { %v13237_v2 = vpop.eup %13236 }
 0xdbe   :  { %v8484_v1 = vmul.f32 %v13237_v2, %v8467_v31  ;;  %v13239_v55 = vpop.eup %13238 }
 0xdbf   :  { %v8253_v51 = vsub.f32 1.0, %v13239_v55  ;;  %v8255_v27 = vmul.f32 %v13239_v55, %v15449_v58 }
 0xdc0   :  { %v8485_v3 = vadd.f32 %v8484_v1, %v8022_v41 }
 0xdc2   :  { %13244 = vtanh.f32 %v8485_v3 }
 0xdc6   :  { %v13241_v17 = vpop.eup %13240 }
 0xdc7   :  { %v8254_v25 = vmul.f32 %v13241_v17, %v8253_v51  ;;  %v13243_v22 = vpop.eup %13242 }
 0xdc8   :  { %v8487_v38 = vsub.f32 1.0, %v13243_v22  ;;  %v8489_v12 = vmul.f32 %v13243_v22, %v15481_v10  ;;  %v8495_v10 = vld [vmem:[#allocation2 + $0x20] sm:$0xff] }
 0xdc9   :  { %v15549_v4 = vadd.f32 %v8255_v27, %v8254_v25 }
 0xdcb   :  { %8492 = vst.msk [vmem:[#allocation5 + $0x18] sm:$0xff] %vm417_vm10, %v15549_v4  ;;  %12739 = vmatmul.mubr.msk.f32.vlgmr.msra.gmra.mxu0 %vm417_vm10, %v15549_v4  ;;  %12750 = vmatmul.mubr.msk.f32.vlgmr.msra.gmra.mxu1 %vm417_vm10, %v15549_v4 }
 0xdcc   :  { %12753 = vmatpush3.msra.mxu0 %v15457_v54  ;;  %12764 = vmatpush3.msra.mxu1 %v15342_v6 }
 0xdcd   :  { %12754 = vmatprep.subr.mxu0 %v13516_v21  ;;  %12765 = vmatprep.subr.mxu1 %v13516_v21 }
 0xdce   :  { %12755 = vmatpush3.msra.mxu0 %v15463_v40  ;;  %12766 = vmatpush3.msra.mxu1 %v15348_v30 }
 0xdcf   :  { %v13245_v58 = vpop.eup %13244  ;;  %12756 = vmatprep.subr.mxu0 %v13516_v21  ;;  %12767 = vmatprep.subr.mxu1 %v13516_v21 }
 0xdd0   :  { %v8488_v49 = vmul.f32 %v13245_v58, %v8487_v38  ;;  %12757 = vmatpush3.msra.mxu0 %v15469_v35  ;;  %12768 = vmatpush3.msra.mxu1 %v15354_v44  ;;  %v8497_v58 = vld [vmem:[#allocation2 + $0xa0] sm:$0xff] }
 0xdd1   :  { %12758 = vmatprep.subr.mxu0 %v13516_v21  ;;  %12769 = vmatprep.subr.mxu1 %v13516_v21 }
 0xdd2   :  { %12759 = vmatpush3.msra.mxu0 %v15476_v45  ;;  %12760 = vmatprep.mubr.msk.f32.mxu0 %vm13517_vm11, %v13516_v21  ;;  %v15573_v43 = vadd.f32 %v8489_v12, %v8488_v49 }
 0xdd3   :  { %12770 = vmatpush3.msra.mxu1 %v15365_v61  ;;  %12771 = vmatprep.mubr.msk.f32.mxu1 %vm13517_vm11, %v13516_v21 }
 0xdd4   :  { %12761 = vmatmul.mubr.msk.f32.vlgmr.msra.gmra.mxu0 %vm417_vm10, %v15549_v4  ;;  %8494 = vst.msk [vmem:[#allocation6 + $0x20] sm:$0xff] %vm417_vm10, %v15573_v43  ;;  %12772 = vmatmul.mubr.msk.f32.vlgmr.msra.gmra.mxu1 %vm417_vm10, %v15573_v43 }
 0xdd5   :  { %12774 = vmatprep.subr.mxu0 %v13516_v21  ;;  %12785 = vmatprep.subr.mxu1 %v13516_v21 }
 0xdd6   :  { %12775 = vmatpush3.msra.mxu0 %v15494_v7  ;;  %12786 = vmatpush3.msra.mxu1 %v15379_v26 }
 0xdd7   :  { %12776 = vmatprep.subr.mxu0 %v13516_v21  ;;  %12787 = vmatprep.subr.mxu1 %v13516_v21 }
 0xdd8   :  { %12777 = vmatpush3.msra.mxu0 %v15500_v14  ;;  %12788 = vmatpush3.msra.mxu1 %v15385_v50 }
 0xdd9   :  { %12778 = vmatprep.subr.mxu0 %v13516_v21  ;;  %12789 = vmatprep.subr.mxu1 %v13516_v21 }
 0xdda   :  { %12779 = vmatpush3.msra.mxu0 %v15506_v60  ;;  %12790 = vmatpush3.msra.mxu1 %v15391_v32 }
 0xddb   :  { %12780 = vmatprep.subr.mxu0 %v13516_v21  ;;  %12791 = vmatprep.subr.mxu1 %v13516_v21 }
 0xddc   :  { %12781 = vmatpush3.msra.mxu0 %v15512_v57  ;;  %12782 = vmatprep.mubr.msk.f32.mxu0 %vm13517_vm11, %v13516_v21 }
 0xddd   :  { %12792 = vmatpush3.msra.mxu1 %v15399_v28  ;;  %12793 = vmatprep.mubr.msk.f32.mxu1 %vm13517_vm11, %v13516_v21 }
 0xdde   :  { %12783 = vmatmul.mubr.msk.f32.vlgmr.msra.gmra.mxu0 %vm417_vm10, %v15573_v43  ;;  %12794 = vmatmul.mubr.msk.f32.vlgmr.msra.gmra.mxu1 %vm417_vm10, %v15573_v43 }
 0xddf   :  { %12796 = vmatprep.subr.mxu0 %v13516_v21  ;;  %12807 = vmatprep.subr.mxu1 %v13516_v21 }
 0xde0   :  { %12797 = vmatpush3.msra.mxu0 %v15410_v53  ;;  %12808 = vmatpush3.msra.mxu1 %v15413_v11 }
 0xde1   :  { %12798 = vmatprep.subr.mxu0 %v13516_v21  ;;  %12809 = vmatprep.subr.mxu1 %v13516_v21 }
 0xde2   :  { %12799 = vmatpush3.msra.mxu0 %v15418_v15  ;;  %12810 = vmatpush3.msra.mxu1 %v15421_v9 }
 0xde3   :  { %12800 = vmatprep.subr.mxu0 %v13516_v21  ;;  %12811 = vmatprep.subr.mxu1 %v13516_v21 }
 0xde4   :  { %12801 = vmatpush3.msra.mxu0 %v15426_v0  ;;  %12812 = vmatpush3.msra.mxu1 %v15429_v5 }
 0xde5   :  { %12802 = vmatprep.subr.mxu0 %v13516_v21  ;;  %12813 = vmatprep.subr.mxu1 %v13516_v21 }
 0xde6   :  { %12803 = vmatpush3.msra.mxu0 %v15434_v42  ;;  %12814 = vmatpush3.msra.mxu1 %v15437_v47 }
 0xde7   :  { %12804 = vmatprep.mubr.msk.f32.mxu0 %vm13517_vm11, %v13516_v21  ;;  %12815 = vmatprep.mubr.msk.f32.mxu1 %vm13517_vm11, %v13516_v21 }
 0xde8   :  { %12818 = vmatprep.subr.mxu0 %v13516_v21  ;;  %12829 = vmatprep.subr.mxu1 %v13516_v21 }
 0xe8b   :  { %v8570_v52 = vpop.f32.mrf.mxu0  ;;  %v8640_v8 = vpop.f32.mrf.mxu1 }
 0xe8c   :  { %v8714_v62 = vadd.f32 %v8570_v52, %v8495_v10  ;;  %v8721_v39 = vadd.f32 %v8640_v8, %v8496_v33  ;;  %v15634_v52 = vld [vmem:[%s15908_s10 + $0x1] ss:$0 sm:$0xff] }
 0xe8d   :  { %v12740_v16 = vpop.f32.mrf.mxu0  ;;  %v12751_v20 = vpop.f32.mrf.mxu1 }
 0xe8e   :  { %v10840_v13 = vmul.f32 -1.442695, %v8714_v62  ;;  %v10841_v19 = vmul.f32 -1.442695, %v8721_v39  ;;  %v8500_v20 = vld [vmem:[#allocation2 + $0x158] sm:$0xff] }
 0xe90   :  { %13246 = vpow2.f32 %v10840_v13 }
 0xe94   :  { %v8710_v18 = vpop.f32.mrf.mxu0  ;;  %v8804_v37 = vpop.f32.mrf.mxu1 }
 0xe95   :  { %v8948_v59 = vadd.f32 %v8804_v37, %v8498_v34  ;;  %v8711_v27 = vadd.f32 %v15245_v46, %v8710_v18 }
 0xe96   :  { %v12762_v23 = vpop.f32.mrf.mxu0  ;;  %v12773_v63 = vpop.f32.mrf.mxu1 }
 0xe97   :  { %v10845_v24 = vmul.f32 -1.442695, %v8948_v59 }
 0xe99   :  { %13248 = vpow2.f32 %v10845_v24  ;;  %v10422_v24 = vld [vmem:[#allocation6 + $0x20] sm:$0xff] }
 0xe9a   :  { %13250 = vpow2.f32 %v10841_v19 }
 0xe9d   :  { %v13247_v48 = vpop.eup %13246 }
 0xe9e   :  { %v8718_v29 = vadd.f32 1.0, %v13247_v48  ;;  %v8874_v56 = vpop.f32.mrf.mxu0  ;;  %v8944_v31 = vpop.f32.mrf.mxu1 }
 0xe9f   :  { %v8955_v2 = vadd.f32 %v8874_v56, %v8499_v36  ;;  %v8945_v8 = vadd.f32 %v15634_v52, %v8944_v31 }
 0xea0   :  { %13252 = vrcp.f32 %v8718_v29  ;;  %v12784_v1 = vpop.f32.mrf.mxu0  ;;  %v12795_v41 = vpop.f32.mrf.mxu1 }
 0xea1   :  { %v10846_v3 = vmul.f32 -1.442695, %v8955_v2 }
 0xea3   :  { %13254 = vpow2.f32 %v10846_v3  ;;  %v8977_v3 = vld [vmem:[#allocation2 + $0x110] sm:$0xff] }
 0xea6   :  { %v13249_v55 = vpop.eup %13248 }
 0xea7   :  { %v13251_v51 = vpop.eup %13250  ;;  %v8952_v17 = vadd.f32 1.0, %v13249_v55 }
 0xea8   :  { %v8725_v25 = vadd.f32 1.0, %v13251_v51 }
 0xea9   :  { %13256 = vrcp.f32 %v8952_v17 }
 0xeaa   :  { %13258 = vrcp.f32 %v8725_v25 }
 0xead   :  { %v13253_v22 = vpop.eup %13252 }
 0xeae   :  { %v8728_v38 = vmul.f32 %v13253_v22, %v8711_v27 }
 0xeb0   :  { %v13255_v49 = vpop.eup %13254  ;;  %v8729_v12 = vadd.f32 %v8728_v38, %v8497_v58 }
 0xeb1   :  { %v8959_v10 = vadd.f32 1.0, %v13255_v49 }
 0xeb2   :  { %13260 = vtanh.f32 %v8729_v12 }
 0xeb3   :  { %13262 = vrcp.f32 %v8959_v10  ;;  %v15724_v10 = vld [vmem:[%s15908_s10] ss:$0 sm:$0xff]  ;;  %s13518_s10 = smov [#allocation14]  }
 0xeb4   :  { %s10459_s1 = sshll.u32 %s13518_s10, 4  ;;  %s10460_s1 = int_to_ptr.vmem [resolvable:$true] %s10459_s1 }
 0xeb5   :  { %s13462_s13 = scalar_lea.vmem %s10460_s1, 512  ;;  %p13467_p2 = scmp.lt.s32.totalorder %s10460_s1, %s10460_s1 }
 0xeb6   :  { %v13257_v62 = vpop.eup %13256  ;;  %p13463_p1 = scmp.ne.s32.totalorder %s10460_s1, %s13462_s13  ;;  %p13468_p3 = scmp.lt.s32.totalorder %s13462_s13, %s13462_s13 }
 0xeb7   :  { %v8962_v16 = vmul.f32 %v13257_v62, %v8945_v8  ;;  %v13259_v13 = vpop.eup %13258 }
 0xeb8   :  { %v8731_v33 = vsub.f32 1.0, %v13259_v13  ;;  %v8733_v34 = vmul.f32 %v13259_v13, %v15549_v4  ;;  %p13469_p4 = por %p13468_p3, %p13467_p2 }
 0xeb9   :  { %v8963_v46 = vadd.f32 %v8962_v16, %v8500_v20  ;;  %v8975_v20 = vld [vmem:[#allocation2 + $0xa8] sm:$0xff] }
 0xeba   :  { %p13470_p5 = pnand %p13469_p4, %p13463_p1 }
 0xebb   :  { %13264 = vtanh.f32 %v8963_v46 }
 0xebf   :  { %v13261_v39 = vpop.eup %13260 }
 0xec0   :  { %v8732_v18 = vmul.f32 %v13261_v39, %v8731_v33  ;;  %v13263_v59 = vpop.eup %13262 }
 0xec1   :  { %v8965_v4 = vsub.f32 1.0, %v13263_v59 }
 0xec2   :  { %v15638_v37 = vadd.f32 %v8733_v34, %v8732_v18 }
 0xec4   :  { %8970 = vst.msk [vmem:[#allocation5 + $0x20] sm:$0xff] %vm417_vm10, %v15638_v37  ;;  %12805 = vmatmul.mubr.msk.f32.vlgmr.msra.gmra.mxu0 %vm417_vm10, %v15638_v37  ;;  %12816 = vmatmul.mubr.msk.f32.vlgmr.msra.gmra.mxu1 %vm417_vm10, %v15638_v37 }
 0xec5   :  { %12819 = vmatpush3.msra.mxu0 %v15457_v54  ;;  %12830 = vmatpush3.msra.mxu1 %v15342_v6  ;;  %v8967_v6 = vmul.f32 %v13263_v59, %v15573_v43  ;;  %v8976_v43 = vld [vmem:[#allocation2 + $0xd0] sm:$0xff] }
 0xec6   :  { %12820 = vmatprep.subr.mxu0 %v13516_v21  ;;  %12831 = vmatprep.subr.mxu1 %v13516_v21  ;;  %v8978_v59 = vld [vmem:[#allocation2 + $0x150] sm:$0xff] }
 0xec7   :  { %12821 = vmatpush3.msra.mxu0 %v15463_v40  ;;  %12832 = vmatpush3.msra.mxu1 %v15348_v30 }
 0xec8   :  { %v13265_v19 = vpop.eup %13264  ;;  %12822 = vmatprep.subr.mxu0 %v13516_v21  ;;  %12833 = vmatprep.subr.mxu1 %v13516_v21 }
 0xec9   :  { %v8966_v23 = vmul.f32 %v13265_v19, %v8965_v4  ;;  %12823 = vmatpush3.msra.mxu0 %v15469_v35  ;;  %12834 = vmatpush3.msra.mxu1 %v15354_v44 }
 0xeca   :  { %12824 = vmatprep.subr.mxu0 %v13516_v21  ;;  %12835 = vmatprep.subr.mxu1 %v13516_v21 }
 0xecb   :  { %12825 = vmatpush3.msra.mxu0 %v15476_v45  ;;  %12826 = vmatprep.mubr.msk.f32.mxu0 %vm13517_vm11, %v13516_v21  ;;  %v15662_v30 = vadd.f32 %v8967_v6, %v8966_v23  ;;  %v10414_v63 = vld [vmem:[#allocation5 + $0x20] sm:$0xff] }
 0xecc   :  { %12836 = vmatpush3.msra.mxu1 %v15365_v61  ;;  %12837 = vmatprep.mubr.msk.f32.mxu1 %vm13517_vm11, %v13516_v21  ;;  %v10430_v44 = vadd.f32 %v10422_v24, %v10414_v63  ;;  %v10413_v61 = vld [vmem:[#allocation5 + $0x18] sm:$0xff] }
 0xecd   :  { %12827 = vmatmul.mubr.msk.f32.vlgmr.msra.gmra.mxu0 %vm417_vm10, %v15638_v37  ;;  %8972 = vst.msk [vmem:[#allocation6 + $0x18] sm:$0xff] %vm417_vm10, %v15662_v30  ;;  %12838 = vmatmul.mubr.msk.f32.vlgmr.msra.gmra.mxu1 %vm417_vm10, %v15662_v30 }
 0xece   :  { %12840 = vmatprep.subr.mxu0 %v13516_v21  ;;  %12851 = vmatprep.subr.mxu1 %v13516_v21  ;;  %10438 = vst.msk [vmem:[#allocation13 + $0x20] sm:$0xff] %vm417_vm10, %v10430_v44 }
 0xecf   :  { %12841 = vmatpush3.msra.mxu0 %v15494_v7  ;;  %12852 = vmatpush3.msra.mxu1 %v15379_v26 }
 0xed0   :  { %12842 = vmatprep.subr.mxu0 %v13516_v21  ;;  %12853 = vmatprep.subr.mxu1 %v13516_v21 }
 0xed1   :  { %12843 = vmatpush3.msra.mxu0 %v15500_v14  ;;  %12854 = vmatpush3.msra.mxu1 %v15385_v50 }
 0xed2   :  { %12844 = vmatprep.subr.mxu0 %v13516_v21  ;;  %12855 = vmatprep.subr.mxu1 %v13516_v21 }
 0xed3   :  { %12845 = vmatpush3.msra.mxu0 %v15506_v60  ;;  %12856 = vmatpush3.msra.mxu1 %v15391_v32  ;;  %v8973_v32 = vld [vmem:[#allocation2 + $0x28] sm:$0xff] }
 0xed4   :  { %12846 = vmatprep.subr.mxu0 %v13516_v21  ;;  %12857 = vmatprep.subr.mxu1 %v13516_v21  ;;  %v10421_v26 = vld [vmem:[#allocation6 + $0x18] sm:$0xff] }
 0xed5   :  { %12847 = vmatpush3.msra.mxu0 %v15512_v57  ;;  %12848 = vmatprep.mubr.msk.f32.mxu0 %vm13517_vm11, %v13516_v21  ;;  %v10429_v50 = vadd.f32 %v10421_v26, %v10413_v61  ;;  %v15738_v26 = vld [vmem:[#allocation12 + $0x78] sm:$0xff] }
 0xed6   :  { %12858 = vmatpush3.msra.mxu1 %v15399_v28  ;;  %12859 = vmatprep.mubr.msk.f32.mxu1 %vm13517_vm11, %v13516_v21 }
 0xed7   :  { %12849 = vmatmul.mubr.msk.f32.vlgmr.msra.gmra.mxu0 %vm417_vm10, %v15662_v30  ;;  %12860 = vmatmul.mubr.msk.f32.vlgmr.msra.gmra.mxu1 %vm417_vm10, %v15662_v30  ;;  %10437 = vst.msk [vmem:[#allocation13 + $0x18] sm:$0xff] %vm417_vm10, %v10429_v50  ;;  %v15744_v50 = vld [vmem:[#allocation12 + $0x70] sm:$0xff] }
 0xed8   :  { %12862 = vmatprep.subr.mxu0 %v13516_v21  ;;  %12873 = vmatprep.subr.mxu1 %v13516_v21 }
 0xed9   :  { %12863 = vmatpush3.msra.mxu0 %v15410_v53  ;;  %12874 = vmatpush3.msra.mxu1 %v15413_v11 }
 0xeda   :  { %12864 = vmatprep.subr.mxu0 %v13516_v21  ;;  %12875 = vmatprep.subr.mxu1 %v13516_v21 }
 0xedb   :  { %12865 = vmatpush3.msra.mxu0 %v15418_v15  ;;  %12876 = vmatpush3.msra.mxu1 %v15421_v9 }
 0xedc   :  { %12866 = vmatprep.subr.mxu0 %v13516_v21  ;;  %12877 = vmatprep.subr.mxu1 %v13516_v21 }
 0xedd   :  { %12867 = vmatpush3.msra.mxu0 %v15426_v0  ;;  %12878 = vmatpush3.msra.mxu1 %v15429_v5  ;;  %v8974_v5 = vld [vmem:[#allocation2 + $0x68] sm:$0xff] }
 0xede   :  { %12868 = vmatprep.subr.mxu0 %v13516_v21  ;;  %12879 = vmatprep.subr.mxu1 %v13516_v21 }
 0xedf   :  { %12869 = vmatpush3.msra.mxu0 %v15434_v42  ;;  %12880 = vmatpush3.msra.mxu1 %v15437_v47 }
 0xee0   :  { %12870 = vmatprep.mubr.msk.f32.mxu0 %vm13517_vm11, %v13516_v21  ;;  %12881 = vmatprep.mubr.msk.f32.mxu1 %vm13517_vm11, %v13516_v21 }
 0xee1   :  { %12884 = vmatprep.subr.mxu0 %v13516_v21  ;;  %12895 = vmatprep.subr.mxu1 %v13516_v21 }
 0xf84   :  { %v9048_v28 = vpop.f32.mrf.mxu0  ;;  %v9118_v53 = vpop.f32.mrf.mxu1 }
 0xf85   :  { %v9192_v11 = vadd.f32 %v9048_v28, %v8973_v32  ;;  %v9199_v42 = vadd.f32 %v9118_v53, %v8974_v5  ;;  %v15750_v28 = vld [vmem:[#allocation12 + $0x68] sm:$0xff] }
 0xf86   :  { %v12806_v15 = vpop.f32.mrf.mxu0  ;;  %v12817_v9 = vpop.f32.mrf.mxu1 }
 0xf87   :  { %v10850_v0 = vmul.f32 -1.442695, %v9192_v11  ;;  %v10851_v36 = vmul.f32 -1.442695, %v9199_v42  ;;  %v10423_v15 = vld [vmem:[#allocation6 + $0x28] sm:$0xff]  ;;  %v15782_v9 = vld [vmem:[#allocation12 + $0xb0] sm:$0xff] }
 0xf88   :  { %v15796_v42 = vld [vmem:[#allocation12 + $0xa0] sm:$0xff] }
 0xf89   :  { %13266 = vpow2.f32 %v10850_v0  ;;  %v10412_v0 = vld [vmem:[#allocation5 + $0x10] sm:$0xff] }
 0xf8d   :  { %v9188_v47 = vpop.f32.mrf.mxu0  ;;  %v9282_v48 = vpop.f32.mrf.mxu1 }
 0xf8e   :  { %v9426_v29 = vadd.f32 %v9282_v48, %v8976_v43  ;;  %v9189_v8 = vadd.f32 %v15724_v10, %v9188_v47  ;;  %v13388_v47 = vld [vmem:[#allocation12 + $0x10] sm:$0xff]  ;;  %v13390_v48 = vld [vmem:[#allocation12 + $0x8] sm:$0xff] }
 0xf8f   :  { %v12828_v56 = vpop.f32.mrf.mxu0  ;;  %v12839_v31 = vpop.f32.mrf.mxu1  ;;  %v13389_v43 = vld [vmem:[#allocation12 + $0x30] sm:$0xff] }
 0xf90   :  { %v10855_v2 = vmul.f32 -1.442695, %v9426_v29  ;;  %v13391_v29 = vld [vmem:[#allocation12 + $0x28] sm:$0xff]  ;;  %v13393_v56 = vld [vmem:[#allocation12 + $0x20] sm:$0xff]  ;;  %v9451_v31 = vld [vmem:[#allocation2 + $0x30] sm:$0xff] }
 0xf92   :  { %13268 = vpow2.f32 %v10855_v2 }
 0xf93   :  { %13270 = vpow2.f32 %v10851_v36  ;;  %v13392_v36 = vld [vmem:[#allocation12] sm:$0xff] }
 0xf96   :  { %v13267_v1 = vpop.eup %13266 }
 0xf97   :  { %v9196_v41 = vadd.f32 1.0, %v13267_v1  ;;  %v9352_v55 = vpop.f32.mrf.mxu0  ;;  %v9422_v51 = vpop.f32.mrf.mxu1 }
 0xf98   :  { %v9433_v17 = vadd.f32 %v9352_v55, %v8977_v3  ;;  %v9423_v39 = vadd.f32 %v15634_v52, %v9422_v51 }
 0xf99   :  { %13272 = vrcp.f32 %v9196_v41  ;;  %v12850_v25 = vpop.f32.mrf.mxu0  ;;  %v12861_v27 = vpop.f32.mrf.mxu1 }
 0xf9a   :  { %v10856_v22 = vmul.f32 -1.442695, %v9433_v17  ;;  %v9452_v17 = vld [vmem:[#allocation2 + $0x70] sm:$0xff] }
 0xf9c   :  { %13274 = vpow2.f32 %v10856_v22  ;;  %v9454_v22 = vld [vmem:[#allocation2 + $0xc8] sm:$0xff] }
 0xf9f   :  { %v13269_v38 = vpop.eup %13268 }
 0xfa0   :  { %v13271_v58 = vpop.eup %13270  ;;  %v9430_v49 = vadd.f32 1.0, %v13269_v38 }
 0xfa1   :  { %v9203_v12 = vadd.f32 1.0, %v13271_v58 }
 0xfa2   :  { %13276 = vrcp.f32 %v9430_v49 }
 0xfa3   :  { %13278 = vrcp.f32 %v9203_v12 }
 0xfa6   :  { %v13273_v62 = vpop.eup %13272 }
 0xfa7   :  { %v9206_v16 = vmul.f32 %v13273_v62, %v9189_v8 }
 0xfa9   :  { %v13275_v46 = vpop.eup %13274  ;;  %v9207_v13 = vadd.f32 %v9206_v16, %v8975_v20 }
 0xfaa   :  { %v9437_v33 = vadd.f32 1.0, %v13275_v46  ;;  %v9455_v46 = vld [vmem:[#allocation2 + $0x108] sm:$0xff] }
 0xfab   :  { %13280 = vtanh.f32 %v9207_v13 }
 0xfac   :  { %13282 = vrcp.f32 %v9437_v33 }
 0xfaf   :  { %v13277_v18 = vpop.eup %13276 }
 0xfb0   :  { %v9440_v34 = vmul.f32 %v13277_v18, %v9423_v39  ;;  %v13279_v19 = vpop.eup %13278 }
 0xfb1   :  { %v9209_v23 = vsub.f32 1.0, %v13279_v19  ;;  %v9211_v24 = vmul.f32 %v13279_v19, %v15638_v37 }
 0xfb2   :  { %v9441_v4 = vadd.f32 %v9440_v34, %v8978_v59 }
 0xfb4   :  { %13284 = vtanh.f32 %v9441_v4 }
 0xfb8   :  { %v13281_v6 = vpop.eup %13280 }
 0xfb9   :  { %v9210_v63 = vmul.f32 %v13281_v6, %v9209_v23  ;;  %v13283_v61 = vpop.eup %13282 }
 0xfba   :  { %v9443_v37 = vsub.f32 1.0, %v13283_v61  ;;  %v9445_v53 = vmul.f32 %v13283_v61, %v15662_v30 }
 0xfbb   :  { %v15729_v44 = vadd.f32 %v9211_v24, %v9210_v63 }
 0xfbd   :  { %9448 = vst.msk [vmem:[#allocation5 + $0x28] sm:$0xff] %vm417_vm10, %v15729_v44  ;;  %12871 = vmatmul.mubr.msk.f32.vlgmr.msra.gmra.mxu0 %vm417_vm10, %v15729_v44  ;;  %12882 = vmatmul.mubr.msk.f32.vlgmr.msra.gmra.mxu1 %vm417_vm10, %v15729_v44 }
 0xfbe   :  { %12885 = vmatpush3.msra.mxu0 %v15457_v54  ;;  %12896 = vmatpush3.msra.mxu1 %v15738_v26 }
 0xfbf   :  { %12886 = vmatprep.subr.mxu0 %v13516_v21  ;;  %12897 = vmatprep.subr.mxu1 %v13516_v21 }
 0xfc0   :  { %12887 = vmatpush3.msra.mxu0 %v15463_v40  ;;  %12898 = vmatpush3.msra.mxu1 %v15744_v50 }
 0xfc1   :  { %v13285_v32 = vpop.eup %13284  ;;  %12888 = vmatprep.subr.mxu0 %v13516_v21  ;;  %12899 = vmatprep.subr.mxu1 %v13516_v21 }
 0xfc2   :  { %v9444_v54 = vmul.f32 %v13285_v32, %v9443_v37  ;;  %12889 = vmatpush3.msra.mxu0 %v15469_v35  ;;  %12900 = vmatpush3.msra.mxu1 %v15750_v28  ;;  %v15761_v35 = vld [vmem:[#allocation12 + $0x60] sm:$0xff]  ;;  %v9453_v37 = vld [vmem:[#allocation2 + $0xb0] sm:$0xff] }
 0xfc3   :  { %12890 = vmatprep.subr.mxu0 %v13516_v21  ;;  %12901 = vmatprep.subr.mxu1 %v13516_v21 }
 0xfc4   :  { %12891 = vmatpush3.msra.mxu0 %v15476_v45  ;;  %12892 = vmatprep.mubr.msk.f32.mxu0 %vm13517_vm11, %v13516_v21  ;;  %v15759_v40 = vadd.f32 %v9445_v53, %v9444_v54  ;;  %v10415_v11 = vld [vmem:[#allocation5 + $0x28] sm:$0xff]  ;;  %v15776_v45 = vld [vmem:[#allocation12 + $0xb8] sm:$0xff] }
 0xfc5   :  { %12902 = vmatpush3.msra.mxu1 %v15761_v35  ;;  %12903 = vmatprep.mubr.msk.f32.mxu1 %vm13517_vm11, %v13516_v21  ;;  %v10431_v30 = vadd.f32 %v10423_v15, %v10415_v11 }
 0xfc6   :  { %12893 = vmatmul.mubr.msk.f32.vlgmr.msra.gmra.mxu0 %vm417_vm10, %v15729_v44  ;;  %9450 = vst.msk [vmem:[#allocation6 + $0x10] sm:$0xff] %vm417_vm10, %v15759_v40  ;;  %12904 = vmatmul.mubr.msk.f32.vlgmr.msra.gmra.mxu1 %vm417_vm10, %v15759_v40 }
 0xfc7   :  { %12906 = vmatprep.subr.mxu0 %v13516_v21  ;;  %12917 = vmatprep.subr.mxu1 %v13516_v21  ;;  %10439 = vst.msk [vmem:[#allocation13 + $0x28] sm:$0xff] %vm417_vm10, %v10431_v30 }
 0xfc8   :  { %12907 = vmatpush3.msra.mxu0 %v15494_v7  ;;  %12918 = vmatpush3.msra.mxu1 %v15776_v45  ;;  %v15788_v7 = vld [vmem:[#allocation12 + $0xa8] sm:$0xff] }
 0xfc9   :  { %12908 = vmatprep.subr.mxu0 %v13516_v21  ;;  %12919 = vmatprep.subr.mxu1 %v13516_v21 }
 0xfca   :  { %12909 = vmatpush3.msra.mxu0 %v15500_v14  ;;  %12920 = vmatpush3.msra.mxu1 %v15782_v9 }
 0xfcb   :  { %12910 = vmatprep.subr.mxu0 %v13516_v21  ;;  %12921 = vmatprep.subr.mxu1 %v13516_v21 }
 0xfcc   :  { %12911 = vmatpush3.msra.mxu0 %v15506_v60  ;;  %12922 = vmatpush3.msra.mxu1 %v15788_v7  ;;  %v13386_v60 = vld [vmem:[#allocation12 + $0x18] sm:$0xff] }
 0xfcd   :  { %12912 = vmatprep.subr.mxu0 %v13516_v21  ;;  %12923 = vmatprep.subr.mxu1 %v13516_v21  ;;  %v10420_v14 = vld [vmem:[#allocation6 + $0x10] sm:$0xff] }
 0xfce   :  { %12913 = vmatpush3.msra.mxu0 %v15512_v57  ;;  %12914 = vmatprep.mubr.msk.f32.mxu0 %vm13517_vm11, %v13516_v21  ;;  %v10428_v5 = vadd.f32 %v10420_v14, %v10412_v0  ;;  %v13387_v57 = vld [vmem:[#allocation12 + $0x38] sm:$0xff]  ;;  %v9456_v0 = vld [vmem:[#allocation2 + $0x148] sm:$0xff] }
 0xfcf   :  { %12924 = vmatpush3.msra.mxu1 %v15796_v42  ;;  %12925 = vmatprep.mubr.msk.f32.mxu1 %vm13517_vm11, %v13516_v21 }
 0xfd0   :  { %12915 = vmatmul.mubr.msk.f32.vlgmr.msra.gmra.mxu0 %vm417_vm10, %v15759_v40  ;;  %12926 = vmatmul.mubr.msk.f32.vlgmr.msra.gmra.mxu1 %vm417_vm10, %v15759_v40  ;;  %10436 = vst.msk [vmem:[#allocation13 + $0x10] sm:$0xff] %vm417_vm10, %v10428_v5 }
 0xfd1   :  { %12928 = vmatprep.subr.mxu0 %v13516_v21  ;;  %12939 = vmatprep.subr.mxu1 %v13516_v21 }
 0xfd2   :  { %12929 = vmatpush3.msra.mxu0 %v13386_v60  ;;  %12940 = vmatpush3.msra.mxu1 %v13387_v57 }
 0xfd3   :  { %12930 = vmatprep.subr.mxu0 %v13516_v21  ;;  %12941 = vmatprep.subr.mxu1 %v13516_v21 }
 0xfd4   :  { %12931 = vmatpush3.msra.mxu0 %v13388_v47  ;;  %12942 = vmatpush3.msra.mxu1 %v13389_v43 }
 0xfd5   :  { %12932 = vmatprep.subr.mxu0 %v13516_v21  ;;  %12943 = vmatprep.subr.mxu1 %v13516_v21 }
 0xfd6   :  { %12933 = vmatpush3.msra.mxu0 %v13390_v48  ;;  %12944 = vmatpush3.msra.mxu1 %v13391_v29 }
 0xfd7   :  { %12934 = vmatprep.subr.mxu0 %v13516_v21  ;;  %12945 = vmatprep.subr.mxu1 %v13516_v21 }
 0xfd8   :  { %12935 = vmatpush3.msra.mxu0 %v13392_v36  ;;  %12946 = vmatpush3.msra.mxu1 %v13393_v56  ;;  %v13394_v36 = vld [vmem:[#allocation12 + $0x58] sm:$0xff]  ;;  %v13395_v56 = vld [vmem:[#allocation12 + $0x50] sm:$0xff] }
 0xfd9   :  { %12936 = vmatprep.mubr.msk.f32.mxu0 %vm13517_vm11, %v13516_v21  ;;  %12947 = vmatprep.mubr.msk.f32.mxu1 %vm13517_vm11, %v13516_v21 }
 0xfda   :  { %12950 = vmatprep.subr.mxu0 %v13516_v21  ;;  %12961 = vmatprep.subr.mxu1 %v13516_v21 }
0x107d   :  { %v9526_v2 = vpop.f32.mrf.mxu0  ;;  %v9596_v1 = vpop.f32.mrf.mxu1 }
0x107e   :  { %v9670_v41 = vadd.f32 %v9526_v2, %v9451_v31  ;;  %v9677_v25 = vadd.f32 %v9596_v1, %v9452_v17  ;;  %v13396_v1 = vld [vmem:[#allocation12 + $0x48] sm:$0xff] }
0x107f   :  { %v12872_v3 = vpop.f32.mrf.mxu0  ;;  %v12883_v55 = vpop.f32.mrf.mxu1 }
0x1080   :  { %v10860_v51 = vmul.f32 -1.442695, %v9670_v41  ;;  %v10861_v49 = vmul.f32 -1.442695, %v9677_v25  ;;  %v13397_v41 = vld [vmem:[#allocation12 + $0x40] sm:$0xff]  ;;  %v10424_v55 = vld [vmem:[#allocation6 + $0x30] sm:$0xff] }
0x1081   :  { %v13401_v25 = vld [vmem:[#allocation12 + $0x80] sm:$0xff] }
0x1082   :  { %13286 = vpow2.f32 %v10860_v51  ;;  %v13400_v51 = vld [vmem:[#allocation12 + $0x88] sm:$0xff] }
0x1086   :  { %v9666_v27 = vpop.f32.mrf.mxu0  ;;  %v9760_v38 = vpop.f32.mrf.mxu1 }
0x1087   :  { %v9904_v58 = vadd.f32 %v9760_v38, %v9454_v22  ;;  %v9667_v63 = vadd.f32 %v15724_v10, %v9666_v27 }
0x1088   :  { %v12894_v12 = vpop.f32.mrf.mxu0  ;;  %v12905_v8 = vpop.f32.mrf.mxu1 }
0x1089   :  { %v10865_v62 = vmul.f32 -1.442695, %v9904_v58 }
0x108b   :  { %13288 = vpow2.f32 %v10865_v62 }
0x108c   :  { %13290 = vpow2.f32 %v10861_v49 }
0x108f   :  { %v13287_v16 = vpop.eup %13286 }
0x1090   :  { %v9674_v20 = vadd.f32 1.0, %v13287_v16  ;;  %v9830_v13 = vpop.f32.mrf.mxu0  ;;  %v9900_v33 = vpop.f32.mrf.mxu1 }
0x1091   :  { %v9911_v39 = vadd.f32 %v9830_v13, %v9455_v46  ;;  %v9901_v11 = vadd.f32 %v15634_v52, %v9900_v33 }
0x1092   :  { %13292 = vrcp.f32 %v9674_v20  ;;  %v12916_v18 = vpop.f32.mrf.mxu0  ;;  %v12927_v34 = vpop.f32.mrf.mxu1 }
0x1093   :  { %v10866_v59 = vmul.f32 -1.442695, %v9911_v39 }
0x1095   :  { %13294 = vpow2.f32 %v10866_v59  ;;  %v9933_v59 = vld [vmem:[#allocation2 + $0x100] sm:$0xff] }
0x1098   :  { %v13289_v4 = vpop.eup %13288 }
0x1099   :  { %v13291_v19 = vpop.eup %13290  ;;  %v9908_v23 = vadd.f32 1.0, %v13289_v4 }
0x109a   :  { %v9681_v6 = vadd.f32 1.0, %v13291_v19 }
0x109b   :  { %13296 = vrcp.f32 %v9908_v23 }
0x109c   :  { %13298 = vrcp.f32 %v9681_v6 }
0x109f   :  { %v13293_v24 = vpop.eup %13292 }
0x10a0   :  { %v9684_v61 = vmul.f32 %v13293_v24, %v9667_v63 }
0x10a2   :  { %v13295_v32 = vpop.eup %13294  ;;  %v9685_v54 = vadd.f32 %v9684_v61, %v9453_v37 }
0x10a3   :  { %v9915_v53 = vadd.f32 1.0, %v13295_v32 }
0x10a4   :  { %13300 = vtanh.f32 %v9685_v54 }
0x10a5   :  { %13302 = vrcp.f32 %v9915_v53 }
0x10a8   :  { %v13297_v15 = vpop.eup %13296 }
0x10a9   :  { %v9918_v30 = vmul.f32 %v13297_v15, %v9901_v11  ;;  %v13299_v5 = vpop.eup %13298 }
0x10aa   :  { %v9687_v60 = vsub.f32 1.0, %v13299_v5  ;;  %v9689_v43 = vmul.f32 %v13299_v5, %v15729_v44 }
0x10ab   :  { %v9919_v14 = vadd.f32 %v9918_v30, %v9456_v0  ;;  %v9931_v30 = vld [vmem:[#allocation2 + $0xb8] sm:$0xff] }
0x10ad   :  { %13304 = vtanh.f32 %v9919_v14 }
0x10b1   :  { %v13301_v57 = vpop.eup %13300 }
0x10b2   :  { %v9688_v47 = vmul.f32 %v13301_v57, %v9687_v60  ;;  %v13303_v29 = vpop.eup %13302 }
0x10b3   :  { %v9921_v44 = vsub.f32 1.0, %v13303_v29 }
0x10b4   :  { %v15823_v48 = vadd.f32 %v9689_v43, %v9688_v47  ;;  %v9934_v43 = vld [vmem:[#allocation2 + $0x140] sm:$0xff] }
0x10b6   :  { %9926 = vst.msk [vmem:[#allocation5 + $0x30] sm:$0xff] %vm417_vm10, %v15823_v48  ;;  %12937 = vmatmul.mubr.msk.f32.vlgmr.msra.gmra.mxu0 %vm417_vm10, %v15823_v48  ;;  %12948 = vmatmul.mubr.msk.f32.vlgmr.msra.gmra.mxu1 %vm417_vm10, %v15823_v48 }
0x10b7   :  { %12951 = vmatpush3.msra.mxu0 %v13394_v36  ;;  %12962 = vmatpush3.msra.mxu1 %v15738_v26  ;;  %v9923_v26 = vmul.f32 %v13303_v29, %v15759_v40  ;;  %v13398_v40 = vld [vmem:[#allocation12 + $0x98] sm:$0xff] }
0x10b8   :  { %12952 = vmatprep.subr.mxu0 %v13516_v21  ;;  %12963 = vmatprep.subr.mxu1 %v13516_v21 }
0x10b9   :  { %12953 = vmatpush3.msra.mxu0 %v13395_v56  ;;  %12964 = vmatpush3.msra.mxu1 %v15744_v50 }
0x10ba   :  { %v13305_v31 = vpop.eup %13304  ;;  %12954 = vmatprep.subr.mxu0 %v13516_v21  ;;  %12965 = vmatprep.subr.mxu1 %v13516_v21 }
0x10bb   :  { %v9922_v2 = vmul.f32 %v13305_v31, %v9921_v44  ;;  %12955 = vmatpush3.msra.mxu0 %v13396_v1  ;;  %12966 = vmatpush3.msra.mxu1 %v15750_v28 }
0x10bc   :  { %12956 = vmatprep.subr.mxu0 %v13516_v21  ;;  %12967 = vmatprep.subr.mxu1 %v13516_v21 }
0x10bd   :  { %12957 = vmatpush3.msra.mxu0 %v13397_v41  ;;  %12958 = vmatprep.mubr.msk.f32.mxu0 %vm13517_vm11, %v13516_v21  ;;  %v15843_v50 = vadd.f32 %v9923_v26, %v9922_v2  ;;  %v10416_v3 = vld [vmem:[#allocation5 + $0x30] sm:$0xff] }
0x10be   :  { %12968 = vmatpush3.msra.mxu1 %v15761_v35  ;;  %12969 = vmatprep.mubr.msk.f32.mxu1 %vm13517_vm11, %v13516_v21  ;;  %v10432_v28 = vadd.f32 %v10424_v55, %v10416_v3  ;;  %v13399_v35 = vld [vmem:[#allocation12 + $0x90] sm:$0xff] }
0x10bf   :  { %12959 = vmatmul.mubr.msk.f32.vlgmr.msra.gmra.mxu0 %vm417_vm10, %v15823_v48  ;;  %9928 = vst.msk [vmem:[#allocation6 + $0x8] sm:$0xff] %vm417_vm10, %v15843_v50  ;;  %12970 = vmatmul.mubr.msk.f32.vlgmr.msra.gmra.mxu1 %vm417_vm10, %v15843_v50 }
0x10c0   :  { %12972 = vmatprep.subr.mxu0 %v13516_v21  ;;  %12983 = vmatprep.subr.mxu1 %v13516_v21  ;;  %10440 = vst.msk [vmem:[#allocation13 + $0x30] sm:$0xff] %vm417_vm10, %v10432_v28 }
0x10c1   :  { %12973 = vmatpush3.msra.mxu0 %v13398_v40  ;;  %12984 = vmatpush3.msra.mxu1 %v15776_v45  ;;  %v10411_v45 = vld [vmem:[#allocation5 + $0x8] sm:$0xff]  ;;  %v10425_v40 = vld [vmem:[#allocation6 + $0x38] sm:$0xff] }
0x10c2   :  { %12974 = vmatprep.subr.mxu0 %v13516_v21  ;;  %12985 = vmatprep.subr.mxu1 %v13516_v21 }
0x10c3   :  { %12975 = vmatpush3.msra.mxu0 %v13399_v35  ;;  %12986 = vmatpush3.msra.mxu1 %v15782_v9 }
0x10c4   :  { %12976 = vmatprep.subr.mxu0 %v13516_v21  ;;  %12987 = vmatprep.subr.mxu1 %v13516_v21 }
0x10c5   :  { %12977 = vmatpush3.msra.mxu0 %v13400_v51  ;;  %12988 = vmatpush3.msra.mxu1 %v15788_v7  ;;  %v9929_v7 = vld [vmem:[#allocation2 + $0x38] sm:$0xff] }
0x10c6   :  { %12978 = vmatprep.subr.mxu0 %v13516_v21  ;;  %12989 = vmatprep.subr.mxu1 %v13516_v21  ;;  %v10419_v17 = vld [vmem:[#allocation6 + $0x8] sm:$0xff] }
0x10c7   :  { %12979 = vmatpush3.msra.mxu0 %v13401_v25  ;;  %12980 = vmatprep.mubr.msk.f32.mxu0 %vm13517_vm11, %v13516_v21  ;;  %v10427_v9 = vadd.f32 %v10419_v17, %v10411_v45 }
0x10c8   :  { %12990 = vmatpush3.msra.mxu1 %v15796_v42  ;;  %12991 = vmatprep.mubr.msk.f32.mxu1 %vm13517_vm11, %v13516_v21  ;;  %v9930_v42 = vld [vmem:[#allocation2 + $0x78] sm:$0xff]  ;;  %v9932_v21 = vld [vmem:[#allocation2 + $0xc0] sm:$0xff] }
0x10c9   :  { %12981 = vmatmul.mubr.msk.f32.vlgmr.msra.gmra.mxu0 %vm417_vm10, %v15843_v50  ;;  %12992 = vmatmul.mubr.msk.f32.vlgmr.msra.gmra.mxu1 %vm417_vm10, %v15843_v50  ;;  %10435 = vst.msk [vmem:[#allocation13 + $0x8] sm:$0xff] %vm417_vm10, %v10427_v9 }
0x1176   :  { %v10004_v27 = vpop.f32.mrf.mxu0  ;;  %v10074_v22 = vpop.f32.mrf.mxu1 }
0x1177   :  { %v10148_v38 = vadd.f32 %v10004_v27, %v9929_v7  ;;  %v10155_v8 = vadd.f32 %v10074_v22, %v9930_v42 }
0x1178   :  { %v12938_v58 = vpop.f32.mrf.mxu0  ;;  %v12949_v49 = vpop.f32.mrf.mxu1 }
0x1179   :  { %v10870_v12 = vmul.f32 -1.442695, %v10148_v38  ;;  %v10871_v46 = vmul.f32 -1.442695, %v10155_v8 }
0x117b   :  { %13306 = vpow2.f32 %v10870_v12 }
0x117f   :  { %v10144_v62 = vpop.f32.mrf.mxu0  ;;  %v10238_v16 = vpop.f32.mrf.mxu1 }
0x1180   :  { %v10382_v20 = vadd.f32 %v10238_v16, %v9932_v21  ;;  %v10145_v53 = vadd.f32 %v15724_v10, %v10144_v62 }
0x1181   :  { %v12960_v13 = vpop.f32.mrf.mxu0  ;;  %v12971_v33 = vpop.f32.mrf.mxu1 }
0x1182   :  { %v10875_v39 = vmul.f32 -1.442695, %v10382_v20 }
0x1184   :  { %13308 = vpow2.f32 %v10875_v39 }
0x1185   :  { %13310 = vpow2.f32 %v10871_v46 }
0x1188   :  { %v13307_v18 = vpop.eup %13306 }
0x1189   :  { %v10152_v34 = vadd.f32 1.0, %v13307_v18  ;;  %v10308_v4 = vpop.f32.mrf.mxu0  ;;  %v10378_v19 = vpop.f32.mrf.mxu1 }
0x118a   :  { %v10389_v23 = vadd.f32 %v10308_v4, %v9933_v59  ;;  %v10379_v60 = vadd.f32 %v15634_v52, %v10378_v19 }
0x118b   :  { %13312 = vrcp.f32 %v10152_v34  ;;  %v12982_v6 = vpop.f32.mrf.mxu0  ;;  %v12993_v63 = vpop.f32.mrf.mxu1 }
0x118c   :  { %v10876_v24 = vmul.f32 -1.442695, %v10389_v23 }
0x118e   :  { %13314 = vpow2.f32 %v10876_v24 }
0x1191   :  { %v13309_v61 = vpop.eup %13308 }
0x1192   :  { %v13311_v37 = vpop.eup %13310  ;;  %v10386_v32 = vadd.f32 1.0, %v13309_v61 }
0x1193   :  { %v10159_v54 = vadd.f32 1.0, %v13311_v37 }
0x1194   :  { %13316 = vrcp.f32 %v10386_v32 }
0x1195   :  { %13318 = vrcp.f32 %v10159_v54 }
0x1198   :  { %v13313_v11 = vpop.eup %13312 }
0x1199   :  { %v10162_v15 = vmul.f32 %v13313_v11, %v10145_v53 }
0x119b   :  { %v13315_v0 = vpop.eup %13314  ;;  %v10163_v14 = vadd.f32 %v10162_v15, %v9931_v30 }
0x119c   :  { %v10393_v5 = vadd.f32 1.0, %v13315_v0 }
0x119d   :  { %13320 = vtanh.f32 %v10163_v14 }
0x119e   :  { %13322 = vrcp.f32 %v10393_v5 }
0x11a1   :  { %v13317_v57 = vpop.eup %13316 }
0x11a2   :  { %v10396_v47 = vmul.f32 %v13317_v57, %v10379_v60  ;;  %v13319_v36 = vpop.eup %13318 }
0x11a3   :  { %v10165_v44 = vsub.f32 1.0, %v13319_v36  ;;  %v10167_v10 = vmul.f32 %v13319_v36, %v15823_v48 }
0x11a4   :  { %v10397_v29 = vadd.f32 %v10396_v47, %v9934_v43 }
0x11a6   :  { %13324 = vtanh.f32 %v10397_v29 }
0x11aa   :  { %v13321_v56 = vpop.eup %13320 }
0x11ab   :  { %v10166_v31 = vmul.f32 %v13321_v56, %v10165_v44  ;;  %v13323_v1 = vpop.eup %13322 }
0x11ac   :  { %v10399_v26 = vsub.f32 1.0, %v13323_v1  ;;  %v10401_v41 = vmul.f32 %v13323_v1, %v15843_v50 }
0x11ad   :  { %v10168_v2 = vadd.f32 %v10167_v10, %v10166_v31 }
0x11af   :  { %10404 = vst.msk [vmem:[#allocation5 + $0x38] sm:$0xff] %vm417_vm10, %v10168_v2  ;;  %10407 = vst.msk [vmem:[#allocation14 + $0x10] sm:$0xff] %vm417_vm10, %v10168_v2 }
0x11b3   :  { %v13325_v52 = vpop.eup %13324 }
0x11b4   :  { %v10400_v3 = vmul.f32 %v13325_v52, %v10399_v26 }
0x11b6   :  { %v10402_v55 = vadd.f32 %v10401_v41, %v10400_v3  ;;  %v10417_v28 = vld [vmem:[#allocation5 + $0x38] sm:$0xff] }
0x11b7   :  { %v10433_v35 = vadd.f32 %v10425_v40, %v10417_v28 }
0x11b8   :  { %10405 = vst.msk [vmem:[#allocation6] sm:$0xff] %vm417_vm10, %v10402_v55  ;;  %10409 = vst.msk [vmem:[#allocation14 + $0x18] sm:$0xff] %vm417_vm10, %v10402_v55 }
0x11b9   :  { %10441 = vst.msk [vmem:[#allocation13 + $0x38] sm:$0xff] %vm417_vm10, %v10433_v35 }
0x11ba   :  { %13473 = shalt.err (!%p13470_p5)
}
0x11bb   :  { %10465 = dma.vmem_to_hbm [thread:$0]  %s10460_s1, 512, %s15910_s12, [#allocation15], %s13512_s26, %s13512_s26, %s13513_s27   ;;  %v10410_v48 = vld [vmem:[#allocation5] sm:$0xff] }
0x11bc   :  { %s13519_s3 = smov [#allocation13]  }
0x11bd   :  { %s10447_s15 = sshll.u32 %s13519_s3, 4  ;;  %s10448_s15 = int_to_ptr.vmem [resolvable:$true] %s10447_s15 }
0x11be   :  { %s13482_s2 = scalar_lea.vmem %s10448_s15, 1024  ;;  %p13487_p7 = scmp.lt.s32.totalorder %s10448_s15, %s10448_s15 }
0x11bf   :  { %v10418_v50 = vld [vmem:[#allocation6] sm:$0xff]  ;;  %p13483_p6 = scmp.ne.s32.totalorder %s10448_s15, %s13482_s2  ;;  %p13488_p8 = scmp.lt.s32.totalorder %s13482_s2, %s13482_s2 }
0x11c0   :  { %v10426_v51 = vadd.f32 %v10418_v50, %v10410_v48 }
0x11c1   :  { %p13489_p9 = por %p13488_p8, %p13487_p7 }
0x11c2   :  { %10434 = vst.msk [vmem:[#allocation13] sm:$0xff] %vm417_vm10, %v10426_v51 }
0x11c3   :  { %p13490_p10 = pnand %p13489_p9, %p13483_p6 }
0x11c5   :  { %13493 = shalt.err (!%p13490_p10)
}
0x11c6   :  { %10453 = dma.vmem_to_hbm [thread:$0]  %s10448_s15, 1024, %s15909_s11, [#allocation9], %s13512_s26, %s13512_s26, %s13513_s27  }
0x11c7   :  { %13506 = dma.done.wait [#allocation9], 1024  }
0x11c8   :  { %13507 = vsyncadd [#allocation9], 4294966272 }
0x11c9   :  { %13508 = dma.done.wait [#allocation15], 512  }
0x11ca   :  { %13509 = vsyncadd [#allocation15], 4294966784 }
0x11cb   :  { %10472 = vsyncpa [#allocation8], 1 }
0x11cc   :  { %10473 = vsyncpa [#allocation11], 1 }
0x11cd   :  { %10474 = vsyncpa [#allocation9], 1 }
0x11ce   :  { %10475 = vsyncpa [#allocation15], 1 }

</bundles_post_ra>
